<compile_context>
chip_gen: v6e
topology: v6e:2x2x1
jax: 0.10.0
libtpu: 0.0.40
codegen_flags: <defaults>
</compile_context>

<pallas_src>
import functools

import jax
import jax.numpy as jnp
from jax import lax
from jax.experimental import pallas as pl
from jax.experimental.pallas import tpu as pltpu

# ----------------------------- hyperparameters ------------------------------
EPSILON = 0.03
PMP_LR = EPSILON / 2.0          # args.epsilon / 2.0
CONST = 0.01                    # regularization (also SGD weight decay)
MOMENTUM = 0.9
MAX_INNER_ITE = 2
MAX_OUTER_ITE = 2

HID = 512                       # hidden (feature) dim of the static model
H1, H2 = 384, 256               # AutoEncoder(dims=[512, 384, 256])
C1 = 8                          # conv1 output channels of the static model
NUM_CLASSES = 10

VMEM_LIMIT = 32 * 1024 * 1024   # safe on v5e/v6e (128 MiB) and v7x (64 MiB)


# ------------------------------- small helpers ------------------------------
def _round_up(x, m):
    return (x + m - 1) // m * m


def _pick_tile(dim, unit, cap):
    """Tile (multiple of `unit`, <= cap) and the padded dim it divides."""
    r = _round_up(dim, unit)
    if r <= cap:
        return r, r
    return cap, _round_up(dim, cap)


def _pad2(x, rows, cols):
    r, c = x.shape
    if r == rows and c == cols:
        return x
    return jnp.pad(x, ((0, rows - r), (0, cols - c)))


# ---------------- tiled matmul + fused bias / ReLU epilogue (forward) --------
def _mm_nn_kernel(a_ref, b_ref, bias_ref, o_ref, acc_ref, *, act):
    @pl.when(pl.program_id(2) == 0)
    def _():
        acc_ref[...] = jnp.zeros_like(acc_ref)

    acc_ref[...] += jnp.dot(a_ref[...], b_ref[...],
                            preferred_element_type=jnp.float32)

    @pl.when(pl.program_id(2) == pl.num_programs(2) - 1)
    def _():
        y = acc_ref[...] + bias_ref[...]
        if act == 'relu':
            y = jnp.maximum(y, 0.0)
        o_ref[...] = y


def _mm_nn(a, w, bias, act):
    M, K = a.shape
    _, N = w.shape
    tm, Mp = _pick_tile(M, 8, 256)
    tn, Np = _pick_tile(N, 128, 256)
    tk, Kp = _pick_tile(K, 128, 1024)
    a_p = _pad2(a.astype(jnp.float32), Mp, Kp)
    w_p = _pad2(w.astype(jnp.float32), Kp, Np)
    b_p = jnp.pad(bias.astype(jnp.float32), (0, Np - N)).reshape(1, Np)
    out = pl.pallas_call(
        functools.partial(_mm_nn_kernel, act=act),
        out_shape=jax.ShapeDtypeStruct((Mp, Np), jnp.float32),
        grid=(Mp // tm, Np // tn, Kp // tk),
        in_specs=[pl.BlockSpec((tm, tk), lambda i, j, k: (i, k)),
                  pl.BlockSpec((tk, tn), lambda i, j, k: (k, j)),
                  pl.BlockSpec((1, tn), lambda i, j, k: (0, j))],
        out_specs=pl.BlockSpec((tm, tn), lambda i, j, k: (i, j)),
        scratch_shapes=[pltpu.VMEM((tm, tn), jnp.float32)],
        compiler_params=pltpu.CompilerParams(
            dimension_semantics=("parallel", "parallel", "arbitrary"),
            vmem_limit_bytes=VMEM_LIMIT),
        cost_estimate=pl.CostEstimate(
            flops=2 * Mp * Np * Kp, transcendentals=0,
            bytes_accessed=4 * (Mp * Kp + Kp * Np + Mp * Np)),
    )(a_p, w_p, b_p)
    if Mp != M or Np != N:
        out = out[:M, :N]
    return out


# -------- tiled A @ B^T (backward dX = g @ W^T, no materialized transpose) ---
def _mm_nt_kernel(g_ref, w_ref, o_ref, acc_ref):
    @pl.when(pl.program_id(2) == 0)
    def _():
        acc_ref[...] = jnp.zeros_like(acc_ref)

    acc_ref[...] += lax.dot_general(
        g_ref[...], w_ref[...], (((1,), (1,)), ((), ())),
        preferred_element_type=jnp.float32)

    @pl.when(pl.program_id(2) == pl.num_programs(2) - 1)
    def _():
        o_ref[...] = acc_ref[...]


def _mm_nt(g, w):
    """(M,N) @ (K,N)^T -> (M,K), contraction on the MXU (no HBM transpose)."""
    M, N = g.shape
    K, _ = w.shape
    tm, Mp = _pick_tile(M, 8, 256)
    tk, Kp = _pick_tile(K, 128, 256)
    tn, Np = _pick_tile(N, 128, 1024)
    g_p = _pad2(g.astype(jnp.float32), Mp, Np)
    w_p = _pad2(w.astype(jnp.float32), Kp, Np)
    out = pl.pallas_call(
        _mm_nt_kernel,
        out_shape=jax.ShapeDtypeStruct((Mp, Kp), jnp.float32),
        grid=(Mp // tm, Kp // tk, Np // tn),
        in_specs=[pl.BlockSpec((tm, tn), lambda i, j, k: (i, k)),
                  pl.BlockSpec((tk, tn), lambda i, j, k: (j, k))],
        out_specs=pl.BlockSpec((tm, tk), lambda i, j, k: (i, j)),
        scratch_shapes=[pltpu.VMEM((tm, tk), jnp.float32)],
        compiler_params=pltpu.CompilerParams(
            dimension_semantics=("parallel", "parallel", "arbitrary"),
            vmem_limit_bytes=VMEM_LIMIT),
        cost_estimate=pl.CostEstimate(
            flops=2 * Mp * Kp * Np, transcendentals=0,
            bytes_accessed=4 * (Mp * Np + Kp * Np + Mp * Kp)),
    )(g_p, w_p)
    if Mp != M or Kp != K:
        out = out[:M, :K]
    return out


@functools.partial(jax.custom_vjp, nondiff_argnums=(3,))
def matmul_bias_act(a, w, b, act):
    """act(a @ w + b): Pallas forward, Pallas backward for the input grad."""
    return _mm_nn(a, w, b, act)


def _mba_fwd(a, w, b, act):
    y = _mm_nn(a, w, b, act)
    return y, (a, w, y)


def _mba_bwd(act, res, g):
    a, w, y = res
    if act == 'relu':
        g = jnp.where(y > 0.0, g, 0.0)
    da = _mm_nt(g, w)                      # g @ w.T on the MXU
    # clc_dyn only differentiates wrt controls / activations; the weight and
    # bias cotangents below are returned for completeness and are DCE'd.
    dw = jnp.einsum('mk,mn->kn', a, g)
    db = jnp.sum(g, axis=0)
    return da, dw, db


matmul_bias_act.defvjp(_mba_fwd, _mba_bwd)


# -------------- fused hidden-space autoencoder (4 dense layers) --------------
def _ae_end_fwd_kernel(h_ref, w1_ref, b1_ref, w2_ref, b2_ref, w3_ref, b3_ref,
                       w4_ref, b4_ref, out_ref, z1_ref, z2_ref, z3_ref):
    h = h_ref[...]
    z1 = jnp.maximum(jnp.dot(h, w1_ref[...],
                             preferred_element_type=jnp.float32) + b1_ref[...], 0.0)
    z2 = jnp.maximum(jnp.dot(z1, w2_ref[...],
                             preferred_element_type=jnp.float32) + b2_ref[...], 0.0)
    z3 = jnp.maximum(jnp.dot(z2, w3_ref[...],
                             preferred_element_type=jnp.float32) + b3_ref[...], 0.0)
    out_ref[...] = jnp.dot(z3, w4_ref[...],
                           preferred_element_type=jnp.float32) + b4_ref[...]
    z1_ref[...] = z1
    z2_ref[...] = z2
    z3_ref[...] = z3


def _ae_end_bwd_kernel(g_ref, z1_ref, z2_ref, z3_ref,
                       w1_ref, w2_ref, w3_ref, w4_ref,
                       dh_ref, g1_ref, g2_ref, g3_ref):
    def mm_nt(x, w):                                   # x @ w.T on the MXU
        return lax.dot_general(x, w, (((1,), (1,)), ((), ())),
                               preferred_element_type=jnp.float32)

    g4 = g_ref[...]
    g3 = jnp.where(z3_ref[...] > 0.0, mm_nt(g4, w4_ref[...]), 0.0)
    g2 = jnp.where(z2_ref[...] > 0.0, mm_nt(g3, w3_ref[...]), 0.0)
    g1 = jnp.where(z1_ref[...] > 0.0, mm_nt(g2, w2_ref[...]), 0.0)
    dh_ref[...] = mm_nt(g1, w1_ref[...])
    g1_ref[...] = g1
    g2_ref[...] = g2
    g3_ref[...] = g3


def _ae_end_fwd_call(h, w1, b1, w2, b2, w3, b3, w4, b4):
    B = h.shape[0]
    tb, Bp = _pick_tile(B, 8, 256)
    h_p = h if Bp == B else jnp.pad(h, ((0, Bp - B), (0, 0)))
    b1r, b2r, b3r, b4r = (b.reshape(1, -1) for b in (b1, b2, b3, b4))
    full = lambda x: pl.BlockSpec(x.shape, lambda i: (0, 0))
    row = lambda d: pl.BlockSpec((tb, d), lambda i: (i, 0))
    out, z1, z2, z3 = pl.pallas_call(
        _ae_end_fwd_kernel,
        out_shape=(jax.ShapeDtypeStruct((Bp, HID), jnp.float32),
                   jax.ShapeDtypeStruct((Bp, H1), jnp.float32),
                   jax.ShapeDtypeStruct((Bp, H2), jnp.float32),
                   jax.ShapeDtypeStruct((Bp, H1), jnp.float32)),
        grid=(Bp // tb,),
        in_specs=[row(HID),
                  full(w1), full(b1r), full(w2), full(b2r),
                  full(w3), full(b3r), full(w4), full(b4r)],
        out_specs=(row(HID), row(H1), row(H2), row(H1)),
        compiler_params=pltpu.CompilerParams(
            dimension_semantics=("parallel",),
            vmem_limit_bytes=VMEM_LIMIT),
        cost_estimate=pl.CostEstimate(
            flops=4 * Bp * (HID * H1 + H1 * H2), transcendentals=0,
            bytes_accessed=4 * (2 * H1 * (HID + H2)
                                + Bp * (2 * HID + 2 * H1 + H2))),
    )(h_p, w1, b1r, w2, b2r, w3, b3r, w4, b4r)
    if Bp != B:
        out, z1, z2, z3 = out[:B], z1[:B], z2[:B], z3[:B]
    return out, z1, z2, z3


def _ae_end_bwd_call(g, z1, z2, z3, w1, w2, w3, w4):
    B = g.shape[0]
    tb, Bp = _pick_tile(B, 8, 256)
    pad = (lambda t: t) if Bp == B else (
        lambda t: jnp.pad(t, ((0, Bp - B), (0, 0))))
    full = lambda x: pl.BlockSpec(x.shape, lambda i: (0, 0))
    row = lambda d: pl.BlockSpec((tb, d), lambda i: (i, 0))
    dh, g1, g2, g3 = pl.pallas_call(
        _ae_end_bwd_kernel,
        out_shape=(jax.ShapeDtypeStruct((Bp, HID), jnp.float32),
                   jax.ShapeDtypeStruct((Bp, H1), jnp.float32),
                   jax.ShapeDtypeStruct((Bp, H2), jnp.float32),
                   jax.ShapeDtypeStruct((Bp, H1), jnp.float32)),
        grid=(Bp // tb,),
        in_specs=[row(HID), row(H1), row(H2), row(H1),
                  full(w1), full(w2), full(w3), full(w4)],
        out_specs=(row(HID), row(H1), row(H2), row(H1)),
        compiler_params=pltpu.CompilerParams(
            dimension_semantics=("parallel",),
            vmem_limit_bytes=VMEM_LIMIT),
    )(pad(g), pad(z1), pad(z2), pad(z3), w1, w2, w3, w4)
    if Bp != B:
        dh, g1, g2, g3 = dh[:B], g1[:B], g2[:B], g3[:B]
    return dh, g1, g2, g3


@jax.custom_vjp
def ae_end_apply(h, w1, b1, w2, b2, w3, b3, w4, b4):
    out, _, _, _ = _ae_end_fwd_call(h, w1, b1, w2, b2, w3, b3, w4, b4)
    return out


def _ae_end_fwd_rule(h, w1, b1, w2, b2, w3, b3, w4, b4):
    out, z1, z2, z3 = _ae_end_fwd_call(h, w1, b1, w2, b2, w3, b3, w4, b4)
    return out, (h, z1, z2, z3, w1, w2, w3, w4)


def _ae_end_bwd_rule(res, g):
    h, z1, z2, z3, w1, w2, w3, w4 = res
    dh, g1, g2, g3 = _ae_end_bwd_call(g, z1, z2, z3, w1, w2, w3, w4)
    # Weight/bias cotangents: correct, but clc_dyn never differentiates wrt
    # parameters, so these tiny einsums are DCE'd by XLA.
    dw1, db1 = jnp.einsum('bi,bj->ij', h, g1), jnp.sum(g1, 0)
    dw2, db2 = jnp.einsum('bi,bj->ij', z1, g2), jnp.sum(g2, 0)
    dw3, db3 = jnp.einsum('bi,bj->ij', z2, g3), jnp.sum(g3, 0)
    dw4, db4 = jnp.einsum('bi,bj->ij', z3, g), jnp.sum(g, 0)
    return dh, dw1, db1, dw2, db2, dw3, db3, dw4, db4


ae_end_apply.defvjp(_ae_end_fwd_rule, _ae_end_bwd_rule)


# --------------- fused backbone tail: ReLU + global-avg-pool + fc ------------
def _tail_fwd_kernel(l1_ref, fcw_ref, fcb_ref, out_ref, *, inv_hw):
    r = jnp.maximum(l1_ref[...], 0.0)                    # (B, HW, C1)
    gap = jnp.sum(r, axis=1) * inv_hw                    # (B, C1), sublane reduce
    out_ref[...] = jnp.dot(gap, fcw_ref[...],
                           preferred_element_type=jnp.float32) + fcb_ref[...]


def _tail_fwd_call(l1, fcw, fcb):
    B, HW, _ = l1.shape
    return pl.pallas_call(
        functools.partial(_tail_fwd_kernel, inv_hw=1.0 / HW),
        out_shape=jax.ShapeDtypeStruct((B, fcw.shape[1]), jnp.float32),
    )(l1, fcw, fcb.reshape(1, -1))


@jax.custom_vjp
def relu_gap_fc(l1, fcw, fcb):
    """hiddens = (mean_{hw} relu(l1)) @ fcw + fcb, fused in one kernel."""
    return _tail_fwd_call(l1, fcw, fcb)


def _tail_fwd_rule(l1, fcw, fcb):
    return _tail_fwd_call(l1, fcw, fcb), (l1, fcw)


def _tail_bwd_rule(res, g):
    l1, fcw = res
    dgap = _mm_nt(g, fcw) * (1.0 / l1.shape[1])          # g @ fcw.T (Pallas)
    dl1 = jnp.where(l1 > 0.0, dgap[:, None, :], 0.0)     # tiny XLA broadcast
    gap = jnp.mean(jnp.maximum(l1, 0.0), axis=1)         # DCE'd with dfcw
    dfcw = jnp.einsum('bc,bh->ch', gap, g)
    dfcb = jnp.sum(g, axis=0)
    return dl1, dfcw, dfcb


relu_gap_fc.defvjp(_tail_fwd_rule, _tail_bwd_rule)


# -------------------- fused SGD-with-momentum update kernel ------------------
def _sgd_kernel(c_ref, g_ref, b_ref, nc_ref, nb_ref, *, lr, mom, wd):
    g = g_ref[...] + wd * c_ref[...]          # weight decay
    buf = mom * b_ref[...] + g                # momentum buffer
    nb_ref[...] = buf
    nc_ref[...] = c_ref[...] - lr * buf


def sgd_momentum_step(c, g, buf, lr, mom, wd):
    shape, size = c.shape, c.size
    padded = _round_up(size, 8 * 128)

    def prep(t):                              # lane-dense (rows, 128) view
        t = t.reshape(-1)
        if padded != size:
            t = jnp.pad(t, (0, padded - size))
        return t.reshape(padded // 128, 128)

    nc, nb = pl.pallas_call(
        functools.partial(_sgd_kernel, lr=lr, mom=mom, wd=wd),
        out_shape=(jax.ShapeDtypeStruct((padded // 128, 128), jnp.float32),) * 2,
    )(prep(c), prep(g), prep(buf))

    def unprep(t):
        return t.reshape(-1)[:size].reshape(shape)

    return unprep(nc), unprep(nb)


# ------------------------------- convolutions --------------------------------
def conv2d_3x3(x, w_hwio, b, act=None):
    """3x3 conv, stride 1, pad 1, NHWC; weights (3,3,Cin,Cout) [= PyTorch
    (Cout,Cin,3,3).permute(2,3,1,0)], lowered to im2col + fused Pallas matmul.
    NHWC im2col already yields (B*H*W, 9*Cin) rows -> no big transposes."""
    B, H, W, Cin = x.shape
    Cout = w_hwio.shape[-1]
    xp = jnp.pad(x, ((0, 0), (1, 1), (1, 1), (0, 0)))
    cols = [xp[:, kh:kh + H, kw:kw + W, :]
            for kh in range(3) for kw in range(3)]
    patches = jnp.concatenate(cols, axis=-1).reshape(B * H * W, 9 * Cin)
    wmat = w_hwio.reshape(9 * Cin, Cout)
    y = matmul_bias_act(patches, wmat, b, act)
    return y.reshape(B, H, W, Cout)


# ----------------------------- synthetic networks ---------------------------
def init_params(key):
    ks = jax.random.split(key, 10)

    def w(k, shape, scale):
        return scale * jax.random.normal(k, shape, jnp.float32)

    return {
        # encoder_init (input-space AE, channels=[3, 64]); conv weights HWIO
        'ae_in_w1': w(ks[0], (3, 3, 3, 64), 0.05), 'ae_in_b1': jnp.zeros((64,)),
        'ae_in_w2': w(ks[1], (3, 3, 64, 3), 0.05), 'ae_in_b2': jnp.zeros((3,)),
        # static model backbone: conv1 3->C1, ReLU, GAP, fc C1->HID
        'conv1_w': w(ks[2], (3, 3, 3, C1), 0.1), 'conv1_b': jnp.zeros((C1,)),
        'fc_w': w(ks[3], (C1, HID), 0.1), 'fc_b': jnp.zeros((HID,)),
        # linear head HID -> NUM_CLASSES
        'head_w': w(ks[4], (HID, NUM_CLASSES), 0.05),
        'head_b': jnp.zeros((NUM_CLASSES,)),
        # encoder_end (MLP AE, dims=[HID, H1, H2]): HID->H1->H2->H1->HID
        'ae_e_w1': w(ks[5], (HID, H1), 0.05), 'ae_e_b1': jnp.zeros((H1,)),
        'ae_e_w2': w(ks[6], (H1, H2), 0.05), 'ae_e_b2': jnp.zeros((H2,)),
        'ae_e_w3': w(ks[7], (H2, H1), 0.05), 'ae_e_b3': jnp.zeros((H1,)),
        'ae_e_w4': w(ks[8], (H1, HID), 0.05), 'ae_e_b4': jnp.zeros((HID,)),
    }


def encoder_init_fn(p, x):                 # input-space autoencoder (NHWC)
    h = conv2d_3x3(x, p['ae_in_w1'], p['ae_in_b1'], act='relu')
    return conv2d_3x3(h, p['ae_in_w2'], p['ae_in_b2'], act=None)


def conv1_fn(p, x):                        # static_model.conv1 (layer_one)
    return conv2d_3x3(x, p['conv1_w'], p['conv1_b'], act=None)


def backbone_tail(p, l1):                  # rest of model[0] after conv1
    B, H, W, C = l1.shape
    return relu_gap_fc(l1.reshape(B, H * W, C), p['fc_w'], p['fc_b'])


def backbone_fn(p, x):                     # model[0]: returns layer_one_out too
    l1 = conv1_fn(p, x)
    return l1, backbone_tail(p, l1)


def encoder_end_fn(p, h):                  # hidden-space autoencoder (fused)
    return ae_end_apply(h, p['ae_e_w1'], p['ae_e_b1'], p['ae_e_w2'],
                        p['ae_e_b2'], p['ae_e_w3'], p['ae_e_b3'],
                        p['ae_e_w4'], p['ae_e_b4'])


def head_fn(p, h):                         # model[1]: linear head
    return matmul_bias_act(h, p['head_w'], p['head_b'], None)


# ----------------------------- PMP optimization ------------------------------
def maximize_hamilton(x, control, encode_fn, adjoint=None, F=None):
    bs = x.shape[0]

    def H_fn(c):
        x_cont = x + c
        recons = encode_fn(x_cont)
        loss = jnp.mean(jnp.sum(((x_cont - recons) ** 2).reshape(bs, -1),
                                axis=1))
        if adjoint is not None:
            xt1 = F(x_cont)
            return jnp.mean(jnp.sum((xt1 * adjoint).reshape(bs, -1),
                                    axis=1)) + loss
        return loss

    grad_fn = jax.grad(H_fn)
    buf = jnp.zeros_like(control)          # fresh momentum buffer per call
    for _ in range(MAX_INNER_ITE):
        g = grad_fn(control)
        control, buf = sgd_momentum_step(control, g, buf,
                                         PMP_LR, MOMENTUM, CONST)
    return control


def initialize_cont(p, x):
    recons_in = encoder_init_fn(p, x)
    _, hiddens = backbone_fn(p, recons_in)
    recons_hid = encoder_end_fn(p, hiddens)
    cont_in = jax.lax.stop_gradient(recons_in - x)
    cont_hid = jax.lax.stop_gradient(recons_hid - hiddens)
    return [cont_in, cont_hid]


def clc_dyn_forward(p, x_nchw):
    x = jnp.transpose(x_nchw, (0, 2, 3, 1))            # one-time NCHW -> NHWC
    bs = x.shape[0]
    x_ = jax.lax.stop_gradient(x)
    control = initialize_cont(p, x_)

    for _ in range(MAX_OUTER_ITE):
        x_cont = x_ + control[0]
        l1 = conv1_fn(p, x_cont)                       # layer_one_out (NHWC)
        hiddens = backbone_tail(p, l1)
        hiddens_ = jax.lax.stop_gradient(hiddens)

        control[1] = maximize_hamilton(
            hiddens_, control[1], lambda h: encoder_end_fn(p, h))

        c_hid = control[1]

        def outer_loss(l1_var):
            h = backbone_tail(p, l1_var)
            hc = h + c_hid
            recons = encoder_end_fn(p, hc)
            loss_recon = jnp.mean(
                jnp.sum(((recons - hc) ** 2).reshape(bs, -1), axis=1))
            loss_regu = jnp.mean(
                jnp.sum((c_hid ** 2).reshape(bs, -1), axis=1))
            return loss_recon + CONST * loss_regu

        adjoint = -jax.grad(outer_loss)(l1)            # -layer_one_out.grad

        control[0] = maximize_hamilton(
            x_, control[0], lambda z: encoder_init_fn(p, z),
            adjoint=adjoint, F=lambda z: conv1_fn(p, z))

    x_cont = x + control[0]
    _, hiddens = backbone_fn(p, x_cont)
    hiddens_cont = hiddens + control[1]
    return head_fn(p, hiddens_cont)


# ----------------------------------- main ------------------------------------
if __name__ == "__main__":
    key = jax.random.PRNGKey(0)
    kp, kx = jax.random.split(key)
    params = init_params(kp)
    x = jax.random.normal(kx, (2, 3, 16, 16), jnp.float32)   # NCHW, small

    out = jax.jit(clc_dyn_forward)(params, x)
    out = jax.block_until_ready(out)
    assert out.shape == (2, NUM_CLASSES) and out.dtype == jnp.float32
    print("KERNEL_OK")
</pallas_src>

<mosaic_0001>
module attributes {stable_mosaic.version = 11 : i64} {
  func.func @_mm_nn_kernel(%arg0: i32, %arg1: i32, %arg2: i32, %arg3: memref<256x128xf32, #tpu.memory_space<vmem>>, %arg4: memref<128x128xf32, #tpu.memory_space<vmem>>, %arg5: memref<1x128xf32, #tpu.memory_space<vmem>>, %arg6: memref<256x128xf32, #tpu.memory_space<vmem>>, %arg7: memref<256x128xf32, #tpu.memory_space<vmem>>) attributes {dimension_semantics = [#tpu.dimension_semantics<parallel>, #tpu.dimension_semantics<parallel>, #tpu.dimension_semantics<arbitrary>], iteration_bounds = array<i64: 2, 1, 1>, scalar_prefetch = 0 : i64, scratch_operands = 1 : i64, tpu.core_type = #tpu.core_type<tc>, window_params = [{transform_indices = @transform_0, window_bounds = array<i64: 256, 128>}, {transform_indices = @transform_1, window_bounds = array<i64: 128, 128>}, {transform_indices = @transform_2, window_bounds = array<i64: 1, 128>}, {transform_indices = @transform_3, window_bounds = array<i64: 256, 128>}]} {
    %c0_i32 = arith.constant 0 : i32
    %0 = arith.cmpi eq, %arg2, %c0_i32 : i32
    %1 = arith.extui %0 : i1 to i32
    %c0_i32_0 = arith.constant 0 : i32
    %2 = arith.cmpi ne, %1, %c0_i32_0 : i32
    scf.if %2 {
      %cst_10 = arith.constant 0.000000e+00 : f32
      %12 = vector.broadcast %cst_10 : f32 to vector<256x128xf32>
      %c0_11 = arith.constant 0 : index
      %c0_12 = arith.constant 0 : index
      %13 = vector.load %arg7[%c0_11, %c0_12] : memref<256x128xf32, #tpu.memory_space<vmem>>, vector<256x128xf32>
      tpu.vector_store %arg7[%c0_11, %c0_12], %12 {strides = array<i32>} : memref<256x128xf32, #tpu.memory_space<vmem>>, vector<256x128xf32>,
    } else {
    }
    %c0 = arith.constant 0 : index
    %c0_1 = arith.constant 0 : index
    %3 = vector.load %arg7[%c0, %c0_1] : memref<256x128xf32, #tpu.memory_space<vmem>>, vector<256x128xf32>
    %c0_2 = arith.constant 0 : index
    %c0_3 = arith.constant 0 : index
    %4 = vector.load %arg3[%c0_2, %c0_3] : memref<256x128xf32, #tpu.memory_space<vmem>>, vector<256x128xf32>
    %c0_4 = arith.constant 0 : index
    %c0_5 = arith.constant 0 : index
    %5 = vector.load %arg4[%c0_4, %c0_5] : memref<128x128xf32, #tpu.memory_space<vmem>>, vector<128x128xf32>
    %cst = arith.constant dense<0.000000e+00> : vector<256x128xf32>
    %6 = tpu.matmul %4, %5, %cst {dimension_numbers = #tpu.dot_dimension_numbers<[1], [0], [0], [1], [0, 0, 1, 1], [], []>} : vector<256x128xf32>, vector<128x128xf32>, vector<256x128xf32> -> vector<256x128xf32>
    %7 = arith.addf %3, %6 : vector<256x128xf32>
    %c0_6 = arith.constant 0 : index
    %c0_7 = arith.constant 0 : index
    %8 = vector.load %arg7[%c0_6, %c0_7] : memref<256x128xf32, #tpu.memory_space<vmem>>, vector<256x128xf32>
    tpu.vector_store %arg7[%c0_6, %c0_7], %7 {strides = array<i32>} : memref<256x128xf32, #tpu.memory_space<vmem>>, vector<256x128xf32>,
    %c0_i32_8 = arith.constant 0 : i32
    %9 = arith.cmpi eq, %arg2, %c0_i32_8 : i32
    %10 = arith.extui %9 : i1 to i32
    %c0_i32_9 = arith.constant 0 : i32
    %11 = arith.cmpi ne, %10, %c0_i32_9 : i32
    scf.if %11 {
      %c0_10 = arith.constant 0 : index
      %c0_11 = arith.constant 0 : index
      %12 = vector.load %arg7[%c0_10, %c0_11] : memref<256x128xf32, #tpu.memory_space<vmem>>, vector<256x128xf32>
      %c0_12 = arith.constant 0 : index
      %c0_13 = arith.constant 0 : index
      %13 = vector.load %arg5[%c0_12, %c0_13] : memref<1x128xf32, #tpu.memory_space<vmem>>, vector<1x128xf32>
      %14 = vector.broadcast %13 : vector<1x128xf32> to vector<256x128xf32>
      %15 = arith.addf %12, %14 : vector<256x128xf32>
      %cst_14 = arith.constant 0.000000e+00 : f32
      %16 = vector.broadcast %cst_14 : f32 to vector<256x128xf32>
      %17 = arith.maximumf %15, %16 : vector<256x128xf32>
      %c0_15 = arith.constant 0 : index
      %c0_16 = arith.constant 0 : index
      %18 = vector.load %arg6[%c0_15, %c0_16] : memref<256x128xf32, #tpu.memory_space<vmem>>, vector<256x128xf32>
      tpu.vector_store %arg6[%c0_15, %c0_16], %17 {strides = array<i32>} : memref<256x128xf32, #tpu.memory_space<vmem>>, vector<256x128xf32>,
    } else {
    }
    return
  }
  func.func @transform_0(%arg0: i32, %arg1: i32, %arg2: i32) -> (i32, i32) {
    %c0_i32 = arith.constant 0 : i32
    return %arg0, %arg2 : i32, i32
  }
  func.func @transform_1(%arg0: i32, %arg1: i32, %arg2: i32) -> (i32, i32) {
    %c0_i32 = arith.constant 0 : i32
    return %arg2, %arg1 : i32, i32
  }
  func.func @transform_2(%arg0: i32, %arg1: i32, %arg2: i32) -> (i32, i32) {
    %c0_i32 = arith.constant 0 : i32
    %c0_i32_0 = arith.constant 0 : i32
    return %c0_i32, %arg1 : i32, i32
  }
  func.func @transform_3(%arg0: i32, %arg1: i32, %arg2: i32) -> (i32, i32) {
    %c0_i32 = arith.constant 0 : i32
    return %arg0, %arg1 : i32, i32
  }
}

module attributes {stable_mosaic.version = 11 : i64} {
  func.func @_mm_nn_kernel(%arg0: i32, %arg1: i32, %arg2: i32, %arg3: memref<256x640xf32, #tpu.memory_space<vmem>>, %arg4: memref<640x128xf32, #tpu.memory_space<vmem>>, %arg5: memref<1x128xf32, #tpu.memory_space<vmem>>, %arg6: memref<256x128xf32, #tpu.memory_space<vmem>>, %arg7: memref<256x128xf32, #tpu.memory_space<vmem>>) attributes {dimension_semantics = [#tpu.dimension_semantics<parallel>, #tpu.dimension_semantics<parallel>, #tpu.dimension_semantics<arbitrary>], iteration_bounds = array<i64: 2, 1, 1>, scalar_prefetch = 0 : i64, scratch_operands = 1 : i64, tpu.core_type = #tpu.core_type<tc>, window_params = [{transform_indices = @transform_0, window_bounds = array<i64: 256, 640>}, {transform_indices = @transform_1, window_bounds = array<i64: 640, 128>}, {transform_indices = @transform_2, window_bounds = array<i64: 1, 128>}, {transform_indices = @transform_3, window_bounds = array<i64: 256, 128>}]} {
    %c0_i32 = arith.constant 0 : i32
    %0 = arith.cmpi eq, %arg2, %c0_i32 : i32
    %1 = arith.extui %0 : i1 to i32
    %c0_i32_0 = arith.constant 0 : i32
    %2 = arith.cmpi ne, %1, %c0_i32_0 : i32
    scf.if %2 {
      %cst_10 = arith.constant 0.000000e+00 : f32
      %12 = vector.broadcast %cst_10 : f32 to vector<256x128xf32>
      %c0_11 = arith.constant 0 : index
      %c0_12 = arith.constant 0 : index
      %13 = vector.load %arg7[%c0_11, %c0_12] : memref<256x128xf32, #tpu.memory_space<vmem>>, vector<256x128xf32>
      tpu.vector_store %arg7[%c0_11, %c0_12], %12 {strides = array<i32>} : memref<256x128xf32, #tpu.memory_space<vmem>>, vector<256x128xf32>,
    } else {
    }
    %c0 = arith.constant 0 : index
    %c0_1 = arith.constant 0 : index
    %3 = vector.load %arg7[%c0, %c0_1] : memref<256x128xf32, #tpu.memory_space<vmem>>, vector<256x128xf32>
    %c0_2 = arith.constant 0 : index
    %c0_3 = arith.constant 0 : index
    %4 = vector.load %arg3[%c0_2, %c0_3] : memref<256x640xf32, #tpu.memory_space<vmem>>, vector<256x640xf32>
    %c0_4 = arith.constant 0 : index
    %c0_5 = arith.constant 0 : index
    %5 = vector.load %arg4[%c0_4, %c0_5] : memref<640x128xf32, #tpu.memory_space<vmem>>, vector<640x128xf32>
    %cst = arith.constant dense<0.000000e+00> : vector<256x128xf32>
    %6 = tpu.matmul %4, %5, %cst {dimension_numbers = #tpu.dot_dimension_numbers<[1], [0], [0], [1], [0, 0, 1, 1], [], []>} : vector<256x640xf32>, vector<640x128xf32>, vector<256x128xf32> -> vector<256x128xf32>
    %7 = arith.addf %3, %6 : vector<256x128xf32>
    %c0_6 = arith.constant 0 : index
    %c0_7 = arith.constant 0 : index
    %8 = vector.load %arg7[%c0_6, %c0_7] : memref<256x128xf32, #tpu.memory_space<vmem>>, vector<256x128xf32>
    tpu.vector_store %arg7[%c0_6, %c0_7], %7 {strides = array<i32>} : memref<256x128xf32, #tpu.memory_space<vmem>>, vector<256x128xf32>,
    %c0_i32_8 = arith.constant 0 : i32
    %9 = arith.cmpi eq, %arg2, %c0_i32_8 : i32
    %10 = arith.extui %9 : i1 to i32
    %c0_i32_9 = arith.constant 0 : i32
    %11 = arith.cmpi ne, %10, %c0_i32_9 : i32
    scf.if %11 {
      %c0_10 = arith.constant 0 : index
      %c0_11 = arith.constant 0 : index
      %12 = vector.load %arg7[%c0_10, %c0_11] : memref<256x128xf32, #tpu.memory_space<vmem>>, vector<256x128xf32>
      %c0_12 = arith.constant 0 : index
      %c0_13 = arith.constant 0 : index
      %13 = vector.load %arg5[%c0_12, %c0_13] : memref<1x128xf32, #tpu.memory_space<vmem>>, vector<1x128xf32>
      %14 = vector.broadcast %13 : vector<1x128xf32> to vector<256x128xf32>
      %15 = arith.addf %12, %14 : vector<256x128xf32>
      %c0_14 = arith.constant 0 : index
      %c0_15 = arith.constant 0 : index
      %16 = vector.load %arg6[%c0_14, %c0_15] : memref<256x128xf32, #tpu.memory_space<vmem>>, vector<256x128xf32>
      tpu.vector_store %arg6[%c0_14, %c0_15], %15 {strides = array<i32>} : memref<256x128xf32, #tpu.memory_space<vmem>>, vector<256x128xf32>,
    } else {
    }
    return
  }
  func.func @transform_0(%arg0: i32, %arg1: i32, %arg2: i32) -> (i32, i32) {
    %c0_i32 = arith.constant 0 : i32
    return %arg0, %arg2 : i32, i32
  }
  func.func @transform_1(%arg0: i32, %arg1: i32, %arg2: i32) -> (i32, i32) {
    %c0_i32 = arith.constant 0 : i32
    return %arg2, %arg1 : i32, i32
  }
  func.func @transform_2(%arg0: i32, %arg1: i32, %arg2: i32) -> (i32, i32) {
    %c0_i32 = arith.constant 0 : i32
    %c0_i32_0 = arith.constant 0 : i32
    return %c0_i32, %arg1 : i32, i32
  }
  func.func @transform_3(%arg0: i32, %arg1: i32, %arg2: i32) -> (i32, i32) {
    %c0_i32 = arith.constant 0 : i32
    return %arg0, %arg1 : i32, i32
  }
}

module attributes {stable_mosaic.version = 11 : i64} {
  func.func @_tail_fwd_kernel(%arg0: memref<2x256x8xf32, #tpu.memory_space<vmem>>, %arg1: memref<8x512xf32, #tpu.memory_space<vmem>>, %arg2: memref<1x512xf32, #tpu.memory_space<vmem>>, %arg3: memref<2x512xf32, #tpu.memory_space<vmem>>) attributes {dimension_semantics = [], scalar_prefetch = 0 : i64, scratch_operands = 0 : i64, tpu.core_type = #tpu.core_type<tc>} {
    %c0 = arith.constant 0 : index
    %c0_0 = arith.constant 0 : index
    %c0_1 = arith.constant 0 : index
    %0 = vector.load %arg0[%c0, %c0_0, %c0_1] : memref<2x256x8xf32, #tpu.memory_space<vmem>>, vector<2x256x8xf32>
    %cst = arith.constant 0.000000e+00 : f32
    %1 = vector.broadcast %cst : f32 to vector<2x256x8xf32>
    %2 = arith.maximumf %0, %1 : vector<2x256x8xf32>
    %cst_2 = arith.constant dense<0.000000e+00> : vector<2x8xf32>
    %3 = vector.multi_reduction <add>, %2, %cst_2 [1] : vector<2x256x8xf32> to vector<2x8xf32>
    %cst_3 = arith.constant 3.906250e-03 : f32
    %4 = vector.broadcast %cst_3 : f32 to vector<2x8xf32>
    %5 = arith.mulf %3, %4 : vector<2x8xf32>
    %c0_4 = arith.constant 0 : index
    %c0_5 = arith.constant 0 : index
    %6 = vector.load %arg1[%c0_4, %c0_5] : memref<8x512xf32, #tpu.memory_space<vmem>>, vector<8x512xf32>
    %cst_6 = arith.constant dense<0.000000e+00> : vector<2x512xf32>
    %7 = tpu.matmul %5, %6, %cst_6 {dimension_numbers = #tpu.dot_dimension_numbers<[1], [0], [0], [1], [0, 0, 1, 1], [], []>} : vector<2x8xf32>, vector<8x512xf32>, vector<2x512xf32> -> vector<2x512xf32>
    %c0_7 = arith.constant 0 : index
    %c0_8 = arith.constant 0 : index
    %8 = vector.load %arg2[%c0_7, %c0_8] : memref<1x512xf32, #tpu.memory_space<vmem>>, vector<1x512xf32>
    %9 = vector.broadcast %8 : vector<1x512xf32> to vector<2x512xf32>
    %10 = arith.addf %7, %9 : vector<2x512xf32>
    %c0_9 = arith.constant 0 : index
    %c0_10 = arith.constant 0 : index
    %11 = vector.load %arg3[%c0_9, %c0_10] : memref<2x512xf32, #tpu.memory_space<vmem>>, vector<2x512xf32>
    tpu.vector_store %arg3[%c0_9, %c0_10], %10 {strides = array<i32>} : memref<2x512xf32, #tpu.memory_space<vmem>>, vector<2x512xf32>,
    return
  }
}

module attributes {stable_mosaic.version = 11 : i64} {
  func.func @_mm_nn_kernel(%arg0: i32, %arg1: i32, %arg2: i32, %arg3: memref<256x128xf32, #tpu.memory_space<vmem>>, %arg4: memref<128x128xf32, #tpu.memory_space<vmem>>, %arg5: memref<1x128xf32, #tpu.memory_space<vmem>>, %arg6: memref<256x128xf32, #tpu.memory_space<vmem>>, %arg7: memref<256x128xf32, #tpu.memory_space<vmem>>) attributes {dimension_semantics = [#tpu.dimension_semantics<parallel>, #tpu.dimension_semantics<parallel>, #tpu.dimension_semantics<arbitrary>], iteration_bounds = array<i64: 2, 1, 1>, scalar_prefetch = 0 : i64, scratch_operands = 1 : i64, tpu.core_type = #tpu.core_type<tc>, window_params = [{transform_indices = @transform_0, window_bounds = array<i64: 256, 128>}, {transform_indices = @transform_1, window_bounds = array<i64: 128, 128>}, {transform_indices = @transform_2, window_bounds = array<i64: 1, 128>}, {transform_indices = @transform_3, window_bounds = array<i64: 256, 128>}]} {
    %c0_i32 = arith.constant 0 : i32
    %0 = arith.cmpi eq, %arg2, %c0_i32 : i32
    %1 = arith.extui %0 : i1 to i32
    %c0_i32_0 = arith.constant 0 : i32
    %2 = arith.cmpi ne, %1, %c0_i32_0 : i32
    scf.if %2 {
      %cst_10 = arith.constant 0.000000e+00 : f32
      %12 = vector.broadcast %cst_10 : f32 to vector<256x128xf32>
      %c0_11 = arith.constant 0 : index
      %c0_12 = arith.constant 0 : index
      %13 = vector.load %arg7[%c0_11, %c0_12] : memref<256x128xf32, #tpu.memory_space<vmem>>, vector<256x128xf32>
      tpu.vector_store %arg7[%c0_11, %c0_12], %12 {strides = array<i32>} : memref<256x128xf32, #tpu.memory_space<vmem>>, vector<256x128xf32>,
    } else {
    }
    %c0 = arith.constant 0 : index
    %c0_1 = arith.constant 0 : index
    %3 = vector.load %arg7[%c0, %c0_1] : memref<256x128xf32, #tpu.memory_space<vmem>>, vector<256x128xf32>
    %c0_2 = arith.constant 0 : index
    %c0_3 = arith.constant 0 : index
    %4 = vector.load %arg3[%c0_2, %c0_3] : memref<256x128xf32, #tpu.memory_space<vmem>>, vector<256x128xf32>
    %c0_4 = arith.constant 0 : index
    %c0_5 = arith.constant 0 : index
    %5 = vector.load %arg4[%c0_4, %c0_5] : memref<128x128xf32, #tpu.memory_space<vmem>>, vector<128x128xf32>
    %cst = arith.constant dense<0.000000e+00> : vector<256x128xf32>
    %6 = tpu.matmul %4, %5, %cst {dimension_numbers = #tpu.dot_dimension_numbers<[1], [0], [0], [1], [0, 0, 1, 1], [], []>} : vector<256x128xf32>, vector<128x128xf32>, vector<256x128xf32> -> vector<256x128xf32>
    %7 = arith.addf %3, %6 : vector<256x128xf32>
    %c0_6 = arith.constant 0 : index
    %c0_7 = arith.constant 0 : index
    %8 = vector.load %arg7[%c0_6, %c0_7] : memref<256x128xf32, #tpu.memory_space<vmem>>, vector<256x128xf32>
    tpu.vector_store %arg7[%c0_6, %c0_7], %7 {strides = array<i32>} : memref<256x128xf32, #tpu.memory_space<vmem>>, vector<256x128xf32>,
    %c0_i32_8 = arith.constant 0 : i32
    %9 = arith.cmpi eq, %arg2, %c0_i32_8 : i32
    %10 = arith.extui %9 : i1 to i32
    %c0_i32_9 = arith.constant 0 : i32
    %11 = arith.cmpi ne, %10, %c0_i32_9 : i32
    scf.if %11 {
      %c0_10 = arith.constant 0 : index
      %c0_11 = arith.constant 0 : index
      %12 = vector.load %arg7[%c0_10, %c0_11] : memref<256x128xf32, #tpu.memory_space<vmem>>, vector<256x128xf32>
      %c0_12 = arith.constant 0 : index
      %c0_13 = arith.constant 0 : index
      %13 = vector.load %arg5[%c0_12, %c0_13] : memref<1x128xf32, #tpu.memory_space<vmem>>, vector<1x128xf32>
      %14 = vector.broadcast %13 : vector<1x128xf32> to vector<256x128xf32>
      %15 = arith.addf %12, %14 : vector<256x128xf32>
      %c0_14 = arith.constant 0 : index
      %c0_15 = arith.constant 0 : index
      %16 = vector.load %arg6[%c0_14, %c0_15] : memref<256x128xf32, #tpu.memory_space<vmem>>, vector<256x128xf32>
      tpu.vector_store %arg6[%c0_14, %c0_15], %15 {strides = array<i32>} : memref<256x128xf32, #tpu.memory_space<vmem>>, vector<256x128xf32>,
    } else {
    }
    return
  }
  func.func @transform_0(%arg0: i32, %arg1: i32, %arg2: i32) -> (i32, i32) {
    %c0_i32 = arith.constant 0 : i32
    return %arg0, %arg2 : i32, i32
  }
  func.func @transform_1(%arg0: i32, %arg1: i32, %arg2: i32) -> (i32, i32) {
    %c0_i32 = arith.constant 0 : i32
    return %arg2, %arg1 : i32, i32
  }
  func.func @transform_2(%arg0: i32, %arg1: i32, %arg2: i32) -> (i32, i32) {
    %c0_i32 = arith.constant 0 : i32
    %c0_i32_0 = arith.constant 0 : i32
    return %c0_i32, %arg1 : i32, i32
  }
  func.func @transform_3(%arg0: i32, %arg1: i32, %arg2: i32) -> (i32, i32) {
    %c0_i32 = arith.constant 0 : i32
    return %arg0, %arg1 : i32, i32
  }
}

module attributes {stable_mosaic.version = 11 : i64} {
  func.func @_ae_end_fwd_kernel(%arg0: i32, %arg1: memref<8x512xf32, #tpu.memory_space<vmem>>, %arg2: memref<512x384xf32, #tpu.memory_space<vmem>>, %arg3: memref<1x384xf32, #tpu.memory_space<vmem>>, %arg4: memref<384x256xf32, #tpu.memory_space<vmem>>, %arg5: memref<1x256xf32, #tpu.memory_space<vmem>>, %arg6: memref<256x384xf32, #tpu.memory_space<vmem>>, %arg7: memref<1x384xf32, #tpu.memory_space<vmem>>, %arg8: memref<384x512xf32, #tpu.memory_space<vmem>>, %arg9: memref<1x512xf32, #tpu.memory_space<vmem>>, %arg10: memref<8x512xf32, #tpu.memory_space<vmem>>, %arg11: memref<8x384xf32, #tpu.memory_space<vmem>>, %arg12: memref<8x256xf32, #tpu.memory_space<vmem>>, %arg13: memref<8x384xf32, #tpu.memory_space<vmem>>) attributes {dimension_semantics = [#tpu.dimension_semantics<parallel>], iteration_bounds = array<i64: 1>, scalar_prefetch = 0 : i64, scratch_operands = 0 : i64, tpu.core_type = #tpu.core_type<tc>, window_params = [{transform_indices = @transform_0, window_bounds = array<i64: 8, 512>}, {pipeline_mode = #tpu.pipeline_mode<synchronous>, transform_indices = @transform_1, window_bounds = array<i64: 512, 384>}, {pipeline_mode = #tpu.pipeline_mode<synchronous>, transform_indices = @transform_2, window_bounds = array<i64: 1, 384>}, {pipeline_mode = #tpu.pipeline_mode<synchronous>, transform_indices = @transform_3, window_bounds = array<i64: 384, 256>}, {pipeline_mode = #tpu.pipeline_mode<synchronous>, transform_indices = @transform_4, window_bounds = array<i64: 1, 256>}, {pipeline_mode = #tpu.pipeline_mode<synchronous>, transform_indices = @transform_5, window_bounds = array<i64: 256, 384>}, {pipeline_mode = #tpu.pipeline_mode<synchronous>, transform_indices = @transform_6, window_bounds = array<i64: 1, 384>}, {pipeline_mode = #tpu.pipeline_mode<synchronous>, transform_indices = @transform_7, window_bounds = array<i64: 384, 512>}, {pipeline_mode = #tpu.pipeline_mode<synchronous>, transform_indices = @transform_8, window_bounds = array<i64: 1, 512>}, {transform_indices = @transform_9, window_bounds = array<i64: 8, 512>}, {transform_indices = @transform_10, window_bounds = array<i64: 8, 384>}, {transform_indices = @transform_11, window_bounds = array<i64: 8, 256>}, {transform_indices = @transform_12, window_bounds = array<i64: 8, 384>}]} {
    %c0 = arith.constant 0 : index
    %c0_0 = arith.constant 0 : index
    %0 = vector.load %arg1[%c0, %c0_0] : memref<8x512xf32, #tpu.memory_space<vmem>>, vector<8x512xf32>
    %c0_1 = arith.constant 0 : index
    %c0_2 = arith.constant 0 : index
    %1 = vector.load %arg2[%c0_1, %c0_2] : memref<512x384xf32, #tpu.memory_space<vmem>>, vector<512x384xf32>
    %cst = arith.constant dense<0.000000e+00> : vector<8x384xf32>
    %2 = tpu.matmul %0, %1, %cst {dimension_numbers = #tpu.dot_dimension_numbers<[1], [0], [0], [1], [0, 0, 1, 1], [], []>} : vector<8x512xf32>, vector<512x384xf32>, vector<8x384xf32> -> vector<8x384xf32>
    %c0_3 = arith.constant 0 : index
    %c0_4 = arith.constant 0 : index
    %3 = vector.load %arg3[%c0_3, %c0_4] : memref<1x384xf32, #tpu.memory_space<vmem>>, vector<1x384xf32>
    %4 = vector.broadcast %3 : vector<1x384xf32> to vector<8x384xf32>
    %5 = arith.addf %2, %4 : vector<8x384xf32>
    %cst_5 = arith.constant 0.000000e+00 : f32
    %6 = vector.broadcast %cst_5 : f32 to vector<8x384xf32>
    %7 = arith.maximumf %5, %6 : vector<8x384xf32>
    %c0_6 = arith.constant 0 : index
    %c0_7 = arith.constant 0 : index
    %8 = vector.load %arg4[%c0_6, %c0_7] : memref<384x256xf32, #tpu.memory_space<vmem>>, vector<384x256xf32>
    %cst_8 = arith.constant dense<0.000000e+00> : vector<8x256xf32>
    %9 = tpu.matmul %7, %8, %cst_8 {dimension_numbers = #tpu.dot_dimension_numbers<[1], [0], [0], [1], [0, 0, 1, 1], [], []>} : vector<8x384xf32>, vector<384x256xf32>, vector<8x256xf32> -> vector<8x256xf32>
    %c0_9 = arith.constant 0 : index
    %c0_10 = arith.constant 0 : index
    %10 = vector.load %arg5[%c0_9, %c0_10] : memref<1x256xf32, #tpu.memory_space<vmem>>, vector<1x256xf32>
    %11 = vector.broadcast %10 : vector<1x256xf32> to vector<8x256xf32>
    %12 = arith.addf %9, %11 : vector<8x256xf32>
    %cst_11 = arith.constant 0.000000e+00 : f32
    %13 = vector.broadcast %cst_11 : f32 to vector<8x256xf32>
    %14 = arith.maximumf %12, %13 : vector<8x256xf32>
    %c0_12 = arith.constant 0 : index
    %c0_13 = arith.constant 0 : index
    %15 = vector.load %arg6[%c0_12, %c0_13] : memref<256x384xf32, #tpu.memory_space<vmem>>, vector<256x384xf32>
    %cst_14 = arith.constant dense<0.000000e+00> : vector<8x384xf32>
    %16 = tpu.matmul %14, %15, %cst_14 {dimension_numbers = #tpu.dot_dimension_numbers<[1], [0], [0], [1], [0, 0, 1, 1], [], []>} : vector<8x256xf32>, vector<256x384xf32>, vector<8x384xf32> -> vector<8x384xf32>
    %c0_15 = arith.constant 0 : index
    %c0_16 = arith.constant 0 : index
    %17 = vector.load %arg7[%c0_15, %c0_16] : memref<1x384xf32, #tpu.memory_space<vmem>>, vector<1x384xf32>
    %18 = vector.broadcast %17 : vector<1x384xf32> to vector<8x384xf32>
    %19 = arith.addf %16, %18 : vector<8x384xf32>
    %cst_17 = arith.constant 0.000000e+00 : f32
    %20 = vector.broadcast %cst_17 : f32 to vector<8x384xf32>
    %21 = arith.maximumf %19, %20 : vector<8x384xf32>
    %c0_18 = arith.constant 0 : index
    %c0_19 = arith.constant 0 : index
    %22 = vector.load %arg8[%c0_18, %c0_19] : memref<384x512xf32, #tpu.memory_space<vmem>>, vector<384x512xf32>
    %cst_20 = arith.constant dense<0.000000e+00> : vector<8x512xf32>
    %23 = tpu.matmul %21, %22, %cst_20 {dimension_numbers = #tpu.dot_dimension_numbers<[1], [0], [0], [1], [0, 0, 1, 1], [], []>} : vector<8x384xf32>, vector<384x512xf32>, vector<8x512xf32> -> vector<8x512xf32>
    %c0_21 = arith.constant 0 : index
    %c0_22 = arith.constant 0 : index
    %24 = vector.load %arg9[%c0_21, %c0_22] : memref<1x512xf32, #tpu.memory_space<vmem>>, vector<1x512xf32>
    %25 = vector.broadcast %24 : vector<1x512xf32> to vector<8x512xf32>
    %26 = arith.addf %23, %25 : vector<8x512xf32>
    %c0_23 = arith.constant 0 : index
    %c0_24 = arith.constant 0 : index
    %27 = vector.load %arg10[%c0_23, %c0_24] : memref<8x512xf32, #tpu.memory_space<vmem>>, vector<8x512xf32>
    tpu.vector_store %arg10[%c0_23, %c0_24], %26 {strides = array<i32>} : memref<8x512xf32, #tpu.memory_space<vmem>>, vector<8x512xf32>,
    %c0_25 = arith.constant 0 : index
    %c0_26 = arith.constant 0 : index
    %28 = vector.load %arg11[%c0_25, %c0_26] : memref<8x384xf32, #tpu.memory_space<vmem>>, vector<8x384xf32>
    tpu.vector_store %arg11[%c0_25, %c0_26], %7 {strides = array<i32>} : memref<8x384xf32, #tpu.memory_space<vmem>>, vector<8x384xf32>,
    %c0_27 = arith.constant 0 : index
    %c0_28 = arith.constant 0 : index
    %29 = vector.load %arg12[%c0_27, %c0_28] : memref<8x256xf32, #tpu.memory_space<vmem>>, vector<8x256xf32>
    tpu.vector_store %arg12[%c0_27, %c0_28], %14 {strides = array<i32>} : memref<8x256xf32, #tpu.memory_space<vmem>>, vector<8x256xf32>,
    %c0_29 = arith.constant 0 : index
    %c0_30 = arith.constant 0 : index
    %30 = vector.load %arg13[%c0_29, %c0_30] : memref<8x384xf32, #tpu.memory_space<vmem>>, vector<8x384xf32>
    tpu.vector_store %arg13[%c0_29, %c0_30], %21 {strides = array<i32>} : memref<8x384xf32, #tpu.memory_space<vmem>>, vector<8x384xf32>,
    return
  }
  func.func @transform_0(%arg0: i32) -> (i32, i32) {
    %c0_i32 = arith.constant 0 : i32
    %c0_i32_0 = arith.constant 0 : i32
    return %arg0, %c0_i32 : i32, i32
  }
  func.func @transform_1(%arg0: i32) -> (i32, i32) {
    %c0_i32 = arith.constant 0 : i32
    %c0_i32_0 = arith.constant 0 : i32
    %c0_i32_1 = arith.constant 0 : i32
    return %c0_i32, %c0_i32_0 : i32, i32
  }
  func.func @transform_2(%arg0: i32) -> (i32, i32) {
    %c0_i32 = arith.constant 0 : i32
    %c0_i32_0 = arith.constant 0 : i32
    %c0_i32_1 = arith.constant 0 : i32
    return %c0_i32, %c0_i32_0 : i32, i32
  }
  func.func @transform_3(%arg0: i32) -> (i32, i32) {
    %c0_i32 = arith.constant 0 : i32
    %c0_i32_0 = arith.constant 0 : i32
    %c0_i32_1 = arith.constant 0 : i32
    return %c0_i32, %c0_i32_0 : i32, i32
  }
  func.func @transform_4(%arg0: i32) -> (i32, i32) {
    %c0_i32 = arith.constant 0 : i32
    %c0_i32_0 = arith.constant 0 : i32
    %c0_i32_1 = arith.constant 0 : i32
    return %c0_i32, %c0_i32_0 : i32, i32
  }
  func.func @transform_5(%arg0: i32) -> (i32, i32) {
    %c0_i32 = arith.constant 0 : i32
    %c0_i32_0 = arith.constant 0 : i32
    %c0_i32_1 = arith.constant 0 : i32
    return %c0_i32, %c0_i32_0 : i32, i32
  }
  func.func @transform_6(%arg0: i32) -> (i32, i32) {
    %c0_i32 = arith.constant 0 : i32
    %c0_i32_0 = arith.constant 0 : i32
    %c0_i32_1 = arith.constant 0 : i32
    return %c0_i32, %c0_i32_0 : i32, i32
  }
  func.func @transform_7(%arg0: i32) -> (i32, i32) {
    %c0_i32 = arith.constant 0 : i32
    %c0_i32_0 = arith.constant 0 : i32
    %c0_i32_1 = arith.constant 0 : i32
    return %c0_i32, %c0_i32_0 : i32, i32
  }
  func.func @transform_8(%arg0: i32) -> (i32, i32) {
    %c0_i32 = arith.constant 0 : i32
    %c0_i32_0 = arith.constant 0 : i32
    %c0_i32_1 = arith.constant 0 : i32
    return %c0_i32, %c0_i32_0 : i32, i32
  }
  func.func @transform_9(%arg0: i32) -> (i32, i32) {
    %c0_i32 = arith.constant 0 : i32
    %c0_i32_0 = arith.constant 0 : i32
    return %arg0, %c0_i32 : i32, i32
  }
  func.func @transform_10(%arg0: i32) -> (i32, i32) {
    %c0_i32 = arith.constant 0 : i32
    %c0_i32_0 = arith.constant 0 : i32
    return %arg0, %c0_i32 : i32, i32
  }
  func.func @transform_11(%arg0: i32) -> (i32, i32) {
    %c0_i32 = arith.constant 0 : i32
    %c0_i32_0 = arith.constant 0 : i32
    return %arg0, %c0_i32 : i32, i32
  }
  func.func @transform_12(%arg0: i32) -> (i32, i32) {
    %c0_i32 = arith.constant 0 : i32
    %c0_i32_0 = arith.constant 0 : i32
    return %arg0, %c0_i32 : i32, i32
  }
}

module attributes {stable_mosaic.version = 11 : i64} {
  func.func @_ae_end_fwd_kernel(%arg0: i32, %arg1: memref<8x512xf32, #tpu.memory_space<vmem>>, %arg2: memref<512x384xf32, #tpu.memory_space<vmem>>, %arg3: memref<1x384xf32, #tpu.memory_space<vmem>>, %arg4: memref<384x256xf32, #tpu.memory_space<vmem>>, %arg5: memref<1x256xf32, #tpu.memory_space<vmem>>, %arg6: memref<256x384xf32, #tpu.memory_space<vmem>>, %arg7: memref<1x384xf32, #tpu.memory_space<vmem>>, %arg8: memref<384x512xf32, #tpu.memory_space<vmem>>, %arg9: memref<1x512xf32, #tpu.memory_space<vmem>>, %arg10: memref<8x512xf32, #tpu.memory_space<vmem>>, %arg11: memref<8x384xf32, #tpu.memory_space<vmem>>, %arg12: memref<8x256xf32, #tpu.memory_space<vmem>>, %arg13: memref<8x384xf32, #tpu.memory_space<vmem>>) attributes {dimension_semantics = [#tpu.dimension_semantics<parallel>], iteration_bounds = array<i64: 1>, scalar_prefetch = 0 : i64, scratch_operands = 0 : i64, tpu.core_type = #tpu.core_type<tc>, window_params = [{transform_indices = @transform_0, window_bounds = array<i64: 8, 512>}, {pipeline_mode = #tpu.pipeline_mode<synchronous>, transform_indices = @transform_1, window_bounds = array<i64: 512, 384>}, {pipeline_mode = #tpu.pipeline_mode<synchronous>, transform_indices = @transform_2, window_bounds = array<i64: 1, 384>}, {pipeline_mode = #tpu.pipeline_mode<synchronous>, transform_indices = @transform_3, window_bounds = array<i64: 384, 256>}, {pipeline_mode = #tpu.pipeline_mode<synchronous>, transform_indices = @transform_4, window_bounds = array<i64: 1, 256>}, {pipeline_mode = #tpu.pipeline_mode<synchronous>, transform_indices = @transform_5, window_bounds = array<i64: 256, 384>}, {pipeline_mode = #tpu.pipeline_mode<synchronous>, transform_indices = @transform_6, window_bounds = array<i64: 1, 384>}, {pipeline_mode = #tpu.pipeline_mode<synchronous>, transform_indices = @transform_7, window_bounds = array<i64: 384, 512>}, {pipeline_mode = #tpu.pipeline_mode<synchronous>, transform_indices = @transform_8, window_bounds = array<i64: 1, 512>}, {transform_indices = @transform_9, window_bounds = array<i64: 8, 512>}, {transform_indices = @transform_10, window_bounds = array<i64: 8, 384>}, {transform_indices = @transform_11, window_bounds = array<i64: 8, 256>}, {transform_indices = @transform_12, window_bounds = array<i64: 8, 384>}]} {
    %c0 = arith.constant 0 : index
    %c0_0 = arith.constant 0 : index
    %0 = vector.load %arg1[%c0, %c0_0] : memref<8x512xf32, #tpu.memory_space<vmem>>, vector<8x512xf32>
    %c0_1 = arith.constant 0 : index
    %c0_2 = arith.constant 0 : index
    %1 = vector.load %arg2[%c0_1, %c0_2] : memref<512x384xf32, #tpu.memory_space<vmem>>, vector<512x384xf32>
    %cst = arith.constant dense<0.000000e+00> : vector<8x384xf32>
    %2 = tpu.matmul %0, %1, %cst {dimension_numbers = #tpu.dot_dimension_numbers<[1], [0], [0], [1], [0, 0, 1, 1], [], []>} : vector<8x512xf32>, vector<512x384xf32>, vector<8x384xf32> -> vector<8x384xf32>
    %c0_3 = arith.constant 0 : index
    %c0_4 = arith.constant 0 : index
    %3 = vector.load %arg3[%c0_3, %c0_4] : memref<1x384xf32, #tpu.memory_space<vmem>>, vector<1x384xf32>
    %4 = vector.broadcast %3 : vector<1x384xf32> to vector<8x384xf32>
    %5 = arith.addf %2, %4 : vector<8x384xf32>
    %cst_5 = arith.constant 0.000000e+00 : f32
    %6 = vector.broadcast %cst_5 : f32 to vector<8x384xf32>
    %7 = arith.maximumf %5, %6 : vector<8x384xf32>
    %c0_6 = arith.constant 0 : index
    %c0_7 = arith.constant 0 : index
    %8 = vector.load %arg4[%c0_6, %c0_7] : memref<384x256xf32, #tpu.memory_space<vmem>>, vector<384x256xf32>
    %cst_8 = arith.constant dense<0.000000e+00> : vector<8x256xf32>
    %9 = tpu.matmul %7, %8, %cst_8 {dimension_numbers = #tpu.dot_dimension_numbers<[1], [0], [0], [1], [0, 0, 1, 1], [], []>} : vector<8x384xf32>, vector<384x256xf32>, vector<8x256xf32> -> vector<8x256xf32>
    %c0_9 = arith.constant 0 : index
    %c0_10 = arith.constant 0 : index
    %10 = vector.load %arg5[%c0_9, %c0_10] : memref<1x256xf32, #tpu.memory_space<vmem>>, vector<1x256xf32>
    %11 = vector.broadcast %10 : vector<1x256xf32> to vector<8x256xf32>
    %12 = arith.addf %9, %11 : vector<8x256xf32>
    %cst_11 = arith.constant 0.000000e+00 : f32
    %13 = vector.broadcast %cst_11 : f32 to vector<8x256xf32>
    %14 = arith.maximumf %12, %13 : vector<8x256xf32>
    %c0_12 = arith.constant 0 : index
    %c0_13 = arith.constant 0 : index
    %15 = vector.load %arg6[%c0_12, %c0_13] : memref<256x384xf32, #tpu.memory_space<vmem>>, vector<256x384xf32>
    %cst_14 = arith.constant dense<0.000000e+00> : vector<8x384xf32>
    %16 = tpu.matmul %14, %15, %cst_14 {dimension_numbers = #tpu.dot_dimension_numbers<[1], [0], [0], [1], [0, 0, 1, 1], [], []>} : vector<8x256xf32>, vector<256x384xf32>, vector<8x384xf32> -> vector<8x384xf32>
    %c0_15 = arith.constant 0 : index
    %c0_16 = arith.constant 0 : index
    %17 = vector.load %arg7[%c0_15, %c0_16] : memref<1x384xf32, #tpu.memory_space<vmem>>, vector<1x384xf32>
    %18 = vector.broadcast %17 : vector<1x384xf32> to vector<8x384xf32>
    %19 = arith.addf %16, %18 : vector<8x384xf32>
    %cst_17 = arith.constant 0.000000e+00 : f32
    %20 = vector.broadcast %cst_17 : f32 to vector<8x384xf32>
    %21 = arith.maximumf %19, %20 : vector<8x384xf32>
    %c0_18 = arith.constant 0 : index
    %c0_19 = arith.constant 0 : index
    %22 = vector.load %arg8[%c0_18, %c0_19] : memref<384x512xf32, #tpu.memory_space<vmem>>, vector<384x512xf32>
    %cst_20 = arith.constant dense<0.000000e+00> : vector<8x512xf32>
    %23 = tpu.matmul %21, %22, %cst_20 {dimension_numbers = #tpu.dot_dimension_numbers<[1], [0], [0], [1], [0, 0, 1, 1], [], []>} : vector<8x384xf32>, vector<384x512xf32>, vector<8x512xf32> -> vector<8x512xf32>
    %c0_21 = arith.constant 0 : index
    %c0_22 = arith.constant 0 : index
    %24 = vector.load %arg9[%c0_21, %c0_22] : memref<1x512xf32, #tpu.memory_space<vmem>>, vector<1x512xf32>
    %25 = vector.broadcast %24 : vector<1x512xf32> to vector<8x512xf32>
    %26 = arith.addf %23, %25 : vector<8x512xf32>
    %c0_23 = arith.constant 0 : index
    %c0_24 = arith.constant 0 : index
    %27 = vector.load %arg10[%c0_23, %c0_24] : memref<8x512xf32, #tpu.memory_space<vmem>>, vector<8x512xf32>
    tpu.vector_store %arg10[%c0_23, %c0_24], %26 {strides = array<i32>} : memref<8x512xf32, #tpu.memory_space<vmem>>, vector<8x512xf32>,
    %c0_25 = arith.constant 0 : index
    %c0_26 = arith.constant 0 : index
    %28 = vector.load %arg11[%c0_25, %c0_26] : memref<8x384xf32, #tpu.memory_space<vmem>>, vector<8x384xf32>
    tpu.vector_store %arg11[%c0_25, %c0_26], %7 {strides = array<i32>} : memref<8x384xf32, #tpu.memory_space<vmem>>, vector<8x384xf32>,
    %c0_27 = arith.constant 0 : index
    %c0_28 = arith.constant 0 : index
    %29 = vector.load %arg12[%c0_27, %c0_28] : memref<8x256xf32, #tpu.memory_space<vmem>>, vector<8x256xf32>
    tpu.vector_store %arg12[%c0_27, %c0_28], %14 {strides = array<i32>} : memref<8x256xf32, #tpu.memory_space<vmem>>, vector<8x256xf32>,
    %c0_29 = arith.constant 0 : index
    %c0_30 = arith.constant 0 : index
    %30 = vector.load %arg13[%c0_29, %c0_30] : memref<8x384xf32, #tpu.memory_space<vmem>>, vector<8x384xf32>
    tpu.vector_store %arg13[%c0_29, %c0_30], %21 {strides = array<i32>} : memref<8x384xf32, #tpu.memory_space<vmem>>, vector<8x384xf32>,
    return
  }
  func.func @transform_0(%arg0: i32) -> (i32, i32) {
    %c0_i32 = arith.constant 0 : i32
    %c0_i32_0 = arith.constant 0 : i32
    return %arg0, %c0_i32 : i32, i32
  }
  func.func @transform_1(%arg0: i32) -> (i32, i32) {
    %c0_i32 = arith.constant 0 : i32
    %c0_i32_0 = arith.constant 0 : i32
    %c0_i32_1 = arith.constant 0 : i32
    return %c0_i32, %c0_i32_0 : i32, i32
  }
  func.func @transform_2(%arg0: i32) -> (i32, i32) {
    %c0_i32 = arith.constant 0 : i32
    %c0_i32_0 = arith.constant 0 : i32
    %c0_i32_1 = arith.constant 0 : i32
    return %c0_i32, %c0_i32_0 : i32, i32
  }
  func.func @transform_3(%arg0: i32) -> (i32, i32) {
    %c0_i32 = arith.constant 0 : i32
    %c0_i32_0 = arith.constant 0 : i32
    %c0_i32_1 = arith.constant 0 : i32
    return %c0_i32, %c0_i32_0 : i32, i32
  }
  func.func @transform_4(%arg0: i32) -> (i32, i32) {
    %c0_i32 = arith.constant 0 : i32
    %c0_i32_0 = arith.constant 0 : i32
    %c0_i32_1 = arith.constant 0 : i32
    return %c0_i32, %c0_i32_0 : i32, i32
  }
  func.func @transform_5(%arg0: i32) -> (i32, i32) {
    %c0_i32 = arith.constant 0 : i32
    %c0_i32_0 = arith.constant 0 : i32
    %c0_i32_1 = arith.constant 0 : i32
    return %c0_i32, %c0_i32_0 : i32, i32
  }
  func.func @transform_6(%arg0: i32) -> (i32, i32) {
    %c0_i32 = arith.constant 0 : i32
    %c0_i32_0 = arith.constant 0 : i32
    %c0_i32_1 = arith.constant 0 : i32
    return %c0_i32, %c0_i32_0 : i32, i32
  }
  func.func @transform_7(%arg0: i32) -> (i32, i32) {
    %c0_i32 = arith.constant 0 : i32
    %c0_i32_0 = arith.constant 0 : i32
    %c0_i32_1 = arith.constant 0 : i32
    return %c0_i32, %c0_i32_0 : i32, i32
  }
  func.func @transform_8(%arg0: i32) -> (i32, i32) {
    %c0_i32 = arith.constant 0 : i32
    %c0_i32_0 = arith.constant 0 : i32
    %c0_i32_1 = arith.constant 0 : i32
    return %c0_i32, %c0_i32_0 : i32, i32
  }
  func.func @transform_9(%arg0: i32) -> (i32, i32) {
    %c0_i32 = arith.constant 0 : i32
    %c0_i32_0 = arith.constant 0 : i32
    return %arg0, %c0_i32 : i32, i32
  }
  func.func @transform_10(%arg0: i32) -> (i32, i32) {
    %c0_i32 = arith.constant 0 : i32
    %c0_i32_0 = arith.constant 0 : i32
    return %arg0, %c0_i32 : i32, i32
  }
  func.func @transform_11(%arg0: i32) -> (i32, i32) {
    %c0_i32 = arith.constant 0 : i32
    %c0_i32_0 = arith.constant 0 : i32
    return %arg0, %c0_i32 : i32, i32
  }
  func.func @transform_12(%arg0: i32) -> (i32, i32) {
    %c0_i32 = arith.constant 0 : i32
    %c0_i32_0 = arith.constant 0 : i32
    return %arg0, %c0_i32 : i32, i32
  }
}

module attributes {stable_mosaic.version = 11 : i64} {
  func.func @_ae_end_bwd_kernel(%arg0: i32, %arg1: memref<8x512xf32, #tpu.memory_space<vmem>>, %arg2: memref<8x384xf32, #tpu.memory_space<vmem>>, %arg3: memref<8x256xf32, #tpu.memory_space<vmem>>, %arg4: memref<8x384xf32, #tpu.memory_space<vmem>>, %arg5: memref<512x384xf32, #tpu.memory_space<vmem>>, %arg6: memref<384x256xf32, #tpu.memory_space<vmem>>, %arg7: memref<256x384xf32, #tpu.memory_space<vmem>>, %arg8: memref<384x512xf32, #tpu.memory_space<vmem>>, %arg9: memref<8x512xf32, #tpu.memory_space<vmem>>, %arg10: memref<8x384xf32, #tpu.memory_space<vmem>>, %arg11: memref<8x256xf32, #tpu.memory_space<vmem>>, %arg12: memref<8x384xf32, #tpu.memory_space<vmem>>) attributes {dimension_semantics = [#tpu.dimension_semantics<parallel>], iteration_bounds = array<i64: 1>, scalar_prefetch = 0 : i64, scratch_operands = 0 : i64, tpu.core_type = #tpu.core_type<tc>, window_params = [{transform_indices = @transform_0, window_bounds = array<i64: 8, 512>}, {transform_indices = @transform_1, window_bounds = array<i64: 8, 384>}, {transform_indices = @transform_2, window_bounds = array<i64: 8, 256>}, {transform_indices = @transform_3, window_bounds = array<i64: 8, 384>}, {pipeline_mode = #tpu.pipeline_mode<synchronous>, transform_indices = @transform_4, window_bounds = array<i64: 512, 384>}, {pipeline_mode = #tpu.pipeline_mode<synchronous>, transform_indices = @transform_5, window_bounds = array<i64: 384, 256>}, {pipeline_mode = #tpu.pipeline_mode<synchronous>, transform_indices = @transform_6, window_bounds = array<i64: 256, 384>}, {pipeline_mode = #tpu.pipeline_mode<synchronous>, transform_indices = @transform_7, window_bounds = array<i64: 384, 512>}, {transform_indices = @transform_8, window_bounds = array<i64: 8, 512>}, {transform_indices = @transform_9, window_bounds = array<i64: 8, 384>}, {transform_indices = @transform_10, window_bounds = array<i64: 8, 256>}, {transform_indices = @transform_11, window_bounds = array<i64: 8, 384>}]} {
    %c0 = arith.constant 0 : index
    %c0_0 = arith.constant 0 : index
    %0 = vector.load %arg1[%c0, %c0_0] : memref<8x512xf32, #tpu.memory_space<vmem>>, vector<8x512xf32>
    %c0_1 = arith.constant 0 : index
    %c0_2 = arith.constant 0 : index
    %1 = vector.load %arg4[%c0_1, %c0_2] : memref<8x384xf32, #tpu.memory_space<vmem>>, vector<8x384xf32>
    %cst = arith.constant 0.000000e+00 : f32
    %2 = vector.broadcast %cst : f32 to vector<8x384xf32>
    %3 = arith.cmpf ogt, %1, %2 : vector<8x384xf32>
    %c0_3 = arith.constant 0 : index
    %c0_4 = arith.constant 0 : index
    %4 = vector.load %arg8[%c0_3, %c0_4] : memref<384x512xf32, #tpu.memory_space<vmem>>, vector<384x512xf32>
    %cst_5 = arith.constant dense<0.000000e+00> : vector<8x384xf32>
    %5 = tpu.matmul %0, %4, %cst_5 {dimension_numbers = #tpu.dot_dimension_numbers<[1], [1], [0], [0], [0, 0, 1, 0], [], []>} : vector<8x512xf32>, vector<384x512xf32>, vector<8x384xf32> -> vector<8x384xf32>
    %cst_6 = arith.constant 0.000000e+00 : f32
    %6 = vector.broadcast %cst_6 : f32 to vector<8x384xf32>
    %7 = arith.select %3, %5, %6 : vector<8x384xi1>, vector<8x384xf32>
    %c0_7 = arith.constant 0 : index
    %c0_8 = arith.constant 0 : index
    %8 = vector.load %arg3[%c0_7, %c0_8] : memref<8x256xf32, #tpu.memory_space<vmem>>, vector<8x256xf32>
    %cst_9 = arith.constant 0.000000e+00 : f32
    %9 = vector.broadcast %cst_9 : f32 to vector<8x256xf32>
    %10 = arith.cmpf ogt, %8, %9 : vector<8x256xf32>
    %c0_10 = arith.constant 0 : index
    %c0_11 = arith.constant 0 : index
    %11 = vector.load %arg7[%c0_10, %c0_11] : memref<256x384xf32, #tpu.memory_space<vmem>>, vector<256x384xf32>
    %cst_12 = arith.constant dense<0.000000e+00> : vector<8x256xf32>
    %12 = tpu.matmul %7, %11, %cst_12 {dimension_numbers = #tpu.dot_dimension_numbers<[1], [1], [0], [0], [0, 0, 1, 0], [], []>} : vector<8x384xf32>, vector<256x384xf32>, vector<8x256xf32> -> vector<8x256xf32>
    %cst_13 = arith.constant 0.000000e+00 : f32
    %13 = vector.broadcast %cst_13 : f32 to vector<8x256xf32>
    %14 = arith.select %10, %12, %13 : vector<8x256xi1>, vector<8x256xf32>
    %c0_14 = arith.constant 0 : index
    %c0_15 = arith.constant 0 : index
    %15 = vector.load %arg2[%c0_14, %c0_15] : memref<8x384xf32, #tpu.memory_space<vmem>>, vector<8x384xf32>
    %cst_16 = arith.constant 0.000000e+00 : f32
    %16 = vector.broadcast %cst_16 : f32 to vector<8x384xf32>
    %17 = arith.cmpf ogt, %15, %16 : vector<8x384xf32>
    %c0_17 = arith.constant 0 : index
    %c0_18 = arith.constant 0 : index
    %18 = vector.load %arg6[%c0_17, %c0_18] : memref<384x256xf32, #tpu.memory_space<vmem>>, vector<384x256xf32>
    %cst_19 = arith.constant dense<0.000000e+00> : vector<8x384xf32>
    %19 = tpu.matmul %14, %18, %cst_19 {dimension_numbers = #tpu.dot_dimension_numbers<[1], [1], [0], [0], [0, 0, 1, 0], [], []>} : vector<8x256xf32>, vector<384x256xf32>, vector<8x384xf32> -> vector<8x384xf32>
    %cst_20 = arith.constant 0.000000e+00 : f32
    %20 = vector.broadcast %cst_20 : f32 to vector<8x384xf32>
    %21 = arith.select %17, %19, %20 : vector<8x384xi1>, vector<8x384xf32>
    %c0_21 = arith.constant 0 : index
    %c0_22 = arith.constant 0 : index
    %22 = vector.load %arg5[%c0_21, %c0_22] : memref<512x384xf32, #tpu.memory_space<vmem>>, vector<512x384xf32>
    %cst_23 = arith.constant dense<0.000000e+00> : vector<8x512xf32>
    %23 = tpu.matmul %21, %22, %cst_23 {dimension_numbers = #tpu.dot_dimension_numbers<[1], [1], [0], [0], [0, 0, 1, 0], [], []>} : vector<8x384xf32>, vector<512x384xf32>, vector<8x512xf32> -> vector<8x512xf32>
    %c0_24 = arith.constant 0 : index
    %c0_25 = arith.constant 0 : index
    %24 = vector.load %arg9[%c0_24, %c0_25] : memref<8x512xf32, #tpu.memory_space<vmem>>, vector<8x512xf32>
    tpu.vector_store %arg9[%c0_24, %c0_25], %23 {strides = array<i32>} : memref<8x512xf32, #tpu.memory_space<vmem>>, vector<8x512xf32>,
    %c0_26 = arith.constant 0 : index
    %c0_27 = arith.constant 0 : index
    %25 = vector.load %arg10[%c0_26, %c0_27] : memref<8x384xf32, #tpu.memory_space<vmem>>, vector<8x384xf32>
    tpu.vector_store %arg10[%c0_26, %c0_27], %21 {strides = array<i32>} : memref<8x384xf32, #tpu.memory_space<vmem>>, vector<8x384xf32>,
    %c0_28 = arith.constant 0 : index
    %c0_29 = arith.constant 0 : index
    %26 = vector.load %arg11[%c0_28, %c0_29] : memref<8x256xf32, #tpu.memory_space<vmem>>, vector<8x256xf32>
    tpu.vector_store %arg11[%c0_28, %c0_29], %14 {strides = array<i32>} : memref<8x256xf32, #tpu.memory_space<vmem>>, vector<8x256xf32>,
    %c0_30 = arith.constant 0 : index
    %c0_31 = arith.constant 0 : index
    %27 = vector.load %arg12[%c0_30, %c0_31] : memref<8x384xf32, #tpu.memory_space<vmem>>, vector<8x384xf32>
    tpu.vector_store %arg12[%c0_30, %c0_31], %7 {strides = array<i32>} : memref<8x384xf32, #tpu.memory_space<vmem>>, vector<8x384xf32>,
    return
  }
  func.func @transform_0(%arg0: i32) -> (i32, i32) {
    %c0_i32 = arith.constant 0 : i32
    %c0_i32_0 = arith.constant 0 : i32
    return %arg0, %c0_i32 : i32, i32
  }
  func.func @transform_1(%arg0: i32) -> (i32, i32) {
    %c0_i32 = arith.constant 0 : i32
    %c0_i32_0 = arith.constant 0 : i32
    return %arg0, %c0_i32 : i32, i32
  }
  func.func @transform_2(%arg0: i32) -> (i32, i32) {
    %c0_i32 = arith.constant 0 : i32
    %c0_i32_0 = arith.constant 0 : i32
    return %arg0, %c0_i32 : i32, i32
  }
  func.func @transform_3(%arg0: i32) -> (i32, i32) {
    %c0_i32 = arith.constant 0 : i32
    %c0_i32_0 = arith.constant 0 : i32
    return %arg0, %c0_i32 : i32, i32
  }
  func.func @transform_4(%arg0: i32) -> (i32, i32) {
    %c0_i32 = arith.constant 0 : i32
    %c0_i32_0 = arith.constant 0 : i32
    %c0_i32_1 = arith.constant 0 : i32
    return %c0_i32, %c0_i32_0 : i32, i32
  }
  func.func @transform_5(%arg0: i32) -> (i32, i32) {
    %c0_i32 = arith.constant 0 : i32
    %c0_i32_0 = arith.constant 0 : i32
    %c0_i32_1 = arith.constant 0 : i32
    return %c0_i32, %c0_i32_0 : i32, i32
  }
  func.func @transform_6(%arg0: i32) -> (i32, i32) {
    %c0_i32 = arith.constant 0 : i32
    %c0_i32_0 = arith.constant 0 : i32
    %c0_i32_1 = arith.constant 0 : i32
    return %c0_i32, %c0_i32_0 : i32, i32
  }
  func.func @transform_7(%arg0: i32) -> (i32, i32) {
    %c0_i32 = arith.constant 0 : i32
    %c0_i32_0 = arith.constant 0 : i32
    %c0_i32_1 = arith.constant 0 : i32
    return %c0_i32, %c0_i32_0 : i32, i32
  }
  func.func @transform_8(%arg0: i32) -> (i32, i32) {
    %c0_i32 = arith.constant 0 : i32
    %c0_i32_0 = arith.constant 0 : i32
    return %arg0, %c0_i32 : i32, i32
  }
  func.func @transform_9(%arg0: i32) -> (i32, i32) {
    %c0_i32 = arith.constant 0 : i32
    %c0_i32_0 = arith.constant 0 : i32
    return %arg0, %c0_i32 : i32, i32
  }
  func.func @transform_10(%arg0: i32) -> (i32, i32) {
    %c0_i32 = arith.constant 0 : i32
    %c0_i32_0 = arith.constant 0 : i32
    return %arg0, %c0_i32 : i32, i32
  }
  func.func @transform_11(%arg0: i32) -> (i32, i32) {
    %c0_i32 = arith.constant 0 : i32
    %c0_i32_0 = arith.constant 0 : i32
    return %arg0, %c0_i32 : i32, i32
  }
}

module attributes {stable_mosaic.version = 11 : i64} {
  func.func @_sgd_kernel(%arg0: memref<8x128xf32, #tpu.memory_space<vmem>>, %arg1: memref<8x128xf32, #tpu.memory_space<vmem>>, %arg2: memref<8x128xf32, #tpu.memory_space<vmem>>, %arg3: memref<8x128xf32, #tpu.memory_space<vmem>>, %arg4: memref<8x128xf32, #tpu.memory_space<vmem>>) attributes {dimension_semantics = [], scalar_prefetch = 0 : i64, scratch_operands = 0 : i64, tpu.core_type = #tpu.core_type<tc>} {
    %c0 = arith.constant 0 : index
    %c0_0 = arith.constant 0 : index
    %0 = vector.load %arg1[%c0, %c0_0] : memref<8x128xf32, #tpu.memory_space<vmem>>, vector<8x128xf32>
    %c0_1 = arith.constant 0 : index
    %c0_2 = arith.constant 0 : index
    %1 = vector.load %arg0[%c0_1, %c0_2] : memref<8x128xf32, #tpu.memory_space<vmem>>, vector<8x128xf32>
    %cst = arith.constant 0.00999999977 : f32
    %2 = vector.broadcast %cst : f32 to vector<8x128xf32>
    %3 = arith.mulf %2, %1 : vector<8x128xf32>
    %4 = arith.addf %0, %3 : vector<8x128xf32>
    %c0_3 = arith.constant 0 : index
    %c0_4 = arith.constant 0 : index
    %5 = vector.load %arg2[%c0_3, %c0_4] : memref<8x128xf32, #tpu.memory_space<vmem>>, vector<8x128xf32>
    %cst_5 = arith.constant 0.899999976 : f32
    %6 = vector.broadcast %cst_5 : f32 to vector<8x128xf32>
    %7 = arith.mulf %6, %5 : vector<8x128xf32>
    %8 = arith.addf %7, %4 : vector<8x128xf32>
    %c0_6 = arith.constant 0 : index
    %c0_7 = arith.constant 0 : index
    %9 = vector.load %arg4[%c0_6, %c0_7] : memref<8x128xf32, #tpu.memory_space<vmem>>, vector<8x128xf32>
    tpu.vector_store %arg4[%c0_6, %c0_7], %8 {strides = array<i32>} : memref<8x128xf32, #tpu.memory_space<vmem>>, vector<8x128xf32>,
    %c0_8 = arith.constant 0 : index
    %c0_9 = arith.constant 0 : index
    %10 = vector.load %arg0[%c0_8, %c0_9] : memref<8x128xf32, #tpu.memory_space<vmem>>, vector<8x128xf32>
    %cst_10 = arith.constant 1.500000e-02 : f32
    %11 = vector.broadcast %cst_10 : f32 to vector<8x128xf32>
    %12 = arith.mulf %11, %8 : vector<8x128xf32>
    %13 = arith.subf %10, %12 : vector<8x128xf32>
    %c0_11 = arith.constant 0 : index
    %c0_12 = arith.constant 0 : index
    %14 = vector.load %arg3[%c0_11, %c0_12] : memref<8x128xf32, #tpu.memory_space<vmem>>, vector<8x128xf32>
    tpu.vector_store %arg3[%c0_11, %c0_12], %13 {strides = array<i32>} : memref<8x128xf32, #tpu.memory_space<vmem>>, vector<8x128xf32>,
    return
  }
}

module attributes {stable_mosaic.version = 11 : i64} {
  func.func @_sgd_kernel(%arg0: memref<8x128xf32, #tpu.memory_space<vmem>>, %arg1: memref<8x128xf32, #tpu.memory_space<vmem>>, %arg2: memref<8x128xf32, #tpu.memory_space<vmem>>, %arg3: memref<8x128xf32, #tpu.memory_space<vmem>>, %arg4: memref<8x128xf32, #tpu.memory_space<vmem>>) attributes {dimension_semantics = [], scalar_prefetch = 0 : i64, scratch_operands = 0 : i64, tpu.core_type = #tpu.core_type<tc>} {
    %c0 = arith.constant 0 : index
    %c0_0 = arith.constant 0 : index
    %0 = vector.load %arg1[%c0, %c0_0] : memref<8x128xf32, #tpu.memory_space<vmem>>, vector<8x128xf32>
    %c0_1 = arith.constant 0 : index
    %c0_2 = arith.constant 0 : index
    %1 = vector.load %arg0[%c0_1, %c0_2] : memref<8x128xf32, #tpu.memory_space<vmem>>, vector<8x128xf32>
    %cst = arith.constant 0.00999999977 : f32
    %2 = vector.broadcast %cst : f32 to vector<8x128xf32>
    %3 = arith.mulf %2, %1 : vector<8x128xf32>
    %4 = arith.addf %0, %3 : vector<8x128xf32>
    %c0_3 = arith.constant 0 : index
    %c0_4 = arith.constant 0 : index
    %5 = vector.load %arg2[%c0_3, %c0_4] : memref<8x128xf32, #tpu.memory_space<vmem>>, vector<8x128xf32>
    %cst_5 = arith.constant 0.899999976 : f32
    %6 = vector.broadcast %cst_5 : f32 to vector<8x128xf32>
    %7 = arith.mulf %6, %5 : vector<8x128xf32>
    %8 = arith.addf %7, %4 : vector<8x128xf32>
    %c0_6 = arith.constant 0 : index
    %c0_7 = arith.constant 0 : index
    %9 = vector.load %arg4[%c0_6, %c0_7] : memref<8x128xf32, #tpu.memory_space<vmem>>, vector<8x128xf32>
    tpu.vector_store %arg4[%c0_6, %c0_7], %8 {strides = array<i32>} : memref<8x128xf32, #tpu.memory_space<vmem>>, vector<8x128xf32>,
    %c0_8 = arith.constant 0 : index
    %c0_9 = arith.constant 0 : index
    %10 = vector.load %arg0[%c0_8, %c0_9] : memref<8x128xf32, #tpu.memory_space<vmem>>, vector<8x128xf32>
    %cst_10 = arith.constant 1.500000e-02 : f32
    %11 = vector.broadcast %cst_10 : f32 to vector<8x128xf32>
    %12 = arith.mulf %11, %8 : vector<8x128xf32>
    %13 = arith.subf %10, %12 : vector<8x128xf32>
    %c0_11 = arith.constant 0 : index
    %c0_12 = arith.constant 0 : index
    %14 = vector.load %arg3[%c0_11, %c0_12] : memref<8x128xf32, #tpu.memory_space<vmem>>, vector<8x128xf32>
    tpu.vector_store %arg3[%c0_11, %c0_12], %13 {strides = array<i32>} : memref<8x128xf32, #tpu.memory_space<vmem>>, vector<8x128xf32>,
    return
  }
}

module attributes {stable_mosaic.version = 11 : i64} {
  func.func @_ae_end_bwd_kernel(%arg0: i32, %arg1: memref<8x512xf32, #tpu.memory_space<vmem>>, %arg2: memref<8x384xf32, #tpu.memory_space<vmem>>, %arg3: memref<8x256xf32, #tpu.memory_space<vmem>>, %arg4: memref<8x384xf32, #tpu.memory_space<vmem>>, %arg5: memref<512x384xf32, #tpu.memory_space<vmem>>, %arg6: memref<384x256xf32, #tpu.memory_space<vmem>>, %arg7: memref<256x384xf32, #tpu.memory_space<vmem>>, %arg8: memref<384x512xf32, #tpu.memory_space<vmem>>, %arg9: memref<8x512xf32, #tpu.memory_space<vmem>>, %arg10: memref<8x384xf32, #tpu.memory_space<vmem>>, %arg11: memref<8x256xf32, #tpu.memory_space<vmem>>, %arg12: memref<8x384xf32, #tpu.memory_space<vmem>>) attributes {dimension_semantics = [#tpu.dimension_semantics<parallel>], iteration_bounds = array<i64: 1>, scalar_prefetch = 0 : i64, scratch_operands = 0 : i64, tpu.core_type = #tpu.core_type<tc>, window_params = [{transform_indices = @transform_0, window_bounds = array<i64: 8, 512>}, {transform_indices = @transform_1, window_bounds = array<i64: 8, 384>}, {transform_indices = @transform_2, window_bounds = array<i64: 8, 256>}, {transform_indices = @transform_3, window_bounds = array<i64: 8, 384>}, {pipeline_mode = #tpu.pipeline_mode<synchronous>, transform_indices = @transform_4, window_bounds = array<i64: 512, 384>}, {pipeline_mode = #tpu.pipeline_mode<synchronous>, transform_indices = @transform_5, window_bounds = array<i64: 384, 256>}, {pipeline_mode = #tpu.pipeline_mode<synchronous>, transform_indices = @transform_6, window_bounds = array<i64: 256, 384>}, {pipeline_mode = #tpu.pipeline_mode<synchronous>, transform_indices = @transform_7, window_bounds = array<i64: 384, 512>}, {transform_indices = @transform_8, window_bounds = array<i64: 8, 512>}, {transform_indices = @transform_9, window_bounds = array<i64: 8, 384>}, {transform_indices = @transform_10, window_bounds = array<i64: 8, 256>}, {transform_indices = @transform_11, window_bounds = array<i64: 8, 384>}]} {
    %c0 = arith.constant 0 : index
    %c0_0 = arith.constant 0 : index
    %0 = vector.load %arg1[%c0, %c0_0] : memref<8x512xf32, #tpu.memory_space<vmem>>, vector<8x512xf32>
    %c0_1 = arith.constant 0 : index
    %c0_2 = arith.constant 0 : index
    %1 = vector.load %arg4[%c0_1, %c0_2] : memref<8x384xf32, #tpu.memory_space<vmem>>, vector<8x384xf32>
    %cst = arith.constant 0.000000e+00 : f32
    %2 = vector.broadcast %cst : f32 to vector<8x384xf32>
    %3 = arith.cmpf ogt, %1, %2 : vector<8x384xf32>
    %c0_3 = arith.constant 0 : index
    %c0_4 = arith.constant 0 : index
    %4 = vector.load %arg8[%c0_3, %c0_4] : memref<384x512xf32, #tpu.memory_space<vmem>>, vector<384x512xf32>
    %cst_5 = arith.constant dense<0.000000e+00> : vector<8x384xf32>
    %5 = tpu.matmul %0, %4, %cst_5 {dimension_numbers = #tpu.dot_dimension_numbers<[1], [1], [0], [0], [0, 0, 1, 0], [], []>} : vector<8x512xf32>, vector<384x512xf32>, vector<8x384xf32> -> vector<8x384xf32>
    %cst_6 = arith.constant 0.000000e+00 : f32
    %6 = vector.broadcast %cst_6 : f32 to vector<8x384xf32>
    %7 = arith.select %3, %5, %6 : vector<8x384xi1>, vector<8x384xf32>
    %c0_7 = arith.constant 0 : index
    %c0_8 = arith.constant 0 : index
    %8 = vector.load %arg3[%c0_7, %c0_8] : memref<8x256xf32, #tpu.memory_space<vmem>>, vector<8x256xf32>
    %cst_9 = arith.constant 0.000000e+00 : f32
    %9 = vector.broadcast %cst_9 : f32 to vector<8x256xf32>
    %10 = arith.cmpf ogt, %8, %9 : vector<8x256xf32>
    %c0_10 = arith.constant 0 : index
    %c0_11 = arith.constant 0 : index
    %11 = vector.load %arg7[%c0_10, %c0_11] : memref<256x384xf32, #tpu.memory_space<vmem>>, vector<256x384xf32>
    %cst_12 = arith.constant dense<0.000000e+00> : vector<8x256xf32>
    %12 = tpu.matmul %7, %11, %cst_12 {dimension_numbers = #tpu.dot_dimension_numbers<[1], [1], [0], [0], [0, 0, 1, 0], [], []>} : vector<8x384xf32>, vector<256x384xf32>, vector<8x256xf32> -> vector<8x256xf32>
    %cst_13 = arith.constant 0.000000e+00 : f32
    %13 = vector.broadcast %cst_13 : f32 to vector<8x256xf32>
    %14 = arith.select %10, %12, %13 : vector<8x256xi1>, vector<8x256xf32>
    %c0_14 = arith.constant 0 : index
    %c0_15 = arith.constant 0 : index
    %15 = vector.load %arg2[%c0_14, %c0_15] : memref<8x384xf32, #tpu.memory_space<vmem>>, vector<8x384xf32>
    %cst_16 = arith.constant 0.000000e+00 : f32
    %16 = vector.broadcast %cst_16 : f32 to vector<8x384xf32>
    %17 = arith.cmpf ogt, %15, %16 : vector<8x384xf32>
    %c0_17 = arith.constant 0 : index
    %c0_18 = arith.constant 0 : index
    %18 = vector.load %arg6[%c0_17, %c0_18] : memref<384x256xf32, #tpu.memory_space<vmem>>, vector<384x256xf32>
    %cst_19 = arith.constant dense<0.000000e+00> : vector<8x384xf32>
    %19 = tpu.matmul %14, %18, %cst_19 {dimension_numbers = #tpu.dot_dimension_numbers<[1], [1], [0], [0], [0, 0, 1, 0], [], []>} : vector<8x256xf32>, vector<384x256xf32>, vector<8x384xf32> -> vector<8x384xf32>
    %cst_20 = arith.constant 0.000000e+00 : f32
    %20 = vector.broadcast %cst_20 : f32 to vector<8x384xf32>
    %21 = arith.select %17, %19, %20 : vector<8x384xi1>, vector<8x384xf32>
    %c0_21 = arith.constant 0 : index
    %c0_22 = arith.constant 0 : index
    %22 = vector.load %arg5[%c0_21, %c0_22] : memref<512x384xf32, #tpu.memory_space<vmem>>, vector<512x384xf32>
    %cst_23 = arith.constant dense<0.000000e+00> : vector<8x512xf32>
    %23 = tpu.matmul %21, %22, %cst_23 {dimension_numbers = #tpu.dot_dimension_numbers<[1], [1], [0], [0], [0, 0, 1, 0], [], []>} : vector<8x384xf32>, vector<512x384xf32>, vector<8x512xf32> -> vector<8x512xf32>
    %c0_24 = arith.constant 0 : index
    %c0_25 = arith.constant 0 : index
    %24 = vector.load %arg9[%c0_24, %c0_25] : memref<8x512xf32, #tpu.memory_space<vmem>>, vector<8x512xf32>
    tpu.vector_store %arg9[%c0_24, %c0_25], %23 {strides = array<i32>} : memref<8x512xf32, #tpu.memory_space<vmem>>, vector<8x512xf32>,
    %c0_26 = arith.constant 0 : index
    %c0_27 = arith.constant 0 : index
    %25 = vector.load %arg10[%c0_26, %c0_27] : memref<8x384xf32, #tpu.memory_space<vmem>>, vector<8x384xf32>
    tpu.vector_store %arg10[%c0_26, %c0_27], %21 {strides = array<i32>} : memref<8x384xf32, #tpu.memory_space<vmem>>, vector<8x384xf32>,
    %c0_28 = arith.constant 0 : index
    %c0_29 = arith.constant 0 : index
    %26 = vector.load %arg11[%c0_28, %c0_29] : memref<8x256xf32, #tpu.memory_space<vmem>>, vector<8x256xf32>
    tpu.vector_store %arg11[%c0_28, %c0_29], %14 {strides = array<i32>} : memref<8x256xf32, #tpu.memory_space<vmem>>, vector<8x256xf32>,
    %c0_30 = arith.constant 0 : index
    %c0_31 = arith.constant 0 : index
    %27 = vector.load %arg12[%c0_30, %c0_31] : memref<8x384xf32, #tpu.memory_space<vmem>>, vector<8x384xf32>
    tpu.vector_store %arg12[%c0_30, %c0_31], %7 {strides = array<i32>} : memref<8x384xf32, #tpu.memory_space<vmem>>, vector<8x384xf32>,
    return
  }
  func.func @transform_0(%arg0: i32) -> (i32, i32) {
    %c0_i32 = arith.constant 0 : i32
    %c0_i32_0 = arith.constant 0 : i32
    return %arg0, %c0_i32 : i32, i32
  }
  func.func @transform_1(%arg0: i32) -> (i32, i32) {
    %c0_i32 = arith.constant 0 : i32
    %c0_i32_0 = arith.constant 0 : i32
    return %arg0, %c0_i32 : i32, i32
  }
  func.func @transform_2(%arg0: i32) -> (i32, i32) {
    %c0_i32 = arith.constant 0 : i32
    %c0_i32_0 = arith.constant 0 : i32
    return %arg0, %c0_i32 : i32, i32
  }
  func.func @transform_3(%arg0: i32) -> (i32, i32) {
    %c0_i32 = arith.constant 0 : i32
    %c0_i32_0 = arith.constant 0 : i32
    return %arg0, %c0_i32 : i32, i32
  }
  func.func @transform_4(%arg0: i32) -> (i32, i32) {
    %c0_i32 = arith.constant 0 : i32
    %c0_i32_0 = arith.constant 0 : i32
    %c0_i32_1 = arith.constant 0 : i32
    return %c0_i32, %c0_i32_0 : i32, i32
  }
  func.func @transform_5(%arg0: i32) -> (i32, i32) {
    %c0_i32 = arith.constant 0 : i32
    %c0_i32_0 = arith.constant 0 : i32
    %c0_i32_1 = arith.constant 0 : i32
    return %c0_i32, %c0_i32_0 : i32, i32
  }
  func.func @transform_6(%arg0: i32) -> (i32, i32) {
    %c0_i32 = arith.constant 0 : i32
    %c0_i32_0 = arith.constant 0 : i32
    %c0_i32_1 = arith.constant 0 : i32
    return %c0_i32, %c0_i32_0 : i32, i32
  }
  func.func @transform_7(%arg0: i32) -> (i32, i32) {
    %c0_i32 = arith.constant 0 : i32
    %c0_i32_0 = arith.constant 0 : i32
    %c0_i32_1 = arith.constant 0 : i32
    return %c0_i32, %c0_i32_0 : i32, i32
  }
  func.func @transform_8(%arg0: i32) -> (i32, i32) {
    %c0_i32 = arith.constant 0 : i32
    %c0_i32_0 = arith.constant 0 : i32
    return %arg0, %c0_i32 : i32, i32
  }
  func.func @transform_9(%arg0: i32) -> (i32, i32) {
    %c0_i32 = arith.constant 0 : i32
    %c0_i32_0 = arith.constant 0 : i32
    return %arg0, %c0_i32 : i32, i32
  }
  func.func @transform_10(%arg0: i32) -> (i32, i32) {
    %c0_i32 = arith.constant 0 : i32
    %c0_i32_0 = arith.constant 0 : i32
    return %arg0, %c0_i32 : i32, i32
  }
  func.func @transform_11(%arg0: i32) -> (i32, i32) {
    %c0_i32 = arith.constant 0 : i32
    %c0_i32_0 = arith.constant 0 : i32
    return %arg0, %c0_i32 : i32, i32
  }
}

module attributes {stable_mosaic.version = 11 : i64} {
  func.func @_mm_nt_kernel(%arg0: i32, %arg1: i32, %arg2: i32, %arg3: memref<8x512xf32, #tpu.memory_space<vmem>>, %arg4: memref<128x512xf32, #tpu.memory_space<vmem>>, %arg5: memref<8x128xf32, #tpu.memory_space<vmem>>, %arg6: memref<8x128xf32, #tpu.memory_space<vmem>>) attributes {dimension_semantics = [#tpu.dimension_semantics<parallel>, #tpu.dimension_semantics<parallel>, #tpu.dimension_semantics<arbitrary>], iteration_bounds = array<i64: 1, 1, 1>, scalar_prefetch = 0 : i64, scratch_operands = 1 : i64, tpu.core_type = #tpu.core_type<tc>, window_params = [{transform_indices = @transform_0, window_bounds = array<i64: 8, 512>}, {transform_indices = @transform_1, window_bounds = array<i64: 128, 512>}, {transform_indices = @transform_2, window_bounds = array<i64: 8, 128>}]} {
    %c0_i32 = arith.constant 0 : i32
    %0 = arith.cmpi eq, %arg2, %c0_i32 : i32
    %1 = arith.extui %0 : i1 to i32
    %c0_i32_0 = arith.constant 0 : i32
    %2 = arith.cmpi ne, %1, %c0_i32_0 : i32
    scf.if %2 {
      %cst_10 = arith.constant 0.000000e+00 : f32
      %12 = vector.broadcast %cst_10 : f32 to vector<8x128xf32>
      %c0_11 = arith.constant 0 : index
      %c0_12 = arith.constant 0 : index
      %13 = vector.load %arg6[%c0_11, %c0_12] : memref<8x128xf32, #tpu.memory_space<vmem>>, vector<8x128xf32>
      tpu.vector_store %arg6[%c0_11, %c0_12], %12 {strides = array<i32>} : memref<8x128xf32, #tpu.memory_space<vmem>>, vector<8x128xf32>,
    } else {
    }
    %c0 = arith.constant 0 : index
    %c0_1 = arith.constant 0 : index
    %3 = vector.load %arg6[%c0, %c0_1] : memref<8x128xf32, #tpu.memory_space<vmem>>, vector<8x128xf32>
    %c0_2 = arith.constant 0 : index
    %c0_3 = arith.constant 0 : index
    %4 = vector.load %arg3[%c0_2, %c0_3] : memref<8x512xf32, #tpu.memory_space<vmem>>, vector<8x512xf32>
    %c0_4 = arith.constant 0 : index
    %c0_5 = arith.constant 0 : index
    %5 = vector.load %arg4[%c0_4, %c0_5] : memref<128x512xf32, #tpu.memory_space<vmem>>, vector<128x512xf32>
    %cst = arith.constant dense<0.000000e+00> : vector<8x128xf32>
    %6 = tpu.matmul %4, %5, %cst {dimension_numbers = #tpu.dot_dimension_numbers<[1], [1], [0], [0], [0, 0, 1, 0], [], []>} : vector<8x512xf32>, vector<128x512xf32>, vector<8x128xf32> -> vector<8x128xf32>
    %7 = arith.addf %3, %6 : vector<8x128xf32>
    %c0_6 = arith.constant 0 : index
    %c0_7 = arith.constant 0 : index
    %8 = vector.load %arg6[%c0_6, %c0_7] : memref<8x128xf32, #tpu.memory_space<vmem>>, vector<8x128xf32>
    tpu.vector_store %arg6[%c0_6, %c0_7], %7 {strides = array<i32>} : memref<8x128xf32, #tpu.memory_space<vmem>>, vector<8x128xf32>,
    %c0_i32_8 = arith.constant 0 : i32
    %9 = arith.cmpi eq, %arg2, %c0_i32_8 : i32
    %10 = arith.extui %9 : i1 to i32
    %c0_i32_9 = arith.constant 0 : i32
    %11 = arith.cmpi ne, %10, %c0_i32_9 : i32
    scf.if %11 {
      %c0_10 = arith.constant 0 : index
      %c0_11 = arith.constant 0 : index
      %12 = vector.load %arg6[%c0_10, %c0_11] : memref<8x128xf32, #tpu.memory_space<vmem>>, vector<8x128xf32>
      %c0_12 = arith.constant 0 : index
      %c0_13 = arith.constant 0 : index
      %13 = vector.load %arg5[%c0_12, %c0_13] : memref<8x128xf32, #tpu.memory_space<vmem>>, vector<8x128xf32>
      tpu.vector_store %arg5[%c0_12, %c0_13], %12 {strides = array<i32>} : memref<8x128xf32, #tpu.memory_space<vmem>>, vector<8x128xf32>,
    } else {
    }
    return
  }
  func.func @transform_0(%arg0: i32, %arg1: i32, %arg2: i32) -> (i32, i32) {
    %c0_i32 = arith.constant 0 : i32
    return %arg0, %arg2 : i32, i32
  }
  func.func @transform_1(%arg0: i32, %arg1: i32, %arg2: i32) -> (i32, i32) {
    %c0_i32 = arith.constant 0 : i32
    return %arg1, %arg2 : i32, i32
  }
  func.func @transform_2(%arg0: i32, %arg1: i32, %arg2: i32) -> (i32, i32) {
    %c0_i32 = arith.constant 0 : i32
    return %arg0, %arg1 : i32, i32
  }
}

module attributes {stable_mosaic.version = 11 : i64} {
  func.func @_mm_nt_kernel(%arg0: i32, %arg1: i32, %arg2: i32, %arg3: memref<256x128xf32, #tpu.memory_space<vmem>>, %arg4: memref<128x128xf32, #tpu.memory_space<vmem>>, %arg5: memref<256x128xf32, #tpu.memory_space<vmem>>, %arg6: memref<256x128xf32, #tpu.memory_space<vmem>>) attributes {dimension_semantics = [#tpu.dimension_semantics<parallel>, #tpu.dimension_semantics<parallel>, #tpu.dimension_semantics<arbitrary>], iteration_bounds = array<i64: 2, 1, 1>, scalar_prefetch = 0 : i64, scratch_operands = 1 : i64, tpu.core_type = #tpu.core_type<tc>, window_params = [{transform_indices = @transform_0, window_bounds = array<i64: 256, 128>}, {transform_indices = @transform_1, window_bounds = array<i64: 128, 128>}, {transform_indices = @transform_2, window_bounds = array<i64: 256, 128>}]} {
    %c0_i32 = arith.constant 0 : i32
    %0 = arith.cmpi eq, %arg2, %c0_i32 : i32
    %1 = arith.extui %0 : i1 to i32
    %c0_i32_0 = arith.constant 0 : i32
    %2 = arith.cmpi ne, %1, %c0_i32_0 : i32
    scf.if %2 {
      %cst_10 = arith.constant 0.000000e+00 : f32
      %12 = vector.broadcast %cst_10 : f32 to vector<256x128xf32>
      %c0_11 = arith.constant 0 : index
      %c0_12 = arith.constant 0 : index
      %13 = vector.load %arg6[%c0_11, %c0_12] : memref<256x128xf32, #tpu.memory_space<vmem>>, vector<256x128xf32>
      tpu.vector_store %arg6[%c0_11, %c0_12], %12 {strides = array<i32>} : memref<256x128xf32, #tpu.memory_space<vmem>>, vector<256x128xf32>,
    } else {
    }
    %c0 = arith.constant 0 : index
    %c0_1 = arith.constant 0 : index
    %3 = vector.load %arg6[%c0, %c0_1] : memref<256x128xf32, #tpu.memory_space<vmem>>, vector<256x128xf32>
    %c0_2 = arith.constant 0 : index
    %c0_3 = arith.constant 0 : index
    %4 = vector.load %arg3[%c0_2, %c0_3] : memref<256x128xf32, #tpu.memory_space<vmem>>, vector<256x128xf32>
    %c0_4 = arith.constant 0 : index
    %c0_5 = arith.constant 0 : index
    %5 = vector.load %arg4[%c0_4, %c0_5] : memref<128x128xf32, #tpu.memory_space<vmem>>, vector<128x128xf32>
    %cst = arith.constant dense<0.000000e+00> : vector<256x128xf32>
    %6 = tpu.matmul %4, %5, %cst {dimension_numbers = #tpu.dot_dimension_numbers<[1], [1], [0], [0], [0, 0, 1, 0], [], []>} : vector<256x128xf32>, vector<128x128xf32>, vector<256x128xf32> -> vector<256x128xf32>
    %7 = arith.addf %3, %6 : vector<256x128xf32>
    %c0_6 = arith.constant 0 : index
    %c0_7 = arith.constant 0 : index
    %8 = vector.load %arg6[%c0_6, %c0_7] : memref<256x128xf32, #tpu.memory_space<vmem>>, vector<256x128xf32>
    tpu.vector_store %arg6[%c0_6, %c0_7], %7 {strides = array<i32>} : memref<256x128xf32, #tpu.memory_space<vmem>>, vector<256x128xf32>,
    %c0_i32_8 = arith.constant 0 : i32
    %9 = arith.cmpi eq, %arg2, %c0_i32_8 : i32
    %10 = arith.extui %9 : i1 to i32
    %c0_i32_9 = arith.constant 0 : i32
    %11 = arith.cmpi ne, %10, %c0_i32_9 : i32
    scf.if %11 {
      %c0_10 = arith.constant 0 : index
      %c0_11 = arith.constant 0 : index
      %12 = vector.load %arg6[%c0_10, %c0_11] : memref<256x128xf32, #tpu.memory_space<vmem>>, vector<256x128xf32>
      %c0_12 = arith.constant 0 : index
      %c0_13 = arith.constant 0 : index
      %13 = vector.load %arg5[%c0_12, %c0_13] : memref<256x128xf32, #tpu.memory_space<vmem>>, vector<256x128xf32>
      tpu.vector_store %arg5[%c0_12, %c0_13], %12 {strides = array<i32>} : memref<256x128xf32, #tpu.memory_space<vmem>>, vector<256x128xf32>,
    } else {
    }
    return
  }
  func.func @transform_0(%arg0: i32, %arg1: i32, %arg2: i32) -> (i32, i32) {
    %c0_i32 = arith.constant 0 : i32
    return %arg0, %arg2 : i32, i32
  }
  func.func @transform_1(%arg0: i32, %arg1: i32, %arg2: i32) -> (i32, i32) {
    %c0_i32 = arith.constant 0 : i32
    return %arg1, %arg2 : i32, i32
  }
  func.func @transform_2(%arg0: i32, %arg1: i32, %arg2: i32) -> (i32, i32) {
    %c0_i32 = arith.constant 0 : i32
    return %arg0, %arg1 : i32, i32
  }
}

module attributes {stable_mosaic.version = 11 : i64} {
  func.func @_mm_nt_kernel(%arg0: i32, %arg1: i32, %arg2: i32, %arg3: memref<256x128xf32, #tpu.memory_space<vmem>>, %arg4: memref<256x128xf32, #tpu.memory_space<vmem>>, %arg5: memref<256x256xf32, #tpu.memory_space<vmem>>, %arg6: memref<256x256xf32, #tpu.memory_space<vmem>>) attributes {dimension_semantics = [#tpu.dimension_semantics<parallel>, #tpu.dimension_semantics<parallel>, #tpu.dimension_semantics<arbitrary>], iteration_bounds = array<i64: 2, 3, 1>, scalar_prefetch = 0 : i64, scratch_operands = 1 : i64, tpu.core_type = #tpu.core_type<tc>, window_params = [{transform_indices = @transform_0, window_bounds = array<i64: 256, 128>}, {transform_indices = @transform_1, window_bounds = array<i64: 256, 128>}, {transform_indices = @transform_2, window_bounds = array<i64: 256, 256>}]} {
    %c0_i32 = arith.constant 0 : i32
    %0 = arith.cmpi eq, %arg2, %c0_i32 : i32
    %1 = arith.extui %0 : i1 to i32
    %c0_i32_0 = arith.constant 0 : i32
    %2 = arith.cmpi ne, %1, %c0_i32_0 : i32
    scf.if %2 {
      %cst_10 = arith.constant 0.000000e+00 : f32
      %12 = vector.broadcast %cst_10 : f32 to vector<256x256xf32>
      %c0_11 = arith.constant 0 : index
      %c0_12 = arith.constant 0 : index
      %13 = vector.load %arg6[%c0_11, %c0_12] : memref<256x256xf32, #tpu.memory_space<vmem>>, vector<256x256xf32>
      tpu.vector_store %arg6[%c0_11, %c0_12], %12 {strides = array<i32>} : memref<256x256xf32, #tpu.memory_space<vmem>>, vector<256x256xf32>,
    } else {
    }
    %c0 = arith.constant 0 : index
    %c0_1 = arith.constant 0 : index
    %3 = vector.load %arg6[%c0, %c0_1] : memref<256x256xf32, #tpu.memory_space<vmem>>, vector<256x256xf32>
    %c0_2 = arith.constant 0 : index
    %c0_3 = arith.constant 0 : index
    %4 = vector.load %arg3[%c0_2, %c0_3] : memref<256x128xf32, #tpu.memory_space<vmem>>, vector<256x128xf32>
    %c0_4 = arith.constant 0 : index
    %c0_5 = arith.constant 0 : index
    %5 = vector.load %arg4[%c0_4, %c0_5] : memref<256x128xf32, #tpu.memory_space<vmem>>, vector<256x128xf32>
    %cst = arith.constant dense<0.000000e+00> : vector<256x256xf32>
    %6 = tpu.matmul %4, %5, %cst {dimension_numbers = #tpu.dot_dimension_numbers<[1], [1], [0], [0], [0, 0, 1, 0], [], []>} : vector<256x128xf32>, vector<256x128xf32>, vector<256x256xf32> -> vector<256x256xf32>
    %7 = arith.addf %3, %6 : vector<256x256xf32>
    %c0_6 = arith.constant 0 : index
    %c0_7 = arith.constant 0 : index
    %8 = vector.load %arg6[%c0_6, %c0_7] : memref<256x256xf32, #tpu.memory_space<vmem>>, vector<256x256xf32>
    tpu.vector_store %arg6[%c0_6, %c0_7], %7 {strides = array<i32>} : memref<256x256xf32, #tpu.memory_space<vmem>>, vector<256x256xf32>,
    %c0_i32_8 = arith.constant 0 : i32
    %9 = arith.cmpi eq, %arg2, %c0_i32_8 : i32
    %10 = arith.extui %9 : i1 to i32
    %c0_i32_9 = arith.constant 0 : i32
    %11 = arith.cmpi ne, %10, %c0_i32_9 : i32
    scf.if %11 {
      %c0_10 = arith.constant 0 : index
      %c0_11 = arith.constant 0 : index
      %12 = vector.load %arg6[%c0_10, %c0_11] : memref<256x256xf32, #tpu.memory_space<vmem>>, vector<256x256xf32>
      %c0_12 = arith.constant 0 : index
      %c0_13 = arith.constant 0 : index
      %13 = vector.load %arg5[%c0_12, %c0_13] : memref<256x256xf32, #tpu.memory_space<vmem>>, vector<256x256xf32>
      tpu.vector_store %arg5[%c0_12, %c0_13], %12 {strides = array<i32>} : memref<256x256xf32, #tpu.memory_space<vmem>>, vector<256x256xf32>,
    } else {
    }
    return
  }
  func.func @transform_0(%arg0: i32, %arg1: i32, %arg2: i32) -> (i32, i32) {
    %c0_i32 = arith.constant 0 : i32
    return %arg0, %arg2 : i32, i32
  }
  func.func @transform_1(%arg0: i32, %arg1: i32, %arg2: i32) -> (i32, i32) {
    %c0_i32 = arith.constant 0 : i32
    return %arg1, %arg2 : i32, i32
  }
  func.func @transform_2(%arg0: i32, %arg1: i32, %arg2: i32) -> (i32, i32) {
    %c0_i32 = arith.constant 0 : i32
    return %arg0, %arg1 : i32, i32
  }
}

module attributes {stable_mosaic.version = 11 : i64} {
  func.func @_mm_nt_kernel(%arg0: i32, %arg1: i32, %arg2: i32, %arg3: memref<256x128xf32, #tpu.memory_space<vmem>>, %arg4: memref<128x128xf32, #tpu.memory_space<vmem>>, %arg5: memref<256x128xf32, #tpu.memory_space<vmem>>, %arg6: memref<256x128xf32, #tpu.memory_space<vmem>>) attributes {dimension_semantics = [#tpu.dimension_semantics<parallel>, #tpu.dimension_semantics<parallel>, #tpu.dimension_semantics<arbitrary>], iteration_bounds = array<i64: 2, 1, 1>, scalar_prefetch = 0 : i64, scratch_operands = 1 : i64, tpu.core_type = #tpu.core_type<tc>, window_params = [{transform_indices = @transform_0, window_bounds = array<i64: 256, 128>}, {transform_indices = @transform_1, window_bounds = array<i64: 128, 128>}, {transform_indices = @transform_2, window_bounds = array<i64: 256, 128>}]} {
    %c0_i32 = arith.constant 0 : i32
    %0 = arith.cmpi eq, %arg2, %c0_i32 : i32
    %1 = arith.extui %0 : i1 to i32
    %c0_i32_0 = arith.constant 0 : i32
    %2 = arith.cmpi ne, %1, %c0_i32_0 : i32
    scf.if %2 {
      %cst_10 = arith.constant 0.000000e+00 : f32
      %12 = vector.broadcast %cst_10 : f32 to vector<256x128xf32>
      %c0_11 = arith.constant 0 : index
      %c0_12 = arith.constant 0 : index
      %13 = vector.load %arg6[%c0_11, %c0_12] : memref<256x128xf32, #tpu.memory_space<vmem>>, vector<256x128xf32>
      tpu.vector_store %arg6[%c0_11, %c0_12], %12 {strides = array<i32>} : memref<256x128xf32, #tpu.memory_space<vmem>>, vector<256x128xf32>,
    } else {
    }
    %c0 = arith.constant 0 : index
    %c0_1 = arith.constant 0 : index
    %3 = vector.load %arg6[%c0, %c0_1] : memref<256x128xf32, #tpu.memory_space<vmem>>, vector<256x128xf32>
    %c0_2 = arith.constant 0 : index
    %c0_3 = arith.constant 0 : index
    %4 = vector.load %arg3[%c0_2, %c0_3] : memref<256x128xf32, #tpu.memory_space<vmem>>, vector<256x128xf32>
    %c0_4 = arith.constant 0 : index
    %c0_5 = arith.constant 0 : index
    %5 = vector.load %arg4[%c0_4, %c0_5] : memref<128x128xf32, #tpu.memory_space<vmem>>, vector<128x128xf32>
    %cst = arith.constant dense<0.000000e+00> : vector<256x128xf32>
    %6 = tpu.matmul %4, %5, %cst {dimension_numbers = #tpu.dot_dimension_numbers<[1], [1], [0], [0], [0, 0, 1, 0], [], []>} : vector<256x128xf32>, vector<128x128xf32>, vector<256x128xf32> -> vector<256x128xf32>
    %7 = arith.addf %3, %6 : vector<256x128xf32>
    %c0_6 = arith.constant 0 : index
    %c0_7 = arith.constant 0 : index
    %8 = vector.load %arg6[%c0_6, %c0_7] : memref<256x128xf32, #tpu.memory_space<vmem>>, vector<256x128xf32>
    tpu.vector_store %arg6[%c0_6, %c0_7], %7 {strides = array<i32>} : memref<256x128xf32, #tpu.memory_space<vmem>>, vector<256x128xf32>,
    %c0_i32_8 = arith.constant 0 : i32
    %9 = arith.cmpi eq, %arg2, %c0_i32_8 : i32
    %10 = arith.extui %9 : i1 to i32
    %c0_i32_9 = arith.constant 0 : i32
    %11 = arith.cmpi ne, %10, %c0_i32_9 : i32
    scf.if %11 {
      %c0_10 = arith.constant 0 : index
      %c0_11 = arith.constant 0 : index
      %12 = vector.load %arg6[%c0_10, %c0_11] : memref<256x128xf32, #tpu.memory_space<vmem>>, vector<256x128xf32>
      %c0_12 = arith.constant 0 : index
      %c0_13 = arith.constant 0 : index
      %13 = vector.load %arg5[%c0_12, %c0_13] : memref<256x128xf32, #tpu.memory_space<vmem>>, vector<256x128xf32>
      tpu.vector_store %arg5[%c0_12, %c0_13], %12 {strides = array<i32>} : memref<256x128xf32, #tpu.memory_space<vmem>>, vector<256x128xf32>,
    } else {
    }
    return
  }
  func.func @transform_0(%arg0: i32, %arg1: i32, %arg2: i32) -> (i32, i32) {
    %c0_i32 = arith.constant 0 : i32
    return %arg0, %arg2 : i32, i32
  }
  func.func @transform_1(%arg0: i32, %arg1: i32, %arg2: i32) -> (i32, i32) {
    %c0_i32 = arith.constant 0 : i32
    return %arg1, %arg2 : i32, i32
  }
  func.func @transform_2(%arg0: i32, %arg1: i32, %arg2: i32) -> (i32, i32) {
    %c0_i32 = arith.constant 0 : i32
    return %arg0, %arg1 : i32, i32
  }
}

module attributes {stable_mosaic.version = 11 : i64} {
  func.func @_sgd_kernel(%arg0: memref<16x128xf32, #tpu.memory_space<vmem>>, %arg1: memref<16x128xf32, #tpu.memory_space<vmem>>, %arg2: memref<16x128xf32, #tpu.memory_space<vmem>>, %arg3: memref<16x128xf32, #tpu.memory_space<vmem>>, %arg4: memref<16x128xf32, #tpu.memory_space<vmem>>) attributes {dimension_semantics = [], scalar_prefetch = 0 : i64, scratch_operands = 0 : i64, tpu.core_type = #tpu.core_type<tc>} {
    %c0 = arith.constant 0 : index
    %c0_0 = arith.constant 0 : index
    %0 = vector.load %arg1[%c0, %c0_0] : memref<16x128xf32, #tpu.memory_space<vmem>>, vector<16x128xf32>
    %c0_1 = arith.constant 0 : index
    %c0_2 = arith.constant 0 : index
    %1 = vector.load %arg0[%c0_1, %c0_2] : memref<16x128xf32, #tpu.memory_space<vmem>>, vector<16x128xf32>
    %cst = arith.constant 0.00999999977 : f32
    %2 = vector.broadcast %cst : f32 to vector<16x128xf32>
    %3 = arith.mulf %2, %1 : vector<16x128xf32>
    %4 = arith.addf %0, %3 : vector<16x128xf32>
    %c0_3 = arith.constant 0 : index
    %c0_4 = arith.constant 0 : index
    %5 = vector.load %arg2[%c0_3, %c0_4] : memref<16x128xf32, #tpu.memory_space<vmem>>, vector<16x128xf32>
    %cst_5 = arith.constant 0.899999976 : f32
    %6 = vector.broadcast %cst_5 : f32 to vector<16x128xf32>
    %7 = arith.mulf %6, %5 : vector<16x128xf32>
    %8 = arith.addf %7, %4 : vector<16x128xf32>
    %c0_6 = arith.constant 0 : index
    %c0_7 = arith.constant 0 : index
    %9 = vector.load %arg4[%c0_6, %c0_7] : memref<16x128xf32, #tpu.memory_space<vmem>>, vector<16x128xf32>
    tpu.vector_store %arg4[%c0_6, %c0_7], %8 {strides = array<i32>} : memref<16x128xf32, #tpu.memory_space<vmem>>, vector<16x128xf32>,
    %c0_8 = arith.constant 0 : index
    %c0_9 = arith.constant 0 : index
    %10 = vector.load %arg0[%c0_8, %c0_9] : memref<16x128xf32, #tpu.memory_space<vmem>>, vector<16x128xf32>
    %cst_10 = arith.constant 1.500000e-02 : f32
    %11 = vector.broadcast %cst_10 : f32 to vector<16x128xf32>
    %12 = arith.mulf %11, %8 : vector<16x128xf32>
    %13 = arith.subf %10, %12 : vector<16x128xf32>
    %c0_11 = arith.constant 0 : index
    %c0_12 = arith.constant 0 : index
    %14 = vector.load %arg3[%c0_11, %c0_12] : memref<16x128xf32, #tpu.memory_space<vmem>>, vector<16x128xf32>
    tpu.vector_store %arg3[%c0_11, %c0_12], %13 {strides = array<i32>} : memref<16x128xf32, #tpu.memory_space<vmem>>, vector<16x128xf32>,
    return
  }
}

module attributes {stable_mosaic.version = 11 : i64} {
  func.func @_sgd_kernel(%arg0: memref<16x128xf32, #tpu.memory_space<vmem>>, %arg1: memref<16x128xf32, #tpu.memory_space<vmem>>, %arg2: memref<16x128xf32, #tpu.memory_space<vmem>>, %arg3: memref<16x128xf32, #tpu.memory_space<vmem>>, %arg4: memref<16x128xf32, #tpu.memory_space<vmem>>) attributes {dimension_semantics = [], scalar_prefetch = 0 : i64, scratch_operands = 0 : i64, tpu.core_type = #tpu.core_type<tc>} {
    %c0 = arith.constant 0 : index
    %c0_0 = arith.constant 0 : index
    %0 = vector.load %arg1[%c0, %c0_0] : memref<16x128xf32, #tpu.memory_space<vmem>>, vector<16x128xf32>
    %c0_1 = arith.constant 0 : index
    %c0_2 = arith.constant 0 : index
    %1 = vector.load %arg0[%c0_1, %c0_2] : memref<16x128xf32, #tpu.memory_space<vmem>>, vector<16x128xf32>
    %cst = arith.constant 0.00999999977 : f32
    %2 = vector.broadcast %cst : f32 to vector<16x128xf32>
    %3 = arith.mulf %2, %1 : vector<16x128xf32>
    %4 = arith.addf %0, %3 : vector<16x128xf32>
    %c0_3 = arith.constant 0 : index
    %c0_4 = arith.constant 0 : index
    %5 = vector.load %arg2[%c0_3, %c0_4] : memref<16x128xf32, #tpu.memory_space<vmem>>, vector<16x128xf32>
    %cst_5 = arith.constant 0.899999976 : f32
    %6 = vector.broadcast %cst_5 : f32 to vector<16x128xf32>
    %7 = arith.mulf %6, %5 : vector<16x128xf32>
    %8 = arith.addf %7, %4 : vector<16x128xf32>
    %c0_6 = arith.constant 0 : index
    %c0_7 = arith.constant 0 : index
    %9 = vector.load %arg4[%c0_6, %c0_7] : memref<16x128xf32, #tpu.memory_space<vmem>>, vector<16x128xf32>
    tpu.vector_store %arg4[%c0_6, %c0_7], %8 {strides = array<i32>} : memref<16x128xf32, #tpu.memory_space<vmem>>, vector<16x128xf32>,
    %c0_8 = arith.constant 0 : index
    %c0_9 = arith.constant 0 : index
    %10 = vector.load %arg0[%c0_8, %c0_9] : memref<16x128xf32, #tpu.memory_space<vmem>>, vector<16x128xf32>
    %cst_10 = arith.constant 1.500000e-02 : f32
    %11 = vector.broadcast %cst_10 : f32 to vector<16x128xf32>
    %12 = arith.mulf %11, %8 : vector<16x128xf32>
    %13 = arith.subf %10, %12 : vector<16x128xf32>
    %c0_11 = arith.constant 0 : index
    %c0_12 = arith.constant 0 : index
    %14 = vector.load %arg3[%c0_11, %c0_12] : memref<16x128xf32, #tpu.memory_space<vmem>>, vector<16x128xf32>
    tpu.vector_store %arg3[%c0_11, %c0_12], %13 {strides = array<i32>} : memref<16x128xf32, #tpu.memory_space<vmem>>, vector<16x128xf32>,
    return
  }
}

module attributes {stable_mosaic.version = 11 : i64} {
  func.func @_mm_nn_kernel(%arg0: i32, %arg1: i32, %arg2: i32, %arg3: memref<8x512xf32, #tpu.memory_space<vmem>>, %arg4: memref<512x128xf32, #tpu.memory_space<vmem>>, %arg5: memref<1x128xf32, #tpu.memory_space<vmem>>, %arg6: memref<8x128xf32, #tpu.memory_space<vmem>>, %arg7: memref<8x128xf32, #tpu.memory_space<vmem>>) attributes {dimension_semantics = [#tpu.dimension_semantics<parallel>, #tpu.dimension_semantics<parallel>, #tpu.dimension_semantics<arbitrary>], iteration_bounds = array<i64: 1, 1, 1>, scalar_prefetch = 0 : i64, scratch_operands = 1 : i64, tpu.core_type = #tpu.core_type<tc>, window_params = [{transform_indices = @transform_0, window_bounds = array<i64: 8, 512>}, {transform_indices = @transform_1, window_bounds = array<i64: 512, 128>}, {transform_indices = @transform_2, window_bounds = array<i64: 1, 128>}, {transform_indices = @transform_3, window_bounds = array<i64: 8, 128>}]} {
    %c0_i32 = arith.constant 0 : i32
    %0 = arith.cmpi eq, %arg2, %c0_i32 : i32
    %1 = arith.extui %0 : i1 to i32
    %c0_i32_0 = arith.constant 0 : i32
    %2 = arith.cmpi ne, %1, %c0_i32_0 : i32
    scf.if %2 {
      %cst_10 = arith.constant 0.000000e+00 : f32
      %12 = vector.broadcast %cst_10 : f32 to vector<8x128xf32>
      %c0_11 = arith.constant 0 : index
      %c0_12 = arith.constant 0 : index
      %13 = vector.load %arg7[%c0_11, %c0_12] : memref<8x128xf32, #tpu.memory_space<vmem>>, vector<8x128xf32>
      tpu.vector_store %arg7[%c0_11, %c0_12], %12 {strides = array<i32>} : memref<8x128xf32, #tpu.memory_space<vmem>>, vector<8x128xf32>,
    } else {
    }
    %c0 = arith.constant 0 : index
    %c0_1 = arith.constant 0 : index
    %3 = vector.load %arg7[%c0, %c0_1] : memref<8x128xf32, #tpu.memory_space<vmem>>, vector<8x128xf32>
    %c0_2 = arith.constant 0 : index
    %c0_3 = arith.constant 0 : index
    %4 = vector.load %arg3[%c0_2, %c0_3] : memref<8x512xf32, #tpu.memory_space<vmem>>, vector<8x512xf32>
    %c0_4 = arith.constant 0 : index
    %c0_5 = arith.constant 0 : index
    %5 = vector.load %arg4[%c0_4, %c0_5] : memref<512x128xf32, #tpu.memory_space<vmem>>, vector<512x128xf32>
    %cst = arith.constant dense<0.000000e+00> : vector<8x128xf32>
    %6 = tpu.matmul %4, %5, %cst {dimension_numbers = #tpu.dot_dimension_numbers<[1], [0], [0], [1], [0, 0, 1, 1], [], []>} : vector<8x512xf32>, vector<512x128xf32>, vector<8x128xf32> -> vector<8x128xf32>
    %7 = arith.addf %3, %6 : vector<8x128xf32>
    %c0_6 = arith.constant 0 : index
    %c0_7 = arith.constant 0 : index
    %8 = vector.load %arg7[%c0_6, %c0_7] : memref<8x128xf32, #tpu.memory_space<vmem>>, vector<8x128xf32>
    tpu.vector_store %arg7[%c0_6, %c0_7], %7 {strides = array<i32>} : memref<8x128xf32, #tpu.memory_space<vmem>>, vector<8x128xf32>,
    %c0_i32_8 = arith.constant 0 : i32
    %9 = arith.cmpi eq, %arg2, %c0_i32_8 : i32
    %10 = arith.extui %9 : i1 to i32
    %c0_i32_9 = arith.constant 0 : i32
    %11 = arith.cmpi ne, %10, %c0_i32_9 : i32
    scf.if %11 {
      %c0_10 = arith.constant 0 : index
      %c0_11 = arith.constant 0 : index
      %12 = vector.load %arg7[%c0_10, %c0_11] : memref<8x128xf32, #tpu.memory_space<vmem>>, vector<8x128xf32>
      %c0_12 = arith.constant 0 : index
      %c0_13 = arith.constant 0 : index
      %13 = vector.load %arg5[%c0_12, %c0_13] : memref<1x128xf32, #tpu.memory_space<vmem>>, vector<1x128xf32>
      %14 = vector.broadcast %13 : vector<1x128xf32> to vector<8x128xf32>
      %15 = arith.addf %12, %14 : vector<8x128xf32>
      %c0_14 = arith.constant 0 : index
      %c0_15 = arith.constant 0 : index
      %16 = vector.load %arg6[%c0_14, %c0_15] : memref<8x128xf32, #tpu.memory_space<vmem>>, vector<8x128xf32>
      tpu.vector_store %arg6[%c0_14, %c0_15], %15 {strides = array<i32>} : memref<8x128xf32, #tpu.memory_space<vmem>>, vector<8x128xf32>,
    } else {
    }
    return
  }
  func.func @transform_0(%arg0: i32, %arg1: i32, %arg2: i32) -> (i32, i32) {
    %c0_i32 = arith.constant 0 : i32
    return %arg0, %arg2 : i32, i32
  }
  func.func @transform_1(%arg0: i32, %arg1: i32, %arg2: i32) -> (i32, i32) {
    %c0_i32 = arith.constant 0 : i32
    return %arg2, %arg1 : i32, i32
  }
  func.func @transform_2(%arg0: i32, %arg1: i32, %arg2: i32) -> (i32, i32) {
    %c0_i32 = arith.constant 0 : i32
    %c0_i32_0 = arith.constant 0 : i32
    return %c0_i32, %arg1 : i32, i32
  }
  func.func @transform_3(%arg0: i32, %arg1: i32, %arg2: i32) -> (i32, i32) {
    %c0_i32 = arith.constant 0 : i32
    return %arg0, %arg1 : i32, i32
  }
}

</mosaic_0001>

<bundles_post_ra>
// kernel: clc_dyn_forward.20
= control target key start
LH: loop header
LB: loop body
LE: loop exit
PB: predicated region body
PF: predicated region fallthrough
CT: control target
= control target key end

     0   :  { %s1155_s12 = smov 0   ;;  %s1157_s13 = smov 0   ;;  %s1351_s0 = inlined_call_operand.vmem [shape: f32[512,128], index: 0, kind: input, shape index: {}]   ;;  %s1352_s1 = inlined_call_operand.vmem [shape: f32[128,128], index: 1, kind: input, shape index: {}]   ;;  %s1353_s2 = inlined_call_operand.vmem [shape: f32[1,128], index: 2, kind: input, shape index: {}]   ;;  %s1354_s3 = inlined_call_operand.vmem [shape: f32[512,128], index: 3, kind: output, shape index: {}]  }
   0x1   :  { %s1159_s14 = smov 0  }
   0x2 LB: > { %s32_s15 = sadd.s32 1, %s1129_s13  ;;  %p919_p0 = scmp.ge.s32.totalorder %s1133_s14, 1  ;;  %s1133_s14 = sphi %s1159_s14, %s13_s14   ;;  %s1129_s13 = sphi %s1157_s13, %s1356_s13   ;;  %s1125_s12 = sphi %s1155_s12, %s1355_s12  }
   0x3   : > { %p34_p1 = scmp.ge.s32.totalorder %s32_s15, 2  ;;  %p188_p2 = scmp.lt.s32.totalorder %s1133_s14, 3 }
   0x5   : > { %s1358_s15 = smov (%p34_p1, %s32_s15), 0  ;;  %p189_p3 = pnand %p919_p0, %p188_p2 }
   0x6   : > { %s920_s5 = sshll.u32 (!%p189_p3), %s1125_s12, 5 }
   0x7   : > { %192 = sbr.rel (%p189_p3) target bundleno = 274 (0x112), region = 32  ;;  %p230_p4 = scmp.lt.s32.totalorder (!%p189_p3), %s920_s5, 63 }
   0xc   : > { %v374_v0 = vld [vmem:[%s1352_s1 + $0x78] sm:$0xff]  ;;  %v373_v1 = vld [vmem:[%s1352_s1 + $0x70] sm:$0xff]  ;;  %v372_v2 = vld [vmem:[%s1352_s1 + $0x68] sm:$0xff]  ;;  %s1360_s5 = smov (!%p230_p4, %s920_s5), 63 }
   0xd   : > { %975 = vmatprep.subr.mxu0 %v374_v0  ;;  %1055 = vmatprep.subr.mxu1 %v374_v0  ;;  %v371_v3 = vld [vmem:[%s1352_s1 + $0x60] sm:$0xff]  ;;  %v370_v4 = vld [vmem:[%s1352_s1 + $0x58] sm:$0xff]  ;;  %v369_v5 = vld [vmem:[%s1352_s1 + $0x50] sm:$0xff]  ;;  %s921_s21 = sshll.u32 %s1360_s5, 3 }
   0xe   : > { %976 = vmatpush3.msra.mxu0 %v374_v0  ;;  %1071 = vmatpush3.msra.mxu1 %v374_v0  ;;  %v368_v6 = vld [vmem:[%s1352_s1 + $0x48] sm:$0xff]  ;;  %v367_v7 = vld [vmem:[%s1352_s1 + $0x40] sm:$0xff]  ;;  %v366_v8 = vld [vmem:[%s1352_s1 + $0x38] sm:$0xff]  ;;  %s1229_s26 = scalar_lea.vmem %s1351_s0, %s921_s21  ;;  %s1278_s7 = scalar_lea.vmem %s1354_s3, %s921_s21 }
   0xf   : > { %977 = vmatprep.subr.mxu0 %v373_v1  ;;  %1056 = vmatprep.subr.mxu1 %v373_v1  ;;  %v365_v9 = vld [vmem:[%s1352_s1 + $0x30] sm:$0xff]  ;;  %v364_v10 = vld [vmem:[%s1352_s1 + $0x28] sm:$0xff]  ;;  %v363_v11 = vld [vmem:[%s1352_s1 + $0x20] sm:$0xff] }
  0x10   : > { %978 = vmatpush3.msra.mxu0 %v373_v1  ;;  %1072 = vmatpush3.msra.mxu1 %v373_v1  ;;  %v362_v12 = vld [vmem:[%s1352_s1 + $0x18] sm:$0xff]  ;;  %v361_v13 = vld [vmem:[%s1352_s1 + $0x10] sm:$0xff]  ;;  %v360_v14 = vld [vmem:[%s1352_s1 + $0x8] sm:$0xff] }
  0x11   : > { %979 = vmatprep.subr.mxu0 %v372_v2  ;;  %1057 = vmatprep.subr.mxu1 %v372_v2  ;;  %v359_v15 = vld [vmem:[%s1352_s1] sm:$0xff]  ;;  %v328_v18 = vld [vmem:[%s1229_s26 + $0x8] sm:$0xff]  ;;  %v329_v20 = vld [vmem:[%s1229_s26 + $0x10] sm:$0xff] }
  0x12   : > { %980 = vmatpush3.msra.mxu0 %v372_v2  ;;  %1073 = vmatpush3.msra.mxu1 %v372_v2  ;;  %v327_v16 = vld [vmem:[%s1229_s26] sm:$0xff]  ;;  %v344_v19 = vld [vmem:[%s1229_s26 + $0x88] sm:$0xff]  ;;  %v345_v21 = vld [vmem:[%s1229_s26 + $0x90] sm:$0xff] }
  0x13   : > { %981 = vmatprep.subr.mxu0 %v371_v3  ;;  %1058 = vmatprep.subr.mxu1 %v371_v3  ;;  %v343_v17 = vld [vmem:[%s1229_s26 + $0x80] sm:$0xff]  ;;  %v330_v22 = vld [vmem:[%s1229_s26 + $0x18] sm:$0xff]  ;;  %v332_v26 = vld [vmem:[%s1229_s26 + $0x28] sm:$0xff] }
  0x14   : > { %982 = vmatpush3.msra.mxu0 %v371_v3  ;;  %1074 = vmatpush3.msra.mxu1 %v371_v3  ;;  %v346_v23 = vld [vmem:[%s1229_s26 + $0x98] sm:$0xff]  ;;  %v331_v24 = vld [vmem:[%s1229_s26 + $0x20] sm:$0xff]  ;;  %v348_v27 = vld [vmem:[%s1229_s26 + $0xa8] sm:$0xff] }
  0x15   : > { %983 = vmatprep.subr.mxu0 %v370_v4  ;;  %1059 = vmatprep.subr.mxu1 %v370_v4  ;;  %v347_v25 = vld [vmem:[%s1229_s26 + $0xa0] sm:$0xff]  ;;  %v333_v28 = vld [vmem:[%s1229_s26 + $0x30] sm:$0xff]  ;;  %v334_v30 = vld [vmem:[%s1229_s26 + $0x38] sm:$0xff] }
  0x16   : > { %984 = vmatpush3.msra.mxu0 %v370_v4  ;;  %1075 = vmatpush3.msra.mxu1 %v370_v4  ;;  %v349_v29 = vld [vmem:[%s1229_s26 + $0xb0] sm:$0xff]  ;;  %v350_v31 = vld [vmem:[%s1229_s26 + $0xb8] sm:$0xff]  ;;  %v335_v32 = vld [vmem:[%s1229_s26 + $0x40] sm:$0xff] }
  0x17   : > { %985 = vmatprep.subr.mxu0 %v369_v5  ;;  %1060 = vmatprep.subr.mxu1 %v369_v5  ;;  %v351_v33 = vld [vmem:[%s1229_s26 + $0xc0] sm:$0xff]  ;;  %v336_v34 = vld [vmem:[%s1229_s26 + $0x48] sm:$0xff]  ;;  %v337_v36 = vld [vmem:[%s1229_s26 + $0x50] sm:$0xff] }
  0x18   : > { %986 = vmatpush3.msra.mxu0 %v369_v5  ;;  %1076 = vmatpush3.msra.mxu1 %v369_v5  ;;  %v352_v35 = vld [vmem:[%s1229_s26 + $0xc8] sm:$0xff]  ;;  %v353_v37 = vld [vmem:[%s1229_s26 + $0xd0] sm:$0xff]  ;;  %v338_v38 = vld [vmem:[%s1229_s26 + $0x58] sm:$0xff] }
  0x19   : > { %987 = vmatprep.subr.mxu0 %v368_v6  ;;  %1061 = vmatprep.subr.mxu1 %v368_v6  ;;  %v354_v39 = vld [vmem:[%s1229_s26 + $0xd8] sm:$0xff]  ;;  %v339_v40 = vld [vmem:[%s1229_s26 + $0x60] sm:$0xff]  ;;  %v340_v42 = vld [vmem:[%s1229_s26 + $0x68] sm:$0xff] }
  0x1a   : > { %988 = vmatpush3.msra.mxu0 %v368_v6  ;;  %1077 = vmatpush3.msra.mxu1 %v368_v6  ;;  %v355_v41 = vld [vmem:[%s1229_s26 + $0xe0] sm:$0xff]  ;;  %v356_v43 = vld [vmem:[%s1229_s26 + $0xe8] sm:$0xff]  ;;  %v341_v44 = vld [vmem:[%s1229_s26 + $0x70] sm:$0xff] }
  0x1b   : > { %989 = vmatprep.subr.mxu0 %v367_v7  ;;  %1062 = vmatprep.subr.mxu1 %v367_v7  ;;  %v357_v45 = vld [vmem:[%s1229_s26 + $0xf0] sm:$0xff]  ;;  %v342_v46 = vld [vmem:[%s1229_s26 + $0x78] sm:$0xff]  ;;  %v1269_v48 = vld [vmem:[%s1353_s2] ss:$0 sm:$0xff] }
  0x1c   : > { %990 = vmatpush3.msra.mxu0 %v367_v7  ;;  %1078 = vmatpush3.msra.mxu1 %v367_v7  ;;  %v358_v47 = vld [vmem:[%s1229_s26 + $0xf8] sm:$0xff] }
  0x1d   : > { %991 = vmatprep.subr.mxu0 %v366_v8  ;;  %1063 = vmatprep.subr.mxu1 %v366_v8 }
  0x1e   : > { %992 = vmatpush3.msra.mxu0 %v366_v8  ;;  %1079 = vmatpush3.msra.mxu1 %v366_v8 }
  0x1f   : > { %993 = vmatprep.subr.mxu0 %v365_v9  ;;  %1064 = vmatprep.subr.mxu1 %v365_v9 }
  0x20   : > { %994 = vmatpush3.msra.mxu0 %v365_v9  ;;  %1080 = vmatpush3.msra.mxu1 %v365_v9 }
  0x21   : > { %995 = vmatprep.subr.mxu0 %v364_v10  ;;  %1065 = vmatprep.subr.mxu1 %v364_v10 }
  0x22   : > { %996 = vmatpush3.msra.mxu0 %v364_v10  ;;  %1081 = vmatpush3.msra.mxu1 %v364_v10 }
  0x23   : > { %997 = vmatprep.subr.mxu0 %v363_v11  ;;  %1066 = vmatprep.subr.mxu1 %v363_v11 }
  0x24   : > { %998 = vmatpush3.msra.mxu0 %v363_v11  ;;  %1082 = vmatpush3.msra.mxu1 %v363_v11 }
  0x25   : > { %999 = vmatprep.subr.mxu0 %v362_v12  ;;  %1067 = vmatprep.subr.mxu1 %v362_v12 }
  0x26   : > { %1000 = vmatpush3.msra.mxu0 %v362_v12  ;;  %1083 = vmatpush3.msra.mxu1 %v362_v12 }
  0x27   : > { %1001 = vmatprep.subr.mxu0 %v361_v13  ;;  %1068 = vmatprep.subr.mxu1 %v361_v13 }
  0x28   : > { %1002 = vmatpush3.msra.mxu0 %v361_v13  ;;  %1084 = vmatpush3.msra.mxu1 %v361_v13 }
  0x29   : > { %1003 = vmatprep.subr.mxu0 %v360_v14  ;;  %1069 = vmatprep.subr.mxu1 %v360_v14 }
  0x2a   : > { %1004 = vmatpush3.msra.mxu0 %v360_v14  ;;  %1085 = vmatpush3.msra.mxu1 %v360_v14 }
  0x2b   : > { %1005 = vmatprep.subr.mxu0 %v359_v15  ;;  %1070 = vmatprep.subr.mxu1 %v359_v15 }
  0x2c   : > { %1006 = vmatpush3.msra.mxu0 %v359_v15  ;;  %1086 = vmatpush3.msra.mxu1 %v359_v15 }
  0x2d   : > { %1007 = vmatprep.mubr.f32.mxu0 %v327_v16  ;;  %1031 = vmatprep.mubr.f32.mxu1 %v343_v17 }
  0x2e   : > { %1008 = vmatmul.mubr.f32.vlgmr.msra.gmra.mxu0 %v328_v18  ;;  %1032 = vmatmul.mubr.f32.vlgmr.msra.gmra.mxu1 %v344_v19 }
  0x2f   : > { %1010 = vmatprep.mubr.f32.mxu0 %v329_v20  ;;  %1034 = vmatprep.mubr.f32.mxu1 %v345_v21 }
  0x32   : > { %1011 = vmatmul.mubr.f32.gmra.mxu0 %v330_v22  ;;  %1035 = vmatmul.mubr.f32.gmra.mxu1 %v346_v23 }
  0x33   : > { %1013 = vmatprep.mubr.f32.mxu0 %v331_v24  ;;  %1037 = vmatprep.mubr.f32.mxu1 %v347_v25 }
  0x36   : > { %1014 = vmatmul.mubr.f32.gmra.mxu0 %v332_v26  ;;  %1038 = vmatmul.mubr.f32.gmra.mxu1 %v348_v27 }
  0x37   : > { %1016 = vmatprep.mubr.f32.mxu0 %v333_v28  ;;  %1040 = vmatprep.mubr.f32.mxu1 %v349_v29 }
  0x3a   : > { %1017 = vmatmul.mubr.f32.gmra.mxu0 %v334_v30  ;;  %1041 = vmatmul.mubr.f32.gmra.mxu1 %v350_v31 }
  0x3b   : > { %1019 = vmatprep.mubr.f32.mxu0 %v335_v32  ;;  %1043 = vmatprep.mubr.f32.mxu1 %v351_v33 }
  0x3e   : > { %1020 = vmatmul.mubr.f32.gmra.mxu0 %v336_v34  ;;  %1044 = vmatmul.mubr.f32.gmra.mxu1 %v352_v35 }
  0x3f   : > { %1022 = vmatprep.mubr.f32.mxu0 %v337_v36  ;;  %1046 = vmatprep.mubr.f32.mxu1 %v353_v37 }
  0x42   : > { %1023 = vmatmul.mubr.f32.gmra.mxu0 %v338_v38  ;;  %1047 = vmatmul.mubr.f32.gmra.mxu1 %v354_v39 }
  0x43   : > { %1025 = vmatprep.mubr.f32.mxu0 %v339_v40  ;;  %1049 = vmatprep.mubr.f32.mxu1 %v355_v41 }
  0x46   : > { %1026 = vmatmul.mubr.f32.gmra.mxu0 %v340_v42  ;;  %1050 = vmatmul.mubr.f32.gmra.mxu1 %v356_v43 }
  0x47   : > { %1028 = vmatprep.mubr.f32.mxu0 %v341_v44  ;;  %1052 = vmatprep.mubr.f32.mxu1 %v357_v45 }
  0x4a   : > { %1029 = vmatmul.mubr.f32.gmra.mxu0 %v342_v46  ;;  %1053 = vmatmul.mubr.f32.gmra.mxu1 %v358_v47 }
  0xee   : > { %v1009_v49 = vpop.f32.mrf.mxu0  ;;  %v1033_v50 = vpop.f32.mrf.mxu1 }
  0xef   : > { %v707_v51 = vadd.f32 %v1009_v49, %v1269_v48  ;;  %v723_v52 = vadd.f32 %v1033_v50, %v1269_v48 }
  0xf0   : > { %v441_v53 = vpop.f32.mrf.mxu0  ;;  %v521_v54 = vpop.f32.mrf.mxu1 }
  0xf1   : > { %v739_v55 = vmax.f32 %v707_v51, 0.0  ;;  %v755_v56 = vmax.f32 %v723_v52, 0.0  ;;  %v706_v57 = vadd.f32 %v1269_v48, %v441_v53  ;;  %v722_v58 = vadd.f32 %v1269_v48, %v521_v54 }
  0xf2   : > { %v1012_v59 = vpop.f32.mrf.mxu0  ;;  %v1036_v60 = vpop.f32.mrf.mxu1 }
  0xf3   : > { %771 = vst [vmem:[%s1278_s7 + $0x8] sm:$0xff] %v739_v55  ;;  %787 = vst [vmem:[%s1278_s7 + $0x88] sm:$0xff] %v755_v56  ;;  %v738_v61 = vmax.f32 %v706_v57, 0.0  ;;  %v754_v62 = vmax.f32 %v722_v58, 0.0  ;;  %v709_v63 = vadd.f32 %v1012_v59, %v1269_v48  ;;  %v725_v0 = vadd.f32 %v1036_v60, %v1269_v48 }
  0xf4   : > { %v451_v1 = vpop.f32.mrf.mxu0  ;;  %v531_v2 = vpop.f32.mrf.mxu1 }
  0xf5   : > { %770 = vst [vmem:[%s1278_s7] sm:$0xff] %v738_v61  ;;  %786 = vst [vmem:[%s1278_s7 + $0x80] sm:$0xff] %v754_v62  ;;  %v741_v3 = vmax.f32 %v709_v63, 0.0  ;;  %v757_v4 = vmax.f32 %v725_v0, 0.0  ;;  %v708_v5 = vadd.f32 %v1269_v48, %v451_v1  ;;  %v724_v6 = vadd.f32 %v1269_v48, %v531_v2 }
  0xf6   : > { %v1015_v7 = vpop.f32.mrf.mxu0  ;;  %v1039_v8 = vpop.f32.mrf.mxu1 }
  0xf7   : > { %773 = vst [vmem:[%s1278_s7 + $0x18] sm:$0xff] %v741_v3  ;;  %789 = vst [vmem:[%s1278_s7 + $0x98] sm:$0xff] %v757_v4  ;;  %v740_v9 = vmax.f32 %v708_v5, 0.0  ;;  %v756_v10 = vmax.f32 %v724_v6, 0.0  ;;  %v711_v11 = vadd.f32 %v1015_v7, %v1269_v48  ;;  %v727_v12 = vadd.f32 %v1039_v8, %v1269_v48 }
  0xf8   : > { %v461_v13 = vpop.f32.mrf.mxu0  ;;  %v541_v14 = vpop.f32.mrf.mxu1 }
  0xf9   : > { %772 = vst [vmem:[%s1278_s7 + $0x10] sm:$0xff] %v740_v9  ;;  %788 = vst [vmem:[%s1278_s7 + $0x90] sm:$0xff] %v756_v10  ;;  %v743_v15 = vmax.f32 %v711_v11, 0.0  ;;  %v759_v16 = vmax.f32 %v727_v12, 0.0  ;;  %v710_v17 = vadd.f32 %v1269_v48, %v461_v13  ;;  %v726_v18 = vadd.f32 %v1269_v48, %v541_v14 }
  0xfa   : > { %v1018_v19 = vpop.f32.mrf.mxu0  ;;  %v1042_v20 = vpop.f32.mrf.mxu1 }
  0xfb   : > { %775 = vst [vmem:[%s1278_s7 + $0x28] sm:$0xff] %v743_v15  ;;  %791 = vst [vmem:[%s1278_s7 + $0xa8] sm:$0xff] %v759_v16  ;;  %v742_v21 = vmax.f32 %v710_v17, 0.0  ;;  %v758_v22 = vmax.f32 %v726_v18, 0.0  ;;  %v713_v23 = vadd.f32 %v1018_v19, %v1269_v48  ;;  %v729_v24 = vadd.f32 %v1042_v20, %v1269_v48 }
  0xfc   : > { %v471_v25 = vpop.f32.mrf.mxu0  ;;  %v551_v26 = vpop.f32.mrf.mxu1 }
  0xfd   : > { %774 = vst [vmem:[%s1278_s7 + $0x20] sm:$0xff] %v742_v21  ;;  %790 = vst [vmem:[%s1278_s7 + $0xa0] sm:$0xff] %v758_v22  ;;  %v745_v27 = vmax.f32 %v713_v23, 0.0  ;;  %v761_v28 = vmax.f32 %v729_v24, 0.0  ;;  %v712_v29 = vadd.f32 %v1269_v48, %v471_v25  ;;  %v728_v30 = vadd.f32 %v1269_v48, %v551_v26 }
  0xfe   : > { %v1021_v31 = vpop.f32.mrf.mxu0  ;;  %v1045_v32 = vpop.f32.mrf.mxu1 }
  0xff   : > { %777 = vst [vmem:[%s1278_s7 + $0x38] sm:$0xff] %v745_v27  ;;  %793 = vst [vmem:[%s1278_s7 + $0xb8] sm:$0xff] %v761_v28  ;;  %v744_v33 = vmax.f32 %v712_v29, 0.0  ;;  %v760_v34 = vmax.f32 %v728_v30, 0.0  ;;  %v715_v35 = vadd.f32 %v1021_v31, %v1269_v48  ;;  %v731_v36 = vadd.f32 %v1045_v32, %v1269_v48 }
 0x100   : > { %v481_v37 = vpop.f32.mrf.mxu0  ;;  %v561_v38 = vpop.f32.mrf.mxu1 }
 0x101   : > { %776 = vst [vmem:[%s1278_s7 + $0x30] sm:$0xff] %v744_v33  ;;  %792 = vst [vmem:[%s1278_s7 + $0xb0] sm:$0xff] %v760_v34  ;;  %v747_v39 = vmax.f32 %v715_v35, 0.0  ;;  %v763_v40 = vmax.f32 %v731_v36, 0.0  ;;  %v714_v41 = vadd.f32 %v1269_v48, %v481_v37  ;;  %v730_v42 = vadd.f32 %v1269_v48, %v561_v38 }
 0x102   : > { %v1024_v43 = vpop.f32.mrf.mxu0  ;;  %v1048_v44 = vpop.f32.mrf.mxu1 }
 0x103   : > { %779 = vst [vmem:[%s1278_s7 + $0x48] sm:$0xff] %v747_v39  ;;  %795 = vst [vmem:[%s1278_s7 + $0xc8] sm:$0xff] %v763_v40  ;;  %v746_v45 = vmax.f32 %v714_v41, 0.0  ;;  %v762_v46 = vmax.f32 %v730_v42, 0.0  ;;  %v717_v47 = vadd.f32 %v1024_v43, %v1269_v48  ;;  %v733_v49 = vadd.f32 %v1048_v44, %v1269_v48 }
 0x104   : > { %v491_v50 = vpop.f32.mrf.mxu0  ;;  %v571_v51 = vpop.f32.mrf.mxu1 }
 0x105   : > { %778 = vst [vmem:[%s1278_s7 + $0x40] sm:$0xff] %v746_v45  ;;  %794 = vst [vmem:[%s1278_s7 + $0xc0] sm:$0xff] %v762_v46  ;;  %v749_v52 = vmax.f32 %v717_v47, 0.0  ;;  %v765_v53 = vmax.f32 %v733_v49, 0.0  ;;  %v716_v54 = vadd.f32 %v1269_v48, %v491_v50  ;;  %v732_v55 = vadd.f32 %v1269_v48, %v571_v51 }
 0x106   : > { %v1027_v56 = vpop.f32.mrf.mxu0  ;;  %v1051_v57 = vpop.f32.mrf.mxu1 }
 0x107   : > { %781 = vst [vmem:[%s1278_s7 + $0x58] sm:$0xff] %v749_v52  ;;  %797 = vst [vmem:[%s1278_s7 + $0xd8] sm:$0xff] %v765_v53  ;;  %v748_v58 = vmax.f32 %v716_v54, 0.0  ;;  %v764_v59 = vmax.f32 %v732_v55, 0.0  ;;  %v719_v60 = vadd.f32 %v1027_v56, %v1269_v48  ;;  %v735_v61 = vadd.f32 %v1051_v57, %v1269_v48 }
 0x108   : > { %v501_v62 = vpop.f32.mrf.mxu0  ;;  %v581_v63 = vpop.f32.mrf.mxu1 }
 0x109   : > { %780 = vst [vmem:[%s1278_s7 + $0x50] sm:$0xff] %v748_v58  ;;  %796 = vst [vmem:[%s1278_s7 + $0xd0] sm:$0xff] %v764_v59  ;;  %v751_v0 = vmax.f32 %v719_v60, 0.0  ;;  %v767_v1 = vmax.f32 %v735_v61, 0.0  ;;  %v718_v2 = vadd.f32 %v1269_v48, %v501_v62  ;;  %v734_v3 = vadd.f32 %v1269_v48, %v581_v63 }
 0x10a   : > { %v1030_v4 = vpop.f32.mrf.mxu0  ;;  %v1054_v5 = vpop.f32.mrf.mxu1 }
 0x10b   : > { %783 = vst [vmem:[%s1278_s7 + $0x68] sm:$0xff] %v751_v0  ;;  %799 = vst [vmem:[%s1278_s7 + $0xe8] sm:$0xff] %v767_v1  ;;  %v750_v6 = vmax.f32 %v718_v2, 0.0  ;;  %v766_v7 = vmax.f32 %v734_v3, 0.0  ;;  %v721_v8 = vadd.f32 %v1030_v4, %v1269_v48  ;;  %v737_v9 = vadd.f32 %v1054_v5, %v1269_v48 }
 0x10c   : > { %v511_v10 = vpop.f32.mrf.mxu0  ;;  %v591_v11 = vpop.f32.mrf.mxu1 }
 0x10d   : > { %782 = vst [vmem:[%s1278_s7 + $0x60] sm:$0xff] %v750_v6  ;;  %798 = vst [vmem:[%s1278_s7 + $0xe0] sm:$0xff] %v766_v7  ;;  %v753_v12 = vmax.f32 %v721_v8, 0.0  ;;  %v769_v13 = vmax.f32 %v737_v9, 0.0  ;;  %v720_v14 = vadd.f32 %v1269_v48, %v511_v10  ;;  %v736_v15 = vadd.f32 %v1269_v48, %v591_v11 }
 0x10f   : > { %785 = vst [vmem:[%s1278_s7 + $0x78] sm:$0xff] %v753_v12  ;;  %801 = vst [vmem:[%s1278_s7 + $0xf8] sm:$0xff] %v769_v13  ;;  %v752_v16 = vmax.f32 %v720_v14, 0.0  ;;  %v768_v17 = vmax.f32 %v736_v15, 0.0 }
 0x111   : > { %784 = vst [vmem:[%s1278_s7 + $0x70] sm:$0xff] %v752_v16  ;;  %800 = vst [vmem:[%s1278_s7 + $0xf0] sm:$0xff] %v768_v17 }
 0x112 PF: > { %s13_s14 = sadd.s32 1, %s1133_s14   ;;  %s1355_s12 = smov %s1129_s13 }
 0x113   : > { %p10_p5 = scmp.ge.s32.totalorder %s13_s14, 4   ;;  %s1356_s13 = smov %s1358_s15 }
 0x115   :  { %12 = sbr.rel (!%p10_p5) target bundleno = 2 (0x2), region = 76 }

// kernel: clc_dyn_forward.21
= control target key start
LH: loop header
LB: loop body
LE: loop exit
PB: predicated region body
PF: predicated region fallthrough
CT: control target
= control target key end

     0   :  { %s1779_s12 = smov 0   ;;  %s1781_s13 = smov 0   ;;  %s2485_s0 = inlined_call_operand.vmem [shape: f32[512,640], index: 0, kind: input, shape index: {}]   ;;  %s2486_s1 = inlined_call_operand.vmem [shape: f32[640,128], index: 1, kind: input, shape index: {}]   ;;  %s2487_s2 = inlined_call_operand.vmem [shape: f32[1,128], index: 2, kind: input, shape index: {}]   ;;  %s2488_s3 = inlined_call_operand.vmem [shape: f32[512,128], index: 3, kind: output, shape index: {}]  }
   0x1   :  { %s1783_s14 = smov 0  }
   0x2 LB: > { %s32_s15 = sadd.s32 1, %s1752_s13  ;;  %p1540_p0 = scmp.ge.s32.totalorder %s1756_s14, 1  ;;  %s1756_s14 = sphi %s1783_s14, %s13_s14   ;;  %s1752_s13 = sphi %s1781_s13, %s2490_s13   ;;  %s1748_s12 = sphi %s1779_s12, %s2489_s12  }
   0x3   : > { %p34_p1 = scmp.ge.s32.totalorder %s32_s15, 2  ;;  %p191_p2 = scmp.lt.s32.totalorder %s1756_s14, 3 }
   0x5   : > { %s2492_s15 = smov (%p34_p1, %s32_s15), 0  ;;  %p192_p3 = pnand %p1540_p0, %p191_p2 }
   0x6   : > { %s1541_s16 = sshll.u32 (!%p192_p3), %s1748_s12, 5 }
   0x7   : > { %195 = sbr.rel (%p192_p3) target bundleno = 434 (0x1b2), region = 32  ;;  %p236_p4 = scmp.lt.s32.totalorder (!%p192_p3), %s1541_s16, 63 }
   0xc   : > { %v510_v0 = vld [vmem:[%s2486_s1 + $0x78] sm:$0xff]  ;;  %v1758_v2 = vmov 0.0   ;;  %v509_v3 = vld [vmem:[%s2486_s1 + $0x70] sm:$0xff]  ;;  %v508_v5 = vld [vmem:[%s2486_s1 + $0x68] sm:$0xff]  ;;  %s2494_s16 = smov (!%p236_p4, %s1541_s16), 63 }
   0xd   : > { %v542_v1 = vld [vmem:[%s2486_s1 + $0x178] sm:$0xff]  ;;  %575 = vmatprep.subr.mxu0 %v1758_v2  ;;  %800 = vmatprep.subr.mxu1 %v1758_v2  ;;  %v541_v4 = vld [vmem:[%s2486_s1 + $0x170] sm:$0xff]  ;;  %v540_v6 = vld [vmem:[%s2486_s1 + $0x168] sm:$0xff]  ;;  %s1708_s9 = smul.u32 40, %s2494_s16 }
   0xe   : > { %576 = vmatpush1.msra.mxu0 %v510_v0  ;;  %801 = vmatpush1.msra.mxu1 %v542_v1  ;;  %v507_v7 = vld [vmem:[%s2486_s1 + $0x60] sm:$0xff]  ;;  %v506_v9 = vld [vmem:[%s2486_s1 + $0x58] sm:$0xff]  ;;  %v505_v11 = vld [vmem:[%s2486_s1 + $0x50] sm:$0xff] }
   0xf   : > { %577 = vmatprep.subr.mxu0 %v1758_v2  ;;  %802 = vmatprep.subr.mxu1 %v1758_v2  ;;  %v539_v8 = vld [vmem:[%s2486_s1 + $0x160] sm:$0xff]  ;;  %v538_v10 = vld [vmem:[%s2486_s1 + $0x158] sm:$0xff]  ;;  %v537_v12 = vld [vmem:[%s2486_s1 + $0x150] sm:$0xff]  ;;  %s2044_s24 = scalar_lea.vmem %s2485_s0, %s1708_s9 }
  0x10   : > { %578 = vmatpush1.msra.mxu0 %v509_v3  ;;  %803 = vmatpush1.msra.mxu1 %v541_v4  ;;  %v504_v13 = vld [vmem:[%s2486_s1 + $0x48] sm:$0xff]  ;;  %v503_v15 = vld [vmem:[%s2486_s1 + $0x40] sm:$0xff]  ;;  %v502_v17 = vld [vmem:[%s2486_s1 + $0x38] sm:$0xff] }
  0x11   : > { %579 = vmatprep.subr.mxu0 %v1758_v2  ;;  %804 = vmatprep.subr.mxu1 %v1758_v2  ;;  %v536_v14 = vld [vmem:[%s2486_s1 + $0x148] sm:$0xff]  ;;  %v535_v16 = vld [vmem:[%s2486_s1 + $0x140] sm:$0xff]  ;;  %v534_v18 = vld [vmem:[%s2486_s1 + $0x138] sm:$0xff] }
  0x12   : > { %580 = vmatpush1.msra.mxu0 %v508_v5  ;;  %805 = vmatpush1.msra.mxu1 %v540_v6  ;;  %v501_v19 = vld [vmem:[%s2486_s1 + $0x30] sm:$0xff]  ;;  %v500_v21 = vld [vmem:[%s2486_s1 + $0x28] sm:$0xff]  ;;  %v499_v23 = vld [vmem:[%s2486_s1 + $0x20] sm:$0xff] }
  0x13   : > { %581 = vmatprep.subr.mxu0 %v1758_v2  ;;  %806 = vmatprep.subr.mxu1 %v1758_v2  ;;  %v533_v20 = vld [vmem:[%s2486_s1 + $0x130] sm:$0xff]  ;;  %v532_v22 = vld [vmem:[%s2486_s1 + $0x128] sm:$0xff]  ;;  %v531_v24 = vld [vmem:[%s2486_s1 + $0x120] sm:$0xff] }
  0x14   : > { %582 = vmatpush1.msra.mxu0 %v507_v7  ;;  %807 = vmatpush1.msra.mxu1 %v539_v8  ;;  %v498_v25 = vld [vmem:[%s2486_s1 + $0x18] sm:$0xff]  ;;  %v497_v27 = vld [vmem:[%s2486_s1 + $0x10] sm:$0xff]  ;;  %v496_v29 = vld [vmem:[%s2486_s1 + $0x8] sm:$0xff] }
  0x15   : > { %583 = vmatprep.subr.mxu0 %v1758_v2  ;;  %808 = vmatprep.subr.mxu1 %v1758_v2  ;;  %v530_v26 = vld [vmem:[%s2486_s1 + $0x118] sm:$0xff]  ;;  %v529_v28 = vld [vmem:[%s2486_s1 + $0x110] sm:$0xff]  ;;  %v528_v30 = vld [vmem:[%s2486_s1 + $0x108] sm:$0xff] }
  0x16   : > { %584 = vmatpush1.msra.mxu0 %v506_v9  ;;  %809 = vmatpush1.msra.mxu1 %v538_v10  ;;  %v495_v31 = vld [vmem:[%s2486_s1] sm:$0xff]  ;;  %v526_v33 = vld [vmem:[%s2486_s1 + $0xf8] sm:$0xff]  ;;  %v525_v35 = vld [vmem:[%s2486_s1 + $0xf0] sm:$0xff] }
  0x17   : > { %585 = vmatprep.subr.mxu0 %v1758_v2  ;;  %810 = vmatprep.subr.mxu1 %v1758_v2  ;;  %v527_v32 = vld [vmem:[%s2486_s1 + $0x100] sm:$0xff]  ;;  %v558_v34 = vld [vmem:[%s2486_s1 + $0x1f8] sm:$0xff]  ;;  %v557_v36 = vld [vmem:[%s2486_s1 + $0x1f0] sm:$0xff] }
  0x18   : > { %586 = vmatpush1.msra.mxu0 %v505_v11  ;;  %811 = vmatpush1.msra.mxu1 %v537_v12  ;;  %v524_v37 = vld [vmem:[%s2486_s1 + $0xe8] sm:$0xff]  ;;  %v523_v39 = vld [vmem:[%s2486_s1 + $0xe0] sm:$0xff]  ;;  %v522_v41 = vld [vmem:[%s2486_s1 + $0xd8] sm:$0xff] }
  0x19   : > { %587 = vmatprep.subr.mxu0 %v1758_v2  ;;  %812 = vmatprep.subr.mxu1 %v1758_v2  ;;  %v556_v38 = vld [vmem:[%s2486_s1 + $0x1e8] sm:$0xff]  ;;  %v555_v40 = vld [vmem:[%s2486_s1 + $0x1e0] sm:$0xff]  ;;  %v554_v42 = vld [vmem:[%s2486_s1 + $0x1d8] sm:$0xff] }
  0x1a   : > { %588 = vmatpush1.msra.mxu0 %v504_v13  ;;  %813 = vmatpush1.msra.mxu1 %v536_v14  ;;  %v521_v43 = vld [vmem:[%s2486_s1 + $0xd0] sm:$0xff]  ;;  %v520_v45 = vld [vmem:[%s2486_s1 + $0xc8] sm:$0xff]  ;;  %v519_v47 = vld [vmem:[%s2486_s1 + $0xc0] sm:$0xff] }
  0x1b   : > { %589 = vmatprep.subr.mxu0 %v1758_v2  ;;  %814 = vmatprep.subr.mxu1 %v1758_v2  ;;  %v553_v44 = vld [vmem:[%s2486_s1 + $0x1d0] sm:$0xff]  ;;  %v552_v46 = vld [vmem:[%s2486_s1 + $0x1c8] sm:$0xff]  ;;  %v551_v48 = vld [vmem:[%s2486_s1 + $0x1c0] sm:$0xff] }
  0x1c   : > { %590 = vmatpush1.msra.mxu0 %v503_v15  ;;  %815 = vmatpush1.msra.mxu1 %v535_v16  ;;  %v518_v49 = vld [vmem:[%s2486_s1 + $0xb8] sm:$0xff]  ;;  %v517_v51 = vld [vmem:[%s2486_s1 + $0xb0] sm:$0xff]  ;;  %v516_v53 = vld [vmem:[%s2486_s1 + $0xa8] sm:$0xff] }
  0x1d   : > { %591 = vmatprep.subr.mxu0 %v1758_v2  ;;  %816 = vmatprep.subr.mxu1 %v1758_v2  ;;  %v550_v50 = vld [vmem:[%s2486_s1 + $0x1b8] sm:$0xff]  ;;  %v549_v52 = vld [vmem:[%s2486_s1 + $0x1b0] sm:$0xff]  ;;  %v548_v54 = vld [vmem:[%s2486_s1 + $0x1a8] sm:$0xff] }
  0x1e   : > { %592 = vmatpush1.msra.mxu0 %v502_v17  ;;  %817 = vmatpush1.msra.mxu1 %v534_v18  ;;  %v515_v55 = vld [vmem:[%s2486_s1 + $0xa0] sm:$0xff]  ;;  %v514_v57 = vld [vmem:[%s2486_s1 + $0x98] sm:$0xff]  ;;  %v513_v59 = vld [vmem:[%s2486_s1 + $0x90] sm:$0xff] }
  0x1f   : > { %593 = vmatprep.subr.mxu0 %v1758_v2  ;;  %818 = vmatprep.subr.mxu1 %v1758_v2  ;;  %v547_v56 = vld [vmem:[%s2486_s1 + $0x1a0] sm:$0xff]  ;;  %v546_v58 = vld [vmem:[%s2486_s1 + $0x198] sm:$0xff]  ;;  %v545_v60 = vld [vmem:[%s2486_s1 + $0x190] sm:$0xff] }
  0x20   : > { %594 = vmatpush1.msra.mxu0 %v501_v19  ;;  %819 = vmatpush1.msra.mxu1 %v533_v20  ;;  %v512_v61 = vld [vmem:[%s2486_s1 + $0x88] sm:$0xff]  ;;  %v511_v63 = vld [vmem:[%s2486_s1 + $0x80] sm:$0xff]  ;;  %v338_v3 = vld [vmem:[%s2044_s24 + $0x18] sm:$0xff] }
  0x21   : > { %595 = vmatprep.subr.mxu0 %v1758_v2  ;;  %820 = vmatprep.subr.mxu1 %v1758_v2  ;;  %v544_v62 = vld [vmem:[%s2486_s1 + $0x188] sm:$0xff]  ;;  %v543_v1 = vld [vmem:[%s2486_s1 + $0x180] sm:$0xff]  ;;  %v337_v5 = vld [vmem:[%s2044_s24 + $0x10] sm:$0xff] }
  0x22   : > { %596 = vmatpush1.msra.mxu0 %v500_v21  ;;  %821 = vmatpush1.msra.mxu1 %v532_v22  ;;  %v336_v0 = vld [vmem:[%s2044_s24 + $0x8] sm:$0xff]  ;;  %v335_v4 = vld [vmem:[%s2044_s24] sm:$0xff]  ;;  %v574_v6 = vld [vmem:[%s2486_s1 + $0x278] sm:$0xff] }
  0x23   : > { %597 = vmatprep.subr.mxu0 %v1758_v2  ;;  %822 = vmatprep.subr.mxu1 %v1758_v2  ;;  %v341_v7 = vld [vmem:[%s2044_s24 + $0x30] sm:$0xff]  ;;  %v343_v8 = vld [vmem:[%s2044_s24 + $0x40] sm:$0xff]  ;;  %v342_v9 = vld [vmem:[%s2044_s24 + $0x38] sm:$0xff] }
  0x24   : > { %598 = vmatpush1.msra.mxu0 %v499_v23  ;;  %823 = vmatpush1.msra.mxu1 %v531_v24  ;;  %v346_v10 = vld [vmem:[%s2044_s24 + $0x58] sm:$0xff]  ;;  %v348_v11 = vld [vmem:[%s2044_s24 + $0x68] sm:$0xff]  ;;  %v573_v12 = vld [vmem:[%s2486_s1 + $0x270] sm:$0xff] }
  0x25   : > { %599 = vmatprep.subr.mxu0 %v1758_v2  ;;  %824 = vmatprep.subr.mxu1 %v1758_v2  ;;  %v345_v13 = vld [vmem:[%s2044_s24 + $0x50] sm:$0xff]  ;;  %v347_v14 = vld [vmem:[%s2044_s24 + $0x60] sm:$0xff]  ;;  %v572_v17 = vld [vmem:[%s2486_s1 + $0x268] sm:$0xff] }
  0x26   : > { %600 = vmatpush1.msra.mxu0 %v498_v25  ;;  %825 = vmatpush1.msra.mxu1 %v530_v26  ;;  %v351_v15 = vld [vmem:[%s2044_s24 + $0x80] sm:$0xff]  ;;  %v353_v16 = vld [vmem:[%s2044_s24 + $0x90] sm:$0xff]  ;;  %v350_v18 = vld [vmem:[%s2044_s24 + $0x78] sm:$0xff] }
  0x27   : > { %601 = vmatprep.subr.mxu0 %v1758_v2  ;;  %826 = vmatprep.subr.mxu1 %v1758_v2  ;;  %v352_v19 = vld [vmem:[%s2044_s24 + $0x88] sm:$0xff]  ;;  %v358_v21 = vld [vmem:[%s2044_s24 + $0xb8] sm:$0xff]  ;;  %v571_v22 = vld [vmem:[%s2486_s1 + $0x260] sm:$0xff] }
  0x28   : > { %602 = vmatpush1.msra.mxu0 %v497_v27  ;;  %827 = vmatpush1.msra.mxu1 %v529_v28  ;;  %v356_v20 = vld [vmem:[%s2044_s24 + $0xa8] sm:$0xff]  ;;  %v355_v23 = vld [vmem:[%s2044_s24 + $0xa0] sm:$0xff]  ;;  %v357_v24 = vld [vmem:[%s2044_s24 + $0xb0] sm:$0xff] }
  0x29   : > { %603 = vmatprep.subr.mxu0 %v1758_v2  ;;  %828 = vmatprep.subr.mxu1 %v1758_v2  ;;  %v361_v25 = vld [vmem:[%s2044_s24 + $0xd0] sm:$0xff]  ;;  %v363_v26 = vld [vmem:[%s2044_s24 + $0xe0] sm:$0xff]  ;;  %v570_v27 = vld [vmem:[%s2486_s1 + $0x258] sm:$0xff] }
  0x2a   : > { %604 = vmatpush1.msra.mxu0 %v496_v29  ;;  %829 = vmatpush1.msra.mxu1 %v528_v30  ;;  %v360_v28 = vld [vmem:[%s2044_s24 + $0xc8] sm:$0xff]  ;;  %v362_v29 = vld [vmem:[%s2044_s24 + $0xd8] sm:$0xff] }
  0x2b   : > { %605 = vmatprep.subr.mxu0 %v1758_v2  ;;  %830 = vmatprep.subr.mxu1 %v1758_v2  ;;  %v366_v30 = vld [vmem:[%s2044_s24 + $0xf8] sm:$0xff] }
  0x2c   : > { %606 = vmatpush1.msra.mxu0 %v495_v31  ;;  %831 = vmatpush1.msra.mxu1 %v527_v32  ;;  %v368_v31 = vld [vmem:[%s2044_s24 + $0x108] sm:$0xff]  ;;  %v569_v32 = vld [vmem:[%s2486_s1 + $0x250] sm:$0xff] }
  0x2d   : > { %607 = vmatprep.subr.mxu0 %v1758_v2  ;;  %832 = vmatprep.subr.mxu1 %v1758_v2 }
  0x2e   : > { %608 = vmatpush2.msra.mxu0 %v526_v33  ;;  %833 = vmatpush2.msra.mxu1 %v558_v34  ;;  %v365_v33 = vld [vmem:[%s2044_s24 + $0xf0] sm:$0xff]  ;;  %v367_v34 = vld [vmem:[%s2044_s24 + $0x100] sm:$0xff] }
  0x2f   : > { %609 = vmatprep.subr.mxu0 %v1758_v2  ;;  %834 = vmatprep.subr.mxu1 %v1758_v2 }
  0x30   : > { %610 = vmatpush2.msra.mxu0 %v525_v35  ;;  %835 = vmatpush2.msra.mxu1 %v557_v36  ;;  %v371_v35 = vld [vmem:[%s2044_s24 + $0x120] sm:$0xff]  ;;  %v373_v36 = vld [vmem:[%s2044_s24 + $0x130] sm:$0xff] }
  0x31   : > { %611 = vmatprep.subr.mxu0 %v1758_v2  ;;  %836 = vmatprep.subr.mxu1 %v1758_v2 }
  0x32   : > { %612 = vmatpush2.msra.mxu0 %v524_v37  ;;  %837 = vmatpush2.msra.mxu1 %v556_v38  ;;  %v568_v37 = vld [vmem:[%s2486_s1 + $0x248] sm:$0xff]  ;;  %v370_v38 = vld [vmem:[%s2044_s24 + $0x118] sm:$0xff] }
  0x33   : > { %613 = vmatprep.subr.mxu0 %v1758_v2  ;;  %838 = vmatprep.subr.mxu1 %v1758_v2 }
  0x34   : > { %614 = vmatpush2.msra.mxu0 %v523_v39  ;;  %839 = vmatpush2.msra.mxu1 %v555_v40  ;;  %v372_v39 = vld [vmem:[%s2044_s24 + $0x128] sm:$0xff] }
  0x35   : > { %615 = vmatprep.subr.mxu0 %v1758_v2  ;;  %840 = vmatprep.subr.mxu1 %v1758_v2  ;;  %v376_v40 = vld [vmem:[%s2044_s24 + $0x148] sm:$0xff] }
  0x36   : > { %616 = vmatpush2.msra.mxu0 %v522_v41  ;;  %841 = vmatpush2.msra.mxu1 %v554_v42  ;;  %v378_v41 = vld [vmem:[%s2044_s24 + $0x158] sm:$0xff]  ;;  %v567_v42 = vld [vmem:[%s2486_s1 + $0x240] sm:$0xff] }
  0x37   : > { %617 = vmatprep.subr.mxu0 %v1758_v2  ;;  %842 = vmatprep.subr.mxu1 %v1758_v2 }
  0x38   : > { %618 = vmatpush2.msra.mxu0 %v521_v43  ;;  %843 = vmatpush2.msra.mxu1 %v553_v44  ;;  %v375_v43 = vld [vmem:[%s2044_s24 + $0x140] sm:$0xff]  ;;  %v377_v44 = vld [vmem:[%s2044_s24 + $0x150] sm:$0xff] }
  0x39   : > { %619 = vmatprep.subr.mxu0 %v1758_v2  ;;  %844 = vmatprep.subr.mxu1 %v1758_v2 }
  0x3a   : > { %620 = vmatpush2.msra.mxu0 %v520_v45  ;;  %845 = vmatpush2.msra.mxu1 %v552_v46  ;;  %v381_v45 = vld [vmem:[%s2044_s24 + $0x170] sm:$0xff]  ;;  %v383_v46 = vld [vmem:[%s2044_s24 + $0x180] sm:$0xff] }
  0x3b   : > { %621 = vmatprep.subr.mxu0 %v1758_v2  ;;  %846 = vmatprep.subr.mxu1 %v1758_v2 }
  0x3c   : > { %622 = vmatpush2.msra.mxu0 %v519_v47  ;;  %847 = vmatpush2.msra.mxu1 %v551_v48  ;;  %v566_v47 = vld [vmem:[%s2486_s1 + $0x238] sm:$0xff]  ;;  %v380_v48 = vld [vmem:[%s2044_s24 + $0x168] sm:$0xff] }
  0x3d   : > { %623 = vmatprep.subr.mxu0 %v1758_v2  ;;  %848 = vmatprep.subr.mxu1 %v1758_v2 }
  0x3e   : > { %624 = vmatpush2.msra.mxu0 %v518_v49  ;;  %849 = vmatpush2.msra.mxu1 %v550_v50  ;;  %v382_v49 = vld [vmem:[%s2044_s24 + $0x178] sm:$0xff] }
  0x3f   : > { %625 = vmatprep.subr.mxu0 %v1758_v2  ;;  %850 = vmatprep.subr.mxu1 %v1758_v2  ;;  %v386_v50 = vld [vmem:[%s2044_s24 + $0x198] sm:$0xff] }
  0x40   : > { %626 = vmatpush2.msra.mxu0 %v517_v51  ;;  %851 = vmatpush2.msra.mxu1 %v549_v52  ;;  %v388_v51 = vld [vmem:[%s2044_s24 + $0x1a8] sm:$0xff]  ;;  %v565_v52 = vld [vmem:[%s2486_s1 + $0x230] sm:$0xff] }
  0x41   : > { %627 = vmatprep.subr.mxu0 %v1758_v2  ;;  %852 = vmatprep.subr.mxu1 %v1758_v2 }
  0x42   : > { %628 = vmatpush2.msra.mxu0 %v516_v53  ;;  %853 = vmatpush2.msra.mxu1 %v548_v54  ;;  %v385_v53 = vld [vmem:[%s2044_s24 + $0x190] sm:$0xff]  ;;  %v387_v54 = vld [vmem:[%s2044_s24 + $0x1a0] sm:$0xff] }
  0x43   : > { %629 = vmatprep.subr.mxu0 %v1758_v2  ;;  %854 = vmatprep.subr.mxu1 %v1758_v2 }
  0x44   : > { %630 = vmatpush2.msra.mxu0 %v515_v55  ;;  %855 = vmatpush2.msra.mxu1 %v547_v56  ;;  %v391_v55 = vld [vmem:[%s2044_s24 + $0x1c0] sm:$0xff]  ;;  %v393_v56 = vld [vmem:[%s2044_s24 + $0x1d0] sm:$0xff] }
  0x45   : > { %631 = vmatprep.subr.mxu0 %v1758_v2  ;;  %856 = vmatprep.subr.mxu1 %v1758_v2 }
  0x46   : > { %632 = vmatpush2.msra.mxu0 %v514_v57  ;;  %857 = vmatpush2.msra.mxu1 %v546_v58  ;;  %v564_v57 = vld [vmem:[%s2486_s1 + $0x228] sm:$0xff]  ;;  %v390_v58 = vld [vmem:[%s2044_s24 + $0x1b8] sm:$0xff] }
  0x47   : > { %633 = vmatprep.subr.mxu0 %v1758_v2  ;;  %858 = vmatprep.subr.mxu1 %v1758_v2 }
  0x48   : > { %634 = vmatpush2.msra.mxu0 %v513_v59  ;;  %859 = vmatpush2.msra.mxu1 %v545_v60  ;;  %v392_v59 = vld [vmem:[%s2044_s24 + $0x1c8] sm:$0xff] }
  0x49   : > { %635 = vmatprep.subr.mxu0 %v1758_v2  ;;  %860 = vmatprep.subr.mxu1 %v1758_v2  ;;  %v396_v60 = vld [vmem:[%s2044_s24 + $0x1e8] sm:$0xff] }
  0x4a   : > { %636 = vmatpush2.msra.mxu0 %v512_v61  ;;  %861 = vmatpush2.msra.mxu1 %v544_v62  ;;  %v398_v61 = vld [vmem:[%s2044_s24 + $0x1f8] sm:$0xff]  ;;  %v563_v62 = vld [vmem:[%s2486_s1 + $0x220] sm:$0xff] }
  0x4b   : > { %637 = vmatprep.subr.mxu0 %v1758_v2  ;;  %862 = vmatprep.subr.mxu1 %v1758_v2  ;;  %v340_v2 = vld [vmem:[%s2044_s24 + $0x28] sm:$0xff] }
  0x4c   : > { %638 = vmatpush2.msra.mxu0 %v511_v63  ;;  %639 = vmatprep.mubr.f32.mxu0 %v336_v0  ;;  %v395_v63 = vld [vmem:[%s2044_s24 + $0x1e0] sm:$0xff]  ;;  %v397_v0 = vld [vmem:[%s2044_s24 + $0x1f0] sm:$0xff] }
  0x4d   : > { %863 = vmatpush2.msra.mxu1 %v543_v1  ;;  %864 = vmatprep.mubr.f32.mxu1 %v338_v3  ;;  %v401_v1 = vld [vmem:[%s2044_s24 + $0x210] sm:$0xff]  ;;  %v403_v3 = vld [vmem:[%s2044_s24 + $0x220] sm:$0xff] }
  0x4e   : > { %640 = vmatmul.mubr.f32.vlgmr.msra.gmra.mxu0 %v335_v4  ;;  %865 = vmatmul.mubr.f32.vlgmr.msra.gmra.mxu1 %v337_v5  ;;  %v562_v4 = vld [vmem:[%s2486_s1 + $0x218] sm:$0xff]  ;;  %v400_v5 = vld [vmem:[%s2044_s24 + $0x208] sm:$0xff] }
  0x4f   : > { %1596 = vmatprep.subr.mxu0 %v574_v6  ;;  %1676 = vmatprep.subr.mxu1 %v574_v6 }
  0x50   : > { %1597 = vmatpush3.msra.mxu0 %v574_v6  ;;  %1692 = vmatpush3.msra.mxu1 %v574_v6  ;;  %v402_v6 = vld [vmem:[%s2044_s24 + $0x218] sm:$0xff] }
  0x51   : > { %644 = vmatprep.mubr.f32.mxu0 %v341_v7  ;;  %869 = vmatprep.mubr.f32.mxu1 %v343_v8  ;;  %v406_v7 = vld [vmem:[%s2044_s24 + $0x238] sm:$0xff]  ;;  %v408_v8 = vld [vmem:[%s2044_s24 + $0x248] sm:$0xff] }
  0x52   : > { %645 = vmatmul.mubr.f32.gmra.mxu0 %v340_v2  ;;  %870 = vmatmul.mubr.f32.gmra.mxu1 %v342_v9  ;;  %v561_v2 = vld [vmem:[%s2486_s1 + $0x210] sm:$0xff] }
  0x53   : > { %649 = vmatprep.mubr.f32.mxu0 %v346_v10  ;;  %874 = vmatprep.mubr.f32.mxu1 %v348_v11  ;;  %v405_v9 = vld [vmem:[%s2044_s24 + $0x230] sm:$0xff]  ;;  %v407_v10 = vld [vmem:[%s2044_s24 + $0x240] sm:$0xff] }
  0x54   : > { %1598 = vmatprep.subr.mxu0 %v573_v12  ;;  %1677 = vmatprep.subr.mxu1 %v573_v12  ;;  %v411_v11 = vld [vmem:[%s2044_s24 + $0x260] sm:$0xff] }
  0x55   : > { %1599 = vmatpush3.msra.mxu0 %v573_v12  ;;  %1693 = vmatpush3.msra.mxu1 %v573_v12  ;;  %v413_v12 = vld [vmem:[%s2044_s24 + $0x270] sm:$0xff] }
  0x56   : > { %650 = vmatmul.mubr.f32.gmra.mxu0 %v345_v13  ;;  %875 = vmatmul.mubr.f32.gmra.mxu1 %v347_v14  ;;  %v560_v13 = vld [vmem:[%s2486_s1 + $0x208] sm:$0xff]  ;;  %v410_v14 = vld [vmem:[%s2044_s24 + $0x258] sm:$0xff] }
  0x57   : > { %654 = vmatprep.mubr.f32.mxu0 %v351_v15  ;;  %879 = vmatprep.mubr.f32.mxu1 %v353_v16  ;;  %v412_v15 = vld [vmem:[%s2044_s24 + $0x268] sm:$0xff] }
  0x58   : > { %1600 = vmatprep.subr.mxu0 %v572_v17  ;;  %1678 = vmatprep.subr.mxu1 %v572_v17  ;;  %v416_v16 = vld [vmem:[%s2044_s24 + $0x288] sm:$0xff] }
  0x59   : > { %1601 = vmatpush3.msra.mxu0 %v572_v17  ;;  %1694 = vmatpush3.msra.mxu1 %v572_v17  ;;  %v418_v17 = vld [vmem:[%s2044_s24 + $0x298] sm:$0xff] }
  0x5a   : > { %655 = vmatmul.mubr.f32.gmra.mxu0 %v350_v18  ;;  %880 = vmatmul.mubr.f32.gmra.mxu1 %v352_v19  ;;  %v559_v18 = vld [vmem:[%s2486_s1 + $0x200] sm:$0xff] }
  0x5b   : > { %659 = vmatprep.mubr.f32.mxu0 %v356_v20  ;;  %884 = vmatprep.mubr.f32.mxu1 %v358_v21  ;;  %v415_v19 = vld [vmem:[%s2044_s24 + $0x280] sm:$0xff]  ;;  %v417_v20 = vld [vmem:[%s2044_s24 + $0x290] sm:$0xff] }
  0x5c   : > { %1602 = vmatprep.subr.mxu0 %v571_v22  ;;  %1679 = vmatprep.subr.mxu1 %v571_v22  ;;  %v421_v21 = vld [vmem:[%s2044_s24 + $0x2b0] sm:$0xff] }
  0x5d   : > { %1603 = vmatpush3.msra.mxu0 %v571_v22  ;;  %1695 = vmatpush3.msra.mxu1 %v571_v22  ;;  %v423_v22 = vld [vmem:[%s2044_s24 + $0x2c0] sm:$0xff] }
  0x5e   : > { %660 = vmatmul.mubr.f32.gmra.mxu0 %v355_v23  ;;  %885 = vmatmul.mubr.f32.gmra.mxu1 %v357_v24  ;;  %v420_v23 = vld [vmem:[%s2044_s24 + $0x2a8] sm:$0xff]  ;;  %v422_v24 = vld [vmem:[%s2044_s24 + $0x2b8] sm:$0xff] }
  0x5f   : > { %664 = vmatprep.mubr.f32.mxu0 %v361_v25  ;;  %889 = vmatprep.mubr.f32.mxu1 %v363_v26  ;;  %v426_v25 = vld [vmem:[%s2044_s24 + $0x2d8] sm:$0xff]  ;;  %v428_v26 = vld [vmem:[%s2044_s24 + $0x2e8] sm:$0xff] }
  0x60   : > { %1604 = vmatprep.subr.mxu0 %v570_v27  ;;  %1680 = vmatprep.subr.mxu1 %v570_v27 }
  0x61   : > { %1605 = vmatpush3.msra.mxu0 %v570_v27  ;;  %1696 = vmatpush3.msra.mxu1 %v570_v27  ;;  %v425_v27 = vld [vmem:[%s2044_s24 + $0x2d0] sm:$0xff] }
  0x62   : > { %665 = vmatmul.mubr.f32.gmra.mxu0 %v360_v28  ;;  %890 = vmatmul.mubr.f32.gmra.mxu1 %v362_v29  ;;  %v427_v28 = vld [vmem:[%s2044_s24 + $0x2e0] sm:$0xff] }
  0x63   : > { %669 = vmatprep.mubr.f32.mxu0 %v366_v30  ;;  %894 = vmatprep.mubr.f32.mxu1 %v368_v31  ;;  %v431_v29 = vld [vmem:[%s2044_s24 + $0x300] sm:$0xff]  ;;  %v433_v30 = vld [vmem:[%s2044_s24 + $0x310] sm:$0xff]  ;;  %v430_v31 = vld [vmem:[%s2044_s24 + $0x2f8] sm:$0xff] }
  0x64   : > { %1606 = vmatprep.subr.mxu0 %v569_v32  ;;  %1681 = vmatprep.subr.mxu1 %v569_v32 }
  0x65   : > { %1607 = vmatpush3.msra.mxu0 %v569_v32  ;;  %1697 = vmatpush3.msra.mxu1 %v569_v32  ;;  %v432_v32 = vld [vmem:[%s2044_s24 + $0x308] sm:$0xff] }
  0x66   : > { %670 = vmatmul.mubr.f32.gmra.mxu0 %v365_v33  ;;  %895 = vmatmul.mubr.f32.gmra.mxu1 %v367_v34  ;;  %v436_v33 = vld [vmem:[%s2044_s24 + $0x328] sm:$0xff]  ;;  %v438_v34 = vld [vmem:[%s2044_s24 + $0x338] sm:$0xff] }
  0x67   : > { %674 = vmatprep.mubr.f32.mxu0 %v371_v35  ;;  %899 = vmatprep.mubr.f32.mxu1 %v373_v36  ;;  %v435_v35 = vld [vmem:[%s2044_s24 + $0x320] sm:$0xff]  ;;  %v437_v36 = vld [vmem:[%s2044_s24 + $0x330] sm:$0xff] }
  0x68   : > { %1608 = vmatprep.subr.mxu0 %v568_v37  ;;  %1682 = vmatprep.subr.mxu1 %v568_v37 }
  0x69   : > { %1609 = vmatpush3.msra.mxu0 %v568_v37  ;;  %1698 = vmatpush3.msra.mxu1 %v568_v37  ;;  %v441_v37 = vld [vmem:[%s2044_s24 + $0x350] sm:$0xff] }
  0x6a   : > { %675 = vmatmul.mubr.f32.gmra.mxu0 %v370_v38  ;;  %900 = vmatmul.mubr.f32.gmra.mxu1 %v372_v39  ;;  %v443_v38 = vld [vmem:[%s2044_s24 + $0x360] sm:$0xff]  ;;  %v440_v39 = vld [vmem:[%s2044_s24 + $0x348] sm:$0xff] }
  0x6b   : > { %679 = vmatprep.mubr.f32.mxu0 %v376_v40  ;;  %904 = vmatprep.mubr.f32.mxu1 %v378_v41  ;;  %v442_v40 = vld [vmem:[%s2044_s24 + $0x358] sm:$0xff] }
  0x6c   : > { %1610 = vmatprep.subr.mxu0 %v567_v42  ;;  %1683 = vmatprep.subr.mxu1 %v567_v42  ;;  %v446_v41 = vld [vmem:[%s2044_s24 + $0x378] sm:$0xff] }
  0x6d   : > { %1611 = vmatpush3.msra.mxu0 %v567_v42  ;;  %1699 = vmatpush3.msra.mxu1 %v567_v42  ;;  %v448_v42 = vld [vmem:[%s2044_s24 + $0x388] sm:$0xff] }
  0x6e   : > { %680 = vmatmul.mubr.f32.gmra.mxu0 %v375_v43  ;;  %905 = vmatmul.mubr.f32.gmra.mxu1 %v377_v44  ;;  %v445_v43 = vld [vmem:[%s2044_s24 + $0x370] sm:$0xff]  ;;  %v447_v44 = vld [vmem:[%s2044_s24 + $0x380] sm:$0xff] }
  0x6f   : > { %684 = vmatprep.mubr.f32.mxu0 %v381_v45  ;;  %909 = vmatprep.mubr.f32.mxu1 %v383_v46  ;;  %v451_v45 = vld [vmem:[%s2044_s24 + $0x3a0] sm:$0xff]  ;;  %v453_v46 = vld [vmem:[%s2044_s24 + $0x3b0] sm:$0xff] }
  0x70   : > { %1612 = vmatprep.subr.mxu0 %v566_v47  ;;  %1684 = vmatprep.subr.mxu1 %v566_v47 }
  0x71   : > { %1613 = vmatpush3.msra.mxu0 %v566_v47  ;;  %1700 = vmatpush3.msra.mxu1 %v566_v47  ;;  %v450_v47 = vld [vmem:[%s2044_s24 + $0x398] sm:$0xff] }
  0x72   : > { %685 = vmatmul.mubr.f32.gmra.mxu0 %v380_v48  ;;  %910 = vmatmul.mubr.f32.gmra.mxu1 %v382_v49  ;;  %v452_v48 = vld [vmem:[%s2044_s24 + $0x3a8] sm:$0xff] }
  0x73   : > { %689 = vmatprep.mubr.f32.mxu0 %v386_v50  ;;  %914 = vmatprep.mubr.f32.mxu1 %v388_v51  ;;  %v456_v49 = vld [vmem:[%s2044_s24 + $0x3c8] sm:$0xff]  ;;  %v458_v50 = vld [vmem:[%s2044_s24 + $0x3d8] sm:$0xff]  ;;  %v455_v51 = vld [vmem:[%s2044_s24 + $0x3c0] sm:$0xff] }
  0x74   : > { %1614 = vmatprep.subr.mxu0 %v565_v52  ;;  %1685 = vmatprep.subr.mxu1 %v565_v52 }
  0x75   : > { %1615 = vmatpush3.msra.mxu0 %v565_v52  ;;  %1701 = vmatpush3.msra.mxu1 %v565_v52  ;;  %v457_v52 = vld [vmem:[%s2044_s24 + $0x3d0] sm:$0xff] }
  0x76   : > { %690 = vmatmul.mubr.f32.gmra.mxu0 %v385_v53  ;;  %915 = vmatmul.mubr.f32.gmra.mxu1 %v387_v54  ;;  %v461_v53 = vld [vmem:[%s2044_s24 + $0x3f0] sm:$0xff]  ;;  %v463_v54 = vld [vmem:[%s2044_s24 + $0x400] sm:$0xff] }
  0x77   : > { %694 = vmatprep.mubr.f32.mxu0 %v391_v55  ;;  %919 = vmatprep.mubr.f32.mxu1 %v393_v56  ;;  %v460_v55 = vld [vmem:[%s2044_s24 + $0x3e8] sm:$0xff]  ;;  %v462_v56 = vld [vmem:[%s2044_s24 + $0x3f8] sm:$0xff] }
  0x78   : > { %1616 = vmatprep.subr.mxu0 %v564_v57  ;;  %1686 = vmatprep.subr.mxu1 %v564_v57 }
  0x79   : > { %1617 = vmatpush3.msra.mxu0 %v564_v57  ;;  %1702 = vmatpush3.msra.mxu1 %v564_v57  ;;  %v466_v57 = vld [vmem:[%s2044_s24 + $0x418] sm:$0xff] }
  0x7a   : > { %695 = vmatmul.mubr.f32.gmra.mxu0 %v390_v58  ;;  %920 = vmatmul.mubr.f32.gmra.mxu1 %v392_v59  ;;  %v468_v58 = vld [vmem:[%s2044_s24 + $0x428] sm:$0xff]  ;;  %v465_v59 = vld [vmem:[%s2044_s24 + $0x410] sm:$0xff] }
  0x7b   : > { %699 = vmatprep.mubr.f32.mxu0 %v396_v60  ;;  %924 = vmatprep.mubr.f32.mxu1 %v398_v61  ;;  %v467_v60 = vld [vmem:[%s2044_s24 + $0x420] sm:$0xff] }
  0x7c   : > { %1618 = vmatprep.subr.mxu0 %v563_v62  ;;  %1687 = vmatprep.subr.mxu1 %v563_v62  ;;  %v471_v61 = vld [vmem:[%s2044_s24 + $0x440] sm:$0xff] }
  0x7d   : > { %1619 = vmatpush3.msra.mxu0 %v563_v62  ;;  %1703 = vmatpush3.msra.mxu1 %v563_v62  ;;  %v473_v62 = vld [vmem:[%s2044_s24 + $0x450] sm:$0xff] }
  0x7e   : > { %700 = vmatmul.mubr.f32.gmra.mxu0 %v395_v63  ;;  %925 = vmatmul.mubr.f32.gmra.mxu1 %v397_v0  ;;  %v470_v63 = vld [vmem:[%s2044_s24 + $0x438] sm:$0xff]  ;;  %v472_v0 = vld [vmem:[%s2044_s24 + $0x448] sm:$0xff] }
  0x7f   : > { %704 = vmatprep.mubr.f32.mxu0 %v401_v1  ;;  %929 = vmatprep.mubr.f32.mxu1 %v403_v3  ;;  %v476_v1 = vld [vmem:[%s2044_s24 + $0x468] sm:$0xff]  ;;  %v478_v3 = vld [vmem:[%s2044_s24 + $0x478] sm:$0xff] }
  0x80   : > { %1620 = vmatprep.subr.mxu0 %v562_v4  ;;  %1688 = vmatprep.subr.mxu1 %v562_v4 }
  0x81   : > { %1621 = vmatpush3.msra.mxu0 %v562_v4  ;;  %1704 = vmatpush3.msra.mxu1 %v562_v4  ;;  %v475_v4 = vld [vmem:[%s2044_s24 + $0x460] sm:$0xff] }
  0x82   : > { %705 = vmatmul.mubr.f32.gmra.mxu0 %v400_v5  ;;  %930 = vmatmul.mubr.f32.gmra.mxu1 %v402_v6  ;;  %v477_v5 = vld [vmem:[%s2044_s24 + $0x470] sm:$0xff] }
  0x83   : > { %709 = vmatprep.mubr.f32.mxu0 %v406_v7  ;;  %934 = vmatprep.mubr.f32.mxu1 %v408_v8  ;;  %v481_v6 = vld [vmem:[%s2044_s24 + $0x490] sm:$0xff]  ;;  %v483_v7 = vld [vmem:[%s2044_s24 + $0x4a0] sm:$0xff]  ;;  %v480_v8 = vld [vmem:[%s2044_s24 + $0x488] sm:$0xff] }
  0x84   : > { %1622 = vmatprep.subr.mxu0 %v561_v2  ;;  %1689 = vmatprep.subr.mxu1 %v561_v2 }
  0x85   : > { %1623 = vmatpush3.msra.mxu0 %v561_v2  ;;  %1705 = vmatpush3.msra.mxu1 %v561_v2  ;;  %v482_v2 = vld [vmem:[%s2044_s24 + $0x498] sm:$0xff] }
  0x86   : > { %710 = vmatmul.mubr.f32.gmra.mxu0 %v405_v9  ;;  %935 = vmatmul.mubr.f32.gmra.mxu1 %v407_v10  ;;  %v486_v9 = vld [vmem:[%s2044_s24 + $0x4b8] sm:$0xff]  ;;  %v488_v10 = vld [vmem:[%s2044_s24 + $0x4c8] sm:$0xff] }
  0x87   : > { %714 = vmatprep.mubr.f32.mxu0 %v411_v11  ;;  %939 = vmatprep.mubr.f32.mxu1 %v413_v12  ;;  %v485_v11 = vld [vmem:[%s2044_s24 + $0x4b0] sm:$0xff]  ;;  %v487_v12 = vld [vmem:[%s2044_s24 + $0x4c0] sm:$0xff] }
  0x88   : > { %1624 = vmatprep.subr.mxu0 %v560_v13  ;;  %1690 = vmatprep.subr.mxu1 %v560_v13 }
  0x89   : > { %1625 = vmatpush3.msra.mxu0 %v560_v13  ;;  %1706 = vmatpush3.msra.mxu1 %v560_v13  ;;  %v491_v13 = vld [vmem:[%s2044_s24 + $0x4e0] sm:$0xff] }
  0x8a   : > { %715 = vmatmul.mubr.f32.gmra.mxu0 %v410_v14  ;;  %940 = vmatmul.mubr.f32.gmra.mxu1 %v412_v15  ;;  %v493_v14 = vld [vmem:[%s2044_s24 + $0x4f0] sm:$0xff]  ;;  %v490_v15 = vld [vmem:[%s2044_s24 + $0x4d8] sm:$0xff] }
  0x8b   : > { %719 = vmatprep.mubr.f32.mxu0 %v416_v16  ;;  %944 = vmatprep.mubr.f32.mxu1 %v418_v17  ;;  %v492_v16 = vld [vmem:[%s2044_s24 + $0x4e8] sm:$0xff]  ;;  %v339_v17 = vld [vmem:[%s2044_s24 + $0x20] sm:$0xff] }
  0x8c   : > { %1626 = vmatprep.subr.mxu0 %v559_v18  ;;  %1691 = vmatprep.subr.mxu1 %v559_v18 }
  0x8d   : > { %1627 = vmatpush3.msra.mxu0 %v559_v18  ;;  %1707 = vmatpush3.msra.mxu1 %v559_v18  ;;  %v419_v18 = vld [vmem:[%s2044_s24 + $0x2a0] sm:$0xff] }
  0x8e   : > { %720 = vmatmul.mubr.f32.gmra.mxu0 %v415_v19  ;;  %945 = vmatmul.mubr.f32.gmra.mxu1 %v417_v20  ;;  %v344_v19 = vld [vmem:[%s2044_s24 + $0x48] sm:$0xff] }
  0x8f   : > { %724 = vmatprep.mubr.f32.mxu0 %v421_v21  ;;  %949 = vmatprep.mubr.f32.mxu1 %v423_v22  ;;  %v424_v20 = vld [vmem:[%s2044_s24 + $0x2c8] sm:$0xff]  ;;  %v349_v21 = vld [vmem:[%s2044_s24 + $0x70] sm:$0xff] }
  0x90   : > { %v429_v22 = vld [vmem:[%s2044_s24 + $0x2f0] sm:$0xff] }
  0x92   : > { %725 = vmatmul.mubr.f32.gmra.mxu0 %v420_v23  ;;  %950 = vmatmul.mubr.f32.gmra.mxu1 %v422_v24  ;;  %v354_v23 = vld [vmem:[%s2044_s24 + $0x98] sm:$0xff] }
  0x93   : > { %729 = vmatprep.mubr.f32.mxu0 %v426_v25  ;;  %954 = vmatprep.mubr.f32.mxu1 %v428_v26  ;;  %v434_v24 = vld [vmem:[%s2044_s24 + $0x318] sm:$0xff]  ;;  %v359_v25 = vld [vmem:[%s2044_s24 + $0xc0] sm:$0xff] }
  0x94   : > { %v439_v26 = vld [vmem:[%s2044_s24 + $0x340] sm:$0xff] }
  0x96   : > { %730 = vmatmul.mubr.f32.gmra.mxu0 %v425_v27  ;;  %955 = vmatmul.mubr.f32.gmra.mxu1 %v427_v28  ;;  %v364_v27 = vld [vmem:[%s2044_s24 + $0xe8] sm:$0xff] }
  0x97   : > { %734 = vmatprep.mubr.f32.mxu0 %v431_v29  ;;  %959 = vmatprep.mubr.f32.mxu1 %v433_v30  ;;  %v444_v28 = vld [vmem:[%s2044_s24 + $0x368] sm:$0xff]  ;;  %v369_v29 = vld [vmem:[%s2044_s24 + $0x110] sm:$0xff] }
  0x98   : > { %v449_v30 = vld [vmem:[%s2044_s24 + $0x390] sm:$0xff] }
  0x9a   : > { %735 = vmatmul.mubr.f32.gmra.mxu0 %v430_v31  ;;  %960 = vmatmul.mubr.f32.gmra.mxu1 %v432_v32  ;;  %v374_v31 = vld [vmem:[%s2044_s24 + $0x138] sm:$0xff] }
  0x9b   : > { %739 = vmatprep.mubr.f32.mxu0 %v436_v33  ;;  %964 = vmatprep.mubr.f32.mxu1 %v438_v34  ;;  %v454_v32 = vld [vmem:[%s2044_s24 + $0x3b8] sm:$0xff]  ;;  %v379_v33 = vld [vmem:[%s2044_s24 + $0x160] sm:$0xff] }
  0x9c   : > { %v459_v34 = vld [vmem:[%s2044_s24 + $0x3e0] sm:$0xff] }
  0x9e   : > { %740 = vmatmul.mubr.f32.gmra.mxu0 %v435_v35  ;;  %965 = vmatmul.mubr.f32.gmra.mxu1 %v437_v36  ;;  %v384_v35 = vld [vmem:[%s2044_s24 + $0x188] sm:$0xff] }
  0x9f   : > { %744 = vmatprep.mubr.f32.mxu0 %v441_v37  ;;  %969 = vmatprep.mubr.f32.mxu1 %v443_v38  ;;  %v464_v36 = vld [vmem:[%s2044_s24 + $0x408] sm:$0xff]  ;;  %v389_v37 = vld [vmem:[%s2044_s24 + $0x1b0] sm:$0xff] }
  0xa0   : > { %v469_v38 = vld [vmem:[%s2044_s24 + $0x430] sm:$0xff] }
  0xa2   : > { %745 = vmatmul.mubr.f32.gmra.mxu0 %v440_v39  ;;  %970 = vmatmul.mubr.f32.gmra.mxu1 %v442_v40  ;;  %v394_v39 = vld [vmem:[%s2044_s24 + $0x1d8] sm:$0xff] }
  0xa3   : > { %749 = vmatprep.mubr.f32.mxu0 %v446_v41  ;;  %974 = vmatprep.mubr.f32.mxu1 %v448_v42  ;;  %v474_v40 = vld [vmem:[%s2044_s24 + $0x458] sm:$0xff]  ;;  %v399_v41 = vld [vmem:[%s2044_s24 + $0x200] sm:$0xff] }
  0xa4   : > { %v479_v42 = vld [vmem:[%s2044_s24 + $0x480] sm:$0xff] }
  0xa6   : > { %750 = vmatmul.mubr.f32.gmra.mxu0 %v445_v43  ;;  %975 = vmatmul.mubr.f32.gmra.mxu1 %v447_v44  ;;  %v404_v43 = vld [vmem:[%s2044_s24 + $0x228] sm:$0xff] }
  0xa7   : > { %754 = vmatprep.mubr.f32.mxu0 %v451_v45  ;;  %979 = vmatprep.mubr.f32.mxu1 %v453_v46  ;;  %v484_v44 = vld [vmem:[%s2044_s24 + $0x4a8] sm:$0xff]  ;;  %v409_v45 = vld [vmem:[%s2044_s24 + $0x250] sm:$0xff] }
  0xa8   : > { %v489_v46 = vld [vmem:[%s2044_s24 + $0x4d0] sm:$0xff] }
  0xaa   : > { %755 = vmatmul.mubr.f32.gmra.mxu0 %v450_v47  ;;  %980 = vmatmul.mubr.f32.gmra.mxu1 %v452_v48  ;;  %v414_v47 = vld [vmem:[%s2044_s24 + $0x278] sm:$0xff] }
  0xab   : > { %759 = vmatprep.mubr.f32.mxu0 %v456_v49  ;;  %984 = vmatprep.mubr.f32.mxu1 %v458_v50  ;;  %v494_v48 = vld [vmem:[%s2044_s24 + $0x4f8] sm:$0xff]  ;;  %s1544_s24 = sshll.u32 %s2494_s16, 3 }
  0xac   : > { %s2368_s25 = scalar_lea.vmem %s2488_s3, %s1544_s24 }
  0xae   : > { %760 = vmatmul.mubr.f32.gmra.mxu0 %v455_v51  ;;  %985 = vmatmul.mubr.f32.gmra.mxu1 %v457_v52 }
  0xaf   : > { %764 = vmatprep.mubr.f32.mxu0 %v461_v53  ;;  %989 = vmatprep.mubr.f32.mxu1 %v463_v54 }
  0xb2   : > { %765 = vmatmul.mubr.f32.gmra.mxu0 %v460_v55  ;;  %990 = vmatmul.mubr.f32.gmra.mxu1 %v462_v56 }
  0xb3   : > { %769 = vmatprep.mubr.f32.mxu0 %v466_v57  ;;  %994 = vmatprep.mubr.f32.mxu1 %v468_v58 }
  0xb6   : > { %770 = vmatmul.mubr.f32.gmra.mxu0 %v465_v59  ;;  %995 = vmatmul.mubr.f32.gmra.mxu1 %v467_v60 }
  0xb7   : > { %774 = vmatprep.mubr.f32.mxu0 %v471_v61  ;;  %999 = vmatprep.mubr.f32.mxu1 %v473_v62 }
  0xba   : > { %775 = vmatmul.mubr.f32.gmra.mxu0 %v470_v63  ;;  %1000 = vmatmul.mubr.f32.gmra.mxu1 %v472_v0 }
  0xbb   : > { %779 = vmatprep.mubr.f32.mxu0 %v476_v1  ;;  %1004 = vmatprep.mubr.f32.mxu1 %v478_v3 }
  0xbe   : > { %780 = vmatmul.mubr.f32.gmra.mxu0 %v475_v4  ;;  %1005 = vmatmul.mubr.f32.gmra.mxu1 %v477_v5 }
  0xbf   : > { %784 = vmatprep.mubr.f32.mxu0 %v481_v6  ;;  %1009 = vmatprep.mubr.f32.mxu1 %v483_v7 }
  0xc2   : > { %785 = vmatmul.mubr.f32.gmra.mxu0 %v480_v8  ;;  %1010 = vmatmul.mubr.f32.gmra.mxu1 %v482_v2 }
  0xc3   : > { %789 = vmatprep.mubr.f32.mxu0 %v486_v9  ;;  %1014 = vmatprep.mubr.f32.mxu1 %v488_v10 }
  0xc6   : > { %790 = vmatmul.mubr.f32.gmra.mxu0 %v485_v11  ;;  %1015 = vmatmul.mubr.f32.gmra.mxu1 %v487_v12 }
  0xc7   : > { %794 = vmatprep.mubr.f32.mxu0 %v491_v13  ;;  %1019 = vmatprep.mubr.f32.mxu1 %v493_v14 }
  0xca   : > { %795 = vmatmul.mubr.f32.gmra.mxu0 %v490_v15  ;;  %1020 = vmatmul.mubr.f32.gmra.mxu1 %v492_v16 }
  0xcb   : > { %1628 = vmatprep.mubr.f32.mxu0 %v339_v17  ;;  %1652 = vmatprep.mubr.f32.mxu1 %v419_v18 }
  0xce   : > { %1629 = vmatmul.mubr.f32.vlgmr.msra.gmra.mxu0 %v344_v19  ;;  %1653 = vmatmul.mubr.f32.vlgmr.msra.gmra.mxu1 %v424_v20 }
  0xcf   : > { %1631 = vmatprep.mubr.f32.mxu0 %v349_v21  ;;  %1655 = vmatprep.mubr.f32.mxu1 %v429_v22 }
  0xd2   : > { %1632 = vmatmul.mubr.f32.gmra.mxu0 %v354_v23  ;;  %1656 = vmatmul.mubr.f32.gmra.mxu1 %v434_v24 }
  0xd3   : > { %1634 = vmatprep.mubr.f32.mxu0 %v359_v25  ;;  %1658 = vmatprep.mubr.f32.mxu1 %v439_v26 }
  0xd6   : > { %1635 = vmatmul.mubr.f32.gmra.mxu0 %v364_v27  ;;  %1659 = vmatmul.mubr.f32.gmra.mxu1 %v444_v28 }
  0xd7   : > { %1637 = vmatprep.mubr.f32.mxu0 %v369_v29  ;;  %1661 = vmatprep.mubr.f32.mxu1 %v449_v30 }
  0xda   : > { %1638 = vmatmul.mubr.f32.gmra.mxu0 %v374_v31  ;;  %1662 = vmatmul.mubr.f32.gmra.mxu1 %v454_v32 }
  0xdb   : > { %1640 = vmatprep.mubr.f32.mxu0 %v379_v33  ;;  %1664 = vmatprep.mubr.f32.mxu1 %v459_v34 }
  0xde   : > { %1641 = vmatmul.mubr.f32.gmra.mxu0 %v384_v35  ;;  %1665 = vmatmul.mubr.f32.gmra.mxu1 %v464_v36 }
  0xdf   : > { %1643 = vmatprep.mubr.f32.mxu0 %v389_v37  ;;  %1667 = vmatprep.mubr.f32.mxu1 %v469_v38 }
  0xe2   : > { %1644 = vmatmul.mubr.f32.gmra.mxu0 %v394_v39  ;;  %1668 = vmatmul.mubr.f32.gmra.mxu1 %v474_v40 }
  0xe3   : > { %1646 = vmatprep.mubr.f32.mxu0 %v399_v41  ;;  %1670 = vmatprep.mubr.f32.mxu1 %v479_v42 }
  0xe6   : > { %1647 = vmatmul.mubr.f32.gmra.mxu0 %v404_v43  ;;  %1671 = vmatmul.mubr.f32.gmra.mxu1 %v484_v44 }
  0xe7   : > { %1649 = vmatprep.mubr.f32.mxu0 %v409_v45  ;;  %1673 = vmatprep.mubr.f32.mxu1 %v489_v46 }
  0xea   : > { %1650 = vmatmul.mubr.f32.gmra.mxu0 %v414_v47  ;;  %1674 = vmatmul.mubr.f32.gmra.mxu1 %v494_v48 }
 0x10e   : > { %v641_v49 = vpop.f32.mrf.mxu0  ;;  %v866_v50 = vpop.f32.mrf.mxu1 }
 0x10f   : > { %v2272_v51 = vadd.f32 %v866_v50, %v641_v49 }
 0x110   : > { %v643_v52 = vpop.f32.mrf.mxu0  ;;  %v868_v53 = vpop.f32.mrf.mxu1 }
 0x112   : > { %v646_v54 = vpop.f32.mrf.mxu0  ;;  %v871_v55 = vpop.f32.mrf.mxu1 }
 0x113   : > { %v2274_v56 = vadd.f32 %v871_v55, %v646_v54 }
 0x114   : > { %v648_v57 = vpop.f32.mrf.mxu0  ;;  %v873_v58 = vpop.f32.mrf.mxu1 }
 0x116   : > { %v651_v59 = vpop.f32.mrf.mxu0  ;;  %v876_v60 = vpop.f32.mrf.mxu1 }
 0x117   : > { %v2276_v61 = vadd.f32 %v876_v60, %v651_v59 }
 0x118   : > { %v653_v62 = vpop.f32.mrf.mxu0  ;;  %v878_v63 = vpop.f32.mrf.mxu1 }
 0x11a   : > { %v656_v0 = vpop.f32.mrf.mxu0  ;;  %v881_v1 = vpop.f32.mrf.mxu1 }
 0x11b   : > { %v2278_v3 = vadd.f32 %v881_v1, %v656_v0 }
 0x11c   : > { %v658_v4 = vpop.f32.mrf.mxu0  ;;  %v883_v5 = vpop.f32.mrf.mxu1 }
 0x11e   : > { %v661_v6 = vpop.f32.mrf.mxu0  ;;  %v886_v7 = vpop.f32.mrf.mxu1 }
 0x11f   : > { %v2280_v8 = vadd.f32 %v886_v7, %v661_v6 }
 0x120   : > { %v663_v2 = vpop.f32.mrf.mxu0  ;;  %v888_v9 = vpop.f32.mrf.mxu1 }
 0x122   : > { %v666_v10 = vpop.f32.mrf.mxu0  ;;  %v891_v11 = vpop.f32.mrf.mxu1 }
 0x123   : > { %v2282_v12 = vadd.f32 %v891_v11, %v666_v10 }
 0x124   : > { %v668_v13 = vpop.f32.mrf.mxu0  ;;  %v893_v14 = vpop.f32.mrf.mxu1 }
 0x126   : > { %v671_v15 = vpop.f32.mrf.mxu0  ;;  %v896_v16 = vpop.f32.mrf.mxu1 }
 0x127   : > { %v2284_v17 = vadd.f32 %v896_v16, %v671_v15 }
 0x128   : > { %v673_v18 = vpop.f32.mrf.mxu0  ;;  %v898_v19 = vpop.f32.mrf.mxu1 }
 0x12a   : > { %v676_v20 = vpop.f32.mrf.mxu0  ;;  %v901_v21 = vpop.f32.mrf.mxu1 }
 0x12b   : > { %v2286_v22 = vadd.f32 %v901_v21, %v676_v20 }
 0x12c   : > { %v678_v23 = vpop.f32.mrf.mxu0  ;;  %v903_v24 = vpop.f32.mrf.mxu1 }
 0x12e   : > { %v681_v25 = vpop.f32.mrf.mxu0  ;;  %v906_v26 = vpop.f32.mrf.mxu1 }
 0x12f   : > { %v2288_v27 = vadd.f32 %v906_v26, %v681_v25 }
 0x130   : > { %v683_v28 = vpop.f32.mrf.mxu0  ;;  %v908_v29 = vpop.f32.mrf.mxu1 }
 0x132   : > { %v686_v30 = vpop.f32.mrf.mxu0  ;;  %v911_v31 = vpop.f32.mrf.mxu1 }
 0x133   : > { %v2290_v32 = vadd.f32 %v911_v31, %v686_v30 }
 0x134   : > { %v688_v33 = vpop.f32.mrf.mxu0  ;;  %v913_v34 = vpop.f32.mrf.mxu1 }
 0x136   : > { %v691_v35 = vpop.f32.mrf.mxu0  ;;  %v916_v36 = vpop.f32.mrf.mxu1 }
 0x137   : > { %v2292_v37 = vadd.f32 %v916_v36, %v691_v35 }
 0x138   : > { %v693_v38 = vpop.f32.mrf.mxu0  ;;  %v918_v39 = vpop.f32.mrf.mxu1 }
 0x13a   : > { %v696_v40 = vpop.f32.mrf.mxu0  ;;  %v921_v41 = vpop.f32.mrf.mxu1 }
 0x13b   : > { %v2294_v42 = vadd.f32 %v921_v41, %v696_v40 }
 0x13c   : > { %v698_v43 = vpop.f32.mrf.mxu0  ;;  %v923_v44 = vpop.f32.mrf.mxu1 }
 0x13e   : > { %v701_v45 = vpop.f32.mrf.mxu0  ;;  %v926_v46 = vpop.f32.mrf.mxu1 }
 0x13f   : > { %v2296_v47 = vadd.f32 %v926_v46, %v701_v45 }
 0x140   : > { %v703_v48 = vpop.f32.mrf.mxu0  ;;  %v928_v49 = vpop.f32.mrf.mxu1 }
 0x142   : > { %v706_v50 = vpop.f32.mrf.mxu0  ;;  %v931_v52 = vpop.f32.mrf.mxu1 }
 0x143   : > { %v2298_v53 = vadd.f32 %v931_v52, %v706_v50 }
 0x144   : > { %v708_v54 = vpop.f32.mrf.mxu0  ;;  %v933_v55 = vpop.f32.mrf.mxu1 }
 0x146   : > { %v711_v57 = vpop.f32.mrf.mxu0  ;;  %v936_v58 = vpop.f32.mrf.mxu1 }
 0x147   : > { %v2300_v59 = vadd.f32 %v936_v58, %v711_v57 }
 0x148   : > { %v713_v60 = vpop.f32.mrf.mxu0  ;;  %v938_v62 = vpop.f32.mrf.mxu1 }
 0x14a   : > { %v716_v63 = vpop.f32.mrf.mxu0  ;;  %v941_v0 = vpop.f32.mrf.mxu1 }
 0x14b   : > { %v2302_v1 = vadd.f32 %v941_v0, %v716_v63 }
 0x14c   : > { %v718_v4 = vpop.f32.mrf.mxu0  ;;  %v943_v5 = vpop.f32.mrf.mxu1 }
 0x14e   : > { %v721_v6 = vpop.f32.mrf.mxu0  ;;  %v946_v7 = vpop.f32.mrf.mxu1 }
 0x14f   : > { %v2304_v2 = vadd.f32 %v946_v7, %v721_v6 }
 0x150   : > { %v723_v9 = vpop.f32.mrf.mxu0  ;;  %v948_v10 = vpop.f32.mrf.mxu1 }
 0x152   : > { %v726_v11 = vpop.f32.mrf.mxu0  ;;  %v951_v13 = vpop.f32.mrf.mxu1 }
 0x154   : > { %v728_v14 = vpop.f32.mrf.mxu0  ;;  %v953_v15 = vpop.f32.mrf.mxu1 }
 0x156   : > { %v2306_v16 = vpop.f32.mrf.mxu0  ;;  %v2308_v18 = vpop.f32.mrf.mxu1 }
 0x158   : > { %v733_v19 = vpop.f32.mrf.mxu0  ;;  %v958_v20 = vpop.f32.mrf.mxu1 }
 0x15a   : > { %v736_v21 = vpop.f32.mrf.mxu0  ;;  %v961_v23 = vpop.f32.mrf.mxu1 }
 0x15c   : > { %v738_v24 = vpop.f32.mrf.mxu0  ;;  %v963_v25 = vpop.f32.mrf.mxu1 }
 0x15e   : > { %v2310_v26 = vpop.f32.mrf.mxu0  ;;  %v2312_v28 = vpop.f32.mrf.mxu1 }
 0x160   : > { %v743_v29 = vpop.f32.mrf.mxu0  ;;  %v968_v30 = vpop.f32.mrf.mxu1 }
 0x162   : > { %v2314_v31 = vpop.f32.mrf.mxu0  ;;  %v2316_v33 = vpop.f32.mrf.mxu1 }
 0x164   : > { %v748_v34 = vpop.f32.mrf.mxu0  ;;  %v973_v35 = vpop.f32.mrf.mxu1 }
 0x166   : > { %v2318_v36 = vpop.f32.mrf.mxu0  ;;  %v2320_v38 = vpop.f32.mrf.mxu1 }
 0x168   : > { %v753_v39 = vpop.f32.mrf.mxu0  ;;  %v978_v40 = vpop.f32.mrf.mxu1 }
 0x16a   : > { %v2322_v41 = vpop.f32.mrf.mxu0  ;;  %v2324_v43 = vpop.f32.mrf.mxu1 }
 0x16c   : > { %v758_v44 = vpop.f32.mrf.mxu0  ;;  %v983_v45 = vpop.f32.mrf.mxu1 }
 0x16d   : > { %v952_v45 = vadd.f32 %v951_v13, %v726_v11 }
 0x16e   : > { %v2326_v46 = vpop.f32.mrf.mxu0  ;;  %v2328_v48 = vpop.f32.mrf.mxu1 }
 0x170   : > { %v763_v49 = vpop.f32.mrf.mxu0  ;;  %v988_v50 = vpop.f32.mrf.mxu1 }
 0x171   : > { %v2362_v50 = vld [vmem:[%s2487_s2] ss:$0 sm:$0xff] }
 0x172   : > { %v2330_v52 = vpop.f32.mrf.mxu0  ;;  %v2332_v54 = vpop.f32.mrf.mxu1 }
 0x174   : > { %v768_v55 = vpop.f32.mrf.mxu0  ;;  %v993_v57 = vpop.f32.mrf.mxu1 }
 0x176   : > { %v2334_v58 = vpop.f32.mrf.mxu0  ;;  %v2336_v60 = vpop.f32.mrf.mxu1 }
 0x178   : > { %v773_v62 = vpop.f32.mrf.mxu0  ;;  %v998_v63 = vpop.f32.mrf.mxu1 }
 0x179   : > { %v962_v63 = vadd.f32 %v961_v23, %v736_v21  ;;  %v957_v21 = vadd.f32 %v2308_v18, %v2306_v16 }
 0x17a   : > { %v2338_v0 = vpop.f32.mrf.mxu0  ;;  %v2340_v4 = vpop.f32.mrf.mxu1 }
 0x17c   : > { %v778_v5 = vpop.f32.mrf.mxu0  ;;  %v1003_v6 = vpop.f32.mrf.mxu1 }
 0x17e   : > { %v2342_v7 = vpop.f32.mrf.mxu0  ;;  %v2344_v9 = vpop.f32.mrf.mxu1 }
 0x180   : > { %v783_v10 = vpop.f32.mrf.mxu0  ;;  %v1008_v14 = vpop.f32.mrf.mxu1 }
 0x182   : > { %v2346_v15 = vpop.f32.mrf.mxu0  ;;  %v2348_v19 = vpop.f32.mrf.mxu1 }
 0x184   : > { %v788_v20 = vpop.f32.mrf.mxu0  ;;  %v1013_v24 = vpop.f32.mrf.mxu1 }
 0x186   : > { %v2350_v25 = vpop.f32.mrf.mxu0  ;;  %v2352_v29 = vpop.f32.mrf.mxu1 }
 0x188   : > { %v793_v30 = vpop.f32.mrf.mxu0  ;;  %v1018_v34 = vpop.f32.mrf.mxu1 }
 0x18a   : > { %v2354_v35 = vpop.f32.mrf.mxu0  ;;  %v2356_v39 = vpop.f32.mrf.mxu1 }
 0x18c   : > { %v798_v40 = vpop.f32.mrf.mxu0  ;;  %v1023_v44 = vpop.f32.mrf.mxu1 }
 0x18e   : > { %v1630_v49 = vpop.f32.mrf.mxu0  ;;  %v1654_v55 = vpop.f32.mrf.mxu1 }
 0x18f   : > { %v1097_v57 = vadd.f32 %v1630_v49, %v2274_v56  ;;  %v1177_v62 = vadd.f32 %v1654_v55, %v952_v45 }
 0x190   : > { %v1091_v11 = vpop.f32.mrf.mxu0  ;;  %v1171_v13 = vpop.f32.mrf.mxu1 }
 0x191   : > { %v1357_v5 = vadd.f32 %v2362_v50, %v1097_v57  ;;  %v1373_v6 = vadd.f32 %v2362_v50, %v1177_v62  ;;  %v1092_v10 = vadd.f32 %v1091_v11, %v2272_v51  ;;  %v1172_v56 = vadd.f32 %v1171_v13, %v2304_v2 }
 0x192   : > { %v1633_v23 = vpop.f32.mrf.mxu0  ;;  %v1657_v14 = vpop.f32.mrf.mxu1  ;;  %v972_v51 = vadd.f32 %v2316_v33, %v2314_v31 }
 0x193   : > { %1389 = vst [vmem:[%s2368_s25 + $0x8] sm:$0xff] %v1357_v5  ;;  %1405 = vst [vmem:[%s2368_s25 + $0x88] sm:$0xff] %v1373_v6  ;;  %v1356_v20 = vadd.f32 %v2362_v50, %v1092_v10  ;;  %v1372_v24 = vadd.f32 %v2362_v50, %v1172_v56  ;;  %v1107_v30 = vadd.f32 %v1633_v23, %v2278_v3 }
 0x194   : > { %v1187_v34 = vadd.f32 %v1657_v14, %v962_v63  ;;  %v1101_v2 = vpop.f32.mrf.mxu0  ;;  %v1181_v40 = vpop.f32.mrf.mxu1  ;;  %v967_v3 = vadd.f32 %v2312_v28, %v2310_v26 }
 0x195   : > { %1388 = vst [vmem:[%s2368_s25] sm:$0xff] %v1356_v20  ;;  %1404 = vst [vmem:[%s2368_s25 + $0x80] sm:$0xff] %v1372_v24  ;;  %v1359_v16 = vadd.f32 %v2362_v50, %v1107_v30  ;;  %v1102_v44 = vadd.f32 %v1101_v2, %v2276_v61  ;;  %v1182_v45 = vadd.f32 %v1181_v40, %v957_v21 }
 0x196   : > { %v1375_v18 = vadd.f32 %v2362_v50, %v1187_v34  ;;  %v1636_v49 = vpop.f32.mrf.mxu0  ;;  %v1660_v55 = vpop.f32.mrf.mxu1  ;;  %v982_v61 = vadd.f32 %v2324_v43, %v2322_v41 }
 0x197   : > { %1391 = vst [vmem:[%s2368_s25 + $0x18] sm:$0xff] %v1359_v16  ;;  %v1358_v31 = vadd.f32 %v2362_v50, %v1102_v44  ;;  %v1374_v33 = vadd.f32 %v2362_v50, %v1182_v45  ;;  %v1117_v57 = vadd.f32 %v1636_v49, %v2282_v12  ;;  %v1197_v62 = vadd.f32 %v1660_v55, %v972_v51 }
 0x198   : > { %1407 = vst [vmem:[%s2368_s25 + $0x98] sm:$0xff] %v1375_v18  ;;  %v1111_v63 = vpop.f32.mrf.mxu0  ;;  %v1191_v11 = vpop.f32.mrf.mxu1  ;;  %v977_v12 = vadd.f32 %v2320_v38, %v2318_v36 }
 0x199   : > { %1390 = vst [vmem:[%s2368_s25 + $0x10] sm:$0xff] %v1358_v31  ;;  %1406 = vst [vmem:[%s2368_s25 + $0x90] sm:$0xff] %v1374_v33  ;;  %v1361_v26 = vadd.f32 %v2362_v50, %v1117_v57  ;;  %v1377_v28 = vadd.f32 %v2362_v50, %v1197_v62  ;;  %v1112_v13 = vadd.f32 %v1111_v63, %v2280_v8 }
 0x19a   : > { %v1192_v5 = vadd.f32 %v1191_v11, %v967_v3  ;;  %v1639_v6 = vpop.f32.mrf.mxu0  ;;  %v1663_v10 = vpop.f32.mrf.mxu1  ;;  %v992_v8 = vadd.f32 %v2332_v54, %v2330_v52 }
 0x19b   : > { %1393 = vst [vmem:[%s2368_s25 + $0x28] sm:$0xff] %v1361_v26  ;;  %1409 = vst [vmem:[%s2368_s25 + $0xa8] sm:$0xff] %v1377_v28  ;;  %v1360_v41 = vadd.f32 %v2362_v50, %v1112_v13  ;;  %v1127_v56 = vadd.f32 %v1639_v6, %v2286_v22  ;;  %v1207_v21 = vadd.f32 %v1663_v10, %v982_v61 }
 0x19c   : > { %v1376_v43 = vadd.f32 %v2362_v50, %v1192_v5  ;;  %v1121_v23 = vpop.f32.mrf.mxu0  ;;  %v1201_v14 = vpop.f32.mrf.mxu1  ;;  %v987_v22 = vadd.f32 %v2328_v48, %v2326_v46 }
 0x19d   : > { %1392 = vst [vmem:[%s2368_s25 + $0x20] sm:$0xff] %v1360_v41  ;;  %v1363_v36 = vadd.f32 %v2362_v50, %v1127_v56  ;;  %v1379_v38 = vadd.f32 %v2362_v50, %v1207_v21  ;;  %v1122_v20 = vadd.f32 %v1121_v23, %v2284_v17  ;;  %v1202_v24 = vadd.f32 %v1201_v14, %v977_v12 }
 0x19e   : > { %1408 = vst [vmem:[%s2368_s25 + $0xa0] sm:$0xff] %v1376_v43  ;;  %v1642_v30 = vpop.f32.mrf.mxu0  ;;  %v1666_v34 = vpop.f32.mrf.mxu1  ;;  %v1002_v17 = vadd.f32 %v2340_v4, %v2338_v0 }
 0x19f   : > { %1395 = vst [vmem:[%s2368_s25 + $0x38] sm:$0xff] %v1363_v36  ;;  %1411 = vst [vmem:[%s2368_s25 + $0xb8] sm:$0xff] %v1379_v38  ;;  %v1362_v52 = vadd.f32 %v2362_v50, %v1122_v20  ;;  %v1378_v54 = vadd.f32 %v2362_v50, %v1202_v24  ;;  %v1137_v51 = vadd.f32 %v1642_v30, %v2290_v32 }
 0x1a0   : > { %v1217_v2 = vadd.f32 %v1666_v34, %v992_v8  ;;  %v1131_v40 = vpop.f32.mrf.mxu0  ;;  %v1211_v16 = vpop.f32.mrf.mxu1  ;;  %v997_v32 = vadd.f32 %v2336_v60, %v2334_v58 }
 0x1a1   : > { %1394 = vst [vmem:[%s2368_s25 + $0x30] sm:$0xff] %v1362_v52  ;;  %1410 = vst [vmem:[%s2368_s25 + $0xb0] sm:$0xff] %v1378_v54  ;;  %v1365_v46 = vadd.f32 %v2362_v50, %v1137_v51  ;;  %v1132_v18 = vadd.f32 %v1131_v40, %v2288_v27  ;;  %v1212_v44 = vadd.f32 %v1211_v16, %v987_v22 }
 0x1a2   : > { %v1381_v48 = vadd.f32 %v2362_v50, %v1217_v2  ;;  %v1645_v45 = vpop.f32.mrf.mxu0  ;;  %v1669_v3 = vpop.f32.mrf.mxu1  ;;  %v1012_v27 = vadd.f32 %v2348_v19, %v2346_v15 }
 0x1a3   : > { %1397 = vst [vmem:[%s2368_s25 + $0x48] sm:$0xff] %v1365_v46  ;;  %v1364_v0 = vadd.f32 %v2362_v50, %v1132_v18  ;;  %v1380_v4 = vadd.f32 %v2362_v50, %v1212_v44  ;;  %v1147_v49 = vadd.f32 %v1645_v45, %v2294_v42  ;;  %v1227_v55 = vadd.f32 %v1669_v3, %v1002_v17 }
 0x1a4   : > { %1413 = vst [vmem:[%s2368_s25 + $0xc8] sm:$0xff] %v1381_v48  ;;  %v1141_v31 = vpop.f32.mrf.mxu0  ;;  %v1221_v33 = vpop.f32.mrf.mxu1  ;;  %v1007_v42 = vadd.f32 %v2344_v9, %v2342_v7 }
 0x1a5   : > { %1396 = vst [vmem:[%s2368_s25 + $0x40] sm:$0xff] %v1364_v0  ;;  %1412 = vst [vmem:[%s2368_s25 + $0xc0] sm:$0xff] %v1380_v4  ;;  %v1367_v58 = vadd.f32 %v2362_v50, %v1147_v49  ;;  %v1383_v60 = vadd.f32 %v2362_v50, %v1227_v55  ;;  %v1142_v57 = vadd.f32 %v1141_v31, %v2292_v37 }
 0x1a6   : > { %v1222_v62 = vadd.f32 %v1221_v33, %v997_v32  ;;  %v1648_v61 = vpop.f32.mrf.mxu0  ;;  %v1672_v63 = vpop.f32.mrf.mxu1  ;;  %v1022_v37 = vadd.f32 %v2356_v39, %v2354_v35 }
 0x1a7   : > { %1399 = vst [vmem:[%s2368_s25 + $0x58] sm:$0xff] %v1367_v58  ;;  %1415 = vst [vmem:[%s2368_s25 + $0xd8] sm:$0xff] %v1383_v60  ;;  %v1366_v15 = vadd.f32 %v2362_v50, %v1142_v57  ;;  %v1157_v11 = vadd.f32 %v1648_v61, %v2298_v53  ;;  %v1237_v26 = vadd.f32 %v1672_v63, %v1012_v27 }
 0x1a8   : > { %v1382_v19 = vadd.f32 %v2362_v50, %v1222_v62  ;;  %v1151_v28 = vpop.f32.mrf.mxu0  ;;  %v1231_v13 = vpop.f32.mrf.mxu1  ;;  %v1017_v53 = vadd.f32 %v2352_v29, %v2350_v25 }
 0x1a9   : > { %1398 = vst [vmem:[%s2368_s25 + $0x50] sm:$0xff] %v1366_v15  ;;  %v1369_v7 = vadd.f32 %v2362_v50, %v1157_v11  ;;  %v1385_v9 = vadd.f32 %v2362_v50, %v1237_v26  ;;  %v1152_v5 = vadd.f32 %v1151_v28, %v2296_v47  ;;  %v1232_v12 = vadd.f32 %v1231_v13, %v1007_v42 }
 0x1aa   : > { %1414 = vst [vmem:[%s2368_s25 + $0xd0] sm:$0xff] %v1382_v19  ;;  %v1651_v6 = vpop.f32.mrf.mxu0  ;;  %v1675_v10 = vpop.f32.mrf.mxu1 }
 0x1ab   : > { %1401 = vst [vmem:[%s2368_s25 + $0x68] sm:$0xff] %v1369_v7  ;;  %1417 = vst [vmem:[%s2368_s25 + $0xe8] sm:$0xff] %v1385_v9  ;;  %v1368_v35 = vadd.f32 %v2362_v50, %v1152_v5  ;;  %v1384_v39 = vadd.f32 %v2362_v50, %v1232_v12  ;;  %v1167_v41 = vadd.f32 %v1651_v6, %v2302_v1 }
 0x1ac   : > { %v1247_v43 = vadd.f32 %v1675_v10, %v1022_v37  ;;  %v1161_v47 = vpop.f32.mrf.mxu0  ;;  %v1241_v56 = vpop.f32.mrf.mxu1 }
 0x1ad   : > { %1400 = vst [vmem:[%s2368_s25 + $0x60] sm:$0xff] %v1368_v35  ;;  %1416 = vst [vmem:[%s2368_s25 + $0xe0] sm:$0xff] %v1384_v39  ;;  %v1371_v25 = vadd.f32 %v2362_v50, %v1167_v41  ;;  %v1162_v21 = vadd.f32 %v1161_v47, %v2300_v59  ;;  %v1242_v8 = vadd.f32 %v1241_v56, %v1017_v53 }
 0x1ae   : > { %v1387_v29 = vadd.f32 %v2362_v50, %v1247_v43 }
 0x1af   : > { %1403 = vst [vmem:[%s2368_s25 + $0x78] sm:$0xff] %v1371_v25  ;;  %v1370_v23 = vadd.f32 %v2362_v50, %v1162_v21  ;;  %v1386_v14 = vadd.f32 %v2362_v50, %v1242_v8 }
 0x1b0   : > { %1419 = vst [vmem:[%s2368_s25 + $0xf8] sm:$0xff] %v1387_v29 }
 0x1b1   : > { %1402 = vst [vmem:[%s2368_s25 + $0x70] sm:$0xff] %v1370_v23  ;;  %1418 = vst [vmem:[%s2368_s25 + $0xf0] sm:$0xff] %v1386_v14 }
 0x1b2 PF: > { %s13_s14 = sadd.s32 1, %s1756_s14   ;;  %s2489_s12 = smov %s1752_s13 }
 0x1b3   : > { %p10_p5 = scmp.ge.s32.totalorder %s13_s14, 4   ;;  %s2490_s13 = smov %s2492_s15 }
 0x1b5   :  { %12 = sbr.rel (!%p10_p5) target bundleno = 2 (0x2), region = 76 }

// kernel: clc_dyn_forward.23
= control target key start
LH: loop header
LB: loop body
LE: loop exit
PB: predicated region body
PF: predicated region fallthrough
CT: control target
= control target key end

     0   :  { %v488_v3 = vmov 0.0   ;;  %vm142_vm0 = vcmask 64512   ;;  %vm311_vm1 = vcmask 1041409   ;;  %s786_s1 = inlined_call_operand.vmem [shape: f32[8,512], index: 1, kind: input, shape index: {}]   ;;  %s787_s0 = inlined_call_operand.vmem [shape: f32[2,256,8], index: 0, kind: input, shape index: {}]   ;;  %s788_s2 = inlined_call_operand.vmem [shape: f32[1,512], index: 2, kind: input, shape index: {}]   ;;  %s789_s3 = inlined_call_operand.vmem [shape: f32[2,512], index: 3, kind: output, shape index: {}]  }
   0x1   :  { %v284_v0 = vld [vmem:[%s786_s1 + $0x8] sm:$0xff]  ;;  %v286_v1 = vld [vmem:[%s786_s1 + $0x18] sm:$0xff]  ;;  %v283_v2 = vld [vmem:[%s786_s1] sm:$0xff]  ;;  %379 = vmatprep.mubr.f32.mxu0 %v488_v3  ;;  %450 = vmatprep.mubr.f32.mxu1 %v488_v3 }
   0x2   :  { %345 = vmatprep.subr.mxu0 %v284_v0  ;;  %416 = vmatprep.subr.mxu1 %v286_v1  ;;  %v285_v4 = vld [vmem:[%s786_s1 + $0x10] sm:$0xff]  ;;  %v14_v5 = vld [vmem:[%s787_s0] sm:$0xff]  ;;  %v15_v6 = vld [vmem:[%s787_s0 + $0x8] sm:$0xff] }
   0x3   :  { %346 = vmatpush1.msra.mxu0 %v283_v2  ;;  %417 = vmatpush1.msra.mxu1 %v285_v4  ;;  %v16_v7 = vld [vmem:[%s787_s0 + $0x10] sm:$0xff]  ;;  %v17_v8 = vld [vmem:[%s787_s0 + $0x18] sm:$0xff]  ;;  %v78_v9 = vmax.f32 %v14_v5, 0.0  ;;  %v79_v10 = vmax.f32 %v15_v6, 0.0  ;;  %v18_v12 = vld [vmem:[%s787_s0 + $0x20] sm:$0xff] }
   0x4   :  { %v80_v11 = vmax.f32 %v16_v7, 0.0  ;;  %v81_v13 = vmax.f32 %v17_v8, 0.0  ;;  %v19_v14 = vld [vmem:[%s787_s0 + $0x28] sm:$0xff]  ;;  %v82_v16 = vmax.f32 %v18_v12, 0.0  ;;  %v20_v19 = vld [vmem:[%s787_s0 + $0x30] sm:$0xff]  ;;  %v46_v21 = vld [vmem:[%s787_s0 + $0x100] sm:$0xff] }
   0x5   :  { %v143_v15 = vsel %vm142_vm0, %v78_v9, 0.0  ;;  %v144_v17 = vsel %vm142_vm0, %v79_v10, 0.0  ;;  %v47_v22 = vld [vmem:[%s787_s0 + $0x108] sm:$0xff]  ;;  %v83_v23 = vmax.f32 %v19_v14, 0.0  ;;  %v21_v25 = vld [vmem:[%s787_s0 + $0x38] sm:$0xff]  ;;  %v48_v26 = vld [vmem:[%s787_s0 + $0x110] sm:$0xff] }
   0x6   :  { %v146_v18 = vsel %vm142_vm0, %v80_v11, 0.0  ;;  %v145_v20 = vadd.f32 %v144_v17, %v143_v15  ;;  %v148_v24 = vsel %vm142_vm0, %v81_v13, 0.0  ;;  %v49_v28 = vld [vmem:[%s787_s0 + $0x118] sm:$0xff]  ;;  %v84_v29 = vmax.f32 %v20_v19, 0.0  ;;  %v22_v31 = vld [vmem:[%s787_s0 + $0x40] sm:$0xff]  ;;  %v23_v39 = vld [vmem:[%s787_s0 + $0x48] sm:$0xff] }
   0x7   :  { %v150_v30 = vsel %vm142_vm0, %v82_v16, 0.0  ;;  %v110_v32 = vmax.f32 %v46_v21, 0.0  ;;  %v111_v33 = vmax.f32 %v47_v22, 0.0  ;;  %v50_v35 = vld [vmem:[%s787_s0 + $0x120] sm:$0xff]  ;;  %v85_v36 = vmax.f32 %v21_v25, 0.0  ;;  %v51_v42 = vld [vmem:[%s787_s0 + $0x128] sm:$0xff] }
   0x8   :  { %v147_v27 = vadd.f32 %v146_v18, %v145_v20  ;;  %v112_v37 = vmax.f32 %v48_v26, 0.0  ;;  %v152_v38 = vsel %vm142_vm0, %v83_v23, 0.0  ;;  %v113_v40 = vmax.f32 %v49_v28, 0.0  ;;  %v24_v45 = vld [vmem:[%s787_s0 + $0x50] sm:$0xff]  ;;  %v25_v55 = vld [vmem:[%s787_s0 + $0x58] sm:$0xff]  ;;  %v26_v63 = vld [vmem:[%s787_s0 + $0x60] sm:$0xff] }
   0x9   :  { %v86_v43 = vmax.f32 %v22_v31, 0.0  ;;  %v154_v44 = vsel %vm142_vm0, %v84_v29, 0.0  ;;  %v114_v46 = vmax.f32 %v50_v35, 0.0  ;;  %v212_v48 = vsel %vm142_vm0, %v110_v32, 0.0  ;;  %v52_v50 = vld [vmem:[%s787_s0 + $0x130] sm:$0xff]  ;;  %v53_v59 = vld [vmem:[%s787_s0 + $0x138] sm:$0xff] }
   0xa   :  { %v149_v34 = vadd.f32 %v148_v24, %v147_v27  ;;  %v213_v49 = vsel %vm142_vm0, %v111_v33, 0.0  ;;  %v87_v51 = vmax.f32 %v23_v39, 0.0  ;;  %v156_v52 = vsel %vm142_vm0, %v85_v36, 0.0  ;;  %v54_v3 = vld [vmem:[%s787_s0 + $0x140] sm:$0xff]  ;;  %v27_v7 = vld [vmem:[%s787_s0 + $0x68] sm:$0xff]  ;;  %v28_v15 = vld [vmem:[%s787_s0 + $0x70] sm:$0xff] }
   0xb   :  { %v214_v53 = vadd.f32 %v213_v49, %v212_v48  ;;  %v215_v54 = vsel %vm142_vm0, %v112_v37, 0.0  ;;  %v115_v56 = vmax.f32 %v51_v42, 0.0  ;;  %v217_v58 = vsel %vm142_vm0, %v113_v40, 0.0  ;;  %v55_v11 = vld [vmem:[%s787_s0 + $0x148] sm:$0xff]  ;;  %v56_v19 = vld [vmem:[%s787_s0 + $0x150] sm:$0xff]  ;;  %v29_v23 = vld [vmem:[%s787_s0 + $0x78] sm:$0xff] }
   0xc   :  { %v151_v41 = vadd.f32 %v150_v30, %v149_v34  ;;  %v88_v60 = vmax.f32 %v24_v45, 0.0  ;;  %v158_v61 = vsel %vm142_vm0, %v86_v43, 0.0  ;;  %v116_v0 = vmax.f32 %v52_v50, 0.0  ;;  %v57_v27 = vld [vmem:[%s787_s0 + $0x158] sm:$0xff]  ;;  %v30_v31 = vld [vmem:[%s787_s0 + $0x80] sm:$0xff]  ;;  %v31_v39 = vld [vmem:[%s787_s0 + $0x88] sm:$0xff] }
   0xd   :  { %v216_v62 = vadd.f32 %v215_v54, %v214_v53  ;;  %v219_v2 = vsel %vm142_vm0, %v114_v46, 0.0  ;;  %v89_v4 = vmax.f32 %v25_v55, 0.0  ;;  %v160_v5 = vsel %vm142_vm0, %v87_v51, 0.0  ;;  %v58_v35 = vld [vmem:[%s787_s0 + $0x160] sm:$0xff]  ;;  %v59_v43 = vld [vmem:[%s787_s0 + $0x168] sm:$0xff]  ;;  %v60_v51 = vld [vmem:[%s787_s0 + $0x170] sm:$0xff] }
   0xe   :  { %v153_v47 = vadd.f32 %v152_v38, %v151_v41  ;;  %v117_v8 = vmax.f32 %v53_v59, 0.0  ;;  %v221_v10 = vsel %vm142_vm0, %v115_v56, 0.0  ;;  %v90_v12 = vmax.f32 %v26_v63, 0.0  ;;  %v33_v55 = vld [vmem:[%s787_s0 + $0x98] sm:$0xff]  ;;  %v34_v63 = vld [vmem:[%s787_s0 + $0xa0] sm:$0xff] }
   0xf   :  { %v218_v6 = vadd.f32 %v217_v58, %v216_v62  ;;  %v162_v13 = vsel %vm142_vm0, %v88_v60, 0.0  ;;  %v118_v16 = vmax.f32 %v54_v3, 0.0  ;;  %v223_v18 = vsel %vm142_vm0, %v116_v0, 0.0  ;;  %v61_v59 = vld [vmem:[%s787_s0 + $0x178] sm:$0xff]  ;;  %v62_v3 = vld [vmem:[%s787_s0 + $0x180] sm:$0xff] }
  0x10   :  { %v155_v57 = vadd.f32 %v154_v44, %v153_v47  ;;  %v91_v20 = vmax.f32 %v27_v7, 0.0  ;;  %v164_v21 = vsel %vm142_vm0, %v89_v4, 0.0  ;;  %v119_v24 = vmax.f32 %v55_v11, 0.0  ;;  %v32_v47 = vld [vmem:[%s787_s0 + $0x90] sm:$0xff]  ;;  %v35_v7 = vld [vmem:[%s787_s0 + $0xa8] sm:$0xff] }
  0x11   :  { %v220_v14 = vadd.f32 %v219_v2, %v218_v6  ;;  %v225_v26 = vsel %vm142_vm0, %v117_v8, 0.0  ;;  %v92_v28 = vmax.f32 %v28_v15, 0.0  ;;  %v166_v29 = vsel %vm142_vm0, %v90_v12, 0.0  ;;  %v63_v11 = vld [vmem:[%s787_s0 + $0x188] sm:$0xff]  ;;  %v36_v15 = vld [vmem:[%s787_s0 + $0xb0] sm:$0xff] }
  0x12   :  { %v157_v1 = vadd.f32 %v156_v52, %v155_v57  ;;  %v120_v32 = vmax.f32 %v56_v19, 0.0  ;;  %v227_v34 = vsel %vm142_vm0, %v118_v16, 0.0  ;;  %v93_v36 = vmax.f32 %v29_v23, 0.0  ;;  %v64_v19 = vld [vmem:[%s787_s0 + $0x190] sm:$0xff]  ;;  %v37_v23 = vld [vmem:[%s787_s0 + $0xb8] sm:$0xff] }
  0x13   :  { %v222_v22 = vadd.f32 %v221_v10, %v220_v14  ;;  %v168_v37 = vsel %vm142_vm0, %v91_v20, 0.0  ;;  %v121_v40 = vmax.f32 %v57_v27, 0.0  ;;  %v229_v42 = vsel %vm142_vm0, %v119_v24, 0.0  ;;  %v65_v27 = vld [vmem:[%s787_s0 + $0x198] sm:$0xff] }
  0x14   :  { %v159_v9 = vadd.f32 %v158_v61, %v157_v1  ;;  %v94_v44 = vmax.f32 %v30_v31, 0.0  ;;  %v170_v45 = vsel %vm142_vm0, %v92_v28, 0.0  ;;  %v122_v48 = vmax.f32 %v58_v35, 0.0  ;;  %v38_v31 = vld [vmem:[%s787_s0 + $0xc0] sm:$0xff] }
  0x15   :  { %v224_v30 = vadd.f32 %v223_v18, %v222_v22  ;;  %v231_v50 = vsel %vm142_vm0, %v120_v32, 0.0  ;;  %v95_v52 = vmax.f32 %v31_v39, 0.0  ;;  %v172_v53 = vsel %vm142_vm0, %v93_v36, 0.0  ;;  %v66_v35 = vld [vmem:[%s787_s0 + $0x1a0] sm:$0xff]  ;;  %v39_v39 = vld [vmem:[%s787_s0 + $0xc8] sm:$0xff] }
  0x16   :  { %v161_v17 = vadd.f32 %v160_v5, %v159_v9  ;;  %v123_v56 = vmax.f32 %v59_v43, 0.0  ;;  %v233_v58 = vsel %vm142_vm0, %v121_v40, 0.0  ;;  %v96_v60 = vmax.f32 %v32_v47, 0.0  ;;  %v67_v43 = vld [vmem:[%s787_s0 + $0x1a8] sm:$0xff]  ;;  %v40_v47 = vld [vmem:[%s787_s0 + $0xd0] sm:$0xff] }
  0x17   :  { %v226_v38 = vadd.f32 %v225_v26, %v224_v30  ;;  %v174_v61 = vsel %vm142_vm0, %v94_v44, 0.0  ;;  %v124_v0 = vmax.f32 %v60_v51, 0.0  ;;  %v235_v2 = vsel %vm142_vm0, %v122_v48, 0.0  ;;  %v68_v51 = vld [vmem:[%s787_s0 + $0x1b0] sm:$0xff] }
  0x18   :  { %v163_v25 = vadd.f32 %v162_v13, %v161_v17  ;;  %v97_v4 = vmax.f32 %v33_v55, 0.0  ;;  %v176_v5 = vsel %vm142_vm0, %v95_v52, 0.0  ;;  %v125_v8 = vmax.f32 %v61_v59, 0.0  ;;  %v41_v55 = vld [vmem:[%s787_s0 + $0xd8] sm:$0xff] }
  0x19   :  { %v228_v46 = vadd.f32 %v227_v34, %v226_v38  ;;  %v237_v10 = vsel %vm142_vm0, %v123_v56, 0.0  ;;  %v98_v12 = vmax.f32 %v34_v63, 0.0  ;;  %v178_v13 = vsel %vm142_vm0, %v96_v60, 0.0  ;;  %v69_v59 = vld [vmem:[%s787_s0 + $0x1b8] sm:$0xff]  ;;  %v42_v63 = vld [vmem:[%s787_s0 + $0xe0] sm:$0xff] }
  0x1a   :  { %v165_v33 = vadd.f32 %v164_v21, %v163_v25  ;;  %v126_v16 = vmax.f32 %v62_v3, 0.0  ;;  %v239_v18 = vsel %vm142_vm0, %v124_v0, 0.0  ;;  %v99_v20 = vmax.f32 %v35_v7, 0.0  ;;  %v70_v3 = vld [vmem:[%s787_s0 + $0x1c0] sm:$0xff]  ;;  %v43_v7 = vld [vmem:[%s787_s0 + $0xe8] sm:$0xff] }
  0x1b   :  { %v230_v54 = vadd.f32 %v229_v42, %v228_v46  ;;  %v180_v21 = vsel %vm142_vm0, %v97_v4, 0.0  ;;  %v127_v24 = vmax.f32 %v63_v11, 0.0  ;;  %v241_v26 = vsel %vm142_vm0, %v125_v8, 0.0  ;;  %v71_v11 = vld [vmem:[%s787_s0 + $0x1c8] sm:$0xff] }
  0x1c   :  { %v167_v41 = vadd.f32 %v166_v29, %v165_v33  ;;  %v100_v28 = vmax.f32 %v36_v15, 0.0  ;;  %v182_v29 = vsel %vm142_vm0, %v98_v12, 0.0  ;;  %v128_v32 = vmax.f32 %v64_v19, 0.0  ;;  %v44_v15 = vld [vmem:[%s787_s0 + $0xf0] sm:$0xff] }
  0x1d   :  { %v232_v62 = vadd.f32 %v231_v50, %v230_v54  ;;  %v243_v34 = vsel %vm142_vm0, %v126_v16, 0.0  ;;  %v101_v36 = vmax.f32 %v37_v23, 0.0  ;;  %v129_v40 = vmax.f32 %v65_v27, 0.0  ;;  %v72_v19 = vld [vmem:[%s787_s0 + $0x1d0] sm:$0xff]  ;;  %v45_v23 = vld [vmem:[%s787_s0 + $0xf8] sm:$0xff] }
  0x1e   :  { %v169_v49 = vadd.f32 %v168_v37, %v167_v41  ;;  %v184_v37 = vsel %vm142_vm0, %v99_v20, 0.0  ;;  %v245_v42 = vsel %vm142_vm0, %v127_v24, 0.0  ;;  %v102_v44 = vmax.f32 %v38_v31, 0.0  ;;  %v73_v27 = vld [vmem:[%s787_s0 + $0x1d8] sm:$0xff] }
  0x1f   :  { %v234_v6 = vadd.f32 %v233_v58, %v232_v62  ;;  %v130_v48 = vmax.f32 %v66_v35, 0.0  ;;  %v247_v50 = vsel %vm142_vm0, %v128_v32, 0.0  ;;  %v103_v52 = vmax.f32 %v39_v39, 0.0 }
  0x20   :  { %v171_v57 = vadd.f32 %v170_v45, %v169_v49  ;;  %v186_v45 = vsel %vm142_vm0, %v100_v28, 0.0  ;;  %v131_v56 = vmax.f32 %v67_v43, 0.0  ;;  %v249_v58 = vsel %vm142_vm0, %v129_v40, 0.0 }
  0x21   :  { %v236_v14 = vadd.f32 %v235_v2, %v234_v6  ;;  %v104_v60 = vmax.f32 %v40_v47, 0.0  ;;  %v132_v0 = vmax.f32 %v68_v51, 0.0  ;;  %v251_v2 = vsel %vm142_vm0, %v130_v48, 0.0  ;;  %v76_v47 = vld [vmem:[%s787_s0 + $0x1f0] sm:$0xff] }
  0x22   :  { %v173_v1 = vadd.f32 %v172_v53, %v171_v57  ;;  %v188_v53 = vsel %vm142_vm0, %v101_v36, 0.0  ;;  %v105_v4 = vmax.f32 %v41_v55, 0.0  ;;  %v133_v8 = vmax.f32 %v69_v59, 0.0 }
  0x23   :  { %v238_v22 = vadd.f32 %v237_v10, %v236_v14  ;;  %v253_v10 = vsel %vm142_vm0, %v131_v56, 0.0  ;;  %v106_v12 = vmax.f32 %v42_v63, 0.0  ;;  %v134_v16 = vmax.f32 %v70_v3, 0.0 }
  0x24   :  { %v175_v9 = vadd.f32 %v174_v61, %v173_v1  ;;  %v190_v61 = vsel %vm142_vm0, %v102_v44, 0.0  ;;  %v107_v20 = vmax.f32 %v43_v7, 0.0  ;;  %v135_v24 = vmax.f32 %v71_v11, 0.0 }
  0x25   :  { %v240_v30 = vadd.f32 %v239_v18, %v238_v22  ;;  %v255_v18 = vsel %vm142_vm0, %v132_v0, 0.0  ;;  %v108_v28 = vmax.f32 %v44_v15, 0.0  ;;  %v136_v31 = vmax.f32 %v72_v19, 0.0 }
  0x26   :  { %v177_v17 = vadd.f32 %v176_v5, %v175_v9  ;;  %v192_v5 = vsel %vm142_vm0, %v103_v52, 0.0  ;;  %v109_v35 = vmax.f32 %v45_v23, 0.0  ;;  %v200_v36 = vsel %vm142_vm0, %v107_v20, 0.0 }
  0x27   :  { %v242_v38 = vadd.f32 %v241_v26, %v240_v30  ;;  %v257_v26 = vsel %vm142_vm0, %v133_v8, 0.0  ;;  %v261_v40 = vsel %vm142_vm0, %v135_v24, 0.0  ;;  %v140_v55 = vmax.f32 %v76_v47, 0.0 }
  0x28   :  { %v179_v25 = vadd.f32 %v178_v13, %v177_v17  ;;  %v194_v13 = vsel %vm142_vm0, %v104_v60, 0.0  ;;  %v204_v48 = vsel %vm142_vm0, %v109_v35, 0.0  ;;  %v489_v20 = vmov 1983009808  }
  0x29   :  { %v244_v46 = vadd.f32 %v243_v34, %v242_v38  ;;  %v74_v34 = vld [vmem:[%s787_s0 + $0x1e0] sm:$0xff]  ;;  %v137_v38 = vmax.f32 %v73_v27, 0.0  ;;  %v271_v0 = vsel %vm142_vm0, %v140_v55, 0.0 }
  0x2a   :  { %v181_v33 = vadd.f32 %v180_v21, %v179_v25  ;;  %v196_v21 = vsel %vm142_vm0, %v105_v4, 0.0  ;;  %v138_v44 = vmax.f32 %v74_v34, 0.0 }
  0x2b   :  { %v246_v54 = vadd.f32 %v245_v42, %v244_v46  ;;  %v202_v42 = vsel %vm142_vm0, %v108_v28, 0.0  ;;  %v263_v46 = vsel %vm142_vm0, %v136_v31, 0.0  ;;  %v265_v52 = vsel %vm142_vm0, %v137_v38, 0.0 }
  0x2c   :  { %v183_v41 = vadd.f32 %v182_v29, %v181_v33  ;;  %v198_v29 = vsel %vm142_vm0, %v106_v12, 0.0  ;;  %v259_v33 = vsel %vm142_vm0, %v134_v16, 0.0 }
  0x2d   :  { %v248_v62 = vadd.f32 %v247_v50, %v246_v54 }
  0x2e   :  { %v185_v49 = vadd.f32 %v184_v37, %v183_v41  ;;  %v75_v41 = vld [vmem:[%s787_s0 + $0x1e8] sm:$0xff] }
  0x2f   :  { %v250_v6 = vadd.f32 %v249_v58, %v248_v62  ;;  %v139_v50 = vmax.f32 %v75_v41, 0.0 }
  0x30   :  { %v187_v57 = vadd.f32 %v186_v45, %v185_v49 }
  0x31   :  { %v252_v14 = vadd.f32 %v251_v2, %v250_v6 }
  0x32   :  { %v189_v1 = vadd.f32 %v188_v53, %v187_v57  ;;  %v77_v53 = vld [vmem:[%s787_s0 + $0x1f8] sm:$0xff]  ;;  %v267_v57 = vsel %vm142_vm0, %v138_v44, 0.0 }
  0x33   :  { %v254_v22 = vadd.f32 %v253_v10, %v252_v14  ;;  %v141_v59 = vmax.f32 %v77_v53, 0.0 }
  0x34   :  { %v191_v9 = vadd.f32 %v190_v61, %v189_v1  ;;  %v269_v61 = vsel %vm142_vm0, %v139_v50, 0.0 }
  0x35   :  { %v256_v30 = vadd.f32 %v255_v18, %v254_v22  ;;  %v273_v3 = vsel %vm142_vm0, %v141_v59, 0.0  ;;  %v289_v18 = vlaneseq }
  0x36   :  { %v193_v17 = vadd.f32 %v192_v5, %v191_v9 }
  0x37   :  { %v258_v37 = vadd.f32 %v257_v26, %v256_v30  ;;  %v290_v19 = vshrl.u32 %v289_v18, 7  ;;  %v287_v26 = vld [vmem:[%s788_s2] sm:$0xf] }
  0x38   :  { %v195_v25 = vadd.f32 %v194_v13, %v193_v17 }
  0x39   :  { %v260_v43 = vadd.f32 %v259_v33, %v258_v37  ;;  %v291_v22 = vsub.s32 0, %v290_v19  ;;  %v299_v23 = vsub.s32 2, %v290_v19  ;;  %v295_v24 = vsub.s32 1, %v290_v19 }
  0x3a   :  { %v197_v32 = vadd.f32 %v196_v21, %v195_v25  ;;  %v464_v21 = vunpack.c.l.s4 %v489_v20  ;;  %v303_v25 = vsub.s32 3, %v290_v19 }
  0x3b   :  { %v262_v49 = vadd.f32 %v261_v40, %v260_v43  ;;  %v292_v28 = vrot.slane %v287_v26, %v291_v22  ;;  %v296_v30 = vrot.slane %v287_v26, %v295_v24 }
  0x3c   :  { %v199_v39 = vadd.f32 %v198_v29, %v197_v32  ;;  %v465_v27 = vunpack.c.0.s8 %v464_v21  ;;  %v300_v29 = vrot.slane %v287_v26, %v299_v23  ;;  %v304_v31 = vrot.slane %v287_v26, %v303_v25 }
  0x3d   :  { %v264_v54 = vadd.f32 %v263_v46, %v262_v49 }
  0x3e   :  { %v201_v45 = vadd.f32 %v200_v36, %v199_v39  ;;  %v468_v35 = vsub.s32 %v465_v27, %v290_v19 }
  0x3f   :  { %v266_v58 = vadd.f32 %v265_v52, %v264_v54 }
  0x40   :  { %v203_v51 = vadd.f32 %v202_v42, %v201_v45 }
  0x41   :  { %v268_v62 = vadd.f32 %v267_v57, %v266_v58 }
  0x42   :  { %v205_v56 = vadd.f32 %v204_v48, %v203_v51 }
  0x43   :  { %v270_v1 = vadd.f32 %v269_v61, %v268_v62 }
  0x44   :  { %v206_v60 = vrot.slane %v205_v56, 4 }
  0x45   :  { %v272_v4 = vadd.f32 %v271_v0, %v270_v1 }
  0x46   :  { %v207_v63 = vadd.f32 %v206_v60, %v205_v56 }
  0x47   :  { %v274_v6 = vadd.f32 %v273_v3, %v272_v4 }
  0x48   :  { %v208_v2 = vrot.slane %v207_v63, 2 }
  0x49   :  { %v275_v7 = vrot.slane %v274_v6, 4 }
  0x4a   :  { %v209_v5 = vadd.f32 %v208_v2, %v207_v63 }
  0x4b   :  { %v276_v9 = vadd.f32 %v275_v7, %v274_v6 }
  0x4c   :  { %v210_v8 = vrot.slane %v209_v5, 1 }
  0x4d   :  { %v277_v10 = vrot.slane %v276_v9, 2 }
  0x4e   :  { %v211_v11 = vadd.f32 %v210_v8, %v209_v5 }
  0x4f   :  { %v278_v12 = vadd.f32 %v277_v10, %v276_v9 }
  0x50   :  { %v281_v15 = vmul.f32 0.00390625, %v211_v11 }
  0x51   :  { %v279_v13 = vrot.slane %v278_v12, 1 }
  0x53   :  { %v280_v14 = vadd.f32 %v279_v13, %v278_v12 }
  0x55   :  { %v282_v16 = vmul.f32 0.00390625, %v280_v14 }
  0x57   :  { %v312_v17 = vsel %vm311_vm1, %v282_v16, %v281_v15 }
  0x58   :  { %484 = vmatmul.mubr.msk.f32.vlgmr.msra.gmra.mxu0 %vm142_vm0, %v312_v17  ;;  %485 = vmatmul.mubr.msk.f32.vlgmr.msra.gmra.mxu1 %vm142_vm0, %v312_v17 }
 0x118   :  { %v381_v32 = vpop.f32.mrf.mxu0  ;;  %v452_v33 = vpop.f32.mrf.mxu1 }
 0x119   :  { %v382_v37 = vadd.f32 %v381_v32, %v292_v28  ;;  %v453_v38 = vadd.f32 %v452_v33, %v300_v29 }
 0x11a   :  { %v383_v34 = vpop.f32.mrf.mxu0  ;;  %v454_v36 = vpop.f32.mrf.mxu1 }
 0x11b   :  { %v384_v39 = vadd.f32 %v383_v34, %v296_v30  ;;  %v455_v40 = vadd.f32 %v454_v36, %v304_v31 }
 0x11d   :  { %v461_v41 = vcombine.low %v382_v37, %v384_v39  ;;  %v462_v42 = vcombine.low %v453_v38, %v455_v40 }
 0x11f   :  { %v469_v43 = vrot.slane %v461_v41, %v468_v35  ;;  %v476_v44 = vrot.slane %v462_v42, %v468_v35 }
 0x121   :  { %v477_v45 = vcombine.low %v469_v43, %v476_v44 }
 0x123   :  { %479 = vst [vmem:[%s789_s3] sm:$0xff] %v477_v45 }

// kernel: clc_dyn_forward.22
= control target key start
LH: loop header
LB: loop body
LE: loop exit
PB: predicated region body
PF: predicated region fallthrough
CT: control target
= control target key end

     0   :  { %s1123_s12 = smov 0   ;;  %s1125_s13 = smov 0   ;;  %s1319_s0 = inlined_call_operand.vmem [shape: f32[512,128], index: 0, kind: input, shape index: {}]   ;;  %s1320_s1 = inlined_call_operand.vmem [shape: f32[128,128], index: 1, kind: input, shape index: {}]   ;;  %s1321_s2 = inlined_call_operand.vmem [shape: f32[1,128], index: 2, kind: input, shape index: {}]   ;;  %s1322_s3 = inlined_call_operand.vmem [shape: f32[512,128], index: 3, kind: output, shape index: {}]  }
   0x1   :  { %s1127_s14 = smov 0  }
   0x2 LB: > { %s32_s15 = sadd.s32 1, %s1097_s13  ;;  %p887_p0 = scmp.ge.s32.totalorder %s1101_s14, 1  ;;  %s1101_s14 = sphi %s1127_s14, %s13_s14   ;;  %s1097_s13 = sphi %s1125_s13, %s1324_s13   ;;  %s1093_s12 = sphi %s1123_s12, %s1323_s12  }
   0x3   : > { %p34_p1 = scmp.ge.s32.totalorder %s32_s15, 2  ;;  %p188_p2 = scmp.lt.s32.totalorder %s1101_s14, 3 }
   0x5   : > { %s1326_s15 = smov (%p34_p1, %s32_s15), 0  ;;  %p189_p3 = pnand %p887_p0, %p188_p2 }
   0x6   : > { %s888_s5 = sshll.u32 (!%p189_p3), %s1093_s12, 5 }
   0x7   : > { %192 = sbr.rel (%p189_p3) target bundleno = 272 (0x110), region = 32  ;;  %p230_p4 = scmp.lt.s32.totalorder (!%p189_p3), %s888_s5, 63 }
   0xc   : > { %v374_v0 = vld [vmem:[%s1320_s1 + $0x78] sm:$0xff]  ;;  %v373_v1 = vld [vmem:[%s1320_s1 + $0x70] sm:$0xff]  ;;  %v372_v2 = vld [vmem:[%s1320_s1 + $0x68] sm:$0xff]  ;;  %s1328_s5 = smov (!%p230_p4, %s888_s5), 63 }
   0xd   : > { %943 = vmatprep.subr.mxu0 %v374_v0  ;;  %1023 = vmatprep.subr.mxu1 %v374_v0  ;;  %v371_v3 = vld [vmem:[%s1320_s1 + $0x60] sm:$0xff]  ;;  %v370_v4 = vld [vmem:[%s1320_s1 + $0x58] sm:$0xff]  ;;  %v369_v5 = vld [vmem:[%s1320_s1 + $0x50] sm:$0xff]  ;;  %s889_s21 = sshll.u32 %s1328_s5, 3 }
   0xe   : > { %944 = vmatpush3.msra.mxu0 %v374_v0  ;;  %1039 = vmatpush3.msra.mxu1 %v374_v0  ;;  %v368_v6 = vld [vmem:[%s1320_s1 + $0x48] sm:$0xff]  ;;  %v367_v7 = vld [vmem:[%s1320_s1 + $0x40] sm:$0xff]  ;;  %v366_v8 = vld [vmem:[%s1320_s1 + $0x38] sm:$0xff]  ;;  %s1197_s26 = scalar_lea.vmem %s1319_s0, %s889_s21  ;;  %s1244_s7 = scalar_lea.vmem %s1322_s3, %s889_s21 }
   0xf   : > { %945 = vmatprep.subr.mxu0 %v373_v1  ;;  %1024 = vmatprep.subr.mxu1 %v373_v1  ;;  %v365_v9 = vld [vmem:[%s1320_s1 + $0x30] sm:$0xff]  ;;  %v364_v10 = vld [vmem:[%s1320_s1 + $0x28] sm:$0xff]  ;;  %v363_v11 = vld [vmem:[%s1320_s1 + $0x20] sm:$0xff] }
  0x10   : > { %946 = vmatpush3.msra.mxu0 %v373_v1  ;;  %1040 = vmatpush3.msra.mxu1 %v373_v1  ;;  %v362_v12 = vld [vmem:[%s1320_s1 + $0x18] sm:$0xff]  ;;  %v361_v13 = vld [vmem:[%s1320_s1 + $0x10] sm:$0xff]  ;;  %v360_v14 = vld [vmem:[%s1320_s1 + $0x8] sm:$0xff] }
  0x11   : > { %947 = vmatprep.subr.mxu0 %v372_v2  ;;  %1025 = vmatprep.subr.mxu1 %v372_v2  ;;  %v359_v15 = vld [vmem:[%s1320_s1] sm:$0xff]  ;;  %v328_v18 = vld [vmem:[%s1197_s26 + $0x8] sm:$0xff]  ;;  %v329_v20 = vld [vmem:[%s1197_s26 + $0x10] sm:$0xff] }
  0x12   : > { %948 = vmatpush3.msra.mxu0 %v372_v2  ;;  %1041 = vmatpush3.msra.mxu1 %v372_v2  ;;  %v327_v16 = vld [vmem:[%s1197_s26] sm:$0xff]  ;;  %v344_v19 = vld [vmem:[%s1197_s26 + $0x88] sm:$0xff]  ;;  %v345_v21 = vld [vmem:[%s1197_s26 + $0x90] sm:$0xff] }
  0x13   : > { %949 = vmatprep.subr.mxu0 %v371_v3  ;;  %1026 = vmatprep.subr.mxu1 %v371_v3  ;;  %v343_v17 = vld [vmem:[%s1197_s26 + $0x80] sm:$0xff]  ;;  %v330_v22 = vld [vmem:[%s1197_s26 + $0x18] sm:$0xff]  ;;  %v332_v26 = vld [vmem:[%s1197_s26 + $0x28] sm:$0xff] }
  0x14   : > { %950 = vmatpush3.msra.mxu0 %v371_v3  ;;  %1042 = vmatpush3.msra.mxu1 %v371_v3  ;;  %v346_v23 = vld [vmem:[%s1197_s26 + $0x98] sm:$0xff]  ;;  %v331_v24 = vld [vmem:[%s1197_s26 + $0x20] sm:$0xff]  ;;  %v348_v27 = vld [vmem:[%s1197_s26 + $0xa8] sm:$0xff] }
  0x15   : > { %951 = vmatprep.subr.mxu0 %v370_v4  ;;  %1027 = vmatprep.subr.mxu1 %v370_v4  ;;  %v347_v25 = vld [vmem:[%s1197_s26 + $0xa0] sm:$0xff]  ;;  %v333_v28 = vld [vmem:[%s1197_s26 + $0x30] sm:$0xff]  ;;  %v334_v30 = vld [vmem:[%s1197_s26 + $0x38] sm:$0xff] }
  0x16   : > { %952 = vmatpush3.msra.mxu0 %v370_v4  ;;  %1043 = vmatpush3.msra.mxu1 %v370_v4  ;;  %v349_v29 = vld [vmem:[%s1197_s26 + $0xb0] sm:$0xff]  ;;  %v350_v31 = vld [vmem:[%s1197_s26 + $0xb8] sm:$0xff]  ;;  %v335_v32 = vld [vmem:[%s1197_s26 + $0x40] sm:$0xff] }
  0x17   : > { %953 = vmatprep.subr.mxu0 %v369_v5  ;;  %1028 = vmatprep.subr.mxu1 %v369_v5  ;;  %v351_v33 = vld [vmem:[%s1197_s26 + $0xc0] sm:$0xff]  ;;  %v336_v34 = vld [vmem:[%s1197_s26 + $0x48] sm:$0xff]  ;;  %v337_v36 = vld [vmem:[%s1197_s26 + $0x50] sm:$0xff] }
  0x18   : > { %954 = vmatpush3.msra.mxu0 %v369_v5  ;;  %1044 = vmatpush3.msra.mxu1 %v369_v5  ;;  %v352_v35 = vld [vmem:[%s1197_s26 + $0xc8] sm:$0xff]  ;;  %v353_v37 = vld [vmem:[%s1197_s26 + $0xd0] sm:$0xff]  ;;  %v338_v38 = vld [vmem:[%s1197_s26 + $0x58] sm:$0xff] }
  0x19   : > { %955 = vmatprep.subr.mxu0 %v368_v6  ;;  %1029 = vmatprep.subr.mxu1 %v368_v6  ;;  %v354_v39 = vld [vmem:[%s1197_s26 + $0xd8] sm:$0xff]  ;;  %v339_v40 = vld [vmem:[%s1197_s26 + $0x60] sm:$0xff]  ;;  %v340_v42 = vld [vmem:[%s1197_s26 + $0x68] sm:$0xff] }
  0x1a   : > { %956 = vmatpush3.msra.mxu0 %v368_v6  ;;  %1045 = vmatpush3.msra.mxu1 %v368_v6  ;;  %v355_v41 = vld [vmem:[%s1197_s26 + $0xe0] sm:$0xff]  ;;  %v356_v43 = vld [vmem:[%s1197_s26 + $0xe8] sm:$0xff]  ;;  %v341_v44 = vld [vmem:[%s1197_s26 + $0x70] sm:$0xff] }
  0x1b   : > { %957 = vmatprep.subr.mxu0 %v367_v7  ;;  %1030 = vmatprep.subr.mxu1 %v367_v7  ;;  %v357_v45 = vld [vmem:[%s1197_s26 + $0xf0] sm:$0xff]  ;;  %v342_v46 = vld [vmem:[%s1197_s26 + $0x78] sm:$0xff]  ;;  %v1237_v48 = vld [vmem:[%s1321_s2] ss:$0 sm:$0xff] }
  0x1c   : > { %958 = vmatpush3.msra.mxu0 %v367_v7  ;;  %1046 = vmatpush3.msra.mxu1 %v367_v7  ;;  %v358_v47 = vld [vmem:[%s1197_s26 + $0xf8] sm:$0xff] }
  0x1d   : > { %959 = vmatprep.subr.mxu0 %v366_v8  ;;  %1031 = vmatprep.subr.mxu1 %v366_v8 }
  0x1e   : > { %960 = vmatpush3.msra.mxu0 %v366_v8  ;;  %1047 = vmatpush3.msra.mxu1 %v366_v8 }
  0x1f   : > { %961 = vmatprep.subr.mxu0 %v365_v9  ;;  %1032 = vmatprep.subr.mxu1 %v365_v9 }
  0x20   : > { %962 = vmatpush3.msra.mxu0 %v365_v9  ;;  %1048 = vmatpush3.msra.mxu1 %v365_v9 }
  0x21   : > { %963 = vmatprep.subr.mxu0 %v364_v10  ;;  %1033 = vmatprep.subr.mxu1 %v364_v10 }
  0x22   : > { %964 = vmatpush3.msra.mxu0 %v364_v10  ;;  %1049 = vmatpush3.msra.mxu1 %v364_v10 }
  0x23   : > { %965 = vmatprep.subr.mxu0 %v363_v11  ;;  %1034 = vmatprep.subr.mxu1 %v363_v11 }
  0x24   : > { %966 = vmatpush3.msra.mxu0 %v363_v11  ;;  %1050 = vmatpush3.msra.mxu1 %v363_v11 }
  0x25   : > { %967 = vmatprep.subr.mxu0 %v362_v12  ;;  %1035 = vmatprep.subr.mxu1 %v362_v12 }
  0x26   : > { %968 = vmatpush3.msra.mxu0 %v362_v12  ;;  %1051 = vmatpush3.msra.mxu1 %v362_v12 }
  0x27   : > { %969 = vmatprep.subr.mxu0 %v361_v13  ;;  %1036 = vmatprep.subr.mxu1 %v361_v13 }
  0x28   : > { %970 = vmatpush3.msra.mxu0 %v361_v13  ;;  %1052 = vmatpush3.msra.mxu1 %v361_v13 }
  0x29   : > { %971 = vmatprep.subr.mxu0 %v360_v14  ;;  %1037 = vmatprep.subr.mxu1 %v360_v14 }
  0x2a   : > { %972 = vmatpush3.msra.mxu0 %v360_v14  ;;  %1053 = vmatpush3.msra.mxu1 %v360_v14 }
  0x2b   : > { %973 = vmatprep.subr.mxu0 %v359_v15  ;;  %1038 = vmatprep.subr.mxu1 %v359_v15 }
  0x2c   : > { %974 = vmatpush3.msra.mxu0 %v359_v15  ;;  %1054 = vmatpush3.msra.mxu1 %v359_v15 }
  0x2d   : > { %975 = vmatprep.mubr.f32.mxu0 %v327_v16  ;;  %999 = vmatprep.mubr.f32.mxu1 %v343_v17 }
  0x2e   : > { %976 = vmatmul.mubr.f32.vlgmr.msra.gmra.mxu0 %v328_v18  ;;  %1000 = vmatmul.mubr.f32.vlgmr.msra.gmra.mxu1 %v344_v19 }
  0x2f   : > { %978 = vmatprep.mubr.f32.mxu0 %v329_v20  ;;  %1002 = vmatprep.mubr.f32.mxu1 %v345_v21 }
  0x32   : > { %979 = vmatmul.mubr.f32.gmra.mxu0 %v330_v22  ;;  %1003 = vmatmul.mubr.f32.gmra.mxu1 %v346_v23 }
  0x33   : > { %981 = vmatprep.mubr.f32.mxu0 %v331_v24  ;;  %1005 = vmatprep.mubr.f32.mxu1 %v347_v25 }
  0x36   : > { %982 = vmatmul.mubr.f32.gmra.mxu0 %v332_v26  ;;  %1006 = vmatmul.mubr.f32.gmra.mxu1 %v348_v27 }
  0x37   : > { %984 = vmatprep.mubr.f32.mxu0 %v333_v28  ;;  %1008 = vmatprep.mubr.f32.mxu1 %v349_v29 }
  0x3a   : > { %985 = vmatmul.mubr.f32.gmra.mxu0 %v334_v30  ;;  %1009 = vmatmul.mubr.f32.gmra.mxu1 %v350_v31 }
  0x3b   : > { %987 = vmatprep.mubr.f32.mxu0 %v335_v32  ;;  %1011 = vmatprep.mubr.f32.mxu1 %v351_v33 }
  0x3e   : > { %988 = vmatmul.mubr.f32.gmra.mxu0 %v336_v34  ;;  %1012 = vmatmul.mubr.f32.gmra.mxu1 %v352_v35 }
  0x3f   : > { %990 = vmatprep.mubr.f32.mxu0 %v337_v36  ;;  %1014 = vmatprep.mubr.f32.mxu1 %v353_v37 }
  0x42   : > { %991 = vmatmul.mubr.f32.gmra.mxu0 %v338_v38  ;;  %1015 = vmatmul.mubr.f32.gmra.mxu1 %v354_v39 }
  0x43   : > { %993 = vmatprep.mubr.f32.mxu0 %v339_v40  ;;  %1017 = vmatprep.mubr.f32.mxu1 %v355_v41 }
  0x46   : > { %994 = vmatmul.mubr.f32.gmra.mxu0 %v340_v42  ;;  %1018 = vmatmul.mubr.f32.gmra.mxu1 %v356_v43 }
  0x47   : > { %996 = vmatprep.mubr.f32.mxu0 %v341_v44  ;;  %1020 = vmatprep.mubr.f32.mxu1 %v357_v45 }
  0x4a   : > { %997 = vmatmul.mubr.f32.gmra.mxu0 %v342_v46  ;;  %1021 = vmatmul.mubr.f32.gmra.mxu1 %v358_v47 }
  0xee   : > { %v977_v49 = vpop.f32.mrf.mxu0  ;;  %v1001_v50 = vpop.f32.mrf.mxu1 }
  0xef   : > { %v707_v51 = vadd.f32 %v977_v49, %v1237_v48  ;;  %v723_v52 = vadd.f32 %v1001_v50, %v1237_v48 }
  0xf0   : > { %v441_v53 = vpop.f32.mrf.mxu0  ;;  %v521_v54 = vpop.f32.mrf.mxu1 }
  0xf1   : > { %739 = vst [vmem:[%s1244_s7 + $0x8] sm:$0xff] %v707_v51  ;;  %755 = vst [vmem:[%s1244_s7 + $0x88] sm:$0xff] %v723_v52  ;;  %v706_v55 = vadd.f32 %v1237_v48, %v441_v53  ;;  %v722_v56 = vadd.f32 %v1237_v48, %v521_v54 }
  0xf2   : > { %v980_v57 = vpop.f32.mrf.mxu0  ;;  %v1004_v58 = vpop.f32.mrf.mxu1 }
  0xf3   : > { %738 = vst [vmem:[%s1244_s7] sm:$0xff] %v706_v55  ;;  %754 = vst [vmem:[%s1244_s7 + $0x80] sm:$0xff] %v722_v56  ;;  %v709_v59 = vadd.f32 %v980_v57, %v1237_v48  ;;  %v725_v60 = vadd.f32 %v1004_v58, %v1237_v48 }
  0xf4   : > { %v451_v61 = vpop.f32.mrf.mxu0  ;;  %v531_v62 = vpop.f32.mrf.mxu1 }
  0xf5   : > { %741 = vst [vmem:[%s1244_s7 + $0x18] sm:$0xff] %v709_v59  ;;  %757 = vst [vmem:[%s1244_s7 + $0x98] sm:$0xff] %v725_v60  ;;  %v708_v63 = vadd.f32 %v1237_v48, %v451_v61  ;;  %v724_v0 = vadd.f32 %v1237_v48, %v531_v62 }
  0xf6   : > { %v983_v1 = vpop.f32.mrf.mxu0  ;;  %v1007_v2 = vpop.f32.mrf.mxu1 }
  0xf7   : > { %740 = vst [vmem:[%s1244_s7 + $0x10] sm:$0xff] %v708_v63  ;;  %756 = vst [vmem:[%s1244_s7 + $0x90] sm:$0xff] %v724_v0  ;;  %v711_v3 = vadd.f32 %v983_v1, %v1237_v48  ;;  %v727_v4 = vadd.f32 %v1007_v2, %v1237_v48 }
  0xf8   : > { %v461_v5 = vpop.f32.mrf.mxu0  ;;  %v541_v6 = vpop.f32.mrf.mxu1 }
  0xf9   : > { %743 = vst [vmem:[%s1244_s7 + $0x28] sm:$0xff] %v711_v3  ;;  %759 = vst [vmem:[%s1244_s7 + $0xa8] sm:$0xff] %v727_v4  ;;  %v710_v7 = vadd.f32 %v1237_v48, %v461_v5  ;;  %v726_v8 = vadd.f32 %v1237_v48, %v541_v6 }
  0xfa   : > { %v986_v9 = vpop.f32.mrf.mxu0  ;;  %v1010_v10 = vpop.f32.mrf.mxu1 }
  0xfb   : > { %742 = vst [vmem:[%s1244_s7 + $0x20] sm:$0xff] %v710_v7  ;;  %758 = vst [vmem:[%s1244_s7 + $0xa0] sm:$0xff] %v726_v8  ;;  %v713_v11 = vadd.f32 %v986_v9, %v1237_v48  ;;  %v729_v12 = vadd.f32 %v1010_v10, %v1237_v48 }
  0xfc   : > { %v471_v13 = vpop.f32.mrf.mxu0  ;;  %v551_v14 = vpop.f32.mrf.mxu1 }
  0xfd   : > { %745 = vst [vmem:[%s1244_s7 + $0x38] sm:$0xff] %v713_v11  ;;  %761 = vst [vmem:[%s1244_s7 + $0xb8] sm:$0xff] %v729_v12  ;;  %v712_v15 = vadd.f32 %v1237_v48, %v471_v13  ;;  %v728_v16 = vadd.f32 %v1237_v48, %v551_v14 }
  0xfe   : > { %v989_v17 = vpop.f32.mrf.mxu0  ;;  %v1013_v18 = vpop.f32.mrf.mxu1 }
  0xff   : > { %744 = vst [vmem:[%s1244_s7 + $0x30] sm:$0xff] %v712_v15  ;;  %760 = vst [vmem:[%s1244_s7 + $0xb0] sm:$0xff] %v728_v16  ;;  %v715_v19 = vadd.f32 %v989_v17, %v1237_v48  ;;  %v731_v20 = vadd.f32 %v1013_v18, %v1237_v48 }
 0x100   : > { %v481_v21 = vpop.f32.mrf.mxu0  ;;  %v561_v22 = vpop.f32.mrf.mxu1 }
 0x101   : > { %747 = vst [vmem:[%s1244_s7 + $0x48] sm:$0xff] %v715_v19  ;;  %763 = vst [vmem:[%s1244_s7 + $0xc8] sm:$0xff] %v731_v20  ;;  %v714_v23 = vadd.f32 %v1237_v48, %v481_v21  ;;  %v730_v24 = vadd.f32 %v1237_v48, %v561_v22 }
 0x102   : > { %v992_v25 = vpop.f32.mrf.mxu0  ;;  %v1016_v26 = vpop.f32.mrf.mxu1 }
 0x103   : > { %746 = vst [vmem:[%s1244_s7 + $0x40] sm:$0xff] %v714_v23  ;;  %762 = vst [vmem:[%s1244_s7 + $0xc0] sm:$0xff] %v730_v24  ;;  %v717_v27 = vadd.f32 %v992_v25, %v1237_v48  ;;  %v733_v28 = vadd.f32 %v1016_v26, %v1237_v48 }
 0x104   : > { %v491_v29 = vpop.f32.mrf.mxu0  ;;  %v571_v30 = vpop.f32.mrf.mxu1 }
 0x105   : > { %749 = vst [vmem:[%s1244_s7 + $0x58] sm:$0xff] %v717_v27  ;;  %765 = vst [vmem:[%s1244_s7 + $0xd8] sm:$0xff] %v733_v28  ;;  %v716_v31 = vadd.f32 %v1237_v48, %v491_v29  ;;  %v732_v32 = vadd.f32 %v1237_v48, %v571_v30 }
 0x106   : > { %v995_v33 = vpop.f32.mrf.mxu0  ;;  %v1019_v34 = vpop.f32.mrf.mxu1 }
 0x107   : > { %748 = vst [vmem:[%s1244_s7 + $0x50] sm:$0xff] %v716_v31  ;;  %764 = vst [vmem:[%s1244_s7 + $0xd0] sm:$0xff] %v732_v32  ;;  %v719_v35 = vadd.f32 %v995_v33, %v1237_v48  ;;  %v735_v36 = vadd.f32 %v1019_v34, %v1237_v48 }
 0x108   : > { %v501_v37 = vpop.f32.mrf.mxu0  ;;  %v581_v38 = vpop.f32.mrf.mxu1 }
 0x109   : > { %751 = vst [vmem:[%s1244_s7 + $0x68] sm:$0xff] %v719_v35  ;;  %767 = vst [vmem:[%s1244_s7 + $0xe8] sm:$0xff] %v735_v36  ;;  %v718_v39 = vadd.f32 %v1237_v48, %v501_v37  ;;  %v734_v40 = vadd.f32 %v1237_v48, %v581_v38 }
 0x10a   : > { %v998_v41 = vpop.f32.mrf.mxu0  ;;  %v1022_v42 = vpop.f32.mrf.mxu1 }
 0x10b   : > { %750 = vst [vmem:[%s1244_s7 + $0x60] sm:$0xff] %v718_v39  ;;  %766 = vst [vmem:[%s1244_s7 + $0xe0] sm:$0xff] %v734_v40  ;;  %v721_v43 = vadd.f32 %v998_v41, %v1237_v48  ;;  %v737_v44 = vadd.f32 %v1022_v42, %v1237_v48 }
 0x10c   : > { %v511_v45 = vpop.f32.mrf.mxu0  ;;  %v591_v46 = vpop.f32.mrf.mxu1 }
 0x10d   : > { %753 = vst [vmem:[%s1244_s7 + $0x78] sm:$0xff] %v721_v43  ;;  %769 = vst [vmem:[%s1244_s7 + $0xf8] sm:$0xff] %v737_v44  ;;  %v720_v47 = vadd.f32 %v1237_v48, %v511_v45  ;;  %v736_v49 = vadd.f32 %v1237_v48, %v591_v46 }
 0x10f   : > { %752 = vst [vmem:[%s1244_s7 + $0x70] sm:$0xff] %v720_v47  ;;  %768 = vst [vmem:[%s1244_s7 + $0xf0] sm:$0xff] %v736_v49 }
 0x110 PF: > { %s13_s14 = sadd.s32 1, %s1101_s14   ;;  %s1323_s12 = smov %s1097_s13 }
 0x111   : > { %p10_p5 = scmp.ge.s32.totalorder %s13_s14, 4   ;;  %s1324_s13 = smov %s1326_s15 }
 0x113   :  { %12 = sbr.rel (!%p10_p5) target bundleno = 2 (0x2), region = 76 }

// kernel: clc_dyn_forward.24
= control target key start
LH: loop header
LB: loop body
LE: loop exit
PB: predicated region body
PF: predicated region fallthrough
CT: control target
= control target key end

     0   :  { %18 = vsyncpa [#allocation3], 0  ;;  %s3667_s0 = inlined_call_operand.vmem [shape: f32[8,512], index: 0, kind: input, shape index: {}]   ;;  %s3668_s1 = inlined_call_operand.vmem [shape: f32[512,384], index: 1, kind: input, shape index: {}]   ;;  %s3669_s2 = inlined_call_operand.vmem [shape: f32[1,384], index: 2, kind: input, shape index: {}]   ;;  %s3670_s3 = inlined_call_operand.vmem [shape: f32[384,256], index: 3, kind: input, shape index: {}]   ;;  %s3671_s4 = inlined_call_operand.vmem [shape: f32[1,256], index: 4, kind: input, shape index: {}]   ;;  %s3672_s5 = inlined_call_operand.vmem [shape: f32[256,384], index: 5, kind: input, shape index: {}]   ;;  %s3673_s6 = inlined_call_operand.vmem [shape: f32[1,384], index: 6, kind: input, shape index: {}]   ;;  %s3674_s7 = inlined_call_operand.vmem [shape: f32[384,512], index: 7, kind: input, shape index: {}]   ;;  %s3675_s8 = inlined_call_operand.vmem [shape: f32[1,512], index: 8, kind: input, shape index: {}]   ;;  %s3676_s9 = inlined_call_operand.vmem [shape: f32[8,512], index: 9, kind: output, shape index: {0}]   ;;  %s3677_s10 = inlined_call_operand.hbm [shape: f32[8,384], index: 10, kind: output, shape index: {1}]   ;;  %s3678_s11 = inlined_call_operand.hbm [shape: f32[8,256], index: 11, kind: output, shape index: {2}]   ;;  %s3679_s12 = inlined_call_operand.hbm [shape: f32[8,384], index: 12, kind: output, shape index: {3}]  }
   0x1   :  { %v88_v0 = vld [vmem:[%s3668_s1 + $0x170] sm:$0xff]  ;;  %v87_v2 = vld [vmem:[%s3668_s1 + $0x168] sm:$0xff]  ;;  %v85_v4 = vld [vmem:[%s3668_s1 + $0x158] sm:$0xff] }
   0x2   :  { %v184_v1 = vld [vmem:[%s3668_s1 + $0x470] sm:$0xff]  ;;  %251 = vmatprep.subr.mxu0 %v88_v0  ;;  %v183_v3 = vld [vmem:[%s3668_s1 + $0x468] sm:$0xff]  ;;  %v181_v5 = vld [vmem:[%s3668_s1 + $0x458] sm:$0xff] }
   0x3   :  { %322 = vmatprep.subr.mxu1 %v184_v1  ;;  %252 = vmatpush1.msra.mxu0 %v87_v2  ;;  %v84_v6 = vld [vmem:[%s3668_s1 + $0x150] sm:$0xff]  ;;  %v82_v8 = vld [vmem:[%s3668_s1 + $0x140] sm:$0xff]  ;;  %v81_v10 = vld [vmem:[%s3668_s1 + $0x138] sm:$0xff] }
   0x4   :  { %323 = vmatpush1.msra.mxu1 %v183_v3  ;;  %v180_v7 = vld [vmem:[%s3668_s1 + $0x450] sm:$0xff]  ;;  %253 = vmatprep.subr.mxu0 %v85_v4  ;;  %v178_v9 = vld [vmem:[%s3668_s1 + $0x440] sm:$0xff]  ;;  %v177_v11 = vld [vmem:[%s3668_s1 + $0x438] sm:$0xff] }
   0x5   :  { %324 = vmatprep.subr.mxu1 %v181_v5  ;;  %254 = vmatpush1.msra.mxu0 %v84_v6  ;;  %v79_v12 = vld [vmem:[%s3668_s1 + $0x128] sm:$0xff]  ;;  %v78_v14 = vld [vmem:[%s3668_s1 + $0x120] sm:$0xff]  ;;  %v76_v16 = vld [vmem:[%s3668_s1 + $0x110] sm:$0xff] }
   0x6   :  { %325 = vmatpush1.msra.mxu1 %v180_v7  ;;  %v175_v13 = vld [vmem:[%s3668_s1 + $0x428] sm:$0xff]  ;;  %255 = vmatprep.subr.mxu0 %v82_v8  ;;  %v174_v15 = vld [vmem:[%s3668_s1 + $0x420] sm:$0xff]  ;;  %v172_v17 = vld [vmem:[%s3668_s1 + $0x410] sm:$0xff] }
   0x7   :  { %326 = vmatprep.subr.mxu1 %v178_v9  ;;  %256 = vmatpush1.msra.mxu0 %v81_v10  ;;  %v75_v18 = vld [vmem:[%s3668_s1 + $0x108] sm:$0xff]  ;;  %v73_v20 = vld [vmem:[%s3668_s1 + $0xf8] sm:$0xff]  ;;  %v72_v22 = vld [vmem:[%s3668_s1 + $0xf0] sm:$0xff] }
   0x8   :  { %327 = vmatpush1.msra.mxu1 %v177_v11  ;;  %257 = vmatprep.subr.mxu0 %v79_v12  ;;  %v171_v19 = vld [vmem:[%s3668_s1 + $0x408] sm:$0xff]  ;;  %v169_v21 = vld [vmem:[%s3668_s1 + $0x3f8] sm:$0xff]  ;;  %v168_v23 = vld [vmem:[%s3668_s1 + $0x3f0] sm:$0xff] }
   0x9   :  { %328 = vmatprep.subr.mxu1 %v175_v13  ;;  %258 = vmatpush1.msra.mxu0 %v78_v14  ;;  %v70_v24 = vld [vmem:[%s3668_s1 + $0xe0] sm:$0xff]  ;;  %v69_v26 = vld [vmem:[%s3668_s1 + $0xd8] sm:$0xff]  ;;  %v67_v28 = vld [vmem:[%s3668_s1 + $0xc8] sm:$0xff] }
   0xa   :  { %329 = vmatpush1.msra.mxu1 %v174_v15  ;;  %259 = vmatprep.subr.mxu0 %v76_v16  ;;  %v166_v25 = vld [vmem:[%s3668_s1 + $0x3e0] sm:$0xff]  ;;  %v165_v27 = vld [vmem:[%s3668_s1 + $0x3d8] sm:$0xff]  ;;  %v163_v29 = vld [vmem:[%s3668_s1 + $0x3c8] sm:$0xff] }
   0xb   :  { %330 = vmatprep.subr.mxu1 %v172_v17  ;;  %260 = vmatpush1.msra.mxu0 %v75_v18  ;;  %v66_v30 = vld [vmem:[%s3668_s1 + $0xc0] sm:$0xff]  ;;  %v64_v32 = vld [vmem:[%s3668_s1 + $0xb0] sm:$0xff]  ;;  %v63_v34 = vld [vmem:[%s3668_s1 + $0xa8] sm:$0xff] }
   0xc   :  { %331 = vmatpush1.msra.mxu1 %v171_v19  ;;  %261 = vmatprep.subr.mxu0 %v73_v20  ;;  %v162_v31 = vld [vmem:[%s3668_s1 + $0x3c0] sm:$0xff]  ;;  %v160_v33 = vld [vmem:[%s3668_s1 + $0x3b0] sm:$0xff]  ;;  %v159_v35 = vld [vmem:[%s3668_s1 + $0x3a8] sm:$0xff] }
   0xd   :  { %332 = vmatprep.subr.mxu1 %v169_v21  ;;  %262 = vmatpush1.msra.mxu0 %v72_v22  ;;  %v61_v36 = vld [vmem:[%s3668_s1 + $0x98] sm:$0xff]  ;;  %v60_v38 = vld [vmem:[%s3668_s1 + $0x90] sm:$0xff]  ;;  %v58_v40 = vld [vmem:[%s3668_s1 + $0x80] sm:$0xff] }
   0xe   :  { %333 = vmatpush1.msra.mxu1 %v168_v23  ;;  %263 = vmatprep.subr.mxu0 %v70_v24  ;;  %v157_v37 = vld [vmem:[%s3668_s1 + $0x398] sm:$0xff]  ;;  %v156_v39 = vld [vmem:[%s3668_s1 + $0x390] sm:$0xff]  ;;  %v154_v41 = vld [vmem:[%s3668_s1 + $0x380] sm:$0xff] }
   0xf   :  { %334 = vmatprep.subr.mxu1 %v166_v25  ;;  %264 = vmatpush1.msra.mxu0 %v69_v26  ;;  %v57_v42 = vld [vmem:[%s3668_s1 + $0x78] sm:$0xff]  ;;  %v55_v44 = vld [vmem:[%s3668_s1 + $0x68] sm:$0xff]  ;;  %v54_v46 = vld [vmem:[%s3668_s1 + $0x60] sm:$0xff] }
  0x10   :  { %335 = vmatpush1.msra.mxu1 %v165_v27  ;;  %265 = vmatprep.subr.mxu0 %v67_v28  ;;  %v153_v43 = vld [vmem:[%s3668_s1 + $0x378] sm:$0xff]  ;;  %v151_v45 = vld [vmem:[%s3668_s1 + $0x368] sm:$0xff]  ;;  %v150_v47 = vld [vmem:[%s3668_s1 + $0x360] sm:$0xff] }
  0x11   :  { %336 = vmatprep.subr.mxu1 %v163_v29  ;;  %266 = vmatpush1.msra.mxu0 %v66_v30  ;;  %v52_v48 = vld [vmem:[%s3668_s1 + $0x50] sm:$0xff]  ;;  %v51_v50 = vld [vmem:[%s3668_s1 + $0x48] sm:$0xff]  ;;  %v49_v52 = vld [vmem:[%s3668_s1 + $0x38] sm:$0xff] }
  0x12   :  { %337 = vmatpush1.msra.mxu1 %v162_v31  ;;  %267 = vmatprep.subr.mxu0 %v64_v32  ;;  %v148_v49 = vld [vmem:[%s3668_s1 + $0x350] sm:$0xff]  ;;  %v147_v51 = vld [vmem:[%s3668_s1 + $0x348] sm:$0xff]  ;;  %v145_v53 = vld [vmem:[%s3668_s1 + $0x338] sm:$0xff] }
  0x13   :  { %338 = vmatprep.subr.mxu1 %v160_v33  ;;  %268 = vmatpush1.msra.mxu0 %v63_v34  ;;  %v48_v54 = vld [vmem:[%s3668_s1 + $0x30] sm:$0xff]  ;;  %v46_v56 = vld [vmem:[%s3668_s1 + $0x20] sm:$0xff]  ;;  %v45_v58 = vld [vmem:[%s3668_s1 + $0x18] sm:$0xff] }
  0x14   :  { %339 = vmatpush1.msra.mxu1 %v159_v35  ;;  %269 = vmatprep.subr.mxu0 %v61_v36  ;;  %v144_v55 = vld [vmem:[%s3668_s1 + $0x330] sm:$0xff]  ;;  %v142_v57 = vld [vmem:[%s3668_s1 + $0x320] sm:$0xff]  ;;  %v141_v59 = vld [vmem:[%s3668_s1 + $0x318] sm:$0xff] }
  0x15   :  { %340 = vmatprep.subr.mxu1 %v157_v37  ;;  %270 = vmatpush1.msra.mxu0 %v60_v38  ;;  %v43_v60 = vld [vmem:[%s3668_s1 + $0x8] sm:$0xff]  ;;  %v42_v62 = vld [vmem:[%s3668_s1] sm:$0xff]  ;;  %v136_v0 = vld [vmem:[%s3668_s1 + $0x2f0] sm:$0xff] }
  0x16   :  { %341 = vmatpush1.msra.mxu1 %v156_v39  ;;  %271 = vmatprep.subr.mxu0 %v58_v40  ;;  %v139_v61 = vld [vmem:[%s3668_s1 + $0x308] sm:$0xff]  ;;  %v138_v63 = vld [vmem:[%s3668_s1 + $0x300] sm:$0xff]  ;;  %v232_v1 = vld [vmem:[%s3668_s1 + $0x5f0] sm:$0xff] }
  0x17   :  { %342 = vmatprep.subr.mxu1 %v154_v41  ;;  %272 = vmatpush1.msra.mxu0 %v57_v42  ;;  %v135_v2 = vld [vmem:[%s3668_s1 + $0x2e8] sm:$0xff]  ;;  %v133_v4 = vld [vmem:[%s3668_s1 + $0x2d8] sm:$0xff]  ;;  %v132_v6 = vld [vmem:[%s3668_s1 + $0x2d0] sm:$0xff] }
  0x18   :  { %343 = vmatpush1.msra.mxu1 %v153_v43  ;;  %273 = vmatprep.subr.mxu0 %v55_v44  ;;  %v231_v3 = vld [vmem:[%s3668_s1 + $0x5e8] sm:$0xff]  ;;  %v229_v5 = vld [vmem:[%s3668_s1 + $0x5d8] sm:$0xff]  ;;  %v228_v7 = vld [vmem:[%s3668_s1 + $0x5d0] sm:$0xff] }
  0x19   :  { %344 = vmatprep.subr.mxu1 %v151_v45  ;;  %274 = vmatpush1.msra.mxu0 %v54_v46  ;;  %v130_v8 = vld [vmem:[%s3668_s1 + $0x2c0] sm:$0xff]  ;;  %v129_v10 = vld [vmem:[%s3668_s1 + $0x2b8] sm:$0xff]  ;;  %v127_v12 = vld [vmem:[%s3668_s1 + $0x2a8] sm:$0xff] }
  0x1a   :  { %345 = vmatpush1.msra.mxu1 %v150_v47  ;;  %275 = vmatprep.subr.mxu0 %v52_v48  ;;  %v226_v9 = vld [vmem:[%s3668_s1 + $0x5c0] sm:$0xff]  ;;  %v225_v11 = vld [vmem:[%s3668_s1 + $0x5b8] sm:$0xff]  ;;  %v223_v13 = vld [vmem:[%s3668_s1 + $0x5a8] sm:$0xff] }
  0x1b   :  { %346 = vmatprep.subr.mxu1 %v148_v49  ;;  %276 = vmatpush1.msra.mxu0 %v51_v50  ;;  %v126_v14 = vld [vmem:[%s3668_s1 + $0x2a0] sm:$0xff]  ;;  %v124_v16 = vld [vmem:[%s3668_s1 + $0x290] sm:$0xff]  ;;  %v123_v18 = vld [vmem:[%s3668_s1 + $0x288] sm:$0xff] }
  0x1c   :  { %347 = vmatpush1.msra.mxu1 %v147_v51  ;;  %277 = vmatprep.subr.mxu0 %v49_v52  ;;  %v222_v15 = vld [vmem:[%s3668_s1 + $0x5a0] sm:$0xff]  ;;  %v220_v17 = vld [vmem:[%s3668_s1 + $0x590] sm:$0xff]  ;;  %v219_v19 = vld [vmem:[%s3668_s1 + $0x588] sm:$0xff] }
  0x1d   :  { %348 = vmatprep.subr.mxu1 %v145_v53  ;;  %278 = vmatpush1.msra.mxu0 %v48_v54  ;;  %v121_v20 = vld [vmem:[%s3668_s1 + $0x278] sm:$0xff]  ;;  %v120_v22 = vld [vmem:[%s3668_s1 + $0x270] sm:$0xff]  ;;  %v118_v24 = vld [vmem:[%s3668_s1 + $0x260] sm:$0xff] }
  0x1e   :  { %349 = vmatpush1.msra.mxu1 %v144_v55  ;;  %279 = vmatprep.subr.mxu0 %v46_v56  ;;  %v217_v21 = vld [vmem:[%s3668_s1 + $0x578] sm:$0xff]  ;;  %v216_v23 = vld [vmem:[%s3668_s1 + $0x570] sm:$0xff]  ;;  %v214_v25 = vld [vmem:[%s3668_s1 + $0x560] sm:$0xff] }
  0x1f   :  { %350 = vmatprep.subr.mxu1 %v142_v57  ;;  %280 = vmatpush1.msra.mxu0 %v45_v58  ;;  %v117_v26 = vld [vmem:[%s3668_s1 + $0x258] sm:$0xff]  ;;  %v115_v28 = vld [vmem:[%s3668_s1 + $0x248] sm:$0xff]  ;;  %v114_v30 = vld [vmem:[%s3668_s1 + $0x240] sm:$0xff] }
  0x20   :  { %351 = vmatpush1.msra.mxu1 %v141_v59  ;;  %281 = vmatprep.subr.mxu0 %v43_v60  ;;  %v213_v27 = vld [vmem:[%s3668_s1 + $0x558] sm:$0xff]  ;;  %v211_v29 = vld [vmem:[%s3668_s1 + $0x548] sm:$0xff]  ;;  %v210_v31 = vld [vmem:[%s3668_s1 + $0x540] sm:$0xff] }
  0x21   :  { %352 = vmatprep.subr.mxu1 %v139_v61  ;;  %282 = vmatpush1.msra.mxu0 %v42_v62  ;;  %v112_v32 = vld [vmem:[%s3668_s1 + $0x230] sm:$0xff]  ;;  %v111_v34 = vld [vmem:[%s3668_s1 + $0x228] sm:$0xff]  ;;  %v109_v36 = vld [vmem:[%s3668_s1 + $0x218] sm:$0xff] }
  0x22   :  { %353 = vmatpush1.msra.mxu1 %v138_v63  ;;  %283 = vmatprep.subr.mxu0 %v136_v0  ;;  %v208_v33 = vld [vmem:[%s3668_s1 + $0x530] sm:$0xff]  ;;  %v207_v35 = vld [vmem:[%s3668_s1 + $0x528] sm:$0xff]  ;;  %v205_v37 = vld [vmem:[%s3668_s1 + $0x518] sm:$0xff] }
  0x23   :  { %354 = vmatprep.subr.mxu1 %v232_v1  ;;  %284 = vmatpush2.msra.mxu0 %v135_v2  ;;  %v108_v38 = vld [vmem:[%s3668_s1 + $0x210] sm:$0xff]  ;;  %v106_v40 = vld [vmem:[%s3668_s1 + $0x200] sm:$0xff]  ;;  %v105_v42 = vld [vmem:[%s3668_s1 + $0x1f8] sm:$0xff] }
  0x24   :  { %355 = vmatpush2.msra.mxu1 %v231_v3  ;;  %285 = vmatprep.subr.mxu0 %v133_v4  ;;  %v204_v39 = vld [vmem:[%s3668_s1 + $0x510] sm:$0xff]  ;;  %v202_v41 = vld [vmem:[%s3668_s1 + $0x500] sm:$0xff]  ;;  %v201_v43 = vld [vmem:[%s3668_s1 + $0x4f8] sm:$0xff] }
  0x25   :  { %356 = vmatprep.subr.mxu1 %v229_v5  ;;  %286 = vmatpush2.msra.mxu0 %v132_v6  ;;  %v103_v44 = vld [vmem:[%s3668_s1 + $0x1e8] sm:$0xff]  ;;  %v102_v46 = vld [vmem:[%s3668_s1 + $0x1e0] sm:$0xff]  ;;  %v100_v48 = vld [vmem:[%s3668_s1 + $0x1d0] sm:$0xff] }
  0x26   :  { %357 = vmatpush2.msra.mxu1 %v228_v7  ;;  %287 = vmatprep.subr.mxu0 %v130_v8  ;;  %v199_v45 = vld [vmem:[%s3668_s1 + $0x4e8] sm:$0xff]  ;;  %v198_v47 = vld [vmem:[%s3668_s1 + $0x4e0] sm:$0xff]  ;;  %v196_v49 = vld [vmem:[%s3668_s1 + $0x4d0] sm:$0xff] }
  0x27   :  { %358 = vmatprep.subr.mxu1 %v226_v9  ;;  %288 = vmatpush2.msra.mxu0 %v129_v10  ;;  %v99_v50 = vld [vmem:[%s3668_s1 + $0x1c8] sm:$0xff]  ;;  %v97_v52 = vld [vmem:[%s3668_s1 + $0x1b8] sm:$0xff]  ;;  %v96_v54 = vld [vmem:[%s3668_s1 + $0x1b0] sm:$0xff] }
  0x28   :  { %359 = vmatpush2.msra.mxu1 %v225_v11  ;;  %289 = vmatprep.subr.mxu0 %v127_v12  ;;  %v195_v51 = vld [vmem:[%s3668_s1 + $0x4c8] sm:$0xff]  ;;  %v193_v53 = vld [vmem:[%s3668_s1 + $0x4b8] sm:$0xff]  ;;  %v192_v55 = vld [vmem:[%s3668_s1 + $0x4b0] sm:$0xff] }
  0x29   :  { %360 = vmatprep.subr.mxu1 %v223_v13  ;;  %290 = vmatpush2.msra.mxu0 %v126_v14  ;;  %v94_v56 = vld [vmem:[%s3668_s1 + $0x1a0] sm:$0xff]  ;;  %v93_v58 = vld [vmem:[%s3668_s1 + $0x198] sm:$0xff]  ;;  %v91_v60 = vld [vmem:[%s3668_s1 + $0x188] sm:$0xff] }
  0x2a   :  { %361 = vmatpush2.msra.mxu1 %v222_v15  ;;  %291 = vmatprep.subr.mxu0 %v124_v16  ;;  %v190_v57 = vld [vmem:[%s3668_s1 + $0x4a0] sm:$0xff]  ;;  %v189_v59 = vld [vmem:[%s3668_s1 + $0x498] sm:$0xff]  ;;  %v187_v61 = vld [vmem:[%s3668_s1 + $0x488] sm:$0xff] }
  0x2b   :  { %362 = vmatprep.subr.mxu1 %v220_v17  ;;  %292 = vmatpush2.msra.mxu0 %v123_v18  ;;  %v90_v62 = vld [vmem:[%s3668_s1 + $0x180] sm:$0xff]  ;;  %v2226_v63 = vld [vmem:[%s3667_s0 + $0x8] sm:$0xff]  ;;  %v2239_v2 = vld [vmem:[%s3667_s0 + $0x18] sm:$0xff] }
  0x2c   :  { %363 = vmatpush2.msra.mxu1 %v219_v19  ;;  %293 = vmatprep.subr.mxu0 %v121_v20  ;;  %v186_v0 = vld [vmem:[%s3668_s1 + $0x480] sm:$0xff]  ;;  %v137_v3 = vld [vmem:[%s3668_s1 + $0x2f8] sm:$0xff]  ;;  %v2251_v5 = vld [vmem:[%s3667_s0 + $0x10] sm:$0xff] }
  0x2d   :  { %364 = vmatprep.subr.mxu1 %v217_v21  ;;  %294 = vmatpush2.msra.mxu0 %v120_v22  ;;  %v2234_v1 = vld [vmem:[%s3667_s0] sm:$0xff]  ;;  %v233_v4 = vld [vmem:[%s3668_s1 + $0x5f8] sm:$0xff]  ;;  %v131_v12 = vld [vmem:[%s3668_s1 + $0x2c8] sm:$0xff] }
  0x2e   :  { %365 = vmatpush2.msra.mxu1 %v216_v23  ;;  %295 = vmatprep.subr.mxu0 %v118_v24  ;;  %v89_v6 = vld [vmem:[%s3668_s1 + $0x178] sm:$0xff]  ;;  %v134_v8 = vld [vmem:[%s3668_s1 + $0x2e0] sm:$0xff]  ;;  %v227_v13 = vld [vmem:[%s3668_s1 + $0x5c8] sm:$0xff] }
  0x2f   :  { %366 = vmatprep.subr.mxu1 %v214_v25  ;;  %296 = vmatpush2.msra.mxu0 %v117_v26  ;;  %v185_v7 = vld [vmem:[%s3668_s1 + $0x478] sm:$0xff]  ;;  %v230_v9 = vld [vmem:[%s3668_s1 + $0x5e0] sm:$0xff]  ;;  %v83_v14 = vld [vmem:[%s3668_s1 + $0x148] sm:$0xff] }
  0x30   :  { %367 = vmatpush2.msra.mxu1 %v213_v27  ;;  %297 = vmatprep.subr.mxu0 %v115_v28  ;;  %v86_v10 = vld [vmem:[%s3668_s1 + $0x160] sm:$0xff]  ;;  %v179_v15 = vld [vmem:[%s3668_s1 + $0x448] sm:$0xff]  ;;  %v128_v16 = vld [vmem:[%s3668_s1 + $0x2b0] sm:$0xff] }
  0x31   :  { %368 = vmatprep.subr.mxu1 %v211_v29  ;;  %298 = vmatpush2.msra.mxu0 %v114_v30  ;;  %v182_v11 = vld [vmem:[%s3668_s1 + $0x460] sm:$0xff]  ;;  %v224_v17 = vld [vmem:[%s3668_s1 + $0x5b0] sm:$0xff]  ;;  %v125_v20 = vld [vmem:[%s3668_s1 + $0x298] sm:$0xff] }
  0x32   :  { %369 = vmatpush2.msra.mxu1 %v210_v31  ;;  %299 = vmatprep.subr.mxu0 %v112_v32  ;;  %v80_v18 = vld [vmem:[%s3668_s1 + $0x130] sm:$0xff]  ;;  %v221_v21 = vld [vmem:[%s3668_s1 + $0x598] sm:$0xff]  ;;  %v122_v24 = vld [vmem:[%s3668_s1 + $0x280] sm:$0xff] }
  0x33   :  { %370 = vmatprep.subr.mxu1 %v208_v33  ;;  %300 = vmatpush2.msra.mxu0 %v111_v34  ;;  %v176_v19 = vld [vmem:[%s3668_s1 + $0x430] sm:$0xff]  ;;  %v77_v22 = vld [vmem:[%s3668_s1 + $0x118] sm:$0xff]  ;;  %v218_v25 = vld [vmem:[%s3668_s1 + $0x580] sm:$0xff] }
  0x34   :  { %371 = vmatpush2.msra.mxu1 %v207_v35  ;;  %301 = vmatprep.subr.mxu0 %v109_v36  ;;  %v173_v23 = vld [vmem:[%s3668_s1 + $0x418] sm:$0xff]  ;;  %v74_v26 = vld [vmem:[%s3668_s1 + $0x100] sm:$0xff]  ;;  %v119_v28 = vld [vmem:[%s3668_s1 + $0x268] sm:$0xff] }
  0x35   :  { %372 = vmatprep.subr.mxu1 %v205_v37  ;;  %302 = vmatpush2.msra.mxu0 %v108_v38  ;;  %v170_v27 = vld [vmem:[%s3668_s1 + $0x400] sm:$0xff]  ;;  %v215_v29 = vld [vmem:[%s3668_s1 + $0x568] sm:$0xff]  ;;  %v116_v32 = vld [vmem:[%s3668_s1 + $0x250] sm:$0xff] }
  0x36   :  { %373 = vmatpush2.msra.mxu1 %v204_v39  ;;  %303 = vmatprep.subr.mxu0 %v106_v40  ;;  %v71_v30 = vld [vmem:[%s3668_s1 + $0xe8] sm:$0xff]  ;;  %v212_v33 = vld [vmem:[%s3668_s1 + $0x550] sm:$0xff]  ;;  %v113_v36 = vld [vmem:[%s3668_s1 + $0x238] sm:$0xff] }
  0x37   :  { %374 = vmatprep.subr.mxu1 %v202_v41  ;;  %304 = vmatpush2.msra.mxu0 %v105_v42  ;;  %v167_v31 = vld [vmem:[%s3668_s1 + $0x3e8] sm:$0xff]  ;;  %v68_v34 = vld [vmem:[%s3668_s1 + $0xd0] sm:$0xff]  ;;  %v209_v37 = vld [vmem:[%s3668_s1 + $0x538] sm:$0xff] }
  0x38   :  { %375 = vmatpush2.msra.mxu1 %v201_v43  ;;  %305 = vmatprep.subr.mxu0 %v103_v44  ;;  %v164_v35 = vld [vmem:[%s3668_s1 + $0x3d0] sm:$0xff]  ;;  %v65_v38 = vld [vmem:[%s3668_s1 + $0xb8] sm:$0xff]  ;;  %v110_v40 = vld [vmem:[%s3668_s1 + $0x220] sm:$0xff] }
  0x39   :  { %376 = vmatprep.subr.mxu1 %v199_v45  ;;  %306 = vmatpush2.msra.mxu0 %v102_v46  ;;  %v161_v39 = vld [vmem:[%s3668_s1 + $0x3b8] sm:$0xff]  ;;  %v206_v41 = vld [vmem:[%s3668_s1 + $0x520] sm:$0xff] }
  0x3a   :  { %377 = vmatpush2.msra.mxu1 %v198_v47  ;;  %307 = vmatprep.subr.mxu0 %v100_v48  ;;  %v62_v42 = vld [vmem:[%s3668_s1 + $0xa0] sm:$0xff] }
  0x3b   :  { %378 = vmatprep.subr.mxu1 %v196_v49  ;;  %308 = vmatpush2.msra.mxu0 %v99_v50  ;;  %v158_v43 = vld [vmem:[%s3668_s1 + $0x3a0] sm:$0xff] }
  0x3c   :  { %379 = vmatpush2.msra.mxu1 %v195_v51  ;;  %309 = vmatprep.subr.mxu0 %v97_v52 }
  0x3d   :  { %380 = vmatprep.subr.mxu1 %v193_v53  ;;  %310 = vmatpush2.msra.mxu0 %v96_v54 }
  0x3e   :  { %381 = vmatpush2.msra.mxu1 %v192_v55  ;;  %311 = vmatprep.subr.mxu0 %v94_v56 }
  0x3f   :  { %382 = vmatprep.subr.mxu1 %v190_v57  ;;  %312 = vmatpush2.msra.mxu0 %v93_v58 }
  0x40   :  { %383 = vmatpush2.msra.mxu1 %v189_v59  ;;  %313 = vmatprep.subr.mxu0 %v91_v60 }
  0x41   :  { %384 = vmatprep.subr.mxu1 %v187_v61  ;;  %314 = vmatpush2.msra.mxu0 %v90_v62 }
  0x42   :  { %315 = vmatprep.mubr.f32.mxu0 %v2226_v63  ;;  %385 = vmatpush2.msra.mxu1 %v186_v0 }
  0x43   :  { %316 = vmatmul.mubr.f32.vlgmr.msra.gmra.mxu0 %v2234_v1  ;;  %386 = vmatprep.mubr.f32.mxu1 %v2239_v2 }
  0x44   :  { %1600 = vmatprep.subr.mxu0 %v137_v3  ;;  %1635 = vmatprep.subr.mxu1 %v233_v4 }
  0x45   :  { %387 = vmatmul.mubr.f32.vlgmr.msra.gmra.mxu1 %v2251_v5  ;;  %1601 = vmatpush3.msra.mxu0 %v89_v6 }
  0x46   :  { %1636 = vmatpush3.msra.mxu1 %v185_v7  ;;  %1602 = vmatprep.subr.mxu0 %v134_v8 }
  0x47   :  { %1637 = vmatprep.subr.mxu1 %v230_v9  ;;  %1603 = vmatpush3.msra.mxu0 %v86_v10 }
  0x48   :  { %1638 = vmatpush3.msra.mxu1 %v182_v11  ;;  %1604 = vmatprep.subr.mxu0 %v131_v12 }
  0x49   :  { %1639 = vmatprep.subr.mxu1 %v227_v13  ;;  %1605 = vmatpush3.msra.mxu0 %v83_v14 }
  0x4a   :  { %1640 = vmatpush3.msra.mxu1 %v179_v15  ;;  %1606 = vmatprep.subr.mxu0 %v128_v16 }
  0x4b   :  { %1641 = vmatprep.subr.mxu1 %v224_v17  ;;  %1607 = vmatpush3.msra.mxu0 %v80_v18 }
  0x4c   :  { %1642 = vmatpush3.msra.mxu1 %v176_v19  ;;  %1608 = vmatprep.subr.mxu0 %v125_v20 }
  0x4d   :  { %1643 = vmatprep.subr.mxu1 %v221_v21  ;;  %1609 = vmatpush3.msra.mxu0 %v77_v22 }
  0x4e   :  { %1644 = vmatpush3.msra.mxu1 %v173_v23  ;;  %1610 = vmatprep.subr.mxu0 %v122_v24 }
  0x4f   :  { %1645 = vmatprep.subr.mxu1 %v218_v25  ;;  %1611 = vmatpush3.msra.mxu0 %v74_v26 }
  0x50   :  { %1646 = vmatpush3.msra.mxu1 %v170_v27  ;;  %1612 = vmatprep.subr.mxu0 %v119_v28 }
  0x51   :  { %1647 = vmatprep.subr.mxu1 %v215_v29  ;;  %1613 = vmatpush3.msra.mxu0 %v71_v30 }
  0x52   :  { %1648 = vmatpush3.msra.mxu1 %v167_v31  ;;  %1614 = vmatprep.subr.mxu0 %v116_v32 }
  0x53   :  { %1649 = vmatprep.subr.mxu1 %v212_v33  ;;  %1615 = vmatpush3.msra.mxu0 %v68_v34 }
  0x54   :  { %1650 = vmatpush3.msra.mxu1 %v164_v35  ;;  %1616 = vmatprep.subr.mxu0 %v113_v36 }
  0x55   :  { %1651 = vmatprep.subr.mxu1 %v209_v37 }
  0x56   :  { %19 = vsyncpa [#allocation5], 0  ;;  %1617 = vmatpush3.msra.mxu0 %v65_v38  ;;  %1652 = vmatpush3.msra.mxu1 %v161_v39  ;;  %v107_v44 = vld [vmem:[%s3668_s1 + $0x208] sm:$0xff]  ;;  %v104_v48 = vld [vmem:[%s3668_s1 + $0x1f0] sm:$0xff]  ;;  %s1775_s15 = smov [#allocation2]  }
  0x57   :  { %v203_v45 = vld [vmem:[%s3668_s1 + $0x508] sm:$0xff]  ;;  %1618 = vmatprep.subr.mxu0 %v110_v40  ;;  %1653 = vmatprep.subr.mxu1 %v206_v41  ;;  %v200_v49 = vld [vmem:[%s3668_s1 + $0x4f0] sm:$0xff]  ;;  %v101_v52 = vld [vmem:[%s3668_s1 + $0x1d8] sm:$0xff]  ;;  %s1563_s16 = sshll.u32 %s1775_s15, 4  ;;  %s1564_s16 = int_to_ptr.vmem [resolvable:$true] %s1563_s16 }
  0x58   :  { %v59_v46 = vld [vmem:[%s3668_s1 + $0x88] sm:$0xff]  ;;  %1619 = vmatpush3.msra.mxu0 %v62_v42  ;;  %1654 = vmatpush3.msra.mxu1 %v158_v43  ;;  %v56_v50 = vld [vmem:[%s3668_s1 + $0x70] sm:$0xff]  ;;  %v197_v53 = vld [vmem:[%s3668_s1 + $0x4d8] sm:$0xff] }
  0x59   :  { %v155_v47 = vld [vmem:[%s3668_s1 + $0x388] sm:$0xff]  ;;  %1620 = vmatprep.subr.mxu0 %v107_v44  ;;  %1655 = vmatprep.subr.mxu1 %v203_v45  ;;  %v152_v51 = vld [vmem:[%s3668_s1 + $0x370] sm:$0xff]  ;;  %v53_v54 = vld [vmem:[%s3668_s1 + $0x58] sm:$0xff] }
  0x5a   :  { %1621 = vmatpush3.msra.mxu0 %v59_v46  ;;  %1656 = vmatpush3.msra.mxu1 %v155_v47  ;;  %v149_v55 = vld [vmem:[%s3668_s1 + $0x358] sm:$0xff]  ;;  %v98_v56 = vld [vmem:[%s3668_s1 + $0x1c0] sm:$0xff]  ;;  %v95_v60 = vld [vmem:[%s3668_s1 + $0x1a8] sm:$0xff] }
  0x5b   :  { %1622 = vmatprep.subr.mxu0 %v104_v48  ;;  %1657 = vmatprep.subr.mxu1 %v200_v49  ;;  %v194_v57 = vld [vmem:[%s3668_s1 + $0x4c0] sm:$0xff]  ;;  %v191_v61 = vld [vmem:[%s3668_s1 + $0x4a8] sm:$0xff]  ;;  %v92_v3 = vld [vmem:[%s3668_s1 + $0x190] sm:$0xff] }
  0x5c   :  { %1623 = vmatpush3.msra.mxu0 %v56_v50  ;;  %1658 = vmatpush3.msra.mxu1 %v152_v51  ;;  %v50_v58 = vld [vmem:[%s3668_s1 + $0x40] sm:$0xff]  ;;  %v47_v62 = vld [vmem:[%s3668_s1 + $0x28] sm:$0xff]  ;;  %v188_v4 = vld [vmem:[%s3668_s1 + $0x490] sm:$0xff] }
  0x5d   :  { %1624 = vmatprep.subr.mxu0 %v101_v52  ;;  %1659 = vmatprep.subr.mxu1 %v197_v53  ;;  %v146_v59 = vld [vmem:[%s3668_s1 + $0x340] sm:$0xff]  ;;  %v143_v0 = vld [vmem:[%s3668_s1 + $0x328] sm:$0xff]  ;;  %v44_v6 = vld [vmem:[%s3668_s1 + $0x10] sm:$0xff] }
  0x5e   :  { %1625 = vmatpush3.msra.mxu0 %v53_v54  ;;  %1660 = vmatpush3.msra.mxu1 %v149_v55  ;;  %v140_v7 = vld [vmem:[%s3668_s1 + $0x310] sm:$0xff]  ;;  %v567_v8 = vld [vmem:[%s3670_s3 + $0xf8] sm:$0xff]  ;;  %v565_v10 = vld [vmem:[%s3670_s3 + $0xe8] sm:$0xff]  ;;  %s1774_s1 = smov [#allocation4]  }
  0x5f   :  { %1626 = vmatprep.subr.mxu0 %v98_v56  ;;  %1661 = vmatprep.subr.mxu1 %v194_v57  ;;  %v566_v9 = vld [vmem:[%s3670_s3 + $0xf0] sm:$0xff]  ;;  %v560_v11 = vld [vmem:[%s3670_s3 + $0xc0] sm:$0xff]  ;;  %v559_v12 = vld [vmem:[%s3670_s3 + $0xb8] sm:$0xff]  ;;  %s1573_s14 = sshll.u32 %s1774_s1, 4  ;;  %s1574_s14 = int_to_ptr.vmem [resolvable:$true] %s1573_s14 }
  0x60   :  { %1627 = vmatpush3.msra.mxu0 %v50_v58  ;;  %1662 = vmatpush3.msra.mxu1 %v146_v59  ;;  %v558_v13 = vld [vmem:[%s3670_s3 + $0xb0] sm:$0xff]  ;;  %v557_v14 = vld [vmem:[%s3670_s3 + $0xa8] sm:$0xff]  ;;  %v556_v15 = vld [vmem:[%s3670_s3 + $0xa0] sm:$0xff]  ;;  %s1709_s17 = scalar_lea.vmem %s1574_s14, 256  ;;  %p1714_p1 = scmp.lt.s32.totalorder %s1574_s14, %s1574_s14 }
  0x61   :  { %1628 = vmatprep.subr.mxu0 %v95_v60  ;;  %1663 = vmatprep.subr.mxu1 %v191_v61  ;;  %v555_v16 = vld [vmem:[%s3670_s3 + $0x98] sm:$0xff]  ;;  %v554_v17 = vld [vmem:[%s3670_s3 + $0x90] sm:$0xff]  ;;  %v553_v18 = vld [vmem:[%s3670_s3 + $0x88] sm:$0xff]  ;;  %p1710_p0 = scmp.ne.s32.totalorder %s1574_s14, %s1709_s17  ;;  %p1715_p2 = scmp.lt.s32.totalorder %s1709_s17, %s1709_s17 }
  0x62   :  { %1629 = vmatpush3.msra.mxu0 %v47_v62  ;;  %1664 = vmatpush3.msra.mxu1 %v143_v0  ;;  %v552_v19 = vld [vmem:[%s3670_s3 + $0x80] sm:$0xff]  ;;  %v551_v20 = vld [vmem:[%s3670_s3 + $0x78] sm:$0xff]  ;;  %v550_v21 = vld [vmem:[%s3670_s3 + $0x70] sm:$0xff] }
  0x63   :  { %1630 = vmatprep.subr.mxu0 %v92_v3  ;;  %1665 = vmatprep.subr.mxu1 %v188_v4  ;;  %v549_v22 = vld [vmem:[%s3670_s3 + $0x68] sm:$0xff]  ;;  %v548_v23 = vld [vmem:[%s3670_s3 + $0x60] sm:$0xff]  ;;  %v547_v24 = vld [vmem:[%s3670_s3 + $0x58] sm:$0xff]  ;;  %p1716_p3 = por %p1715_p2, %p1714_p1 }
  0x64   :  { %1631 = vmatpush3.msra.mxu0 %v44_v6  ;;  %457 = vmatprep.mubr.f32.mxu0 %v2226_v63  ;;  %v564_v63 = vld [vmem:[%s3670_s3 + $0xe0] sm:$0xff]  ;;  %v546_v25 = vld [vmem:[%s3670_s3 + $0x50] sm:$0xff]  ;;  %v545_v26 = vld [vmem:[%s3670_s3 + $0x48] sm:$0xff] }
  0x65   :  { %1666 = vmatpush3.msra.mxu1 %v140_v7  ;;  %527 = vmatprep.mubr.f32.mxu1 %v2239_v2  ;;  %v563_v2 = vld [vmem:[%s3670_s3 + $0xd8] sm:$0xff]  ;;  %v544_v27 = vld [vmem:[%s3670_s3 + $0x40] sm:$0xff]  ;;  %v542_v29 = vld [vmem:[%s3670_s3 + $0x30] sm:$0xff]  ;;  %p1717_p4 = pnand %p1716_p3, %p1710_p0 }
  0x66   :  { %458 = vmatmul.mubr.f32.vlgmr.msra.gmra.mxu0 %v2234_v1  ;;  %528 = vmatmul.mubr.f32.vlgmr.msra.gmra.mxu1 %v2251_v5  ;;  %v562_v1 = vld [vmem:[%s3670_s3 + $0xd0] sm:$0xff]  ;;  %v561_v5 = vld [vmem:[%s3670_s3 + $0xc8] sm:$0xff]  ;;  %v543_v28 = vld [vmem:[%s3670_s3 + $0x38] sm:$0xff] }
  0x67   :  { %644 = vmatprep.subr.mxu0 %v567_v8  ;;  %v541_v30 = vld [vmem:[%s3670_s3 + $0x28] sm:$0xff]  ;;  %v540_v31 = vld [vmem:[%s3670_s3 + $0x20] sm:$0xff]  ;;  %v539_v32 = vld [vmem:[%s3670_s3 + $0x18] sm:$0xff] }
  0x68   :  { %645 = vmatpush1.msra.mxu0 %v566_v9  ;;  %v538_v33 = vld [vmem:[%s3670_s3 + $0x10] sm:$0xff]  ;;  %v537_v34 = vld [vmem:[%s3670_s3 + $0x8] sm:$0xff]  ;;  %v536_v35 = vld [vmem:[%s3670_s3] sm:$0xff] }
  0x69   :  { %646 = vmatprep.subr.mxu0 %v565_v10  ;;  %v599_v36 = vld [vmem:[%s3670_s3 + $0x1f8] sm:$0xff]  ;;  %v598_v37 = vld [vmem:[%s3670_s3 + $0x1f0] sm:$0xff]  ;;  %v597_v38 = vld [vmem:[%s3670_s3 + $0x1e8] sm:$0xff] }
  0x6a   :  { %647 = vmatpush1.msra.mxu0 %v564_v63  ;;  %v596_v39 = vld [vmem:[%s3670_s3 + $0x1e0] sm:$0xff]  ;;  %v595_v40 = vld [vmem:[%s3670_s3 + $0x1d8] sm:$0xff]  ;;  %v594_v41 = vld [vmem:[%s3670_s3 + $0x1d0] sm:$0xff] }
  0x6b   :  { %648 = vmatprep.subr.mxu0 %v563_v2  ;;  %v593_v42 = vld [vmem:[%s3670_s3 + $0x1c8] sm:$0xff]  ;;  %v592_v43 = vld [vmem:[%s3670_s3 + $0x1c0] sm:$0xff]  ;;  %v591_v44 = vld [vmem:[%s3670_s3 + $0x1b8] sm:$0xff] }
  0x6c   :  { %649 = vmatpush1.msra.mxu0 %v562_v1  ;;  %v590_v45 = vld [vmem:[%s3670_s3 + $0x1b0] sm:$0xff]  ;;  %v631_v46 = vld [vmem:[%s3670_s3 + $0x2f8] sm:$0xff]  ;;  %v629_v48 = vld [vmem:[%s3670_s3 + $0x2e8] sm:$0xff] }
  0x6d   :  { %650 = vmatprep.subr.mxu0 %v561_v5  ;;  %v630_v47 = vld [vmem:[%s3670_s3 + $0x2f0] sm:$0xff]  ;;  %v589_v49 = vld [vmem:[%s3670_s3 + $0x1a8] sm:$0xff]  ;;  %715 = vmatprep.subr.mxu1 %v631_v46  ;;  %v628_v50 = vld [vmem:[%s3670_s3 + $0x2e0] sm:$0xff] }
  0x6e   :  { %651 = vmatpush1.msra.mxu0 %v560_v11  ;;  %v588_v51 = vld [vmem:[%s3670_s3 + $0x1a0] sm:$0xff]  ;;  %716 = vmatpush1.msra.mxu1 %v630_v47  ;;  %v627_v52 = vld [vmem:[%s3670_s3 + $0x2d8] sm:$0xff]  ;;  %v626_v54 = vld [vmem:[%s3670_s3 + $0x2d0] sm:$0xff] }
  0x6f   :  { %652 = vmatprep.subr.mxu0 %v559_v12  ;;  %v587_v53 = vld [vmem:[%s3670_s3 + $0x198] sm:$0xff]  ;;  %717 = vmatprep.subr.mxu1 %v629_v48  ;;  %v586_v55 = vld [vmem:[%s3670_s3 + $0x190] sm:$0xff]  ;;  %v625_v56 = vld [vmem:[%s3670_s3 + $0x2c8] sm:$0xff] }
  0x70   :  { %653 = vmatpush1.msra.mxu0 %v558_v13  ;;  %718 = vmatpush1.msra.mxu1 %v628_v50  ;;  %v585_v57 = vld [vmem:[%s3670_s3 + $0x188] sm:$0xff]  ;;  %v624_v58 = vld [vmem:[%s3670_s3 + $0x2c0] sm:$0xff]  ;;  %v623_v60 = vld [vmem:[%s3670_s3 + $0x2b8] sm:$0xff] }
  0x71   :  { %654 = vmatprep.subr.mxu0 %v557_v14  ;;  %719 = vmatprep.subr.mxu1 %v627_v52  ;;  %v584_v59 = vld [vmem:[%s3670_s3 + $0x180] sm:$0xff]  ;;  %v583_v61 = vld [vmem:[%s3670_s3 + $0x178] sm:$0xff]  ;;  %v622_v62 = vld [vmem:[%s3670_s3 + $0x2b0] sm:$0xff] }
  0x72   :  { %655 = vmatpush1.msra.mxu0 %v556_v15  ;;  %720 = vmatpush1.msra.mxu1 %v626_v54  ;;  %v582_v0 = vld [vmem:[%s3670_s3 + $0x170] sm:$0xff]  ;;  %v621_v3 = vld [vmem:[%s3670_s3 + $0x2a8] sm:$0xff]  ;;  %v620_v6 = vld [vmem:[%s3670_s3 + $0x2a0] sm:$0xff] }
  0x73   :  { %656 = vmatprep.subr.mxu0 %v555_v16  ;;  %721 = vmatprep.subr.mxu1 %v625_v56  ;;  %v581_v4 = vld [vmem:[%s3670_s3 + $0x168] sm:$0xff]  ;;  %v580_v7 = vld [vmem:[%s3670_s3 + $0x160] sm:$0xff]  ;;  %v619_v8 = vld [vmem:[%s3670_s3 + $0x298] sm:$0xff] }
  0x74   :  { %657 = vmatpush1.msra.mxu0 %v554_v17  ;;  %722 = vmatpush1.msra.mxu1 %v624_v58  ;;  %v579_v9 = vld [vmem:[%s3670_s3 + $0x158] sm:$0xff]  ;;  %v618_v10 = vld [vmem:[%s3670_s3 + $0x290] sm:$0xff]  ;;  %v617_v2 = vld [vmem:[%s3670_s3 + $0x288] sm:$0xff] }
  0x75   :  { %658 = vmatprep.subr.mxu0 %v553_v18  ;;  %723 = vmatprep.subr.mxu1 %v623_v60  ;;  %v578_v63 = vld [vmem:[%s3670_s3 + $0x150] sm:$0xff]  ;;  %v577_v1 = vld [vmem:[%s3670_s3 + $0x148] sm:$0xff]  ;;  %v616_v5 = vld [vmem:[%s3670_s3 + $0x280] sm:$0xff] }
  0x76   :  { %659 = vmatpush1.msra.mxu0 %v552_v19  ;;  %724 = vmatpush1.msra.mxu1 %v622_v62  ;;  %v576_v11 = vld [vmem:[%s3670_s3 + $0x140] sm:$0xff]  ;;  %v615_v12 = vld [vmem:[%s3670_s3 + $0x278] sm:$0xff]  ;;  %v614_v14 = vld [vmem:[%s3670_s3 + $0x270] sm:$0xff] }
  0x77   :  { %660 = vmatprep.subr.mxu0 %v551_v20  ;;  %725 = vmatprep.subr.mxu1 %v621_v3  ;;  %v575_v13 = vld [vmem:[%s3670_s3 + $0x138] sm:$0xff]  ;;  %v574_v15 = vld [vmem:[%s3670_s3 + $0x130] sm:$0xff]  ;;  %v613_v16 = vld [vmem:[%s3670_s3 + $0x268] sm:$0xff] }
  0x78   :  { %661 = vmatpush1.msra.mxu0 %v550_v21  ;;  %726 = vmatpush1.msra.mxu1 %v620_v6  ;;  %v573_v17 = vld [vmem:[%s3670_s3 + $0x128] sm:$0xff]  ;;  %v612_v18 = vld [vmem:[%s3670_s3 + $0x260] sm:$0xff]  ;;  %v611_v20 = vld [vmem:[%s3670_s3 + $0x258] sm:$0xff] }
  0x79   :  { %662 = vmatprep.subr.mxu0 %v549_v22  ;;  %727 = vmatprep.subr.mxu1 %v619_v8  ;;  %v572_v19 = vld [vmem:[%s3670_s3 + $0x120] sm:$0xff]  ;;  %v571_v21 = vld [vmem:[%s3670_s3 + $0x118] sm:$0xff]  ;;  %v570_v22 = vld [vmem:[%s3670_s3 + $0x110] sm:$0xff] }
  0x7a   :  { %663 = vmatpush1.msra.mxu0 %v548_v23  ;;  %728 = vmatpush1.msra.mxu1 %v618_v10  ;;  %v569_v23 = vld [vmem:[%s3670_s3 + $0x108] sm:$0xff]  ;;  %v830_v8 = vld [vmem:[%s3672_s5 + $0x150] sm:$0xff]  ;;  %v827_v10 = vld [vmem:[%s3672_s5 + $0x138] sm:$0xff] }
  0x7b   :  { %664 = vmatprep.subr.mxu0 %v547_v24  ;;  %729 = vmatprep.subr.mxu1 %v617_v2  ;;  %v568_v24 = vld [vmem:[%s3670_s3 + $0x100] sm:$0xff]  ;;  %v833_v6 = vld [vmem:[%s3672_s5 + $0x168] sm:$0xff] }
  0x7c   :  { %665 = vmatpush1.msra.mxu0 %v546_v25  ;;  %730 = vmatpush1.msra.mxu1 %v616_v5  ;;  %v610_v25 = vld [vmem:[%s3670_s3 + $0x250] sm:$0xff]  ;;  %v824_v2 = vld [vmem:[%s3672_s5 + $0x120] sm:$0xff]  ;;  %v821_v5 = vld [vmem:[%s3672_s5 + $0x108] sm:$0xff] }
  0x7d   :  { %666 = vmatprep.subr.mxu0 %v545_v26  ;;  %731 = vmatprep.subr.mxu1 %v615_v12  ;;  %v609_v26 = vld [vmem:[%s3670_s3 + $0x248] sm:$0xff]  ;;  %v818_v12 = vld [vmem:[%s3672_s5 + $0xf0] sm:$0xff] }
  0x7e   :  { %667 = vmatpush1.msra.mxu0 %v544_v27  ;;  %732 = vmatpush1.msra.mxu1 %v614_v14  ;;  %v608_v27 = vld [vmem:[%s3670_s3 + $0x240] sm:$0xff]  ;;  %v815_v14 = vld [vmem:[%s3672_s5 + $0xd8] sm:$0xff] }
  0x7f   :  { %668 = vmatprep.subr.mxu0 %v543_v28  ;;  %733 = vmatprep.subr.mxu1 %v613_v16  ;;  %v607_v28 = vld [vmem:[%s3670_s3 + $0x238] sm:$0xff]  ;;  %v812_v16 = vld [vmem:[%s3672_s5 + $0xc0] sm:$0xff] }
  0x80   :  { %669 = vmatpush1.msra.mxu0 %v542_v29  ;;  %734 = vmatpush1.msra.mxu1 %v612_v18  ;;  %v606_v29 = vld [vmem:[%s3670_s3 + $0x230] sm:$0xff]  ;;  %v809_v18 = vld [vmem:[%s3672_s5 + $0xa8] sm:$0xff] }
  0x81   :  { %670 = vmatprep.subr.mxu0 %v541_v30  ;;  %735 = vmatprep.subr.mxu1 %v611_v20  ;;  %v605_v30 = vld [vmem:[%s3670_s3 + $0x228] sm:$0xff]  ;;  %v806_v20 = vld [vmem:[%s3672_s5 + $0x90] sm:$0xff] }
  0x82   :  { %671 = vmatpush1.msra.mxu0 %v540_v31  ;;  %736 = vmatpush1.msra.mxu1 %v610_v25  ;;  %v604_v31 = vld [vmem:[%s3670_s3 + $0x220] sm:$0xff]  ;;  %v798_v25 = vld [vmem:[%s3672_s5 + $0x50] sm:$0xff] }
  0x83   :  { %672 = vmatprep.subr.mxu0 %v539_v32  ;;  %737 = vmatprep.subr.mxu1 %v609_v26  ;;  %v603_v32 = vld [vmem:[%s3670_s3 + $0x218] sm:$0xff]  ;;  %v797_v26 = vld [vmem:[%s3672_s5 + $0x48] sm:$0xff] }
  0x84   :  { %673 = vmatpush1.msra.mxu0 %v538_v33  ;;  %738 = vmatpush1.msra.mxu1 %v608_v27  ;;  %v602_v33 = vld [vmem:[%s3670_s3 + $0x210] sm:$0xff]  ;;  %v795_v27 = vld [vmem:[%s3672_s5 + $0x38] sm:$0xff] }
  0x85   :  { %674 = vmatprep.subr.mxu0 %v537_v34  ;;  %739 = vmatprep.subr.mxu1 %v607_v28  ;;  %v601_v34 = vld [vmem:[%s3670_s3 + $0x208] sm:$0xff]  ;;  %v794_v28 = vld [vmem:[%s3672_s5 + $0x30] sm:$0xff] }
  0x86   :  { %675 = vmatpush1.msra.mxu0 %v536_v35  ;;  %740 = vmatpush1.msra.mxu1 %v606_v29  ;;  %v600_v35 = vld [vmem:[%s3670_s3 + $0x200] sm:$0xff] }
  0x87   :  { %676 = vmatprep.subr.mxu0 %v599_v36  ;;  %741 = vmatprep.subr.mxu1 %v605_v30  ;;  %v1773_v36 = vmov 0.0   ;;  %v792_v29 = vld [vmem:[%s3672_s5 + $0x20] sm:$0xff]  ;;  %v791_v30 = vld [vmem:[%s3672_s5 + $0x18] sm:$0xff] }
  0x88   :  { %677 = vmatpush2.msra.mxu0 %v598_v37  ;;  %742 = vmatpush1.msra.mxu1 %v604_v31  ;;  %v834_v37 = vld [vmem:[%s3672_s5 + $0x170] sm:$0xff]  ;;  %v883_v31 = vld [vmem:[%s3672_s5 + $0x2f8] sm:$0xff] }
  0x89   :  { %678 = vmatprep.subr.mxu0 %v597_v38  ;;  %743 = vmatprep.subr.mxu1 %v603_v32  ;;  %v236_v38 = vlaneseq  ;;  %v789_v32 = vld [vmem:[%s3672_s5 + $0x8] sm:$0xff] }
  0x8a   :  { %679 = vmatpush2.msra.mxu0 %v596_v39  ;;  %744 = vmatpush1.msra.mxu1 %v602_v33  ;;  %v835_v33 = vld [vmem:[%s3672_s5 + $0x178] sm:$0xff] }
  0x8b   :  { %680 = vmatprep.subr.mxu0 %v595_v40  ;;  %745 = vmatprep.subr.mxu1 %v601_v34  ;;  %v2738_v39 = vshrl.u32 %v236_v38, 7  ;;  %v788_v34 = vld [vmem:[%s3672_s5] sm:$0xff]  ;;  %v882_v38 = vld [vmem:[%s3672_s5 + $0x2f0] sm:$0xff] }
  0x8c   :  { %681 = vmatpush2.msra.mxu0 %v594_v41  ;;  %746 = vmatpush1.msra.mxu1 %v600_v35  ;;  %v234_v41 = vld [vmem:[%s3669_s2] sm:$0x7] }
  0x8d   :  { %682 = vmatprep.subr.mxu0 %v593_v42  ;;  %779 = vmatprep.mubr.f32.mxu1 %v1773_v36  ;;  %v2741_v40 = vsub.s32 0, %v2738_v39  ;;  %v2747_v42 = vsub.s32 1, %v2738_v39  ;;  %v880_v35 = vld [vmem:[%s3672_s5 + $0x2e0] sm:$0xff] }
  0x8e   :  { %683 = vmatpush2.msra.mxu0 %v592_v43  ;;  %901 = vmatprep.subr.mxu1 %v834_v37  ;;  %v832_v37 = vld [vmem:[%s3672_s5 + $0x160] sm:$0xff] }
  0x8f   :  { %684 = vmatprep.subr.mxu0 %v591_v44  ;;  %v239_v43 = vrot.slane %v234_v41, %v2741_v40  ;;  %v243_v44 = vrot.slane %v234_v41, %v2747_v42 }
  0x90   :  { %685 = vmatpush2.msra.mxu0 %v590_v45 }
  0x91   :  { %686 = vmatprep.subr.mxu0 %v589_v49 }
  0x92   :  { %687 = vmatpush2.msra.mxu0 %v588_v51 }
  0x93   :  { %688 = vmatprep.subr.mxu0 %v587_v53 }
  0x94   :  { %689 = vmatpush2.msra.mxu0 %v586_v55  ;;  %v2752_v55 = vsub.s32 2, %v2738_v39 }
  0x95   :  { %690 = vmatprep.subr.mxu0 %v585_v57 }
  0x96   :  { %691 = vmatpush2.msra.mxu0 %v584_v59  ;;  %v247_v58 = vrot.slane %v234_v41, %v2752_v55  ;;  %v877_v41 = vld [vmem:[%s3672_s5 + $0x2c8] sm:$0xff] }
  0x97   :  { %692 = vmatprep.subr.mxu0 %v583_v61 }
  0x98   :  { %693 = vmatpush2.msra.mxu0 %v582_v0 }
  0x99   :  { %694 = vmatprep.subr.mxu0 %v581_v4 }
  0x9a   :  { %695 = vmatpush2.msra.mxu0 %v580_v7  ;;  %v831_v7 = vld [vmem:[%s3672_s5 + $0x158] sm:$0xff] }
  0x9b   :  { %696 = vmatprep.subr.mxu0 %v579_v9  ;;  %v828_v9 = vld [vmem:[%s3672_s5 + $0x140] sm:$0xff] }
  0x9c   :  { %697 = vmatpush2.msra.mxu0 %v578_v63  ;;  %v825_v63 = vld [vmem:[%s3672_s5 + $0x128] sm:$0xff] }
  0x9d   :  { %698 = vmatprep.subr.mxu0 %v577_v1  ;;  %v822_v1 = vld [vmem:[%s3672_s5 + $0x110] sm:$0xff] }
  0x9e   :  { %699 = vmatpush2.msra.mxu0 %v576_v11  ;;  %v819_v11 = vld [vmem:[%s3672_s5 + $0xf8] sm:$0xff] }
  0x9f   :  { %700 = vmatprep.subr.mxu0 %v575_v13  ;;  %v816_v13 = vld [vmem:[%s3672_s5 + $0xe0] sm:$0xff] }
  0xa0   :  { %701 = vmatpush2.msra.mxu0 %v574_v15  ;;  %v813_v15 = vld [vmem:[%s3672_s5 + $0xc8] sm:$0xff] }
  0xa1   :  { %702 = vmatprep.subr.mxu0 %v573_v17  ;;  %v810_v17 = vld [vmem:[%s3672_s5 + $0xb0] sm:$0xff] }
  0xa2   :  { %703 = vmatpush2.msra.mxu0 %v572_v19  ;;  %v807_v19 = vld [vmem:[%s3672_s5 + $0x98] sm:$0xff] }
  0xa3   :  { %704 = vmatprep.subr.mxu0 %v571_v21  ;;  %v804_v21 = vld [vmem:[%s3672_s5 + $0x80] sm:$0xff] }
  0xa4   :  { %705 = vmatpush2.msra.mxu0 %v570_v22  ;;  %v803_v22 = vld [vmem:[%s3672_s5 + $0x78] sm:$0xff] }
  0xa5   :  { %706 = vmatprep.subr.mxu0 %v569_v23  ;;  %v801_v23 = vld [vmem:[%s3672_s5 + $0x68] sm:$0xff] }
  0xa6   :  { %707 = vmatpush2.msra.mxu0 %v568_v24  ;;  %v800_v24 = vld [vmem:[%s3672_s5 + $0x60] sm:$0xff] }
  0xa7   :  { %1670 = vmatprep.subr.mxu0 %v883_v31  ;;  %v841_v31 = vld [vmem:[%s3672_s5 + $0x1a8] sm:$0xff] }
 0x103   :  { %v317_v45 = vpop.f32.mrf.mxu0 }
 0x104   :  { %v318_v46 = vadd.f32 %v317_v45, %v239_v43  ;;  %v881_v43 = vld [vmem:[%s3672_s5 + $0x2e8] sm:$0xff]  ;;  %v874_v45 = vld [vmem:[%s3672_s5 + $0x2b0] sm:$0xff] }
 0x105   :  { %v388_v47 = vpop.f32.mrf.mxu1  ;;  %v319_v48 = vpop.f32.mrf.mxu0 }
 0x106   :  { %v389_v49 = vadd.f32 %v388_v47, %v318_v46  ;;  %v320_v50 = vadd.f32 %v319_v48, %v243_v44  ;;  %v829_v44 = vld [vmem:[%s3672_s5 + $0x148] sm:$0xff]  ;;  %v879_v46 = vld [vmem:[%s3672_s5 + $0x2d8] sm:$0xff]  ;;  %v826_v47 = vld [vmem:[%s3672_s5 + $0x130] sm:$0xff] }
 0x107   :  { %v390_v51 = vpop.f32.mrf.mxu1  ;;  %v878_v48 = vld [vmem:[%s3672_s5 + $0x2d0] sm:$0xff] }
 0x108   :  { %v533_v52 = vmax.f32 %v389_v49, 0.0  ;;  %v391_v53 = vadd.f32 %v390_v51, %v320_v50  ;;  %v871_v49 = vld [vmem:[%s3672_s5 + $0x298] sm:$0xff]  ;;  %v876_v50 = vld [vmem:[%s3672_s5 + $0x2c0] sm:$0xff] }
 0x109   :  { %v823_v51 = vld [vmem:[%s3672_s5 + $0x118] sm:$0xff] }
 0x10a   :  { %1547 = vst [vmem:[#allocation2] sm:$0xff] %v533_v52  ;;  %v534_v54 = vmax.f32 %v391_v53, 0.0  ;;  %v868_v53 = vld [vmem:[%s3672_s5 + $0x280] sm:$0xff] }
 0x10c   :  { %1548 = vst [vmem:[#allocation2 + $0x8] sm:$0xff] %v534_v54  ;;  %708 = vmatprep.mubr.f32.mxu0 %v534_v54  ;;  %v873_v54 = vld [vmem:[%s3672_s5 + $0x2a8] sm:$0xff] }
 0x10d   :  { %709 = vmatmul.mubr.f32.vlgmr.msra.gmra.mxu0 %v533_v52  ;;  %v875_v52 = vld [vmem:[%s3672_s5 + $0x2b8] sm:$0xff] }
 0x10e   :  { %1671 = vmatpush3.msra.mxu0 %v835_v33  ;;  %v793_v33 = vld [vmem:[%s3672_s5 + $0x28] sm:$0xff] }
 0x10f   :  { %1672 = vmatprep.subr.mxu0 %v880_v35  ;;  %v838_v35 = vld [vmem:[%s3672_s5 + $0x190] sm:$0xff] }
 0x110   :  { %1673 = vmatpush3.msra.mxu0 %v832_v37  ;;  %v836_v37 = vld [vmem:[%s3672_s5 + $0x180] sm:$0xff] }
 0x111   :  { %1674 = vmatprep.subr.mxu0 %v877_v41  ;;  %v1106_v41 = vld [vmem:[%s3674_s7 + $0x1e8] sm:$0xff] }
 0x112   :  { %1675 = vmatpush3.msra.mxu0 %v829_v44  ;;  %v632_v44 = vld [vmem:[%s3671_s4] sm:$0x3] }
 0x113   :  { %1676 = vmatprep.subr.mxu0 %v874_v45 }
 0x114   :  { %1677 = vmatpush3.msra.mxu0 %v826_v47  ;;  %v641_v47 = vrot.slane %v632_v44, %v2747_v42 }
 0x115   :  { %1678 = vmatprep.subr.mxu0 %v871_v49 }
 0x116   :  { %1679 = vmatpush3.msra.mxu0 %v823_v51 }
 0x117   :  { %1680 = vmatprep.subr.mxu0 %v868_v53 }
 0x126   :  { %v1632_v56 = vpop.f32.mrf.mxu0  ;;  %v1667_v57 = vpop.f32.mrf.mxu1 }
 0x128   :  { %v1633_v59 = vpop.f32.mrf.mxu0  ;;  %v1668_v60 = vpop.f32.mrf.mxu1 }
 0x129   :  { %v1634_v61 = vadd.f32 %v1633_v59, %v1632_v56  ;;  %v1669_v0 = vadd.f32 %v1668_v60, %v1667_v57  ;;  %v820_v56 = vld [vmem:[%s3672_s5 + $0x100] sm:$0xff]  ;;  %v870_v59 = vld [vmem:[%s3672_s5 + $0x290] sm:$0xff]  ;;  %v817_v60 = vld [vmem:[%s3672_s5 + $0xe8] sm:$0xff] }
 0x12a   :  { %v872_v57 = vld [vmem:[%s3672_s5 + $0x2a0] sm:$0xff]  ;;  %1681 = vmatpush3.msra.mxu0 %v820_v56 }
 0x12b   :  { %v460_v62 = vadd.f32 %v1634_v61, %v247_v58  ;;  %v865_v58 = vld [vmem:[%s3672_s5 + $0x268] sm:$0xff] }
 0x12c   :  { %v869_v61 = vld [vmem:[%s3672_s5 + $0x288] sm:$0xff]  ;;  %1682 = vmatprep.subr.mxu0 %v865_v58  ;;  %v1105_v58 = vld [vmem:[%s3674_s7 + $0x1e0] sm:$0xff] }
 0x12d   :  { %v530_v3 = vadd.f32 %v1669_v0, %v460_v62  ;;  %v862_v62 = vld [vmem:[%s3672_s5 + $0x250] sm:$0xff]  ;;  %v867_v0 = vld [vmem:[%s3672_s5 + $0x278] sm:$0xff]  ;;  %1683 = vmatpush3.msra.mxu0 %v817_v60  ;;  %v1102_v60 = vld [vmem:[%s3674_s7 + $0x1c8] sm:$0xff] }
 0x12e   :  { %1684 = vmatprep.subr.mxu0 %v862_v62  ;;  %v1101_v62 = vld [vmem:[%s3674_s7 + $0x1c0] sm:$0xff] }
 0x12f   :  { %v535_v4 = vmax.f32 %v530_v3, 0.0  ;;  %v814_v3 = vld [vmem:[%s3672_s5 + $0xd0] sm:$0xff] }
 0x130   :  { %1685 = vmatpush3.msra.mxu0 %v814_v3  ;;  %v1098_v3 = vld [vmem:[%s3674_s7 + $0x1a8] sm:$0xff] }
 0x131   :  { %1549 = vst [vmem:[#allocation2 + $0x10] sm:$0xff] %v535_v4  ;;  %780 = vmatmul.mubr.f32.vlgmr.msra.gmra.mxu1 %v535_v4  ;;  %v866_v4 = vld [vmem:[%s3672_s5 + $0x270] sm:$0xff] }
 0x132   :  { %902 = vmatpush1.msra.mxu1 %v833_v6  ;;  %v859_v6 = vld [vmem:[%s3672_s5 + $0x238] sm:$0xff] }
 0x133   :  { %903 = vmatprep.subr.mxu1 %v831_v7  ;;  %v864_v7 = vld [vmem:[%s3672_s5 + $0x260] sm:$0xff]  ;;  %1686 = vmatprep.subr.mxu0 %v859_v6 }
 0x134   :  { %904 = vmatpush1.msra.mxu1 %v830_v8  ;;  %v811_v8 = vld [vmem:[%s3672_s5 + $0xb8] sm:$0xff]  ;;  %v1097_v6 = vld [vmem:[%s3674_s7 + $0x1a0] sm:$0xff] }
 0x135   :  { %905 = vmatprep.subr.mxu1 %v828_v9  ;;  %v863_v9 = vld [vmem:[%s3672_s5 + $0x258] sm:$0xff]  ;;  %1687 = vmatpush3.msra.mxu0 %v811_v8  ;;  %v1094_v8 = vld [vmem:[%s3674_s7 + $0x188] sm:$0xff] }
 0x136   :  { %906 = vmatpush1.msra.mxu1 %v827_v10  ;;  %v856_v10 = vld [vmem:[%s3672_s5 + $0x220] sm:$0xff] }
 0x137   :  { %907 = vmatprep.subr.mxu1 %v825_v63  ;;  %v861_v63 = vld [vmem:[%s3672_s5 + $0x248] sm:$0xff]  ;;  %1688 = vmatprep.subr.mxu0 %v856_v10  ;;  %v1093_v10 = vld [vmem:[%s3674_s7 + $0x180] sm:$0xff] }
 0x138   :  { %908 = vmatpush1.msra.mxu1 %v824_v2  ;;  %v808_v2 = vld [vmem:[%s3672_s5 + $0xa0] sm:$0xff] }
 0x139   :  { %909 = vmatprep.subr.mxu1 %v822_v1  ;;  %v860_v1 = vld [vmem:[%s3672_s5 + $0x240] sm:$0xff]  ;;  %1689 = vmatpush3.msra.mxu0 %v808_v2  ;;  %v1090_v2 = vld [vmem:[%s3674_s7 + $0x168] sm:$0xff] }
 0x13a   :  { %910 = vmatpush1.msra.mxu1 %v821_v5  ;;  %v853_v5 = vld [vmem:[%s3672_s5 + $0x208] sm:$0xff] }
 0x13b   :  { %911 = vmatprep.subr.mxu1 %v819_v11  ;;  %v858_v11 = vld [vmem:[%s3672_s5 + $0x230] sm:$0xff]  ;;  %1690 = vmatprep.subr.mxu0 %v853_v5  ;;  %v1089_v5 = vld [vmem:[%s3674_s7 + $0x160] sm:$0xff] }
 0x13c   :  { %912 = vmatpush1.msra.mxu1 %v818_v12  ;;  %v805_v12 = vld [vmem:[%s3672_s5 + $0x88] sm:$0xff] }
 0x13d   :  { %913 = vmatprep.subr.mxu1 %v816_v13  ;;  %v857_v13 = vld [vmem:[%s3672_s5 + $0x228] sm:$0xff]  ;;  %1691 = vmatpush3.msra.mxu0 %v805_v12 }
 0x13e   :  { %914 = vmatpush1.msra.mxu1 %v815_v14  ;;  %v850_v14 = vld [vmem:[%s3672_s5 + $0x1f0] sm:$0xff]  ;;  %v1086_v12 = vld [vmem:[%s3674_s7 + $0x148] sm:$0xff] }
 0x13f   :  { %915 = vmatprep.subr.mxu1 %v813_v15  ;;  %v855_v15 = vld [vmem:[%s3672_s5 + $0x218] sm:$0xff]  ;;  %1692 = vmatprep.subr.mxu0 %v850_v14  ;;  %v1085_v14 = vld [vmem:[%s3674_s7 + $0x140] sm:$0xff] }
 0x140   :  { %916 = vmatpush1.msra.mxu1 %v812_v16  ;;  %v802_v16 = vld [vmem:[%s3672_s5 + $0x70] sm:$0xff] }
 0x141   :  { %917 = vmatprep.subr.mxu1 %v810_v17  ;;  %v854_v17 = vld [vmem:[%s3672_s5 + $0x210] sm:$0xff]  ;;  %1693 = vmatpush3.msra.mxu0 %v802_v16  ;;  %v1082_v16 = vld [vmem:[%s3674_s7 + $0x128] sm:$0xff] }
 0x142   :  { %918 = vmatpush1.msra.mxu1 %v809_v18  ;;  %v852_v18 = vld [vmem:[%s3672_s5 + $0x200] sm:$0xff] }
 0x143   :  { %919 = vmatprep.subr.mxu1 %v807_v19  ;;  %v851_v19 = vld [vmem:[%s3672_s5 + $0x1f8] sm:$0xff] }
 0x144   :  { %920 = vmatpush1.msra.mxu1 %v806_v20  ;;  %v849_v20 = vld [vmem:[%s3672_s5 + $0x1e8] sm:$0xff] }
 0x145   :  { %921 = vmatprep.subr.mxu1 %v804_v21  ;;  %v848_v21 = vld [vmem:[%s3672_s5 + $0x1e0] sm:$0xff] }
 0x146   :  { %922 = vmatpush1.msra.mxu1 %v803_v22  ;;  %v846_v22 = vld [vmem:[%s3672_s5 + $0x1d0] sm:$0xff] }
 0x147   :  { %923 = vmatprep.subr.mxu1 %v801_v23  ;;  %v847_v23 = vld [vmem:[%s3672_s5 + $0x1d8] sm:$0xff] }
 0x148   :  { %924 = vmatpush1.msra.mxu1 %v800_v24  ;;  %1694 = vmatprep.subr.mxu0 %v847_v23  ;;  %v845_v24 = vld [vmem:[%s3672_s5 + $0x1c8] sm:$0xff]  ;;  %v1205_v23 = vld [vmem:[%s3674_s7 + $0x500] sm:$0xff] }
 0x149   :  { %925 = vmatprep.subr.mxu1 %v798_v25  ;;  %v799_v25 = vld [vmem:[%s3672_s5 + $0x58] sm:$0xff] }
 0x14a   :  { %926 = vmatpush1.msra.mxu1 %v797_v26  ;;  %1695 = vmatpush3.msra.mxu0 %v799_v25  ;;  %v843_v26 = vld [vmem:[%s3672_s5 + $0x1b8] sm:$0xff]  ;;  %v1202_v25 = vld [vmem:[%s3674_s7 + $0x4e8] sm:$0xff] }
 0x14b   :  { %927 = vmatprep.subr.mxu1 %v795_v27  ;;  %v844_v27 = vld [vmem:[%s3672_s5 + $0x1c0] sm:$0xff] }
 0x14c   :  { %928 = vmatpush1.msra.mxu1 %v794_v28  ;;  %1696 = vmatprep.subr.mxu0 %v844_v27  ;;  %v842_v28 = vld [vmem:[%s3672_s5 + $0x1b0] sm:$0xff]  ;;  %v1201_v27 = vld [vmem:[%s3674_s7 + $0x4e0] sm:$0xff] }
 0x14d   :  { %929 = vmatprep.subr.mxu1 %v792_v29  ;;  %v796_v29 = vld [vmem:[%s3672_s5 + $0x40] sm:$0xff] }
 0x14e   :  { %930 = vmatpush1.msra.mxu1 %v791_v30  ;;  %1697 = vmatpush3.msra.mxu0 %v796_v29  ;;  %v840_v30 = vld [vmem:[%s3672_s5 + $0x1a0] sm:$0xff]  ;;  %v1198_v29 = vld [vmem:[%s3674_s7 + $0x4c8] sm:$0xff] }
 0x14f   :  { %931 = vmatprep.subr.mxu1 %v789_v32  ;;  %1698 = vmatprep.subr.mxu0 %v841_v31  ;;  %v839_v32 = vld [vmem:[%s3672_s5 + $0x198] sm:$0xff]  ;;  %v1197_v31 = vld [vmem:[%s3674_s7 + $0x4c0] sm:$0xff] }
 0x150   :  { %932 = vmatpush1.msra.mxu1 %v788_v34  ;;  %1699 = vmatpush3.msra.mxu0 %v793_v33  ;;  %v837_v34 = vld [vmem:[%s3672_s5 + $0x188] sm:$0xff] }
 0x151   :  { %933 = vmatprep.subr.mxu1 %v882_v38  ;;  %1700 = vmatprep.subr.mxu0 %v838_v35  ;;  %v790_v38 = vld [vmem:[%s3672_s5 + $0x10] sm:$0xff]  ;;  %v1194_v33 = vld [vmem:[%s3674_s7 + $0x4a8] sm:$0xff]  ;;  %v1193_v35 = vld [vmem:[%s3674_s7 + $0x4a0] sm:$0xff] }
 0x152   :  { %934 = vmatpush2.msra.mxu1 %v881_v43  ;;  %1701 = vmatpush3.msra.mxu0 %v790_v38  ;;  %v1234_v43 = vld [vmem:[%s3674_s7 + $0x5e8] sm:$0xff] }
 0x153   :  { %935 = vmatprep.subr.mxu1 %v879_v46  ;;  %1259 = vmatprep.subr.mxu0 %v1106_v41  ;;  %v637_v46 = vrot.slane %v632_v44, %v2741_v40  ;;  %v1190_v38 = vld [vmem:[%s3674_s7 + $0x488] sm:$0xff]  ;;  %v1061_v41 = vld [vmem:[%s3674_s7 + $0x80] sm:$0xff] }
 0x154   :  { %936 = vmatpush2.msra.mxu1 %v878_v48  ;;  %v1058_v44 = vld [vmem:[%s3674_s7 + $0x68] sm:$0xff] }
 0x155   :  { %937 = vmatprep.subr.mxu1 %v876_v50 }
 0x156   :  { %938 = vmatpush2.msra.mxu1 %v875_v52 }
 0x157   :  { %939 = vmatprep.subr.mxu1 %v873_v54 }
 0x158   :  { %940 = vmatpush2.msra.mxu1 %v872_v57 }
 0x159   :  { %941 = vmatprep.subr.mxu1 %v870_v59  ;;  %v1233_v59 = vld [vmem:[%s3674_s7 + $0x5e0] sm:$0xff] }
 0x15a   :  { %942 = vmatpush2.msra.mxu1 %v869_v61  ;;  %v1230_v61 = vld [vmem:[%s3674_s7 + $0x5c8] sm:$0xff] }
 0x15b   :  { %943 = vmatprep.subr.mxu1 %v867_v0  ;;  %v1229_v0 = vld [vmem:[%s3674_s7 + $0x5c0] sm:$0xff] }
 0x15c   :  { %944 = vmatpush2.msra.mxu1 %v866_v4  ;;  %v1226_v4 = vld [vmem:[%s3674_s7 + $0x5a8] sm:$0xff] }
 0x15d   :  { %945 = vmatprep.subr.mxu1 %v864_v7  ;;  %v1225_v7 = vld [vmem:[%s3674_s7 + $0x5a0] sm:$0xff] }
 0x15e   :  { %946 = vmatpush2.msra.mxu1 %v863_v9  ;;  %v1222_v9 = vld [vmem:[%s3674_s7 + $0x588] sm:$0xff] }
 0x15f   :  { %947 = vmatprep.subr.mxu1 %v861_v63  ;;  %v1221_v63 = vld [vmem:[%s3674_s7 + $0x580] sm:$0xff] }
 0x160   :  { %948 = vmatpush2.msra.mxu1 %v860_v1  ;;  %v1218_v1 = vld [vmem:[%s3674_s7 + $0x568] sm:$0xff] }
 0x161   :  { %949 = vmatprep.subr.mxu1 %v858_v11  ;;  %v1217_v11 = vld [vmem:[%s3674_s7 + $0x560] sm:$0xff] }
 0x162   :  { %950 = vmatpush2.msra.mxu1 %v857_v13  ;;  %v1214_v13 = vld [vmem:[%s3674_s7 + $0x548] sm:$0xff] }
 0x163   :  { %951 = vmatprep.subr.mxu1 %v855_v15  ;;  %v1213_v15 = vld [vmem:[%s3674_s7 + $0x540] sm:$0xff] }
 0x164   :  { %952 = vmatpush2.msra.mxu1 %v854_v17  ;;  %v1210_v17 = vld [vmem:[%s3674_s7 + $0x528] sm:$0xff] }
 0x165   :  { %953 = vmatprep.subr.mxu1 %v852_v18  ;;  %v1081_v18 = vld [vmem:[%s3674_s7 + $0x120] sm:$0xff] }
 0x166   :  { %954 = vmatpush2.msra.mxu1 %v851_v19  ;;  %v1209_v19 = vld [vmem:[%s3674_s7 + $0x520] sm:$0xff] }
 0x167   :  { %955 = vmatprep.subr.mxu1 %v849_v20  ;;  %v1078_v20 = vld [vmem:[%s3674_s7 + $0x108] sm:$0xff] }
 0x168   :  { %956 = vmatpush2.msra.mxu1 %v848_v21  ;;  %v1206_v21 = vld [vmem:[%s3674_s7 + $0x508] sm:$0xff] }
 0x169   :  { %957 = vmatprep.subr.mxu1 %v846_v22  ;;  %v1077_v22 = vld [vmem:[%s3674_s7 + $0x100] sm:$0xff] }
 0x16a   :  { %958 = vmatpush2.msra.mxu1 %v845_v24  ;;  %v1074_v24 = vld [vmem:[%s3674_s7 + $0xe8] sm:$0xff] }
 0x16b   :  { %959 = vmatprep.subr.mxu1 %v843_v26  ;;  %v1073_v26 = vld [vmem:[%s3674_s7 + $0xe0] sm:$0xff] }
 0x16c   :  { %960 = vmatpush2.msra.mxu1 %v842_v28  ;;  %v1070_v28 = vld [vmem:[%s3674_s7 + $0xc8] sm:$0xff] }
 0x16d   :  { %961 = vmatprep.subr.mxu1 %v840_v30  ;;  %v1069_v30 = vld [vmem:[%s3674_s7 + $0xc0] sm:$0xff] }
 0x16e   :  { %962 = vmatpush2.msra.mxu1 %v839_v32  ;;  %v1066_v32 = vld [vmem:[%s3674_s7 + $0xa8] sm:$0xff] }
 0x16f   :  { %963 = vmatprep.subr.mxu1 %v837_v34  ;;  %v1065_v34 = vld [vmem:[%s3674_s7 + $0xa0] sm:$0xff] }
 0x170   :  { %964 = vmatpush2.msra.mxu1 %v836_v37  ;;  %v1062_v37 = vld [vmem:[%s3674_s7 + $0x88] sm:$0xff] }
 0x171   :  { %1330 = vmatprep.subr.mxu1 %v1234_v43  ;;  %v1189_v43 = vld [vmem:[%s3674_s7 + $0x480] sm:$0xff] }
 0x1cd   :  { %v710_v45 = vpop.f32.mrf.mxu0 }
 0x1ce   :  { %v711_v49 = vadd.f32 %v710_v45, %v637_v46  ;;  %v1057_v45 = vld [vmem:[%s3674_s7 + $0x60] sm:$0xff]  ;;  %v1054_v46 = vld [vmem:[%s3674_s7 + $0x48] sm:$0xff] }
 0x1cf   :  { %v712_v48 = vpop.f32.mrf.mxu0 }
 0x1d0   :  { %v713_v51 = vadd.f32 %v712_v48, %v641_v47  ;;  %v1053_v47 = vld [vmem:[%s3674_s7 + $0x40] sm:$0xff]  ;;  %v1050_v48 = vld [vmem:[%s3674_s7 + $0x28] sm:$0xff] }
 0x1f1   :  { %v781_v50 = vpop.f32.mrf.mxu1 }
 0x1f2   :  { %v782_v52 = vadd.f32 %v781_v50, %v711_v49  ;;  %v1049_v49 = vld [vmem:[%s3674_s7 + $0x20] sm:$0xff]  ;;  %v1046_v50 = vld [vmem:[%s3674_s7 + $0x8] sm:$0xff] }
 0x1f3   :  { %v783_v53 = vpop.f32.mrf.mxu1 }
 0x1f4   :  { %v786_v54 = vmax.f32 %v782_v52, 0.0  ;;  %v784_v56 = vadd.f32 %v783_v53, %v713_v51  ;;  %v1045_v51 = vld [vmem:[%s3674_s7] sm:$0xff]  ;;  %v1170_v52 = vld [vmem:[%s3674_s7 + $0x3e8] sm:$0xff] }
 0x1f5   :  { %v1169_v53 = vld [vmem:[%s3674_s7 + $0x3e0] sm:$0xff] }
 0x1f6   :  { %1550 = vst [vmem:[#allocation4] sm:$0xff] %v786_v54  ;;  %v787_v57 = vmax.f32 %v784_v56, 0.0  ;;  %v1165_v56 = vld [vmem:[%s3674_s7 + $0x3c0] sm:$0xff] }
 0x1f8   :  { %1551 = vst [vmem:[#allocation4 + $0x8] sm:$0xff] %v787_v57  ;;  %965 = vmatprep.mubr.f32.mxu1 %v787_v57  ;;  %1036 = vmatprep.mubr.f32.mxu0 %v787_v57  ;;  %v1162_v57 = vld [vmem:[%s3674_s7 + $0x3a8] sm:$0xff] }
 0x1f9   :  { %966 = vmatmul.mubr.f32.vlgmr.msra.gmra.mxu1 %v786_v54  ;;  %1037 = vmatmul.mubr.f32.vlgmr.msra.gmra.mxu0 %v786_v54  ;;  %v1166_v54 = vld [vmem:[%s3674_s7 + $0x3c8] sm:$0xff] }
 0x1fa   :  { %1260 = vmatpush1.msra.mxu0 %v1105_v58  ;;  %1331 = vmatpush1.msra.mxu1 %v1233_v59  ;;  %v1161_v58 = vld [vmem:[%s3674_s7 + $0x3a0] sm:$0xff]  ;;  %v1158_v59 = vld [vmem:[%s3674_s7 + $0x388] sm:$0xff] }
 0x1fb   :  { %1261 = vmatprep.subr.mxu0 %v1102_v60  ;;  %1332 = vmatprep.subr.mxu1 %v1230_v61  ;;  %v1157_v60 = vld [vmem:[%s3674_s7 + $0x380] sm:$0xff]  ;;  %v1154_v61 = vld [vmem:[%s3674_s7 + $0x368] sm:$0xff] }
 0x1fc   :  { %1262 = vmatpush1.msra.mxu0 %v1101_v62  ;;  %1333 = vmatpush1.msra.mxu1 %v1229_v0  ;;  %v1153_v62 = vld [vmem:[%s3674_s7 + $0x360] sm:$0xff]  ;;  %v1150_v0 = vld [vmem:[%s3674_s7 + $0x348] sm:$0xff] }
 0x1fd   :  { %1263 = vmatprep.subr.mxu0 %v1098_v3  ;;  %1334 = vmatprep.subr.mxu1 %v1226_v4  ;;  %v1149_v3 = vld [vmem:[%s3674_s7 + $0x340] sm:$0xff]  ;;  %v1146_v4 = vld [vmem:[%s3674_s7 + $0x328] sm:$0xff] }
 0x1fe   :  { %1264 = vmatpush1.msra.mxu0 %v1097_v6  ;;  %1335 = vmatpush1.msra.mxu1 %v1225_v7  ;;  %v1145_v6 = vld [vmem:[%s3674_s7 + $0x320] sm:$0xff]  ;;  %v1142_v7 = vld [vmem:[%s3674_s7 + $0x308] sm:$0xff] }
 0x1ff   :  { %1265 = vmatprep.subr.mxu0 %v1094_v8  ;;  %1336 = vmatprep.subr.mxu1 %v1222_v9  ;;  %v1141_v8 = vld [vmem:[%s3674_s7 + $0x300] sm:$0xff]  ;;  %v1138_v9 = vld [vmem:[%s3674_s7 + $0x2e8] sm:$0xff] }
 0x200   :  { %1266 = vmatpush1.msra.mxu0 %v1093_v10  ;;  %1337 = vmatpush1.msra.mxu1 %v1221_v63  ;;  %v1137_v10 = vld [vmem:[%s3674_s7 + $0x2e0] sm:$0xff]  ;;  %v1134_v63 = vld [vmem:[%s3674_s7 + $0x2c8] sm:$0xff] }
 0x201   :  { %1267 = vmatprep.subr.mxu0 %v1090_v2  ;;  %1338 = vmatprep.subr.mxu1 %v1218_v1  ;;  %v1133_v2 = vld [vmem:[%s3674_s7 + $0x2c0] sm:$0xff]  ;;  %v1130_v1 = vld [vmem:[%s3674_s7 + $0x2a8] sm:$0xff] }
 0x202   :  { %1268 = vmatpush1.msra.mxu0 %v1089_v5  ;;  %1339 = vmatpush1.msra.mxu1 %v1217_v11  ;;  %v1129_v5 = vld [vmem:[%s3674_s7 + $0x2a0] sm:$0xff]  ;;  %v1126_v11 = vld [vmem:[%s3674_s7 + $0x288] sm:$0xff] }
 0x203   :  { %1269 = vmatprep.subr.mxu0 %v1086_v12  ;;  %1340 = vmatprep.subr.mxu1 %v1214_v13  ;;  %v1125_v12 = vld [vmem:[%s3674_s7 + $0x280] sm:$0xff]  ;;  %v1122_v13 = vld [vmem:[%s3674_s7 + $0x268] sm:$0xff] }
 0x204   :  { %1270 = vmatpush1.msra.mxu0 %v1085_v14  ;;  %1341 = vmatpush1.msra.mxu1 %v1213_v15  ;;  %v1121_v14 = vld [vmem:[%s3674_s7 + $0x260] sm:$0xff]  ;;  %v1186_v15 = vld [vmem:[%s3674_s7 + $0x468] sm:$0xff] }
 0x205   :  { %1271 = vmatprep.subr.mxu0 %v1082_v16  ;;  %1342 = vmatprep.subr.mxu1 %v1210_v17  ;;  %v1118_v16 = vld [vmem:[%s3674_s7 + $0x248] sm:$0xff]  ;;  %v1185_v17 = vld [vmem:[%s3674_s7 + $0x460] sm:$0xff] }
 0x206   :  { %1272 = vmatpush1.msra.mxu0 %v1081_v18  ;;  %1343 = vmatpush1.msra.mxu1 %v1209_v19  ;;  %v1117_v18 = vld [vmem:[%s3674_s7 + $0x240] sm:$0xff]  ;;  %v1182_v19 = vld [vmem:[%s3674_s7 + $0x448] sm:$0xff] }
 0x207   :  { %1273 = vmatprep.subr.mxu0 %v1078_v20  ;;  %1344 = vmatprep.subr.mxu1 %v1206_v21  ;;  %v1114_v20 = vld [vmem:[%s3674_s7 + $0x228] sm:$0xff]  ;;  %v1181_v21 = vld [vmem:[%s3674_s7 + $0x440] sm:$0xff] }
 0x208   :  { %1274 = vmatpush1.msra.mxu0 %v1077_v22  ;;  %1345 = vmatpush1.msra.mxu1 %v1205_v23  ;;  %v1113_v22 = vld [vmem:[%s3674_s7 + $0x220] sm:$0xff]  ;;  %v1178_v23 = vld [vmem:[%s3674_s7 + $0x428] sm:$0xff] }
 0x209   :  { %1275 = vmatprep.subr.mxu0 %v1074_v24  ;;  %1346 = vmatprep.subr.mxu1 %v1202_v25  ;;  %v1110_v24 = vld [vmem:[%s3674_s7 + $0x208] sm:$0xff]  ;;  %v1177_v25 = vld [vmem:[%s3674_s7 + $0x420] sm:$0xff] }
 0x20a   :  { %1276 = vmatpush1.msra.mxu0 %v1073_v26  ;;  %1347 = vmatpush1.msra.mxu1 %v1201_v27  ;;  %v1109_v26 = vld [vmem:[%s3674_s7 + $0x200] sm:$0xff]  ;;  %v1174_v27 = vld [vmem:[%s3674_s7 + $0x408] sm:$0xff] }
 0x20b   :  { %1277 = vmatprep.subr.mxu0 %v1070_v28  ;;  %1348 = vmatprep.subr.mxu1 %v1198_v29  ;;  %v1173_v28 = vld [vmem:[%s3674_s7 + $0x400] sm:$0xff]  ;;  %v1236_v29 = vld [vmem:[%s3674_s7 + $0x5f8] sm:$0xff] }
 0x20c   :  { %1278 = vmatpush1.msra.mxu0 %v1069_v30  ;;  %1349 = vmatpush1.msra.mxu1 %v1197_v31  ;;  %v1108_v30 = vld [vmem:[%s3674_s7 + $0x1f8] sm:$0xff]  ;;  %v884_v31 = vld [vmem:[%s3673_s6] sm:$0x7] }
 0x20d   :  { %1279 = vmatprep.subr.mxu0 %v1066_v32  ;;  %1350 = vmatprep.subr.mxu1 %v1194_v33  ;;  %v889_v32 = vrot.slane %v884_v31, %v2741_v40  ;;  %v893_v33 = vrot.slane %v884_v31, %v2747_v42 }
 0x20e   :  { %1280 = vmatpush1.msra.mxu0 %v1065_v34  ;;  %1351 = vmatpush1.msra.mxu1 %v1193_v35 }
 0x20f   :  { %1281 = vmatprep.subr.mxu0 %v1062_v37  ;;  %1352 = vmatprep.subr.mxu1 %v1190_v38  ;;  %v897_v38 = vrot.slane %v884_v31, %v2752_v55  ;;  %v1191_v31 = vld [vmem:[%s3674_s7 + $0x490] sm:$0xff] }
 0x210   :  { %1282 = vmatpush1.msra.mxu0 %v1061_v41  ;;  %1353 = vmatpush1.msra.mxu1 %v1189_v43 }
 0x211   :  { %1283 = vmatprep.subr.mxu0 %v1058_v44  ;;  %1394 = vmatprep.mubr.f32.mxu1 %v1773_v36 }
 0x212   :  { %1284 = vmatpush1.msra.mxu0 %v1057_v45  ;;  %1354 = vmatprep.subr.mxu1 %v1186_v15  ;;  %v1207_v15 = vld [vmem:[%s3674_s7 + $0x510] sm:$0xff] }
 0x213   :  { %1285 = vmatprep.subr.mxu0 %v1054_v46  ;;  %1355 = vmatpush1.msra.mxu1 %v1185_v17  ;;  %v1204_v17 = vld [vmem:[%s3674_s7 + $0x4f8] sm:$0xff] }
 0x214   :  { %1286 = vmatpush1.msra.mxu0 %v1053_v47  ;;  %1356 = vmatprep.subr.mxu1 %v1182_v19  ;;  %v1203_v19 = vld [vmem:[%s3674_s7 + $0x4f0] sm:$0xff] }
 0x215   :  { %1287 = vmatprep.subr.mxu0 %v1050_v48  ;;  %1357 = vmatpush1.msra.mxu1 %v1181_v21  ;;  %v1200_v21 = vld [vmem:[%s3674_s7 + $0x4d8] sm:$0xff] }
 0x216   :  { %1288 = vmatpush1.msra.mxu0 %v1049_v49  ;;  %1358 = vmatprep.subr.mxu1 %v1178_v23  ;;  %v1235_v49 = vld [vmem:[%s3674_s7 + $0x5f0] sm:$0xff] }
 0x217   :  { %1289 = vmatprep.subr.mxu0 %v1046_v50  ;;  %1359 = vmatpush1.msra.mxu1 %v1177_v25  ;;  %v1199_v23 = vld [vmem:[%s3674_s7 + $0x4d0] sm:$0xff]  ;;  %v1196_v25 = vld [vmem:[%s3674_s7 + $0x4b8] sm:$0xff] }
 0x218   :  { %1290 = vmatpush1.msra.mxu0 %v1045_v51  ;;  %1360 = vmatprep.subr.mxu1 %v1174_v27  ;;  %v1107_v51 = vld [vmem:[%s3674_s7 + $0x1f0] sm:$0xff] }
 0x219   :  { %1291 = vmatprep.subr.mxu0 %v1170_v52  ;;  %1361 = vmatpush1.msra.mxu1 %v1173_v28  ;;  %v1232_v52 = vld [vmem:[%s3674_s7 + $0x5d8] sm:$0xff]  ;;  %v1195_v27 = vld [vmem:[%s3674_s7 + $0x4b0] sm:$0xff] }
 0x21a   :  { %1292 = vmatpush2.msra.mxu0 %v1169_v53  ;;  %1401 = vmatprep.subr.mxu1 %v1108_v30  ;;  %v1104_v53 = vld [vmem:[%s3674_s7 + $0x1d8] sm:$0xff]  ;;  %v1067_v28 = vld [vmem:[%s3674_s7 + $0xb0] sm:$0xff] }
 0x21b   :  { %1293 = vmatprep.subr.mxu0 %v1166_v54  ;;  %v1231_v54 = vld [vmem:[%s3674_s7 + $0x5d0] sm:$0xff]  ;;  %v1064_v30 = vld [vmem:[%s3674_s7 + $0x98] sm:$0xff] }
 0x21c   :  { %1294 = vmatpush2.msra.mxu0 %v1165_v56  ;;  %v1103_v56 = vld [vmem:[%s3674_s7 + $0x1d0] sm:$0xff] }
 0x21d   :  { %1295 = vmatprep.subr.mxu0 %v1162_v57  ;;  %v1228_v57 = vld [vmem:[%s3674_s7 + $0x5b8] sm:$0xff] }
 0x21e   :  { %1296 = vmatpush2.msra.mxu0 %v1161_v58  ;;  %v1100_v58 = vld [vmem:[%s3674_s7 + $0x1b8] sm:$0xff] }
 0x21f   :  { %1297 = vmatprep.subr.mxu0 %v1158_v59  ;;  %v1227_v59 = vld [vmem:[%s3674_s7 + $0x5b0] sm:$0xff] }
 0x220   :  { %1298 = vmatpush2.msra.mxu0 %v1157_v60  ;;  %v1099_v60 = vld [vmem:[%s3674_s7 + $0x1b0] sm:$0xff] }
 0x221   :  { %1299 = vmatprep.subr.mxu0 %v1154_v61  ;;  %v1224_v61 = vld [vmem:[%s3674_s7 + $0x598] sm:$0xff] }
 0x222   :  { %1300 = vmatpush2.msra.mxu0 %v1153_v62  ;;  %v1096_v62 = vld [vmem:[%s3674_s7 + $0x198] sm:$0xff] }
 0x223   :  { %1301 = vmatprep.subr.mxu0 %v1150_v0  ;;  %v1223_v0 = vld [vmem:[%s3674_s7 + $0x590] sm:$0xff] }
 0x224   :  { %1302 = vmatpush2.msra.mxu0 %v1149_v3  ;;  %v1095_v3 = vld [vmem:[%s3674_s7 + $0x190] sm:$0xff] }
 0x225   :  { %1303 = vmatprep.subr.mxu0 %v1146_v4  ;;  %v1220_v4 = vld [vmem:[%s3674_s7 + $0x578] sm:$0xff] }
 0x226   :  { %1304 = vmatpush2.msra.mxu0 %v1145_v6  ;;  %v1092_v6 = vld [vmem:[%s3674_s7 + $0x178] sm:$0xff] }
 0x227   :  { %1305 = vmatprep.subr.mxu0 %v1142_v7  ;;  %v1219_v7 = vld [vmem:[%s3674_s7 + $0x570] sm:$0xff] }
 0x228   :  { %1306 = vmatpush2.msra.mxu0 %v1141_v8  ;;  %v1091_v8 = vld [vmem:[%s3674_s7 + $0x170] sm:$0xff] }
 0x229   :  { %1307 = vmatprep.subr.mxu0 %v1138_v9  ;;  %v1216_v9 = vld [vmem:[%s3674_s7 + $0x558] sm:$0xff] }
 0x22a   :  { %1308 = vmatpush2.msra.mxu0 %v1137_v10  ;;  %v1088_v10 = vld [vmem:[%s3674_s7 + $0x158] sm:$0xff] }
 0x22b   :  { %1309 = vmatprep.subr.mxu0 %v1134_v63  ;;  %v1215_v63 = vld [vmem:[%s3674_s7 + $0x550] sm:$0xff] }
 0x22c   :  { %1310 = vmatpush2.msra.mxu0 %v1133_v2  ;;  %v1087_v2 = vld [vmem:[%s3674_s7 + $0x150] sm:$0xff] }
 0x22d   :  { %1311 = vmatprep.subr.mxu0 %v1130_v1  ;;  %v1212_v1 = vld [vmem:[%s3674_s7 + $0x538] sm:$0xff] }
 0x22e   :  { %1312 = vmatpush2.msra.mxu0 %v1129_v5  ;;  %v1084_v5 = vld [vmem:[%s3674_s7 + $0x138] sm:$0xff] }
 0x22f   :  { %1313 = vmatprep.subr.mxu0 %v1126_v11  ;;  %v1211_v11 = vld [vmem:[%s3674_s7 + $0x530] sm:$0xff] }
 0x230   :  { %1314 = vmatpush2.msra.mxu0 %v1125_v12  ;;  %v1083_v12 = vld [vmem:[%s3674_s7 + $0x130] sm:$0xff] }
 0x231   :  { %1315 = vmatprep.subr.mxu0 %v1122_v13  ;;  %v1208_v13 = vld [vmem:[%s3674_s7 + $0x518] sm:$0xff] }
 0x232   :  { %1316 = vmatpush2.msra.mxu0 %v1121_v14  ;;  %v1080_v14 = vld [vmem:[%s3674_s7 + $0x118] sm:$0xff] }
 0x233   :  { %1317 = vmatprep.subr.mxu0 %v1118_v16  ;;  %v1079_v16 = vld [vmem:[%s3674_s7 + $0x110] sm:$0xff] }
 0x234   :  { %1318 = vmatpush2.msra.mxu0 %v1117_v18  ;;  %v1076_v18 = vld [vmem:[%s3674_s7 + $0xf8] sm:$0xff] }
 0x235   :  { %1319 = vmatprep.subr.mxu0 %v1114_v20  ;;  %v1075_v20 = vld [vmem:[%s3674_s7 + $0xf0] sm:$0xff] }
 0x236   :  { %1320 = vmatpush2.msra.mxu0 %v1113_v22  ;;  %v1072_v22 = vld [vmem:[%s3674_s7 + $0xd8] sm:$0xff] }
 0x237   :  { %1321 = vmatprep.subr.mxu0 %v1110_v24  ;;  %v1071_v24 = vld [vmem:[%s3674_s7 + $0xd0] sm:$0xff] }
 0x238   :  { %1322 = vmatpush2.msra.mxu0 %v1109_v26  ;;  %v1068_v26 = vld [vmem:[%s3674_s7 + $0xb8] sm:$0xff] }
 0x239   :  { %1472 = vmatprep.subr.mxu0 %v1236_v29  ;;  %v1192_v29 = vld [vmem:[%s3674_s7 + $0x498] sm:$0xff] }
 0x2b9   :  { %v967_v34 = vpop.f32.mrf.mxu1  ;;  %v1702_v35 = vpop.f32.mrf.mxu0 }
 0x2ba   :  { %v968_v37 = vadd.f32 %v967_v34, %v889_v32  ;;  %v1063_v32 = vld [vmem:[%s3674_s7 + $0x90] sm:$0xff]  ;;  %v1060_v34 = vld [vmem:[%s3674_s7 + $0x78] sm:$0xff] }
 0x2bb   :  { %v969_v41 = vpop.f32.mrf.mxu1  ;;  %v1703_v43 = vpop.f32.mrf.mxu0 }
 0x2bc   :  { %v3346_v44 = vmax.f32 %v968_v37, 0.0  ;;  %v970_v45 = vadd.f32 %v969_v41, %v893_v33  ;;  %v1704_v46 = vadd.f32 %v1703_v43, %v1702_v35  ;;  %v1188_v33 = vld [vmem:[%s3674_s7 + $0x478] sm:$0xff]  ;;  %v1187_v35 = vld [vmem:[%s3674_s7 + $0x470] sm:$0xff] }
 0x2bd   :  { %v1059_v37 = vld [vmem:[%s3674_s7 + $0x70] sm:$0xff]  ;;  %v1056_v41 = vld [vmem:[%s3674_s7 + $0x58] sm:$0xff] }
 0x2be   :  { %1552 = vst [vmem:[#allocation6] sm:$0xff] %v3346_v44  ;;  %v1043_v47 = vmax.f32 %v970_v45, 0.0  ;;  %v1039_v48 = vadd.f32 %v1704_v46, %v897_v38  ;;  %v1184_v38 = vld [vmem:[%s3674_s7 + $0x458] sm:$0xff]  ;;  %v1183_v43 = vld [vmem:[%s3674_s7 + $0x450] sm:$0xff] }
 0x2bf   :  { %v1055_v45 = vld [vmem:[%s3674_s7 + $0x50] sm:$0xff]  ;;  %v1180_v46 = vld [vmem:[%s3674_s7 + $0x438] sm:$0xff] }
 0x2c0   :  { %1553 = vst [vmem:[#allocation6 + $0x8] sm:$0xff] %v1043_v47  ;;  %v3352_v50 = vmax.f32 %v1039_v48, 0.0  ;;  %1323 = vmatprep.mubr.f32.mxu0 %v1043_v47  ;;  %v1179_v48 = vld [vmem:[%s3674_s7 + $0x430] sm:$0xff] }
 0x2c1   :  { %1324 = vmatmul.mubr.f32.vlgmr.msra.gmra.mxu0 %v3346_v44 }
 0x2c2   :  { %1554 = vst [vmem:[#allocation6 + $0x10] sm:$0xff] %v3352_v50  ;;  %1473 = vmatpush1.msra.mxu0 %v1235_v49  ;;  %1395 = vmatmul.mubr.f32.vlgmr.msra.gmra.mxu1 %v3352_v50  ;;  %v1051_v49 = vld [vmem:[%s3674_s7 + $0x30] sm:$0xff] }
 0x2c3   :  { %1402 = vmatpush1.msra.mxu1 %v1107_v51  ;;  %1474 = vmatprep.subr.mxu0 %v1232_v52  ;;  %v1176_v51 = vld [vmem:[%s3674_s7 + $0x418] sm:$0xff] }
 0x2c4   :  { %1403 = vmatprep.subr.mxu1 %v1104_v53  ;;  %1465 = vmatprep.mubr.f32.mxu1 %v1043_v47  ;;  %v1052_v47 = vld [vmem:[%s3674_s7 + $0x38] sm:$0xff]  ;;  %v1175_v53 = vld [vmem:[%s3674_s7 + $0x410] sm:$0xff] }
 0x2c5   :  { %1475 = vmatpush1.msra.mxu0 %v1231_v54  ;;  %1404 = vmatpush1.msra.mxu1 %v1103_v56  ;;  %v1048_v52 = vld [vmem:[%s3674_s7 + $0x18] sm:$0xff]  ;;  %v1047_v54 = vld [vmem:[%s3674_s7 + $0x10] sm:$0xff] }
 0x2c6   :  { %1476 = vmatprep.subr.mxu0 %v1228_v57  ;;  %1405 = vmatprep.subr.mxu1 %v1100_v58  ;;  %v1172_v56 = vld [vmem:[%s3674_s7 + $0x3f8] sm:$0xff]  ;;  %v1171_v57 = vld [vmem:[%s3674_s7 + $0x3f0] sm:$0xff] }
 0x2c7   :  { %1477 = vmatpush1.msra.mxu0 %v1227_v59  ;;  %1406 = vmatpush1.msra.mxu1 %v1099_v60  ;;  %v1168_v58 = vld [vmem:[%s3674_s7 + $0x3d8] sm:$0xff]  ;;  %v1167_v59 = vld [vmem:[%s3674_s7 + $0x3d0] sm:$0xff] }
 0x2c8   :  { %1478 = vmatprep.subr.mxu0 %v1224_v61  ;;  %1407 = vmatprep.subr.mxu1 %v1096_v62  ;;  %v1163_v60 = vld [vmem:[%s3674_s7 + $0x3b0] sm:$0xff]  ;;  %v1156_v62 = vld [vmem:[%s3674_s7 + $0x378] sm:$0xff] }
 0x2c9   :  { %1479 = vmatpush1.msra.mxu0 %v1223_v0  ;;  %1408 = vmatpush1.msra.mxu1 %v1095_v3  ;;  %v1159_v61 = vld [vmem:[%s3674_s7 + $0x390] sm:$0xff]  ;;  %v1152_v3 = vld [vmem:[%s3674_s7 + $0x358] sm:$0xff] }
 0x2ca   :  { %1480 = vmatprep.subr.mxu0 %v1220_v4  ;;  %1409 = vmatprep.subr.mxu1 %v1092_v6  ;;  %v1155_v0 = vld [vmem:[%s3674_s7 + $0x370] sm:$0xff]  ;;  %v1148_v6 = vld [vmem:[%s3674_s7 + $0x338] sm:$0xff] }
 0x2cb   :  { %1481 = vmatpush1.msra.mxu0 %v1219_v7  ;;  %1410 = vmatpush1.msra.mxu1 %v1091_v8  ;;  %v1151_v4 = vld [vmem:[%s3674_s7 + $0x350] sm:$0xff]  ;;  %v1144_v8 = vld [vmem:[%s3674_s7 + $0x318] sm:$0xff] }
 0x2cc   :  { %1482 = vmatprep.subr.mxu0 %v1216_v9  ;;  %1411 = vmatprep.subr.mxu1 %v1088_v10  ;;  %v1147_v7 = vld [vmem:[%s3674_s7 + $0x330] sm:$0xff]  ;;  %v1140_v10 = vld [vmem:[%s3674_s7 + $0x2f8] sm:$0xff] }
 0x2cd   :  { %1483 = vmatpush1.msra.mxu0 %v1215_v63  ;;  %1412 = vmatpush1.msra.mxu1 %v1087_v2  ;;  %v1143_v9 = vld [vmem:[%s3674_s7 + $0x310] sm:$0xff]  ;;  %v1136_v2 = vld [vmem:[%s3674_s7 + $0x2d8] sm:$0xff] }
 0x2ce   :  { %1484 = vmatprep.subr.mxu0 %v1212_v1  ;;  %1413 = vmatprep.subr.mxu1 %v1084_v5  ;;  %v1139_v63 = vld [vmem:[%s3674_s7 + $0x2f0] sm:$0xff]  ;;  %v1132_v5 = vld [vmem:[%s3674_s7 + $0x2b8] sm:$0xff] }
 0x2cf   :  { %1485 = vmatpush1.msra.mxu0 %v1211_v11  ;;  %1414 = vmatpush1.msra.mxu1 %v1083_v12  ;;  %v1135_v1 = vld [vmem:[%s3674_s7 + $0x2d0] sm:$0xff]  ;;  %v1128_v12 = vld [vmem:[%s3674_s7 + $0x298] sm:$0xff] }
 0x2d0   :  { %1486 = vmatprep.subr.mxu0 %v1208_v13  ;;  %1415 = vmatprep.subr.mxu1 %v1080_v14  ;;  %v1131_v11 = vld [vmem:[%s3674_s7 + $0x2b0] sm:$0xff]  ;;  %v1124_v14 = vld [vmem:[%s3674_s7 + $0x278] sm:$0xff] }
 0x2d1   :  { %1487 = vmatpush1.msra.mxu0 %v1207_v15  ;;  %1416 = vmatpush1.msra.mxu1 %v1079_v16  ;;  %v1127_v13 = vld [vmem:[%s3674_s7 + $0x290] sm:$0xff]  ;;  %v1120_v16 = vld [vmem:[%s3674_s7 + $0x258] sm:$0xff] }
 0x2d2   :  { %1488 = vmatprep.subr.mxu0 %v1204_v17  ;;  %1417 = vmatprep.subr.mxu1 %v1076_v18  ;;  %v1123_v15 = vld [vmem:[%s3674_s7 + $0x270] sm:$0xff]  ;;  %v1116_v18 = vld [vmem:[%s3674_s7 + $0x238] sm:$0xff] }
 0x2d3   :  { %1489 = vmatpush1.msra.mxu0 %v1203_v19  ;;  %1418 = vmatpush1.msra.mxu1 %v1075_v20  ;;  %v1119_v17 = vld [vmem:[%s3674_s7 + $0x250] sm:$0xff]  ;;  %v1112_v20 = vld [vmem:[%s3674_s7 + $0x218] sm:$0xff] }
 0x2d4   :  { %1490 = vmatprep.subr.mxu0 %v1200_v21  ;;  %1419 = vmatprep.subr.mxu1 %v1072_v22  ;;  %v1115_v19 = vld [vmem:[%s3674_s7 + $0x230] sm:$0xff] }
 0x2d5   :  { %1491 = vmatpush1.msra.mxu0 %v1199_v23  ;;  %1420 = vmatpush1.msra.mxu1 %v1071_v24  ;;  %v1111_v21 = vld [vmem:[%s3674_s7 + $0x210] sm:$0xff] }
 0x2d6   :  { %1492 = vmatprep.subr.mxu0 %v1196_v25  ;;  %1421 = vmatprep.subr.mxu1 %v1068_v26 }
 0x2d7   :  { %1493 = vmatpush1.msra.mxu0 %v1195_v27  ;;  %1422 = vmatpush1.msra.mxu1 %v1067_v28 }
 0x2d8   :  { %1494 = vmatprep.subr.mxu0 %v1192_v29  ;;  %1423 = vmatprep.subr.mxu1 %v1064_v30 }
 0x2d9   :  { %1495 = vmatpush1.msra.mxu0 %v1191_v31  ;;  %1424 = vmatpush1.msra.mxu1 %v1063_v32 }
 0x2da   :  { %1496 = vmatprep.subr.mxu0 %v1188_v33  ;;  %1425 = vmatprep.subr.mxu1 %v1060_v34 }
 0x2db   :  { %1497 = vmatpush1.msra.mxu0 %v1187_v35  ;;  %1426 = vmatpush1.msra.mxu1 %v1059_v37 }
 0x2dc   :  { %1498 = vmatprep.subr.mxu0 %v1184_v38  ;;  %1427 = vmatprep.subr.mxu1 %v1056_v41 }
 0x2dd   :  { %1499 = vmatpush1.msra.mxu0 %v1183_v43  ;;  %1428 = vmatpush1.msra.mxu1 %v1055_v45 }
 0x2de   :  { %1500 = vmatprep.subr.mxu0 %v1180_v46  ;;  %1429 = vmatprep.subr.mxu1 %v1052_v47 }
 0x2df   :  { %1501 = vmatpush1.msra.mxu0 %v1179_v48  ;;  %1430 = vmatpush1.msra.mxu1 %v1051_v49 }
 0x2e0   :  { %1502 = vmatprep.subr.mxu0 %v1176_v51  ;;  %1431 = vmatprep.subr.mxu1 %v1048_v52 }
 0x2e1   :  { %1503 = vmatpush1.msra.mxu0 %v1175_v53  ;;  %1536 = vmatprep.mubr.f32.mxu0 %v1773_v36  ;;  %v1164_v36 = vld [vmem:[%s3674_s7 + $0x3b8] sm:$0xff] }
 0x2e2   :  { %1432 = vmatpush1.msra.mxu1 %v1047_v54  ;;  %1537 = vmatmul.mubr.f32.vlgmr.msra.gmra.mxu0 %v3352_v50  ;;  %v1160_v50 = vld [vmem:[%s3674_s7 + $0x398] sm:$0xff] }
 0x2e3   :  { %1433 = vmatprep.subr.mxu1 %v1172_v56 }
 0x2e4   :  { %1434 = vmatpush2.msra.mxu1 %v1171_v57 }
 0x2e5   :  { %1435 = vmatprep.subr.mxu1 %v1168_v58 }
 0x2e6   :  { %1436 = vmatpush2.msra.mxu1 %v1167_v59 }
 0x2e7   :  { %1437 = vmatprep.subr.mxu1 %v1164_v36 }
 0x2e8   :  { %1438 = vmatpush2.msra.mxu1 %v1163_v60 }
 0x2e9   :  { %1439 = vmatprep.subr.mxu1 %v1160_v50 }
 0x2ea   :  { %1440 = vmatpush2.msra.mxu1 %v1159_v61 }
 0x2eb   :  { %1441 = vmatprep.subr.mxu1 %v1156_v62 }
 0x2ec   :  { %1442 = vmatpush2.msra.mxu1 %v1155_v0 }
 0x2ed   :  { %1443 = vmatprep.subr.mxu1 %v1152_v3 }
 0x2ee   :  { %1444 = vmatpush2.msra.mxu1 %v1151_v4 }
 0x2ef   :  { %1445 = vmatprep.subr.mxu1 %v1148_v6 }
 0x2f0   :  { %1446 = vmatpush2.msra.mxu1 %v1147_v7 }
 0x2f1   :  { %1447 = vmatprep.subr.mxu1 %v1144_v8 }
 0x2f2   :  { %1448 = vmatpush2.msra.mxu1 %v1143_v9 }
 0x2f3   :  { %1449 = vmatprep.subr.mxu1 %v1140_v10 }
 0x2f4   :  { %1450 = vmatpush2.msra.mxu1 %v1139_v63 }
 0x2f5   :  { %1451 = vmatprep.subr.mxu1 %v1136_v2 }
 0x2f6   :  { %1452 = vmatpush2.msra.mxu1 %v1135_v1 }
 0x2f7   :  { %1453 = vmatprep.subr.mxu1 %v1132_v5 }
 0x2f8   :  { %1454 = vmatpush2.msra.mxu1 %v1131_v11 }
 0x2f9   :  { %1455 = vmatprep.subr.mxu1 %v1128_v12 }
 0x2fa   :  { %1456 = vmatpush2.msra.mxu1 %v1127_v13 }
 0x2fb   :  { %1457 = vmatprep.subr.mxu1 %v1124_v14 }
 0x2fc   :  { %1458 = vmatpush2.msra.mxu1 %v1123_v15 }
 0x2fd   :  { %1459 = vmatprep.subr.mxu1 %v1120_v16 }
 0x2fe   :  { %1460 = vmatpush2.msra.mxu1 %v1119_v17 }
 0x2ff   :  { %1461 = vmatprep.subr.mxu1 %v1116_v18 }
 0x300   :  { %1462 = vmatpush2.msra.mxu1 %v1115_v19 }
 0x301   :  { %1463 = vmatprep.subr.mxu1 %v1112_v20 }
 0x302   :  { %1464 = vmatpush2.msra.mxu1 %v1111_v21 }
 0x303   :  { %1466 = vmatmul.mubr.f32.vlgmr.msra.gmra.mxu1 %v3346_v44 }
 0x304   :  { %1720 = shalt.err (!%p1717_p4)
}
 0x305   :  { %1576 = dma.vmem_to_hbm [thread:$0]  %s1574_s14, 256, %s3678_s11, [#allocation5]  }
 0x306   :  { %s1729_s7 = scalar_lea.vmem %s1564_s16, 384  ;;  %p1734_p6 = scmp.lt.s32.totalorder %s1564_s16, %s1564_s16 }
 0x307   :  { %p1730_p5 = scmp.ne.s32.totalorder %s1564_s16, %s1729_s7  ;;  %p1735_p7 = scmp.lt.s32.totalorder %s1729_s7, %s1729_s7 }
 0x309   :  { %p1736_p8 = por %p1735_p7, %p1734_p6 }
 0x30b   :  { %p1737_p9 = pnand %p1736_p8, %p1730_p5 }
 0x30d   :  { %1740 = shalt.err (!%p1737_p9)
}
 0x30e   :  { %1566 = dma.vmem_to_hbm [thread:$0]  %s1564_s16, 384, %s3677_s10, [#allocation3]  }
 0x30f   :  { %s1776_s22 = smov [#allocation6]  }
 0x310   :  { %s1583_s5 = sshll.u32 %s1776_s22, 4  ;;  %s1584_s5 = int_to_ptr.vmem [resolvable:$true] %s1583_s5 }
 0x311   :  { %s1749_s23 = scalar_lea.vmem %s1584_s5, 384  ;;  %p1754_p11 = scmp.lt.s32.totalorder %s1584_s5, %s1584_s5 }
 0x312   :  { %p1750_p10 = scmp.ne.s32.totalorder %s1584_s5, %s1749_s23  ;;  %p1755_p12 = scmp.lt.s32.totalorder %s1749_s23, %s1749_s23 }
 0x314   :  { %p1756_p13 = por %p1755_p12, %p1754_p11 }
 0x316   :  { %p1757_p0 = pnand %p1756_p13, %p1750_p10 }
 0x318   :  { %1760 = shalt.err (!%p1757_p0)
}
 0x319   :  { %1586 = dma.vmem_to_hbm [thread:$0]  %s1584_s5, 384, %s3679_s12, [#allocation5]   ;;  %v1237_v44 = vld [vmem:[%s3675_s8] sm:$0xf] }
 0x31a   :  { %v1242_v22 = vrot.slane %v1237_v44, %v2741_v40  ;;  %v1246_v23 = vrot.slane %v1237_v44, %v2747_v42  ;;  %v1253_v40 = vsub.s32 3, %v2738_v39  ;;  %v1250_v42 = vrot.slane %v1237_v44, %v2752_v55 }
 0x31c   :  { %v1254_v32 = vrot.slane %v1237_v44, %v1253_v40 }
 0x381   :  { %v1325_v24 = vpop.f32.mrf.mxu0 }
 0x382   :  { %v1326_v25 = vadd.f32 %v1325_v24, %v1242_v22  ;;  %v1396_v26 = vpop.f32.mrf.mxu1 }
 0x383   :  { %v1327_v27 = vpop.f32.mrf.mxu0 }
 0x384   :  { %v1397_v28 = vadd.f32 %v1396_v26, %v1326_v25  ;;  %v1328_v29 = vadd.f32 %v1327_v27, %v1246_v23  ;;  %v1398_v30 = vpop.f32.mrf.mxu1 }
 0x386   :  { %1543 = vst [vmem:[%s3676_s9] sm:$0xff] %v1397_v28  ;;  %v1399_v31 = vadd.f32 %v1398_v30, %v1328_v29 }
 0x388   :  { %1544 = vst [vmem:[%s3676_s9 + $0x8] sm:$0xff] %v1399_v31 }
 0x3a2   :  { %v1538_v33 = vpop.f32.mrf.mxu0 }
 0x3a4   :  { %v1540_v43 = vpop.f32.mrf.mxu0 }
 0x3c3   :  { %v1467_v34 = vpop.f32.mrf.mxu1 }
 0x3c4   :  { %v1468_v35 = vadd.f32 %v1467_v34, %v1250_v42 }
 0x3c5   :  { %v1469_v37 = vpop.f32.mrf.mxu1 }
 0x3c6   :  { %v1539_v38 = vadd.f32 %v1538_v33, %v1468_v35  ;;  %v1470_v41 = vadd.f32 %v1469_v37, %v1254_v32 }
 0x3c8   :  { %1545 = vst [vmem:[%s3676_s9 + $0x10] sm:$0xff] %v1539_v38  ;;  %v1541_v45 = vadd.f32 %v1540_v43, %v1470_v41 }
 0x3ca   :  { %1546 = vst [vmem:[%s3676_s9 + $0x18] sm:$0xff] %v1541_v45 }
 0x3cb   :  { %1769 = dma.done.wait [#allocation3], 384  }
 0x3cc   :  { %1770 = vsyncadd [#allocation3], 4294966912 }
 0x3cd   :  { %1771 = dma.done.wait [#allocation5], 640  }
 0x3ce   :  { %1772 = vsyncadd [#allocation5], 4294966656 }
 0x3cf   :  { %1598 = vsyncpa [#allocation3], 1 }
 0x3d0   :  { %1599 = vsyncpa [#allocation5], 1 }

// kernel: clc_dyn_forward.26
= control target key start
LH: loop header
LB: loop body
LE: loop exit
PB: predicated region body
PF: predicated region fallthrough
CT: control target
= control target key end

     0   :  { %s76_s0 = inlined_call_operand.vmem [shape: f32[8,128], index: 0, kind: input, shape index: {}]   ;;  %s77_s1 = inlined_call_operand.vmem [shape: f32[8,128], index: 1, kind: input, shape index: {}]   ;;  %s78_s2 = inlined_call_operand.vmem [shape: f32[8,128], index: 2, kind: input, shape index: {}]   ;;  %s79_s4 = inlined_call_operand.vmem [shape: f32[8,128], index: 4, kind: output, shape index: {1}]   ;;  %s80_s3 = inlined_call_operand.vmem [shape: f32[8,128], index: 3, kind: output, shape index: {0}]  }
   0x1   :  { %v16_v0 = vld [vmem:[%s77_s1] sm:$0xff] }
   0x2   :  { %v17_v1 = vld [vmem:[%s76_s0] sm:$0xff] }
   0x3   :  { %v20_v2 = vld [vmem:[%s78_s2] sm:$0xff]  ;;  %v18_v3 = vmul.f32 0.01, %v17_v1 }
   0x4   :  { %v21_v4 = vmul.f32 0.9, %v20_v2 }
   0x5   :  { %v19_v5 = vadd.f32 %v18_v3, %v16_v0 }
   0x7   :  { %v22_v6 = vadd.f32 %v21_v4, %v19_v5 }
   0x9   :  { %23 = vst [vmem:[%s79_s4] sm:$0xff] %v22_v6  ;;  %v25_v7 = vmul.f32 0.015, %v22_v6 }
   0xb   :  { %v26_v8 = vsub.f32 %v17_v1, %v25_v7 }
   0xd   :  { %27 = vst [vmem:[%s80_s3] sm:$0xff] %v26_v8 }

// kernel: jvp__.16
= control target key start
LH: loop header
LB: loop body
LE: loop exit
PB: predicated region body
PF: predicated region fallthrough
CT: control target
= control target key end

     0   :  { %s3581_s1 = inlined_call_operand.vmem [shape: f32[512,384], index: 1, kind: input, shape index: {}]   ;;  %s3582_s0 = inlined_call_operand.vmem [shape: f32[8,512], index: 0, kind: input, shape index: {}]   ;;  %s3583_s3 = inlined_call_operand.vmem [shape: f32[384,256], index: 3, kind: input, shape index: {}]   ;;  %s3584_s5 = inlined_call_operand.vmem [shape: f32[256,384], index: 5, kind: input, shape index: {}]   ;;  %s3585_s2 = inlined_call_operand.vmem [shape: f32[1,384], index: 2, kind: input, shape index: {}]   ;;  %s3586_s10 = inlined_call_operand.vmem [shape: f32[8,384], index: 10, kind: output, shape index: {1}]   ;;  %s3587_s7 = inlined_call_operand.vmem [shape: f32[384,512], index: 7, kind: input, shape index: {}]   ;;  %s3588_s4 = inlined_call_operand.vmem [shape: f32[1,256], index: 4, kind: input, shape index: {}]   ;;  %s3589_s11 = inlined_call_operand.vmem [shape: f32[8,256], index: 11, kind: output, shape index: {2}]   ;;  %s3590_s6 = inlined_call_operand.vmem [shape: f32[1,384], index: 6, kind: input, shape index: {}]   ;;  %s3591_s12 = inlined_call_operand.vmem [shape: f32[8,384], index: 12, kind: output, shape index: {3}]   ;;  %s3592_s8 = inlined_call_operand.vmem [shape: f32[1,512], index: 8, kind: input, shape index: {}]   ;;  %s3593_s9 = inlined_call_operand.vmem [shape: f32[8,512], index: 9, kind: output, shape index: {0}]  }
   0x1   :  { %v86_v0 = vld [vmem:[%s3581_s1 + $0x170] sm:$0xff]  ;;  %v85_v2 = vld [vmem:[%s3581_s1 + $0x168] sm:$0xff]  ;;  %v83_v4 = vld [vmem:[%s3581_s1 + $0x158] sm:$0xff] }
   0x2   :  { %v182_v1 = vld [vmem:[%s3581_s1 + $0x470] sm:$0xff]  ;;  %249 = vmatprep.subr.mxu0 %v86_v0  ;;  %v181_v3 = vld [vmem:[%s3581_s1 + $0x468] sm:$0xff]  ;;  %v179_v5 = vld [vmem:[%s3581_s1 + $0x458] sm:$0xff] }
   0x3   :  { %320 = vmatprep.subr.mxu1 %v182_v1  ;;  %250 = vmatpush1.msra.mxu0 %v85_v2  ;;  %v82_v6 = vld [vmem:[%s3581_s1 + $0x150] sm:$0xff]  ;;  %v80_v8 = vld [vmem:[%s3581_s1 + $0x140] sm:$0xff]  ;;  %v79_v10 = vld [vmem:[%s3581_s1 + $0x138] sm:$0xff] }
   0x4   :  { %321 = vmatpush1.msra.mxu1 %v181_v3  ;;  %v178_v7 = vld [vmem:[%s3581_s1 + $0x450] sm:$0xff]  ;;  %251 = vmatprep.subr.mxu0 %v83_v4  ;;  %v176_v9 = vld [vmem:[%s3581_s1 + $0x440] sm:$0xff]  ;;  %v175_v11 = vld [vmem:[%s3581_s1 + $0x438] sm:$0xff] }
   0x5   :  { %322 = vmatprep.subr.mxu1 %v179_v5  ;;  %252 = vmatpush1.msra.mxu0 %v82_v6  ;;  %v77_v12 = vld [vmem:[%s3581_s1 + $0x128] sm:$0xff]  ;;  %v76_v14 = vld [vmem:[%s3581_s1 + $0x120] sm:$0xff]  ;;  %v74_v16 = vld [vmem:[%s3581_s1 + $0x110] sm:$0xff] }
   0x6   :  { %323 = vmatpush1.msra.mxu1 %v178_v7  ;;  %v173_v13 = vld [vmem:[%s3581_s1 + $0x428] sm:$0xff]  ;;  %253 = vmatprep.subr.mxu0 %v80_v8  ;;  %v172_v15 = vld [vmem:[%s3581_s1 + $0x420] sm:$0xff]  ;;  %v170_v17 = vld [vmem:[%s3581_s1 + $0x410] sm:$0xff] }
   0x7   :  { %324 = vmatprep.subr.mxu1 %v176_v9  ;;  %254 = vmatpush1.msra.mxu0 %v79_v10  ;;  %v73_v18 = vld [vmem:[%s3581_s1 + $0x108] sm:$0xff]  ;;  %v71_v20 = vld [vmem:[%s3581_s1 + $0xf8] sm:$0xff]  ;;  %v70_v22 = vld [vmem:[%s3581_s1 + $0xf0] sm:$0xff] }
   0x8   :  { %325 = vmatpush1.msra.mxu1 %v175_v11  ;;  %255 = vmatprep.subr.mxu0 %v77_v12  ;;  %v169_v19 = vld [vmem:[%s3581_s1 + $0x408] sm:$0xff]  ;;  %v167_v21 = vld [vmem:[%s3581_s1 + $0x3f8] sm:$0xff]  ;;  %v166_v23 = vld [vmem:[%s3581_s1 + $0x3f0] sm:$0xff] }
   0x9   :  { %326 = vmatprep.subr.mxu1 %v173_v13  ;;  %256 = vmatpush1.msra.mxu0 %v76_v14  ;;  %v68_v24 = vld [vmem:[%s3581_s1 + $0xe0] sm:$0xff]  ;;  %v67_v26 = vld [vmem:[%s3581_s1 + $0xd8] sm:$0xff]  ;;  %v65_v28 = vld [vmem:[%s3581_s1 + $0xc8] sm:$0xff] }
   0xa   :  { %327 = vmatpush1.msra.mxu1 %v172_v15  ;;  %257 = vmatprep.subr.mxu0 %v74_v16  ;;  %v164_v25 = vld [vmem:[%s3581_s1 + $0x3e0] sm:$0xff]  ;;  %v163_v27 = vld [vmem:[%s3581_s1 + $0x3d8] sm:$0xff]  ;;  %v161_v29 = vld [vmem:[%s3581_s1 + $0x3c8] sm:$0xff] }
   0xb   :  { %328 = vmatprep.subr.mxu1 %v170_v17  ;;  %258 = vmatpush1.msra.mxu0 %v73_v18  ;;  %v64_v30 = vld [vmem:[%s3581_s1 + $0xc0] sm:$0xff]  ;;  %v62_v32 = vld [vmem:[%s3581_s1 + $0xb0] sm:$0xff]  ;;  %v61_v34 = vld [vmem:[%s3581_s1 + $0xa8] sm:$0xff] }
   0xc   :  { %329 = vmatpush1.msra.mxu1 %v169_v19  ;;  %259 = vmatprep.subr.mxu0 %v71_v20  ;;  %v160_v31 = vld [vmem:[%s3581_s1 + $0x3c0] sm:$0xff]  ;;  %v158_v33 = vld [vmem:[%s3581_s1 + $0x3b0] sm:$0xff]  ;;  %v157_v35 = vld [vmem:[%s3581_s1 + $0x3a8] sm:$0xff] }
   0xd   :  { %330 = vmatprep.subr.mxu1 %v167_v21  ;;  %260 = vmatpush1.msra.mxu0 %v70_v22  ;;  %v59_v36 = vld [vmem:[%s3581_s1 + $0x98] sm:$0xff]  ;;  %v58_v38 = vld [vmem:[%s3581_s1 + $0x90] sm:$0xff]  ;;  %v56_v40 = vld [vmem:[%s3581_s1 + $0x80] sm:$0xff] }
   0xe   :  { %331 = vmatpush1.msra.mxu1 %v166_v23  ;;  %261 = vmatprep.subr.mxu0 %v68_v24  ;;  %v155_v37 = vld [vmem:[%s3581_s1 + $0x398] sm:$0xff]  ;;  %v154_v39 = vld [vmem:[%s3581_s1 + $0x390] sm:$0xff]  ;;  %v152_v41 = vld [vmem:[%s3581_s1 + $0x380] sm:$0xff] }
   0xf   :  { %332 = vmatprep.subr.mxu1 %v164_v25  ;;  %262 = vmatpush1.msra.mxu0 %v67_v26  ;;  %v55_v42 = vld [vmem:[%s3581_s1 + $0x78] sm:$0xff]  ;;  %v53_v44 = vld [vmem:[%s3581_s1 + $0x68] sm:$0xff]  ;;  %v52_v46 = vld [vmem:[%s3581_s1 + $0x60] sm:$0xff] }
  0x10   :  { %333 = vmatpush1.msra.mxu1 %v163_v27  ;;  %263 = vmatprep.subr.mxu0 %v65_v28  ;;  %v151_v43 = vld [vmem:[%s3581_s1 + $0x378] sm:$0xff]  ;;  %v149_v45 = vld [vmem:[%s3581_s1 + $0x368] sm:$0xff]  ;;  %v148_v47 = vld [vmem:[%s3581_s1 + $0x360] sm:$0xff] }
  0x11   :  { %334 = vmatprep.subr.mxu1 %v161_v29  ;;  %264 = vmatpush1.msra.mxu0 %v64_v30  ;;  %v50_v48 = vld [vmem:[%s3581_s1 + $0x50] sm:$0xff]  ;;  %v49_v50 = vld [vmem:[%s3581_s1 + $0x48] sm:$0xff]  ;;  %v47_v52 = vld [vmem:[%s3581_s1 + $0x38] sm:$0xff] }
  0x12   :  { %335 = vmatpush1.msra.mxu1 %v160_v31  ;;  %265 = vmatprep.subr.mxu0 %v62_v32  ;;  %v146_v49 = vld [vmem:[%s3581_s1 + $0x350] sm:$0xff]  ;;  %v145_v51 = vld [vmem:[%s3581_s1 + $0x348] sm:$0xff]  ;;  %v143_v53 = vld [vmem:[%s3581_s1 + $0x338] sm:$0xff] }
  0x13   :  { %336 = vmatprep.subr.mxu1 %v158_v33  ;;  %266 = vmatpush1.msra.mxu0 %v61_v34  ;;  %v46_v54 = vld [vmem:[%s3581_s1 + $0x30] sm:$0xff]  ;;  %v44_v56 = vld [vmem:[%s3581_s1 + $0x20] sm:$0xff]  ;;  %v43_v58 = vld [vmem:[%s3581_s1 + $0x18] sm:$0xff] }
  0x14   :  { %337 = vmatpush1.msra.mxu1 %v157_v35  ;;  %267 = vmatprep.subr.mxu0 %v59_v36  ;;  %v142_v55 = vld [vmem:[%s3581_s1 + $0x330] sm:$0xff]  ;;  %v140_v57 = vld [vmem:[%s3581_s1 + $0x320] sm:$0xff]  ;;  %v139_v59 = vld [vmem:[%s3581_s1 + $0x318] sm:$0xff] }
  0x15   :  { %338 = vmatprep.subr.mxu1 %v155_v37  ;;  %268 = vmatpush1.msra.mxu0 %v58_v38  ;;  %v41_v60 = vld [vmem:[%s3581_s1 + $0x8] sm:$0xff]  ;;  %v40_v62 = vld [vmem:[%s3581_s1] sm:$0xff]  ;;  %v134_v0 = vld [vmem:[%s3581_s1 + $0x2f0] sm:$0xff] }
  0x16   :  { %339 = vmatpush1.msra.mxu1 %v154_v39  ;;  %269 = vmatprep.subr.mxu0 %v56_v40  ;;  %v137_v61 = vld [vmem:[%s3581_s1 + $0x308] sm:$0xff]  ;;  %v136_v63 = vld [vmem:[%s3581_s1 + $0x300] sm:$0xff]  ;;  %v230_v1 = vld [vmem:[%s3581_s1 + $0x5f0] sm:$0xff] }
  0x17   :  { %340 = vmatprep.subr.mxu1 %v152_v41  ;;  %270 = vmatpush1.msra.mxu0 %v55_v42  ;;  %v133_v2 = vld [vmem:[%s3581_s1 + $0x2e8] sm:$0xff]  ;;  %v131_v4 = vld [vmem:[%s3581_s1 + $0x2d8] sm:$0xff]  ;;  %v130_v6 = vld [vmem:[%s3581_s1 + $0x2d0] sm:$0xff] }
  0x18   :  { %341 = vmatpush1.msra.mxu1 %v151_v43  ;;  %271 = vmatprep.subr.mxu0 %v53_v44  ;;  %v229_v3 = vld [vmem:[%s3581_s1 + $0x5e8] sm:$0xff]  ;;  %v227_v5 = vld [vmem:[%s3581_s1 + $0x5d8] sm:$0xff]  ;;  %v226_v7 = vld [vmem:[%s3581_s1 + $0x5d0] sm:$0xff] }
  0x19   :  { %342 = vmatprep.subr.mxu1 %v149_v45  ;;  %272 = vmatpush1.msra.mxu0 %v52_v46  ;;  %v128_v8 = vld [vmem:[%s3581_s1 + $0x2c0] sm:$0xff]  ;;  %v127_v10 = vld [vmem:[%s3581_s1 + $0x2b8] sm:$0xff]  ;;  %v125_v12 = vld [vmem:[%s3581_s1 + $0x2a8] sm:$0xff] }
  0x1a   :  { %343 = vmatpush1.msra.mxu1 %v148_v47  ;;  %273 = vmatprep.subr.mxu0 %v50_v48  ;;  %v224_v9 = vld [vmem:[%s3581_s1 + $0x5c0] sm:$0xff]  ;;  %v223_v11 = vld [vmem:[%s3581_s1 + $0x5b8] sm:$0xff]  ;;  %v221_v13 = vld [vmem:[%s3581_s1 + $0x5a8] sm:$0xff] }
  0x1b   :  { %344 = vmatprep.subr.mxu1 %v146_v49  ;;  %274 = vmatpush1.msra.mxu0 %v49_v50  ;;  %v124_v14 = vld [vmem:[%s3581_s1 + $0x2a0] sm:$0xff]  ;;  %v122_v16 = vld [vmem:[%s3581_s1 + $0x290] sm:$0xff]  ;;  %v121_v18 = vld [vmem:[%s3581_s1 + $0x288] sm:$0xff] }
  0x1c   :  { %345 = vmatpush1.msra.mxu1 %v145_v51  ;;  %275 = vmatprep.subr.mxu0 %v47_v52  ;;  %v220_v15 = vld [vmem:[%s3581_s1 + $0x5a0] sm:$0xff]  ;;  %v218_v17 = vld [vmem:[%s3581_s1 + $0x590] sm:$0xff]  ;;  %v217_v19 = vld [vmem:[%s3581_s1 + $0x588] sm:$0xff] }
  0x1d   :  { %346 = vmatprep.subr.mxu1 %v143_v53  ;;  %276 = vmatpush1.msra.mxu0 %v46_v54  ;;  %v119_v20 = vld [vmem:[%s3581_s1 + $0x278] sm:$0xff]  ;;  %v118_v22 = vld [vmem:[%s3581_s1 + $0x270] sm:$0xff]  ;;  %v116_v24 = vld [vmem:[%s3581_s1 + $0x260] sm:$0xff] }
  0x1e   :  { %347 = vmatpush1.msra.mxu1 %v142_v55  ;;  %277 = vmatprep.subr.mxu0 %v44_v56  ;;  %v215_v21 = vld [vmem:[%s3581_s1 + $0x578] sm:$0xff]  ;;  %v214_v23 = vld [vmem:[%s3581_s1 + $0x570] sm:$0xff]  ;;  %v212_v25 = vld [vmem:[%s3581_s1 + $0x560] sm:$0xff] }
  0x1f   :  { %348 = vmatprep.subr.mxu1 %v140_v57  ;;  %278 = vmatpush1.msra.mxu0 %v43_v58  ;;  %v115_v26 = vld [vmem:[%s3581_s1 + $0x258] sm:$0xff]  ;;  %v113_v28 = vld [vmem:[%s3581_s1 + $0x248] sm:$0xff]  ;;  %v112_v30 = vld [vmem:[%s3581_s1 + $0x240] sm:$0xff] }
  0x20   :  { %349 = vmatpush1.msra.mxu1 %v139_v59  ;;  %279 = vmatprep.subr.mxu0 %v41_v60  ;;  %v211_v27 = vld [vmem:[%s3581_s1 + $0x558] sm:$0xff]  ;;  %v209_v29 = vld [vmem:[%s3581_s1 + $0x548] sm:$0xff]  ;;  %v208_v31 = vld [vmem:[%s3581_s1 + $0x540] sm:$0xff] }
  0x21   :  { %350 = vmatprep.subr.mxu1 %v137_v61  ;;  %280 = vmatpush1.msra.mxu0 %v40_v62  ;;  %v110_v32 = vld [vmem:[%s3581_s1 + $0x230] sm:$0xff]  ;;  %v109_v34 = vld [vmem:[%s3581_s1 + $0x228] sm:$0xff]  ;;  %v107_v36 = vld [vmem:[%s3581_s1 + $0x218] sm:$0xff] }
  0x22   :  { %351 = vmatpush1.msra.mxu1 %v136_v63  ;;  %281 = vmatprep.subr.mxu0 %v134_v0  ;;  %v206_v33 = vld [vmem:[%s3581_s1 + $0x530] sm:$0xff]  ;;  %v205_v35 = vld [vmem:[%s3581_s1 + $0x528] sm:$0xff]  ;;  %v203_v37 = vld [vmem:[%s3581_s1 + $0x518] sm:$0xff] }
  0x23   :  { %352 = vmatprep.subr.mxu1 %v230_v1  ;;  %282 = vmatpush2.msra.mxu0 %v133_v2  ;;  %v106_v38 = vld [vmem:[%s3581_s1 + $0x210] sm:$0xff]  ;;  %v104_v40 = vld [vmem:[%s3581_s1 + $0x200] sm:$0xff]  ;;  %v103_v42 = vld [vmem:[%s3581_s1 + $0x1f8] sm:$0xff] }
  0x24   :  { %353 = vmatpush2.msra.mxu1 %v229_v3  ;;  %283 = vmatprep.subr.mxu0 %v131_v4  ;;  %v202_v39 = vld [vmem:[%s3581_s1 + $0x510] sm:$0xff]  ;;  %v200_v41 = vld [vmem:[%s3581_s1 + $0x500] sm:$0xff]  ;;  %v199_v43 = vld [vmem:[%s3581_s1 + $0x4f8] sm:$0xff] }
  0x25   :  { %354 = vmatprep.subr.mxu1 %v227_v5  ;;  %284 = vmatpush2.msra.mxu0 %v130_v6  ;;  %v101_v44 = vld [vmem:[%s3581_s1 + $0x1e8] sm:$0xff]  ;;  %v100_v46 = vld [vmem:[%s3581_s1 + $0x1e0] sm:$0xff]  ;;  %v98_v48 = vld [vmem:[%s3581_s1 + $0x1d0] sm:$0xff] }
  0x26   :  { %355 = vmatpush2.msra.mxu1 %v226_v7  ;;  %285 = vmatprep.subr.mxu0 %v128_v8  ;;  %v197_v45 = vld [vmem:[%s3581_s1 + $0x4e8] sm:$0xff]  ;;  %v196_v47 = vld [vmem:[%s3581_s1 + $0x4e0] sm:$0xff]  ;;  %v194_v49 = vld [vmem:[%s3581_s1 + $0x4d0] sm:$0xff] }
  0x27   :  { %356 = vmatprep.subr.mxu1 %v224_v9  ;;  %286 = vmatpush2.msra.mxu0 %v127_v10  ;;  %v97_v50 = vld [vmem:[%s3581_s1 + $0x1c8] sm:$0xff]  ;;  %v95_v52 = vld [vmem:[%s3581_s1 + $0x1b8] sm:$0xff]  ;;  %v94_v54 = vld [vmem:[%s3581_s1 + $0x1b0] sm:$0xff] }
  0x28   :  { %357 = vmatpush2.msra.mxu1 %v223_v11  ;;  %287 = vmatprep.subr.mxu0 %v125_v12  ;;  %v193_v51 = vld [vmem:[%s3581_s1 + $0x4c8] sm:$0xff]  ;;  %v191_v53 = vld [vmem:[%s3581_s1 + $0x4b8] sm:$0xff]  ;;  %v190_v55 = vld [vmem:[%s3581_s1 + $0x4b0] sm:$0xff] }
  0x29   :  { %358 = vmatprep.subr.mxu1 %v221_v13  ;;  %288 = vmatpush2.msra.mxu0 %v124_v14  ;;  %v92_v56 = vld [vmem:[%s3581_s1 + $0x1a0] sm:$0xff]  ;;  %v91_v58 = vld [vmem:[%s3581_s1 + $0x198] sm:$0xff]  ;;  %v89_v60 = vld [vmem:[%s3581_s1 + $0x188] sm:$0xff] }
  0x2a   :  { %359 = vmatpush2.msra.mxu1 %v220_v15  ;;  %289 = vmatprep.subr.mxu0 %v122_v16  ;;  %v188_v57 = vld [vmem:[%s3581_s1 + $0x4a0] sm:$0xff]  ;;  %v187_v59 = vld [vmem:[%s3581_s1 + $0x498] sm:$0xff]  ;;  %v185_v61 = vld [vmem:[%s3581_s1 + $0x488] sm:$0xff] }
  0x2b   :  { %360 = vmatprep.subr.mxu1 %v218_v17  ;;  %290 = vmatpush2.msra.mxu0 %v121_v18  ;;  %v88_v62 = vld [vmem:[%s3581_s1 + $0x180] sm:$0xff]  ;;  %v2125_v63 = vld [vmem:[%s3582_s0 + $0x8] sm:$0xff]  ;;  %v2138_v2 = vld [vmem:[%s3582_s0 + $0x18] sm:$0xff] }
  0x2c   :  { %361 = vmatpush2.msra.mxu1 %v217_v19  ;;  %291 = vmatprep.subr.mxu0 %v119_v20  ;;  %v184_v0 = vld [vmem:[%s3581_s1 + $0x480] sm:$0xff]  ;;  %v135_v3 = vld [vmem:[%s3581_s1 + $0x2f8] sm:$0xff]  ;;  %v2150_v5 = vld [vmem:[%s3582_s0 + $0x10] sm:$0xff] }
  0x2d   :  { %362 = vmatprep.subr.mxu1 %v215_v21  ;;  %292 = vmatpush2.msra.mxu0 %v118_v22  ;;  %v2133_v1 = vld [vmem:[%s3582_s0] sm:$0xff]  ;;  %v231_v4 = vld [vmem:[%s3581_s1 + $0x5f8] sm:$0xff]  ;;  %v129_v12 = vld [vmem:[%s3581_s1 + $0x2c8] sm:$0xff] }
  0x2e   :  { %363 = vmatpush2.msra.mxu1 %v214_v23  ;;  %293 = vmatprep.subr.mxu0 %v116_v24  ;;  %v87_v6 = vld [vmem:[%s3581_s1 + $0x178] sm:$0xff]  ;;  %v132_v8 = vld [vmem:[%s3581_s1 + $0x2e0] sm:$0xff]  ;;  %v225_v13 = vld [vmem:[%s3581_s1 + $0x5c8] sm:$0xff] }
  0x2f   :  { %364 = vmatprep.subr.mxu1 %v212_v25  ;;  %294 = vmatpush2.msra.mxu0 %v115_v26  ;;  %v183_v7 = vld [vmem:[%s3581_s1 + $0x478] sm:$0xff]  ;;  %v228_v9 = vld [vmem:[%s3581_s1 + $0x5e0] sm:$0xff]  ;;  %v81_v14 = vld [vmem:[%s3581_s1 + $0x148] sm:$0xff] }
  0x30   :  { %365 = vmatpush2.msra.mxu1 %v211_v27  ;;  %295 = vmatprep.subr.mxu0 %v113_v28  ;;  %v84_v10 = vld [vmem:[%s3581_s1 + $0x160] sm:$0xff]  ;;  %v177_v15 = vld [vmem:[%s3581_s1 + $0x448] sm:$0xff]  ;;  %v126_v16 = vld [vmem:[%s3581_s1 + $0x2b0] sm:$0xff] }
  0x31   :  { %366 = vmatprep.subr.mxu1 %v209_v29  ;;  %296 = vmatpush2.msra.mxu0 %v112_v30  ;;  %v180_v11 = vld [vmem:[%s3581_s1 + $0x460] sm:$0xff]  ;;  %v222_v17 = vld [vmem:[%s3581_s1 + $0x5b0] sm:$0xff]  ;;  %v123_v20 = vld [vmem:[%s3581_s1 + $0x298] sm:$0xff] }
  0x32   :  { %367 = vmatpush2.msra.mxu1 %v208_v31  ;;  %297 = vmatprep.subr.mxu0 %v110_v32  ;;  %v78_v18 = vld [vmem:[%s3581_s1 + $0x130] sm:$0xff]  ;;  %v219_v21 = vld [vmem:[%s3581_s1 + $0x598] sm:$0xff]  ;;  %v120_v24 = vld [vmem:[%s3581_s1 + $0x280] sm:$0xff] }
  0x33   :  { %368 = vmatprep.subr.mxu1 %v206_v33  ;;  %298 = vmatpush2.msra.mxu0 %v109_v34  ;;  %v174_v19 = vld [vmem:[%s3581_s1 + $0x430] sm:$0xff]  ;;  %v75_v22 = vld [vmem:[%s3581_s1 + $0x118] sm:$0xff]  ;;  %v216_v25 = vld [vmem:[%s3581_s1 + $0x580] sm:$0xff] }
  0x34   :  { %369 = vmatpush2.msra.mxu1 %v205_v35  ;;  %299 = vmatprep.subr.mxu0 %v107_v36  ;;  %v171_v23 = vld [vmem:[%s3581_s1 + $0x418] sm:$0xff]  ;;  %v72_v26 = vld [vmem:[%s3581_s1 + $0x100] sm:$0xff]  ;;  %v117_v28 = vld [vmem:[%s3581_s1 + $0x268] sm:$0xff] }
  0x35   :  { %370 = vmatprep.subr.mxu1 %v203_v37  ;;  %300 = vmatpush2.msra.mxu0 %v106_v38  ;;  %v168_v27 = vld [vmem:[%s3581_s1 + $0x400] sm:$0xff]  ;;  %v213_v29 = vld [vmem:[%s3581_s1 + $0x568] sm:$0xff]  ;;  %v114_v32 = vld [vmem:[%s3581_s1 + $0x250] sm:$0xff] }
  0x36   :  { %371 = vmatpush2.msra.mxu1 %v202_v39  ;;  %301 = vmatprep.subr.mxu0 %v104_v40  ;;  %v69_v30 = vld [vmem:[%s3581_s1 + $0xe8] sm:$0xff]  ;;  %v210_v33 = vld [vmem:[%s3581_s1 + $0x550] sm:$0xff]  ;;  %v111_v36 = vld [vmem:[%s3581_s1 + $0x238] sm:$0xff] }
  0x37   :  { %372 = vmatprep.subr.mxu1 %v200_v41  ;;  %302 = vmatpush2.msra.mxu0 %v103_v42  ;;  %v165_v31 = vld [vmem:[%s3581_s1 + $0x3e8] sm:$0xff]  ;;  %v66_v34 = vld [vmem:[%s3581_s1 + $0xd0] sm:$0xff]  ;;  %v207_v37 = vld [vmem:[%s3581_s1 + $0x538] sm:$0xff] }
  0x38   :  { %373 = vmatpush2.msra.mxu1 %v199_v43  ;;  %303 = vmatprep.subr.mxu0 %v101_v44  ;;  %v162_v35 = vld [vmem:[%s3581_s1 + $0x3d0] sm:$0xff]  ;;  %v63_v38 = vld [vmem:[%s3581_s1 + $0xb8] sm:$0xff]  ;;  %v108_v40 = vld [vmem:[%s3581_s1 + $0x220] sm:$0xff] }
  0x39   :  { %374 = vmatprep.subr.mxu1 %v197_v45  ;;  %304 = vmatpush2.msra.mxu0 %v100_v46  ;;  %v159_v39 = vld [vmem:[%s3581_s1 + $0x3b8] sm:$0xff]  ;;  %v204_v41 = vld [vmem:[%s3581_s1 + $0x520] sm:$0xff]  ;;  %v105_v44 = vld [vmem:[%s3581_s1 + $0x208] sm:$0xff] }
  0x3a   :  { %375 = vmatpush2.msra.mxu1 %v196_v47  ;;  %305 = vmatprep.subr.mxu0 %v98_v48  ;;  %v60_v42 = vld [vmem:[%s3581_s1 + $0xa0] sm:$0xff]  ;;  %v201_v45 = vld [vmem:[%s3581_s1 + $0x508] sm:$0xff]  ;;  %v102_v48 = vld [vmem:[%s3581_s1 + $0x1f0] sm:$0xff] }
  0x3b   :  { %376 = vmatprep.subr.mxu1 %v194_v49  ;;  %306 = vmatpush2.msra.mxu0 %v97_v50  ;;  %v156_v43 = vld [vmem:[%s3581_s1 + $0x3a0] sm:$0xff]  ;;  %v57_v46 = vld [vmem:[%s3581_s1 + $0x88] sm:$0xff]  ;;  %v198_v49 = vld [vmem:[%s3581_s1 + $0x4f0] sm:$0xff] }
  0x3c   :  { %377 = vmatpush2.msra.mxu1 %v193_v51  ;;  %307 = vmatprep.subr.mxu0 %v95_v52  ;;  %v153_v47 = vld [vmem:[%s3581_s1 + $0x388] sm:$0xff]  ;;  %v54_v50 = vld [vmem:[%s3581_s1 + $0x70] sm:$0xff]  ;;  %v99_v52 = vld [vmem:[%s3581_s1 + $0x1d8] sm:$0xff] }
  0x3d   :  { %378 = vmatprep.subr.mxu1 %v191_v53  ;;  %308 = vmatpush2.msra.mxu0 %v94_v54  ;;  %v150_v51 = vld [vmem:[%s3581_s1 + $0x370] sm:$0xff]  ;;  %v195_v53 = vld [vmem:[%s3581_s1 + $0x4d8] sm:$0xff] }
  0x3e   :  { %379 = vmatpush2.msra.mxu1 %v190_v55  ;;  %309 = vmatprep.subr.mxu0 %v92_v56  ;;  %v51_v54 = vld [vmem:[%s3581_s1 + $0x58] sm:$0xff]  ;;  %v96_v56 = vld [vmem:[%s3581_s1 + $0x1c0] sm:$0xff] }
  0x3f   :  { %380 = vmatprep.subr.mxu1 %v188_v57  ;;  %310 = vmatpush2.msra.mxu0 %v91_v58  ;;  %v147_v55 = vld [vmem:[%s3581_s1 + $0x358] sm:$0xff]  ;;  %v192_v57 = vld [vmem:[%s3581_s1 + $0x4c0] sm:$0xff] }
  0x40   :  { %381 = vmatpush2.msra.mxu1 %v187_v59  ;;  %311 = vmatprep.subr.mxu0 %v89_v60  ;;  %v48_v58 = vld [vmem:[%s3581_s1 + $0x40] sm:$0xff]  ;;  %v93_v60 = vld [vmem:[%s3581_s1 + $0x1a8] sm:$0xff] }
  0x41   :  { %382 = vmatprep.subr.mxu1 %v185_v61  ;;  %312 = vmatpush2.msra.mxu0 %v88_v62  ;;  %v144_v59 = vld [vmem:[%s3581_s1 + $0x340] sm:$0xff]  ;;  %v189_v61 = vld [vmem:[%s3581_s1 + $0x4a8] sm:$0xff] }
  0x42   :  { %313 = vmatprep.mubr.f32.mxu0 %v2125_v63  ;;  %383 = vmatpush2.msra.mxu1 %v184_v0  ;;  %v45_v62 = vld [vmem:[%s3581_s1 + $0x28] sm:$0xff] }
  0x43   :  { %314 = vmatmul.mubr.f32.vlgmr.msra.gmra.mxu0 %v2133_v1  ;;  %384 = vmatprep.mubr.f32.mxu1 %v2138_v2  ;;  %v141_v0 = vld [vmem:[%s3581_s1 + $0x328] sm:$0xff] }
  0x44   :  { %1569 = vmatprep.subr.mxu0 %v135_v3  ;;  %1604 = vmatprep.subr.mxu1 %v231_v4  ;;  %v90_v3 = vld [vmem:[%s3581_s1 + $0x190] sm:$0xff] }
  0x45   :  { %385 = vmatmul.mubr.f32.vlgmr.msra.gmra.mxu1 %v2150_v5  ;;  %1570 = vmatpush3.msra.mxu0 %v87_v6  ;;  %v186_v4 = vld [vmem:[%s3581_s1 + $0x490] sm:$0xff] }
  0x46   :  { %1605 = vmatpush3.msra.mxu1 %v183_v7  ;;  %1571 = vmatprep.subr.mxu0 %v132_v8  ;;  %v42_v6 = vld [vmem:[%s3581_s1 + $0x10] sm:$0xff]  ;;  %v565_v8 = vld [vmem:[%s3583_s3 + $0xf8] sm:$0xff] }
  0x47   :  { %1606 = vmatprep.subr.mxu1 %v228_v9  ;;  %1572 = vmatpush3.msra.mxu0 %v84_v10  ;;  %v138_v7 = vld [vmem:[%s3581_s1 + $0x310] sm:$0xff]  ;;  %v563_v10 = vld [vmem:[%s3583_s3 + $0xe8] sm:$0xff] }
  0x48   :  { %1607 = vmatpush3.msra.mxu1 %v180_v11  ;;  %1573 = vmatprep.subr.mxu0 %v129_v12  ;;  %v564_v9 = vld [vmem:[%s3583_s3 + $0xf0] sm:$0xff]  ;;  %v558_v11 = vld [vmem:[%s3583_s3 + $0xc0] sm:$0xff]  ;;  %v557_v12 = vld [vmem:[%s3583_s3 + $0xb8] sm:$0xff] }
  0x49   :  { %1608 = vmatprep.subr.mxu1 %v225_v13  ;;  %1574 = vmatpush3.msra.mxu0 %v81_v14  ;;  %v556_v13 = vld [vmem:[%s3583_s3 + $0xb0] sm:$0xff]  ;;  %v555_v14 = vld [vmem:[%s3583_s3 + $0xa8] sm:$0xff] }
  0x4a   :  { %1609 = vmatpush3.msra.mxu1 %v177_v15  ;;  %1575 = vmatprep.subr.mxu0 %v126_v16  ;;  %v554_v15 = vld [vmem:[%s3583_s3 + $0xa0] sm:$0xff]  ;;  %v553_v16 = vld [vmem:[%s3583_s3 + $0x98] sm:$0xff] }
  0x4b   :  { %1610 = vmatprep.subr.mxu1 %v222_v17  ;;  %1576 = vmatpush3.msra.mxu0 %v78_v18  ;;  %v552_v17 = vld [vmem:[%s3583_s3 + $0x90] sm:$0xff]  ;;  %v551_v18 = vld [vmem:[%s3583_s3 + $0x88] sm:$0xff] }
  0x4c   :  { %1611 = vmatpush3.msra.mxu1 %v174_v19  ;;  %1577 = vmatprep.subr.mxu0 %v123_v20  ;;  %v550_v19 = vld [vmem:[%s3583_s3 + $0x80] sm:$0xff]  ;;  %v549_v20 = vld [vmem:[%s3583_s3 + $0x78] sm:$0xff] }
  0x4d   :  { %1612 = vmatprep.subr.mxu1 %v219_v21  ;;  %1578 = vmatpush3.msra.mxu0 %v75_v22  ;;  %v548_v21 = vld [vmem:[%s3583_s3 + $0x70] sm:$0xff]  ;;  %v547_v22 = vld [vmem:[%s3583_s3 + $0x68] sm:$0xff] }
  0x4e   :  { %1613 = vmatpush3.msra.mxu1 %v171_v23  ;;  %1579 = vmatprep.subr.mxu0 %v120_v24  ;;  %v546_v23 = vld [vmem:[%s3583_s3 + $0x60] sm:$0xff]  ;;  %v545_v24 = vld [vmem:[%s3583_s3 + $0x58] sm:$0xff] }
  0x4f   :  { %1614 = vmatprep.subr.mxu1 %v216_v25  ;;  %1580 = vmatpush3.msra.mxu0 %v72_v26  ;;  %v544_v25 = vld [vmem:[%s3583_s3 + $0x50] sm:$0xff]  ;;  %v543_v26 = vld [vmem:[%s3583_s3 + $0x48] sm:$0xff] }
  0x50   :  { %1615 = vmatpush3.msra.mxu1 %v168_v27  ;;  %1581 = vmatprep.subr.mxu0 %v117_v28  ;;  %v542_v27 = vld [vmem:[%s3583_s3 + $0x40] sm:$0xff]  ;;  %v541_v28 = vld [vmem:[%s3583_s3 + $0x38] sm:$0xff] }
  0x51   :  { %1616 = vmatprep.subr.mxu1 %v213_v29  ;;  %1582 = vmatpush3.msra.mxu0 %v69_v30  ;;  %v540_v29 = vld [vmem:[%s3583_s3 + $0x30] sm:$0xff]  ;;  %v539_v30 = vld [vmem:[%s3583_s3 + $0x28] sm:$0xff] }
  0x52   :  { %1617 = vmatpush3.msra.mxu1 %v165_v31  ;;  %1583 = vmatprep.subr.mxu0 %v114_v32  ;;  %v538_v31 = vld [vmem:[%s3583_s3 + $0x20] sm:$0xff]  ;;  %v537_v32 = vld [vmem:[%s3583_s3 + $0x18] sm:$0xff] }
  0x53   :  { %1618 = vmatprep.subr.mxu1 %v210_v33  ;;  %1584 = vmatpush3.msra.mxu0 %v66_v34  ;;  %v536_v33 = vld [vmem:[%s3583_s3 + $0x10] sm:$0xff]  ;;  %v535_v34 = vld [vmem:[%s3583_s3 + $0x8] sm:$0xff] }
  0x54   :  { %1619 = vmatpush3.msra.mxu1 %v162_v35  ;;  %1585 = vmatprep.subr.mxu0 %v111_v36  ;;  %v534_v35 = vld [vmem:[%s3583_s3] sm:$0xff]  ;;  %v597_v36 = vld [vmem:[%s3583_s3 + $0x1f8] sm:$0xff] }
  0x55   :  { %1620 = vmatprep.subr.mxu1 %v207_v37  ;;  %1586 = vmatpush3.msra.mxu0 %v63_v38  ;;  %v596_v37 = vld [vmem:[%s3583_s3 + $0x1f0] sm:$0xff]  ;;  %v595_v38 = vld [vmem:[%s3583_s3 + $0x1e8] sm:$0xff] }
  0x56   :  { %1621 = vmatpush3.msra.mxu1 %v159_v39  ;;  %1587 = vmatprep.subr.mxu0 %v108_v40  ;;  %v594_v39 = vld [vmem:[%s3583_s3 + $0x1e0] sm:$0xff]  ;;  %v593_v40 = vld [vmem:[%s3583_s3 + $0x1d8] sm:$0xff] }
  0x57   :  { %1622 = vmatprep.subr.mxu1 %v204_v41  ;;  %1588 = vmatpush3.msra.mxu0 %v60_v42  ;;  %v592_v41 = vld [vmem:[%s3583_s3 + $0x1d0] sm:$0xff]  ;;  %v591_v42 = vld [vmem:[%s3583_s3 + $0x1c8] sm:$0xff] }
  0x58   :  { %1623 = vmatpush3.msra.mxu1 %v156_v43  ;;  %1589 = vmatprep.subr.mxu0 %v105_v44  ;;  %v590_v43 = vld [vmem:[%s3583_s3 + $0x1c0] sm:$0xff]  ;;  %v589_v44 = vld [vmem:[%s3583_s3 + $0x1b8] sm:$0xff] }
  0x59   :  { %1624 = vmatprep.subr.mxu1 %v201_v45  ;;  %1590 = vmatpush3.msra.mxu0 %v57_v46  ;;  %v588_v45 = vld [vmem:[%s3583_s3 + $0x1b0] sm:$0xff]  ;;  %v629_v46 = vld [vmem:[%s3583_s3 + $0x2f8] sm:$0xff] }
  0x5a   :  { %1625 = vmatpush3.msra.mxu1 %v153_v47  ;;  %1591 = vmatprep.subr.mxu0 %v102_v48  ;;  %v628_v47 = vld [vmem:[%s3583_s3 + $0x2f0] sm:$0xff]  ;;  %v627_v48 = vld [vmem:[%s3583_s3 + $0x2e8] sm:$0xff] }
  0x5b   :  { %1626 = vmatprep.subr.mxu1 %v198_v49  ;;  %1592 = vmatpush3.msra.mxu0 %v54_v50  ;;  %v587_v49 = vld [vmem:[%s3583_s3 + $0x1a8] sm:$0xff]  ;;  %v626_v50 = vld [vmem:[%s3583_s3 + $0x2e0] sm:$0xff] }
  0x5c   :  { %1627 = vmatpush3.msra.mxu1 %v150_v51  ;;  %1593 = vmatprep.subr.mxu0 %v99_v52  ;;  %v586_v51 = vld [vmem:[%s3583_s3 + $0x1a0] sm:$0xff]  ;;  %v625_v52 = vld [vmem:[%s3583_s3 + $0x2d8] sm:$0xff] }
  0x5d   :  { %1628 = vmatprep.subr.mxu1 %v195_v53  ;;  %1594 = vmatpush3.msra.mxu0 %v51_v54  ;;  %v585_v53 = vld [vmem:[%s3583_s3 + $0x198] sm:$0xff]  ;;  %v624_v54 = vld [vmem:[%s3583_s3 + $0x2d0] sm:$0xff] }
  0x5e   :  { %1629 = vmatpush3.msra.mxu1 %v147_v55  ;;  %1595 = vmatprep.subr.mxu0 %v96_v56  ;;  %v584_v55 = vld [vmem:[%s3583_s3 + $0x190] sm:$0xff]  ;;  %v623_v56 = vld [vmem:[%s3583_s3 + $0x2c8] sm:$0xff] }
  0x5f   :  { %1630 = vmatprep.subr.mxu1 %v192_v57  ;;  %1596 = vmatpush3.msra.mxu0 %v48_v58  ;;  %v583_v57 = vld [vmem:[%s3583_s3 + $0x188] sm:$0xff]  ;;  %v622_v58 = vld [vmem:[%s3583_s3 + $0x2c0] sm:$0xff] }
  0x60   :  { %1631 = vmatpush3.msra.mxu1 %v144_v59  ;;  %1597 = vmatprep.subr.mxu0 %v93_v60  ;;  %v582_v59 = vld [vmem:[%s3583_s3 + $0x180] sm:$0xff]  ;;  %v621_v60 = vld [vmem:[%s3583_s3 + $0x2b8] sm:$0xff] }
  0x61   :  { %1632 = vmatprep.subr.mxu1 %v189_v61  ;;  %1598 = vmatpush3.msra.mxu0 %v45_v62  ;;  %v581_v61 = vld [vmem:[%s3583_s3 + $0x178] sm:$0xff]  ;;  %v620_v62 = vld [vmem:[%s3583_s3 + $0x2b0] sm:$0xff] }
  0x62   :  { %1633 = vmatpush3.msra.mxu1 %v141_v0  ;;  %1599 = vmatprep.subr.mxu0 %v90_v3  ;;  %v580_v0 = vld [vmem:[%s3583_s3 + $0x170] sm:$0xff]  ;;  %v619_v3 = vld [vmem:[%s3583_s3 + $0x2a8] sm:$0xff] }
  0x63   :  { %1634 = vmatprep.subr.mxu1 %v186_v4  ;;  %1600 = vmatpush3.msra.mxu0 %v42_v6  ;;  %v579_v4 = vld [vmem:[%s3583_s3 + $0x168] sm:$0xff]  ;;  %v618_v6 = vld [vmem:[%s3583_s3 + $0x2a0] sm:$0xff] }
  0x64   :  { %455 = vmatprep.mubr.f32.mxu0 %v2125_v63  ;;  %1635 = vmatpush3.msra.mxu1 %v138_v7  ;;  %v562_v63 = vld [vmem:[%s3583_s3 + $0xe0] sm:$0xff] }
  0x65   :  { %525 = vmatprep.mubr.f32.mxu1 %v2138_v2  ;;  %456 = vmatmul.mubr.f32.vlgmr.msra.gmra.mxu0 %v2133_v1  ;;  %v561_v2 = vld [vmem:[%s3583_s3 + $0xd8] sm:$0xff]  ;;  %v560_v1 = vld [vmem:[%s3583_s3 + $0xd0] sm:$0xff]  ;;  %v578_v7 = vld [vmem:[%s3583_s3 + $0x160] sm:$0xff] }
  0x66   :  { %526 = vmatmul.mubr.f32.vlgmr.msra.gmra.mxu1 %v2150_v5  ;;  %642 = vmatprep.subr.mxu0 %v565_v8  ;;  %v559_v5 = vld [vmem:[%s3583_s3 + $0xc8] sm:$0xff]  ;;  %v617_v8 = vld [vmem:[%s3583_s3 + $0x298] sm:$0xff] }
  0x67   :  { %643 = vmatpush1.msra.mxu0 %v564_v9  ;;  %713 = vmatprep.subr.mxu1 %v629_v46  ;;  %v577_v9 = vld [vmem:[%s3583_s3 + $0x158] sm:$0xff] }
  0x68   :  { %644 = vmatprep.subr.mxu0 %v563_v10  ;;  %714 = vmatpush1.msra.mxu1 %v628_v47  ;;  %v616_v10 = vld [vmem:[%s3583_s3 + $0x290] sm:$0xff] }
  0x69   :  { %645 = vmatpush1.msra.mxu0 %v562_v63  ;;  %715 = vmatprep.subr.mxu1 %v627_v48  ;;  %v576_v63 = vld [vmem:[%s3583_s3 + $0x150] sm:$0xff] }
  0x6a   :  { %646 = vmatprep.subr.mxu0 %v561_v2  ;;  %716 = vmatpush1.msra.mxu1 %v626_v50  ;;  %v615_v2 = vld [vmem:[%s3583_s3 + $0x288] sm:$0xff] }
  0x6b   :  { %647 = vmatpush1.msra.mxu0 %v560_v1  ;;  %717 = vmatprep.subr.mxu1 %v625_v52  ;;  %v575_v1 = vld [vmem:[%s3583_s3 + $0x148] sm:$0xff] }
  0x6c   :  { %648 = vmatprep.subr.mxu0 %v559_v5  ;;  %718 = vmatpush1.msra.mxu1 %v624_v54  ;;  %v614_v5 = vld [vmem:[%s3583_s3 + $0x280] sm:$0xff] }
  0x6d   :  { %649 = vmatpush1.msra.mxu0 %v558_v11  ;;  %719 = vmatprep.subr.mxu1 %v623_v56  ;;  %v574_v11 = vld [vmem:[%s3583_s3 + $0x140] sm:$0xff] }
  0x6e   :  { %650 = vmatprep.subr.mxu0 %v557_v12  ;;  %720 = vmatpush1.msra.mxu1 %v622_v58  ;;  %v613_v12 = vld [vmem:[%s3583_s3 + $0x278] sm:$0xff] }
  0x6f   :  { %651 = vmatpush1.msra.mxu0 %v556_v13  ;;  %721 = vmatprep.subr.mxu1 %v621_v60  ;;  %v573_v13 = vld [vmem:[%s3583_s3 + $0x138] sm:$0xff] }
  0x70   :  { %652 = vmatprep.subr.mxu0 %v555_v14  ;;  %722 = vmatpush1.msra.mxu1 %v620_v62  ;;  %v612_v14 = vld [vmem:[%s3583_s3 + $0x270] sm:$0xff] }
  0x71   :  { %653 = vmatpush1.msra.mxu0 %v554_v15  ;;  %723 = vmatprep.subr.mxu1 %v619_v3  ;;  %v572_v15 = vld [vmem:[%s3583_s3 + $0x130] sm:$0xff] }
  0x72   :  { %654 = vmatprep.subr.mxu0 %v553_v16  ;;  %724 = vmatpush1.msra.mxu1 %v618_v6  ;;  %v611_v16 = vld [vmem:[%s3583_s3 + $0x268] sm:$0xff] }
  0x73   :  { %655 = vmatpush1.msra.mxu0 %v552_v17  ;;  %725 = vmatprep.subr.mxu1 %v617_v8  ;;  %v571_v17 = vld [vmem:[%s3583_s3 + $0x128] sm:$0xff]  ;;  %v828_v8 = vld [vmem:[%s3584_s5 + $0x150] sm:$0xff] }
  0x74   :  { %656 = vmatprep.subr.mxu0 %v551_v18  ;;  %726 = vmatpush1.msra.mxu1 %v616_v10  ;;  %v610_v18 = vld [vmem:[%s3583_s3 + $0x260] sm:$0xff]  ;;  %v831_v6 = vld [vmem:[%s3584_s5 + $0x168] sm:$0xff]  ;;  %v825_v10 = vld [vmem:[%s3584_s5 + $0x138] sm:$0xff] }
  0x75   :  { %657 = vmatpush1.msra.mxu0 %v550_v19  ;;  %727 = vmatprep.subr.mxu1 %v615_v2  ;;  %v570_v19 = vld [vmem:[%s3583_s3 + $0x120] sm:$0xff] }
  0x76   :  { %658 = vmatprep.subr.mxu0 %v549_v20  ;;  %728 = vmatpush1.msra.mxu1 %v614_v5  ;;  %v609_v20 = vld [vmem:[%s3583_s3 + $0x258] sm:$0xff]  ;;  %v822_v2 = vld [vmem:[%s3584_s5 + $0x120] sm:$0xff]  ;;  %v819_v5 = vld [vmem:[%s3584_s5 + $0x108] sm:$0xff] }
  0x77   :  { %659 = vmatpush1.msra.mxu0 %v548_v21  ;;  %729 = vmatprep.subr.mxu1 %v613_v12  ;;  %v569_v21 = vld [vmem:[%s3583_s3 + $0x118] sm:$0xff]  ;;  %v816_v12 = vld [vmem:[%s3584_s5 + $0xf0] sm:$0xff] }
  0x78   :  { %660 = vmatprep.subr.mxu0 %v547_v22  ;;  %730 = vmatpush1.msra.mxu1 %v612_v14  ;;  %v568_v22 = vld [vmem:[%s3583_s3 + $0x110] sm:$0xff]  ;;  %v813_v14 = vld [vmem:[%s3584_s5 + $0xd8] sm:$0xff] }
  0x79   :  { %661 = vmatpush1.msra.mxu0 %v546_v23  ;;  %731 = vmatprep.subr.mxu1 %v611_v16  ;;  %v567_v23 = vld [vmem:[%s3583_s3 + $0x108] sm:$0xff]  ;;  %v810_v16 = vld [vmem:[%s3584_s5 + $0xc0] sm:$0xff] }
  0x7a   :  { %662 = vmatprep.subr.mxu0 %v545_v24  ;;  %732 = vmatpush1.msra.mxu1 %v610_v18  ;;  %v566_v24 = vld [vmem:[%s3583_s3 + $0x100] sm:$0xff]  ;;  %v807_v18 = vld [vmem:[%s3584_s5 + $0xa8] sm:$0xff] }
  0x7b   :  { %663 = vmatpush1.msra.mxu0 %v544_v25  ;;  %733 = vmatprep.subr.mxu1 %v609_v20  ;;  %v608_v25 = vld [vmem:[%s3583_s3 + $0x250] sm:$0xff] }
  0x7c   :  { %664 = vmatprep.subr.mxu0 %v543_v26  ;;  %734 = vmatpush1.msra.mxu1 %v608_v25  ;;  %v607_v26 = vld [vmem:[%s3583_s3 + $0x248] sm:$0xff]  ;;  %v804_v20 = vld [vmem:[%s3584_s5 + $0x90] sm:$0xff] }
  0x7d   :  { %665 = vmatpush1.msra.mxu0 %v542_v27  ;;  %735 = vmatprep.subr.mxu1 %v607_v26  ;;  %v606_v27 = vld [vmem:[%s3583_s3 + $0x240] sm:$0xff]  ;;  %v796_v25 = vld [vmem:[%s3584_s5 + $0x50] sm:$0xff]  ;;  %v795_v26 = vld [vmem:[%s3584_s5 + $0x48] sm:$0xff] }
  0x7e   :  { %666 = vmatprep.subr.mxu0 %v541_v28  ;;  %736 = vmatpush1.msra.mxu1 %v606_v27  ;;  %v605_v28 = vld [vmem:[%s3583_s3 + $0x238] sm:$0xff] }
  0x7f   :  { %667 = vmatpush1.msra.mxu0 %v540_v29  ;;  %737 = vmatprep.subr.mxu1 %v605_v28  ;;  %v604_v29 = vld [vmem:[%s3583_s3 + $0x230] sm:$0xff]  ;;  %v793_v27 = vld [vmem:[%s3584_s5 + $0x38] sm:$0xff] }
  0x80   :  { %668 = vmatprep.subr.mxu0 %v539_v30  ;;  %738 = vmatpush1.msra.mxu1 %v604_v29  ;;  %v603_v30 = vld [vmem:[%s3583_s3 + $0x228] sm:$0xff]  ;;  %v792_v28 = vld [vmem:[%s3584_s5 + $0x30] sm:$0xff]  ;;  %v790_v29 = vld [vmem:[%s3584_s5 + $0x20] sm:$0xff] }
  0x81   :  { %669 = vmatpush1.msra.mxu0 %v538_v31  ;;  %739 = vmatprep.subr.mxu1 %v603_v30  ;;  %v602_v31 = vld [vmem:[%s3583_s3 + $0x220] sm:$0xff]  ;;  %v789_v30 = vld [vmem:[%s3584_s5 + $0x18] sm:$0xff] }
  0x82   :  { %670 = vmatprep.subr.mxu0 %v537_v32  ;;  %740 = vmatpush1.msra.mxu1 %v602_v31  ;;  %v601_v32 = vld [vmem:[%s3583_s3 + $0x218] sm:$0xff] }
  0x83   :  { %671 = vmatpush1.msra.mxu0 %v536_v33  ;;  %741 = vmatprep.subr.mxu1 %v601_v32  ;;  %v600_v33 = vld [vmem:[%s3583_s3 + $0x210] sm:$0xff]  ;;  %v881_v31 = vld [vmem:[%s3584_s5 + $0x2f8] sm:$0xff]  ;;  %v787_v32 = vld [vmem:[%s3584_s5 + $0x8] sm:$0xff] }
  0x84   :  { %672 = vmatprep.subr.mxu0 %v535_v34  ;;  %742 = vmatpush1.msra.mxu1 %v600_v33  ;;  %v599_v34 = vld [vmem:[%s3583_s3 + $0x208] sm:$0xff]  ;;  %v833_v33 = vld [vmem:[%s3584_s5 + $0x178] sm:$0xff] }
  0x85   :  { %673 = vmatpush1.msra.mxu0 %v534_v35  ;;  %743 = vmatprep.subr.mxu1 %v599_v34  ;;  %v598_v35 = vld [vmem:[%s3583_s3 + $0x200] sm:$0xff] }
  0x86   :  { %674 = vmatprep.subr.mxu0 %v597_v36  ;;  %744 = vmatpush1.msra.mxu1 %v598_v35  ;;  %v1675_v36 = vmov 0.0   ;;  %v786_v34 = vld [vmem:[%s3584_s5] sm:$0xff] }
  0x87   :  { %675 = vmatpush2.msra.mxu0 %v596_v37  ;;  %777 = vmatprep.mubr.f32.mxu1 %v1675_v36  ;;  %v832_v37 = vld [vmem:[%s3584_s5 + $0x170] sm:$0xff]  ;;  %v878_v35 = vld [vmem:[%s3584_s5 + $0x2e0] sm:$0xff] }
  0x88   :  { %676 = vmatprep.subr.mxu0 %v595_v38  ;;  %899 = vmatprep.subr.mxu1 %v832_v37  ;;  %v234_v38 = vlaneseq  ;;  %v830_v37 = vld [vmem:[%s3584_s5 + $0x160] sm:$0xff] }
  0x89   :  { %677 = vmatpush2.msra.mxu0 %v594_v39 }
  0x8a   :  { %678 = vmatprep.subr.mxu0 %v593_v40  ;;  %v2637_v39 = vshrl.u32 %v234_v38, 7  ;;  %v880_v38 = vld [vmem:[%s3584_s5 + $0x2f0] sm:$0xff] }
  0x8b   :  { %679 = vmatpush2.msra.mxu0 %v592_v41  ;;  %v232_v41 = vld [vmem:[%s3585_s2] sm:$0x7] }
  0x8c   :  { %680 = vmatprep.subr.mxu0 %v591_v42  ;;  %v2640_v40 = vsub.s32 0, %v2637_v39  ;;  %v2646_v42 = vsub.s32 1, %v2637_v39 }
  0x8d   :  { %681 = vmatpush2.msra.mxu0 %v590_v43 }
  0x8e   :  { %682 = vmatprep.subr.mxu0 %v589_v44  ;;  %v237_v43 = vrot.slane %v232_v41, %v2640_v40  ;;  %v241_v44 = vrot.slane %v232_v41, %v2646_v42 }
  0x8f   :  { %683 = vmatpush2.msra.mxu0 %v588_v45 }
  0x90   :  { %684 = vmatprep.subr.mxu0 %v587_v49 }
  0x91   :  { %685 = vmatpush2.msra.mxu0 %v586_v51 }
  0x92   :  { %686 = vmatprep.subr.mxu0 %v585_v53 }
  0x93   :  { %687 = vmatpush2.msra.mxu0 %v584_v55  ;;  %v2657_v55 = vsub.s32 2, %v2637_v39 }
  0x94   :  { %688 = vmatprep.subr.mxu0 %v583_v57 }
  0x95   :  { %689 = vmatpush2.msra.mxu0 %v582_v59  ;;  %v245_v58 = vrot.slane %v232_v41, %v2657_v55  ;;  %v875_v41 = vld [vmem:[%s3584_s5 + $0x2c8] sm:$0xff] }
  0x96   :  { %690 = vmatprep.subr.mxu0 %v581_v61 }
  0x97   :  { %691 = vmatpush2.msra.mxu0 %v580_v0 }
  0x98   :  { %692 = vmatprep.subr.mxu0 %v579_v4 }
  0x99   :  { %693 = vmatpush2.msra.mxu0 %v578_v7  ;;  %v829_v7 = vld [vmem:[%s3584_s5 + $0x158] sm:$0xff] }
  0x9a   :  { %694 = vmatprep.subr.mxu0 %v577_v9  ;;  %v826_v9 = vld [vmem:[%s3584_s5 + $0x140] sm:$0xff] }
  0x9b   :  { %695 = vmatpush2.msra.mxu0 %v576_v63  ;;  %v823_v63 = vld [vmem:[%s3584_s5 + $0x128] sm:$0xff] }
  0x9c   :  { %696 = vmatprep.subr.mxu0 %v575_v1  ;;  %v820_v1 = vld [vmem:[%s3584_s5 + $0x110] sm:$0xff] }
  0x9d   :  { %697 = vmatpush2.msra.mxu0 %v574_v11  ;;  %v817_v11 = vld [vmem:[%s3584_s5 + $0xf8] sm:$0xff] }
  0x9e   :  { %698 = vmatprep.subr.mxu0 %v573_v13  ;;  %v814_v13 = vld [vmem:[%s3584_s5 + $0xe0] sm:$0xff] }
  0x9f   :  { %699 = vmatpush2.msra.mxu0 %v572_v15  ;;  %v811_v15 = vld [vmem:[%s3584_s5 + $0xc8] sm:$0xff] }
  0xa0   :  { %700 = vmatprep.subr.mxu0 %v571_v17  ;;  %v808_v17 = vld [vmem:[%s3584_s5 + $0xb0] sm:$0xff] }
  0xa1   :  { %701 = vmatpush2.msra.mxu0 %v570_v19  ;;  %v805_v19 = vld [vmem:[%s3584_s5 + $0x98] sm:$0xff] }
  0xa2   :  { %702 = vmatprep.subr.mxu0 %v569_v21  ;;  %v802_v21 = vld [vmem:[%s3584_s5 + $0x80] sm:$0xff] }
  0xa3   :  { %703 = vmatpush2.msra.mxu0 %v568_v22  ;;  %v801_v22 = vld [vmem:[%s3584_s5 + $0x78] sm:$0xff] }
  0xa4   :  { %704 = vmatprep.subr.mxu0 %v567_v23  ;;  %v799_v23 = vld [vmem:[%s3584_s5 + $0x68] sm:$0xff] }
  0xa5   :  { %705 = vmatpush2.msra.mxu0 %v566_v24  ;;  %v798_v24 = vld [vmem:[%s3584_s5 + $0x60] sm:$0xff] }
  0xa6   :  { %1639 = vmatprep.subr.mxu0 %v881_v31  ;;  %v839_v31 = vld [vmem:[%s3584_s5 + $0x1a8] sm:$0xff] }
 0x103   :  { %v315_v45 = vpop.f32.mrf.mxu0 }
 0x104   :  { %v316_v46 = vadd.f32 %v315_v45, %v237_v43  ;;  %v879_v43 = vld [vmem:[%s3584_s5 + $0x2e8] sm:$0xff]  ;;  %v872_v45 = vld [vmem:[%s3584_s5 + $0x2b0] sm:$0xff] }
 0x105   :  { %v386_v47 = vpop.f32.mrf.mxu1  ;;  %v317_v48 = vpop.f32.mrf.mxu0 }
 0x106   :  { %v387_v49 = vadd.f32 %v386_v47, %v316_v46  ;;  %v318_v50 = vadd.f32 %v317_v48, %v241_v44  ;;  %v827_v44 = vld [vmem:[%s3584_s5 + $0x148] sm:$0xff]  ;;  %v877_v46 = vld [vmem:[%s3584_s5 + $0x2d8] sm:$0xff]  ;;  %v824_v47 = vld [vmem:[%s3584_s5 + $0x130] sm:$0xff] }
 0x107   :  { %v388_v51 = vpop.f32.mrf.mxu1  ;;  %v876_v48 = vld [vmem:[%s3584_s5 + $0x2d0] sm:$0xff] }
 0x108   :  { %v531_v52 = vmax.f32 %v387_v49, 0.0  ;;  %v389_v53 = vadd.f32 %v388_v51, %v318_v50  ;;  %v869_v49 = vld [vmem:[%s3584_s5 + $0x298] sm:$0xff]  ;;  %v874_v50 = vld [vmem:[%s3584_s5 + $0x2c0] sm:$0xff] }
 0x109   :  { %v821_v51 = vld [vmem:[%s3584_s5 + $0x118] sm:$0xff] }
 0x10a   :  { %1545 = vst [vmem:[%s3586_s10] sm:$0xff] %v531_v52  ;;  %v532_v54 = vmax.f32 %v389_v53, 0.0  ;;  %v866_v53 = vld [vmem:[%s3584_s5 + $0x280] sm:$0xff] }
 0x10c   :  { %1546 = vst [vmem:[%s3586_s10 + $0x8] sm:$0xff] %v532_v54  ;;  %706 = vmatprep.mubr.f32.mxu0 %v532_v54  ;;  %v871_v54 = vld [vmem:[%s3584_s5 + $0x2a8] sm:$0xff] }
 0x10d   :  { %707 = vmatmul.mubr.f32.vlgmr.msra.gmra.mxu0 %v531_v52  ;;  %v873_v52 = vld [vmem:[%s3584_s5 + $0x2b8] sm:$0xff] }
 0x10e   :  { %1640 = vmatpush3.msra.mxu0 %v833_v33  ;;  %v791_v33 = vld [vmem:[%s3584_s5 + $0x28] sm:$0xff] }
 0x10f   :  { %1641 = vmatprep.subr.mxu0 %v878_v35  ;;  %v836_v35 = vld [vmem:[%s3584_s5 + $0x190] sm:$0xff] }
 0x110   :  { %1642 = vmatpush3.msra.mxu0 %v830_v37  ;;  %v834_v37 = vld [vmem:[%s3584_s5 + $0x180] sm:$0xff] }
 0x111   :  { %1643 = vmatprep.subr.mxu0 %v875_v41  ;;  %v1104_v41 = vld [vmem:[%s3587_s7 + $0x1e8] sm:$0xff] }
 0x112   :  { %1644 = vmatpush3.msra.mxu0 %v827_v44  ;;  %v630_v44 = vld [vmem:[%s3588_s4] sm:$0x3] }
 0x113   :  { %1645 = vmatprep.subr.mxu0 %v872_v45 }
 0x114   :  { %1646 = vmatpush3.msra.mxu0 %v824_v47  ;;  %v639_v47 = vrot.slane %v630_v44, %v2646_v42 }
 0x115   :  { %1647 = vmatprep.subr.mxu0 %v869_v49 }
 0x116   :  { %1648 = vmatpush3.msra.mxu0 %v821_v51 }
 0x117   :  { %1649 = vmatprep.subr.mxu0 %v866_v53 }
 0x125   :  { %v1601_v56 = vpop.f32.mrf.mxu0 }
 0x126   :  { %v1636_v57 = vpop.f32.mrf.mxu1 }
 0x127   :  { %v1602_v59 = vpop.f32.mrf.mxu0 }
 0x128   :  { %v1637_v60 = vpop.f32.mrf.mxu1  ;;  %v1603_v61 = vadd.f32 %v1602_v59, %v1601_v56  ;;  %v818_v56 = vld [vmem:[%s3584_s5 + $0x100] sm:$0xff]  ;;  %v868_v59 = vld [vmem:[%s3584_s5 + $0x290] sm:$0xff] }
 0x129   :  { %v1638_v0 = vadd.f32 %v1637_v60, %v1636_v57  ;;  %v870_v57 = vld [vmem:[%s3584_s5 + $0x2a0] sm:$0xff]  ;;  %v815_v60 = vld [vmem:[%s3584_s5 + $0xe8] sm:$0xff]  ;;  %1650 = vmatpush3.msra.mxu0 %v818_v56 }
 0x12a   :  { %v458_v62 = vadd.f32 %v1603_v61, %v245_v58  ;;  %v863_v58 = vld [vmem:[%s3584_s5 + $0x268] sm:$0xff] }
 0x12b   :  { %v867_v61 = vld [vmem:[%s3584_s5 + $0x288] sm:$0xff]  ;;  %1651 = vmatprep.subr.mxu0 %v863_v58  ;;  %v1103_v58 = vld [vmem:[%s3587_s7 + $0x1e0] sm:$0xff] }
 0x12c   :  { %v528_v3 = vadd.f32 %v1638_v0, %v458_v62  ;;  %v860_v62 = vld [vmem:[%s3584_s5 + $0x250] sm:$0xff]  ;;  %v865_v0 = vld [vmem:[%s3584_s5 + $0x278] sm:$0xff]  ;;  %1652 = vmatpush3.msra.mxu0 %v815_v60  ;;  %v1100_v60 = vld [vmem:[%s3587_s7 + $0x1c8] sm:$0xff] }
 0x12d   :  { %1653 = vmatprep.subr.mxu0 %v860_v62  ;;  %v1099_v62 = vld [vmem:[%s3587_s7 + $0x1c0] sm:$0xff] }
 0x12e   :  { %v533_v4 = vmax.f32 %v528_v3, 0.0  ;;  %v812_v3 = vld [vmem:[%s3584_s5 + $0xd0] sm:$0xff] }
 0x12f   :  { %1654 = vmatpush3.msra.mxu0 %v812_v3  ;;  %v1096_v3 = vld [vmem:[%s3587_s7 + $0x1a8] sm:$0xff] }
 0x130   :  { %1547 = vst [vmem:[%s3586_s10 + $0x10] sm:$0xff] %v533_v4  ;;  %778 = vmatmul.mubr.f32.vlgmr.msra.gmra.mxu1 %v533_v4  ;;  %v864_v4 = vld [vmem:[%s3584_s5 + $0x270] sm:$0xff] }
 0x131   :  { %900 = vmatpush1.msra.mxu1 %v831_v6  ;;  %v857_v6 = vld [vmem:[%s3584_s5 + $0x238] sm:$0xff] }
 0x132   :  { %901 = vmatprep.subr.mxu1 %v829_v7  ;;  %v862_v7 = vld [vmem:[%s3584_s5 + $0x260] sm:$0xff]  ;;  %1655 = vmatprep.subr.mxu0 %v857_v6 }
 0x133   :  { %902 = vmatpush1.msra.mxu1 %v828_v8  ;;  %v809_v8 = vld [vmem:[%s3584_s5 + $0xb8] sm:$0xff]  ;;  %v1095_v6 = vld [vmem:[%s3587_s7 + $0x1a0] sm:$0xff] }
 0x134   :  { %903 = vmatprep.subr.mxu1 %v826_v9  ;;  %v861_v9 = vld [vmem:[%s3584_s5 + $0x258] sm:$0xff]  ;;  %1656 = vmatpush3.msra.mxu0 %v809_v8  ;;  %v1092_v8 = vld [vmem:[%s3587_s7 + $0x188] sm:$0xff] }
 0x135   :  { %904 = vmatpush1.msra.mxu1 %v825_v10  ;;  %v854_v10 = vld [vmem:[%s3584_s5 + $0x220] sm:$0xff] }
 0x136   :  { %905 = vmatprep.subr.mxu1 %v823_v63  ;;  %v859_v63 = vld [vmem:[%s3584_s5 + $0x248] sm:$0xff]  ;;  %1657 = vmatprep.subr.mxu0 %v854_v10  ;;  %v1091_v10 = vld [vmem:[%s3587_s7 + $0x180] sm:$0xff] }
 0x137   :  { %906 = vmatpush1.msra.mxu1 %v822_v2  ;;  %v806_v2 = vld [vmem:[%s3584_s5 + $0xa0] sm:$0xff] }
 0x138   :  { %907 = vmatprep.subr.mxu1 %v820_v1  ;;  %v858_v1 = vld [vmem:[%s3584_s5 + $0x240] sm:$0xff]  ;;  %1658 = vmatpush3.msra.mxu0 %v806_v2  ;;  %v1088_v2 = vld [vmem:[%s3587_s7 + $0x168] sm:$0xff] }
 0x139   :  { %908 = vmatpush1.msra.mxu1 %v819_v5  ;;  %v851_v5 = vld [vmem:[%s3584_s5 + $0x208] sm:$0xff] }
 0x13a   :  { %909 = vmatprep.subr.mxu1 %v817_v11  ;;  %v856_v11 = vld [vmem:[%s3584_s5 + $0x230] sm:$0xff]  ;;  %1659 = vmatprep.subr.mxu0 %v851_v5  ;;  %v1087_v5 = vld [vmem:[%s3587_s7 + $0x160] sm:$0xff] }
 0x13b   :  { %910 = vmatpush1.msra.mxu1 %v816_v12  ;;  %v803_v12 = vld [vmem:[%s3584_s5 + $0x88] sm:$0xff] }
 0x13c   :  { %911 = vmatprep.subr.mxu1 %v814_v13  ;;  %v855_v13 = vld [vmem:[%s3584_s5 + $0x228] sm:$0xff]  ;;  %1660 = vmatpush3.msra.mxu0 %v803_v12 }
 0x13d   :  { %912 = vmatpush1.msra.mxu1 %v813_v14  ;;  %v848_v14 = vld [vmem:[%s3584_s5 + $0x1f0] sm:$0xff]  ;;  %v1084_v12 = vld [vmem:[%s3587_s7 + $0x148] sm:$0xff] }
 0x13e   :  { %913 = vmatprep.subr.mxu1 %v811_v15  ;;  %v853_v15 = vld [vmem:[%s3584_s5 + $0x218] sm:$0xff]  ;;  %1661 = vmatprep.subr.mxu0 %v848_v14  ;;  %v1083_v14 = vld [vmem:[%s3587_s7 + $0x140] sm:$0xff] }
 0x13f   :  { %914 = vmatpush1.msra.mxu1 %v810_v16  ;;  %v800_v16 = vld [vmem:[%s3584_s5 + $0x70] sm:$0xff] }
 0x140   :  { %915 = vmatprep.subr.mxu1 %v808_v17  ;;  %v852_v17 = vld [vmem:[%s3584_s5 + $0x210] sm:$0xff]  ;;  %1662 = vmatpush3.msra.mxu0 %v800_v16  ;;  %v1080_v16 = vld [vmem:[%s3587_s7 + $0x128] sm:$0xff] }
 0x141   :  { %916 = vmatpush1.msra.mxu1 %v807_v18  ;;  %v850_v18 = vld [vmem:[%s3584_s5 + $0x200] sm:$0xff] }
 0x142   :  { %917 = vmatprep.subr.mxu1 %v805_v19  ;;  %v849_v19 = vld [vmem:[%s3584_s5 + $0x1f8] sm:$0xff] }
 0x143   :  { %918 = vmatpush1.msra.mxu1 %v804_v20  ;;  %v847_v20 = vld [vmem:[%s3584_s5 + $0x1e8] sm:$0xff] }
 0x144   :  { %919 = vmatprep.subr.mxu1 %v802_v21  ;;  %v846_v21 = vld [vmem:[%s3584_s5 + $0x1e0] sm:$0xff] }
 0x145   :  { %920 = vmatpush1.msra.mxu1 %v801_v22  ;;  %v844_v22 = vld [vmem:[%s3584_s5 + $0x1d0] sm:$0xff] }
 0x146   :  { %921 = vmatprep.subr.mxu1 %v799_v23  ;;  %v845_v23 = vld [vmem:[%s3584_s5 + $0x1d8] sm:$0xff] }
 0x147   :  { %922 = vmatpush1.msra.mxu1 %v798_v24  ;;  %1663 = vmatprep.subr.mxu0 %v845_v23  ;;  %v843_v24 = vld [vmem:[%s3584_s5 + $0x1c8] sm:$0xff]  ;;  %v1203_v23 = vld [vmem:[%s3587_s7 + $0x500] sm:$0xff] }
 0x148   :  { %923 = vmatprep.subr.mxu1 %v796_v25  ;;  %v797_v25 = vld [vmem:[%s3584_s5 + $0x58] sm:$0xff] }
 0x149   :  { %924 = vmatpush1.msra.mxu1 %v795_v26  ;;  %1664 = vmatpush3.msra.mxu0 %v797_v25  ;;  %v841_v26 = vld [vmem:[%s3584_s5 + $0x1b8] sm:$0xff]  ;;  %v1200_v25 = vld [vmem:[%s3587_s7 + $0x4e8] sm:$0xff] }
 0x14a   :  { %925 = vmatprep.subr.mxu1 %v793_v27  ;;  %v842_v27 = vld [vmem:[%s3584_s5 + $0x1c0] sm:$0xff] }
 0x14b   :  { %926 = vmatpush1.msra.mxu1 %v792_v28  ;;  %1665 = vmatprep.subr.mxu0 %v842_v27  ;;  %v840_v28 = vld [vmem:[%s3584_s5 + $0x1b0] sm:$0xff]  ;;  %v1199_v27 = vld [vmem:[%s3587_s7 + $0x4e0] sm:$0xff] }
 0x14c   :  { %927 = vmatprep.subr.mxu1 %v790_v29  ;;  %v794_v29 = vld [vmem:[%s3584_s5 + $0x40] sm:$0xff] }
 0x14d   :  { %928 = vmatpush1.msra.mxu1 %v789_v30  ;;  %1666 = vmatpush3.msra.mxu0 %v794_v29  ;;  %v838_v30 = vld [vmem:[%s3584_s5 + $0x1a0] sm:$0xff]  ;;  %v1196_v29 = vld [vmem:[%s3587_s7 + $0x4c8] sm:$0xff] }
 0x14e   :  { %929 = vmatprep.subr.mxu1 %v787_v32  ;;  %1667 = vmatprep.subr.mxu0 %v839_v31  ;;  %v837_v32 = vld [vmem:[%s3584_s5 + $0x198] sm:$0xff]  ;;  %v1195_v31 = vld [vmem:[%s3587_s7 + $0x4c0] sm:$0xff] }
 0x14f   :  { %930 = vmatpush1.msra.mxu1 %v786_v34  ;;  %1668 = vmatpush3.msra.mxu0 %v791_v33  ;;  %v835_v34 = vld [vmem:[%s3584_s5 + $0x188] sm:$0xff] }
 0x150   :  { %931 = vmatprep.subr.mxu1 %v880_v38  ;;  %1669 = vmatprep.subr.mxu0 %v836_v35  ;;  %v788_v38 = vld [vmem:[%s3584_s5 + $0x10] sm:$0xff]  ;;  %v1192_v33 = vld [vmem:[%s3587_s7 + $0x4a8] sm:$0xff]  ;;  %v1191_v35 = vld [vmem:[%s3587_s7 + $0x4a0] sm:$0xff] }
 0x151   :  { %932 = vmatpush2.msra.mxu1 %v879_v43  ;;  %1670 = vmatpush3.msra.mxu0 %v788_v38  ;;  %v1232_v43 = vld [vmem:[%s3587_s7 + $0x5e8] sm:$0xff] }
 0x152   :  { %933 = vmatprep.subr.mxu1 %v877_v46  ;;  %1257 = vmatprep.subr.mxu0 %v1104_v41  ;;  %v635_v46 = vrot.slane %v630_v44, %v2640_v40  ;;  %v1188_v38 = vld [vmem:[%s3587_s7 + $0x488] sm:$0xff]  ;;  %v1059_v41 = vld [vmem:[%s3587_s7 + $0x80] sm:$0xff] }
 0x153   :  { %934 = vmatpush2.msra.mxu1 %v876_v48  ;;  %v1056_v44 = vld [vmem:[%s3587_s7 + $0x68] sm:$0xff] }
 0x154   :  { %935 = vmatprep.subr.mxu1 %v874_v50 }
 0x155   :  { %936 = vmatpush2.msra.mxu1 %v873_v52 }
 0x156   :  { %937 = vmatprep.subr.mxu1 %v871_v54 }
 0x157   :  { %938 = vmatpush2.msra.mxu1 %v870_v57 }
 0x158   :  { %939 = vmatprep.subr.mxu1 %v868_v59  ;;  %v1231_v59 = vld [vmem:[%s3587_s7 + $0x5e0] sm:$0xff] }
 0x159   :  { %940 = vmatpush2.msra.mxu1 %v867_v61  ;;  %v1228_v61 = vld [vmem:[%s3587_s7 + $0x5c8] sm:$0xff] }
 0x15a   :  { %941 = vmatprep.subr.mxu1 %v865_v0  ;;  %v1227_v0 = vld [vmem:[%s3587_s7 + $0x5c0] sm:$0xff] }
 0x15b   :  { %942 = vmatpush2.msra.mxu1 %v864_v4  ;;  %v1224_v4 = vld [vmem:[%s3587_s7 + $0x5a8] sm:$0xff] }
 0x15c   :  { %943 = vmatprep.subr.mxu1 %v862_v7  ;;  %v1223_v7 = vld [vmem:[%s3587_s7 + $0x5a0] sm:$0xff] }
 0x15d   :  { %944 = vmatpush2.msra.mxu1 %v861_v9  ;;  %v1220_v9 = vld [vmem:[%s3587_s7 + $0x588] sm:$0xff] }
 0x15e   :  { %945 = vmatprep.subr.mxu1 %v859_v63  ;;  %v1219_v63 = vld [vmem:[%s3587_s7 + $0x580] sm:$0xff] }
 0x15f   :  { %946 = vmatpush2.msra.mxu1 %v858_v1  ;;  %v1216_v1 = vld [vmem:[%s3587_s7 + $0x568] sm:$0xff] }
 0x160   :  { %947 = vmatprep.subr.mxu1 %v856_v11  ;;  %v1215_v11 = vld [vmem:[%s3587_s7 + $0x560] sm:$0xff] }
 0x161   :  { %948 = vmatpush2.msra.mxu1 %v855_v13  ;;  %v1212_v13 = vld [vmem:[%s3587_s7 + $0x548] sm:$0xff] }
 0x162   :  { %949 = vmatprep.subr.mxu1 %v853_v15  ;;  %v1211_v15 = vld [vmem:[%s3587_s7 + $0x540] sm:$0xff] }
 0x163   :  { %950 = vmatpush2.msra.mxu1 %v852_v17  ;;  %v1208_v17 = vld [vmem:[%s3587_s7 + $0x528] sm:$0xff] }
 0x164   :  { %951 = vmatprep.subr.mxu1 %v850_v18  ;;  %v1079_v18 = vld [vmem:[%s3587_s7 + $0x120] sm:$0xff] }
 0x165   :  { %952 = vmatpush2.msra.mxu1 %v849_v19  ;;  %v1207_v19 = vld [vmem:[%s3587_s7 + $0x520] sm:$0xff] }
 0x166   :  { %953 = vmatprep.subr.mxu1 %v847_v20  ;;  %v1076_v20 = vld [vmem:[%s3587_s7 + $0x108] sm:$0xff] }
 0x167   :  { %954 = vmatpush2.msra.mxu1 %v846_v21  ;;  %v1204_v21 = vld [vmem:[%s3587_s7 + $0x508] sm:$0xff] }
 0x168   :  { %955 = vmatprep.subr.mxu1 %v844_v22  ;;  %v1075_v22 = vld [vmem:[%s3587_s7 + $0x100] sm:$0xff] }
 0x169   :  { %956 = vmatpush2.msra.mxu1 %v843_v24  ;;  %v1072_v24 = vld [vmem:[%s3587_s7 + $0xe8] sm:$0xff] }
 0x16a   :  { %957 = vmatprep.subr.mxu1 %v841_v26  ;;  %v1071_v26 = vld [vmem:[%s3587_s7 + $0xe0] sm:$0xff] }
 0x16b   :  { %958 = vmatpush2.msra.mxu1 %v840_v28  ;;  %v1068_v28 = vld [vmem:[%s3587_s7 + $0xc8] sm:$0xff] }
 0x16c   :  { %959 = vmatprep.subr.mxu1 %v838_v30  ;;  %v1067_v30 = vld [vmem:[%s3587_s7 + $0xc0] sm:$0xff] }
 0x16d   :  { %960 = vmatpush2.msra.mxu1 %v837_v32  ;;  %v1064_v32 = vld [vmem:[%s3587_s7 + $0xa8] sm:$0xff] }
 0x16e   :  { %961 = vmatprep.subr.mxu1 %v835_v34  ;;  %v1063_v34 = vld [vmem:[%s3587_s7 + $0xa0] sm:$0xff] }
 0x16f   :  { %962 = vmatpush2.msra.mxu1 %v834_v37  ;;  %v1060_v37 = vld [vmem:[%s3587_s7 + $0x88] sm:$0xff] }
 0x170   :  { %1328 = vmatprep.subr.mxu1 %v1232_v43  ;;  %v1187_v43 = vld [vmem:[%s3587_s7 + $0x480] sm:$0xff] }
 0x1cd   :  { %v708_v45 = vpop.f32.mrf.mxu0 }
 0x1ce   :  { %v709_v49 = vadd.f32 %v708_v45, %v635_v46  ;;  %v1055_v45 = vld [vmem:[%s3587_s7 + $0x60] sm:$0xff]  ;;  %v1052_v46 = vld [vmem:[%s3587_s7 + $0x48] sm:$0xff] }
 0x1cf   :  { %v710_v48 = vpop.f32.mrf.mxu0 }
 0x1d0   :  { %v711_v51 = vadd.f32 %v710_v48, %v639_v47  ;;  %v1051_v47 = vld [vmem:[%s3587_s7 + $0x40] sm:$0xff]  ;;  %v1048_v48 = vld [vmem:[%s3587_s7 + $0x28] sm:$0xff] }
 0x1f0   :  { %v779_v50 = vpop.f32.mrf.mxu1 }
 0x1f1   :  { %v780_v52 = vadd.f32 %v779_v50, %v709_v49  ;;  %v1047_v49 = vld [vmem:[%s3587_s7 + $0x20] sm:$0xff]  ;;  %v1044_v50 = vld [vmem:[%s3587_s7 + $0x8] sm:$0xff] }
 0x1f2   :  { %v781_v53 = vpop.f32.mrf.mxu1 }
 0x1f3   :  { %v784_v54 = vmax.f32 %v780_v52, 0.0  ;;  %v782_v56 = vadd.f32 %v781_v53, %v711_v51  ;;  %v1043_v51 = vld [vmem:[%s3587_s7] sm:$0xff]  ;;  %v1168_v52 = vld [vmem:[%s3587_s7 + $0x3e8] sm:$0xff] }
 0x1f4   :  { %v1167_v53 = vld [vmem:[%s3587_s7 + $0x3e0] sm:$0xff] }
 0x1f5   :  { %1548 = vst [vmem:[%s3589_s11] sm:$0xff] %v784_v54  ;;  %v785_v57 = vmax.f32 %v782_v56, 0.0  ;;  %v1163_v56 = vld [vmem:[%s3587_s7 + $0x3c0] sm:$0xff] }
 0x1f7   :  { %1549 = vst [vmem:[%s3589_s11 + $0x8] sm:$0xff] %v785_v57  ;;  %963 = vmatprep.mubr.f32.mxu1 %v785_v57  ;;  %1034 = vmatprep.mubr.f32.mxu0 %v785_v57  ;;  %v1160_v57 = vld [vmem:[%s3587_s7 + $0x3a8] sm:$0xff] }
 0x1f8   :  { %964 = vmatmul.mubr.f32.vlgmr.msra.gmra.mxu1 %v784_v54  ;;  %1035 = vmatmul.mubr.f32.vlgmr.msra.gmra.mxu0 %v784_v54  ;;  %v1164_v54 = vld [vmem:[%s3587_s7 + $0x3c8] sm:$0xff] }
 0x1f9   :  { %1258 = vmatpush1.msra.mxu0 %v1103_v58  ;;  %1329 = vmatpush1.msra.mxu1 %v1231_v59  ;;  %v1159_v58 = vld [vmem:[%s3587_s7 + $0x3a0] sm:$0xff]  ;;  %v1156_v59 = vld [vmem:[%s3587_s7 + $0x388] sm:$0xff] }
 0x1fa   :  { %1259 = vmatprep.subr.mxu0 %v1100_v60  ;;  %1330 = vmatprep.subr.mxu1 %v1228_v61  ;;  %v1155_v60 = vld [vmem:[%s3587_s7 + $0x380] sm:$0xff]  ;;  %v1152_v61 = vld [vmem:[%s3587_s7 + $0x368] sm:$0xff] }
 0x1fb   :  { %1260 = vmatpush1.msra.mxu0 %v1099_v62  ;;  %1331 = vmatpush1.msra.mxu1 %v1227_v0  ;;  %v1151_v62 = vld [vmem:[%s3587_s7 + $0x360] sm:$0xff]  ;;  %v1148_v0 = vld [vmem:[%s3587_s7 + $0x348] sm:$0xff] }
 0x1fc   :  { %1261 = vmatprep.subr.mxu0 %v1096_v3  ;;  %1332 = vmatprep.subr.mxu1 %v1224_v4  ;;  %v1147_v3 = vld [vmem:[%s3587_s7 + $0x340] sm:$0xff]  ;;  %v1144_v4 = vld [vmem:[%s3587_s7 + $0x328] sm:$0xff] }
 0x1fd   :  { %1262 = vmatpush1.msra.mxu0 %v1095_v6  ;;  %1333 = vmatpush1.msra.mxu1 %v1223_v7  ;;  %v1143_v6 = vld [vmem:[%s3587_s7 + $0x320] sm:$0xff]  ;;  %v1140_v7 = vld [vmem:[%s3587_s7 + $0x308] sm:$0xff] }
 0x1fe   :  { %1263 = vmatprep.subr.mxu0 %v1092_v8  ;;  %1334 = vmatprep.subr.mxu1 %v1220_v9  ;;  %v1139_v8 = vld [vmem:[%s3587_s7 + $0x300] sm:$0xff]  ;;  %v1136_v9 = vld [vmem:[%s3587_s7 + $0x2e8] sm:$0xff] }
 0x1ff   :  { %1264 = vmatpush1.msra.mxu0 %v1091_v10  ;;  %1335 = vmatpush1.msra.mxu1 %v1219_v63  ;;  %v1135_v10 = vld [vmem:[%s3587_s7 + $0x2e0] sm:$0xff]  ;;  %v1132_v63 = vld [vmem:[%s3587_s7 + $0x2c8] sm:$0xff] }
 0x200   :  { %1265 = vmatprep.subr.mxu0 %v1088_v2  ;;  %1336 = vmatprep.subr.mxu1 %v1216_v1  ;;  %v1131_v2 = vld [vmem:[%s3587_s7 + $0x2c0] sm:$0xff]  ;;  %v1128_v1 = vld [vmem:[%s3587_s7 + $0x2a8] sm:$0xff] }
 0x201   :  { %1266 = vmatpush1.msra.mxu0 %v1087_v5  ;;  %1337 = vmatpush1.msra.mxu1 %v1215_v11  ;;  %v1127_v5 = vld [vmem:[%s3587_s7 + $0x2a0] sm:$0xff]  ;;  %v1124_v11 = vld [vmem:[%s3587_s7 + $0x288] sm:$0xff] }
 0x202   :  { %1267 = vmatprep.subr.mxu0 %v1084_v12  ;;  %1338 = vmatprep.subr.mxu1 %v1212_v13  ;;  %v1123_v12 = vld [vmem:[%s3587_s7 + $0x280] sm:$0xff]  ;;  %v1120_v13 = vld [vmem:[%s3587_s7 + $0x268] sm:$0xff] }
 0x203   :  { %1268 = vmatpush1.msra.mxu0 %v1083_v14  ;;  %1339 = vmatpush1.msra.mxu1 %v1211_v15  ;;  %v1119_v14 = vld [vmem:[%s3587_s7 + $0x260] sm:$0xff]  ;;  %v1184_v15 = vld [vmem:[%s3587_s7 + $0x468] sm:$0xff] }
 0x204   :  { %1269 = vmatprep.subr.mxu0 %v1080_v16  ;;  %1340 = vmatprep.subr.mxu1 %v1208_v17  ;;  %v1116_v16 = vld [vmem:[%s3587_s7 + $0x248] sm:$0xff]  ;;  %v1183_v17 = vld [vmem:[%s3587_s7 + $0x460] sm:$0xff] }
 0x205   :  { %1270 = vmatpush1.msra.mxu0 %v1079_v18  ;;  %1341 = vmatpush1.msra.mxu1 %v1207_v19  ;;  %v1115_v18 = vld [vmem:[%s3587_s7 + $0x240] sm:$0xff]  ;;  %v1180_v19 = vld [vmem:[%s3587_s7 + $0x448] sm:$0xff] }
 0x206   :  { %1271 = vmatprep.subr.mxu0 %v1076_v20  ;;  %1342 = vmatprep.subr.mxu1 %v1204_v21  ;;  %v1112_v20 = vld [vmem:[%s3587_s7 + $0x228] sm:$0xff]  ;;  %v1179_v21 = vld [vmem:[%s3587_s7 + $0x440] sm:$0xff] }
 0x207   :  { %1272 = vmatpush1.msra.mxu0 %v1075_v22  ;;  %1343 = vmatpush1.msra.mxu1 %v1203_v23  ;;  %v1111_v22 = vld [vmem:[%s3587_s7 + $0x220] sm:$0xff]  ;;  %v1176_v23 = vld [vmem:[%s3587_s7 + $0x428] sm:$0xff] }
 0x208   :  { %1273 = vmatprep.subr.mxu0 %v1072_v24  ;;  %1344 = vmatprep.subr.mxu1 %v1200_v25  ;;  %v1108_v24 = vld [vmem:[%s3587_s7 + $0x208] sm:$0xff]  ;;  %v1175_v25 = vld [vmem:[%s3587_s7 + $0x420] sm:$0xff] }
 0x209   :  { %1274 = vmatpush1.msra.mxu0 %v1071_v26  ;;  %1345 = vmatpush1.msra.mxu1 %v1199_v27  ;;  %v1107_v26 = vld [vmem:[%s3587_s7 + $0x200] sm:$0xff]  ;;  %v1172_v27 = vld [vmem:[%s3587_s7 + $0x408] sm:$0xff] }
 0x20a   :  { %1275 = vmatprep.subr.mxu0 %v1068_v28  ;;  %1346 = vmatprep.subr.mxu1 %v1196_v29  ;;  %v1171_v28 = vld [vmem:[%s3587_s7 + $0x400] sm:$0xff]  ;;  %v1234_v29 = vld [vmem:[%s3587_s7 + $0x5f8] sm:$0xff] }
 0x20b   :  { %1276 = vmatpush1.msra.mxu0 %v1067_v30  ;;  %1347 = vmatpush1.msra.mxu1 %v1195_v31  ;;  %v1106_v30 = vld [vmem:[%s3587_s7 + $0x1f8] sm:$0xff]  ;;  %v882_v31 = vld [vmem:[%s3590_s6] sm:$0x7] }
 0x20c   :  { %1277 = vmatprep.subr.mxu0 %v1064_v32  ;;  %1348 = vmatprep.subr.mxu1 %v1192_v33  ;;  %v887_v32 = vrot.slane %v882_v31, %v2640_v40  ;;  %v891_v33 = vrot.slane %v882_v31, %v2646_v42 }
 0x20d   :  { %1278 = vmatpush1.msra.mxu0 %v1063_v34  ;;  %1349 = vmatpush1.msra.mxu1 %v1191_v35 }
 0x20e   :  { %1279 = vmatprep.subr.mxu0 %v1060_v37  ;;  %1350 = vmatprep.subr.mxu1 %v1188_v38  ;;  %v895_v38 = vrot.slane %v882_v31, %v2657_v55  ;;  %v1189_v31 = vld [vmem:[%s3587_s7 + $0x490] sm:$0xff] }
 0x20f   :  { %1280 = vmatpush1.msra.mxu0 %v1059_v41  ;;  %1351 = vmatpush1.msra.mxu1 %v1187_v43 }
 0x210   :  { %1281 = vmatprep.subr.mxu0 %v1056_v44  ;;  %1392 = vmatprep.mubr.f32.mxu1 %v1675_v36 }
 0x211   :  { %1282 = vmatpush1.msra.mxu0 %v1055_v45  ;;  %1352 = vmatprep.subr.mxu1 %v1184_v15  ;;  %v1205_v15 = vld [vmem:[%s3587_s7 + $0x510] sm:$0xff] }
 0x212   :  { %1283 = vmatprep.subr.mxu0 %v1052_v46  ;;  %1353 = vmatpush1.msra.mxu1 %v1183_v17  ;;  %v1202_v17 = vld [vmem:[%s3587_s7 + $0x4f8] sm:$0xff] }
 0x213   :  { %1284 = vmatpush1.msra.mxu0 %v1051_v47  ;;  %1354 = vmatprep.subr.mxu1 %v1180_v19  ;;  %v1201_v19 = vld [vmem:[%s3587_s7 + $0x4f0] sm:$0xff] }
 0x214   :  { %1285 = vmatprep.subr.mxu0 %v1048_v48  ;;  %1355 = vmatpush1.msra.mxu1 %v1179_v21  ;;  %v1198_v21 = vld [vmem:[%s3587_s7 + $0x4d8] sm:$0xff] }
 0x215   :  { %1286 = vmatpush1.msra.mxu0 %v1047_v49  ;;  %1356 = vmatprep.subr.mxu1 %v1176_v23  ;;  %v1233_v49 = vld [vmem:[%s3587_s7 + $0x5f0] sm:$0xff] }
 0x216   :  { %1287 = vmatprep.subr.mxu0 %v1044_v50  ;;  %1357 = vmatpush1.msra.mxu1 %v1175_v25  ;;  %v1197_v23 = vld [vmem:[%s3587_s7 + $0x4d0] sm:$0xff]  ;;  %v1194_v25 = vld [vmem:[%s3587_s7 + $0x4b8] sm:$0xff] }
 0x217   :  { %1288 = vmatpush1.msra.mxu0 %v1043_v51  ;;  %1358 = vmatprep.subr.mxu1 %v1172_v27  ;;  %v1105_v51 = vld [vmem:[%s3587_s7 + $0x1f0] sm:$0xff] }
 0x218   :  { %1289 = vmatprep.subr.mxu0 %v1168_v52  ;;  %1359 = vmatpush1.msra.mxu1 %v1171_v28  ;;  %v1230_v52 = vld [vmem:[%s3587_s7 + $0x5d8] sm:$0xff]  ;;  %v1193_v27 = vld [vmem:[%s3587_s7 + $0x4b0] sm:$0xff] }
 0x219   :  { %1290 = vmatpush2.msra.mxu0 %v1167_v53  ;;  %1399 = vmatprep.subr.mxu1 %v1106_v30  ;;  %v1102_v53 = vld [vmem:[%s3587_s7 + $0x1d8] sm:$0xff]  ;;  %v1065_v28 = vld [vmem:[%s3587_s7 + $0xb0] sm:$0xff] }
 0x21a   :  { %1291 = vmatprep.subr.mxu0 %v1164_v54  ;;  %v1229_v54 = vld [vmem:[%s3587_s7 + $0x5d0] sm:$0xff]  ;;  %v1062_v30 = vld [vmem:[%s3587_s7 + $0x98] sm:$0xff] }
 0x21b   :  { %1292 = vmatpush2.msra.mxu0 %v1163_v56  ;;  %v1101_v56 = vld [vmem:[%s3587_s7 + $0x1d0] sm:$0xff] }
 0x21c   :  { %1293 = vmatprep.subr.mxu0 %v1160_v57  ;;  %v1226_v57 = vld [vmem:[%s3587_s7 + $0x5b8] sm:$0xff] }
 0x21d   :  { %1294 = vmatpush2.msra.mxu0 %v1159_v58  ;;  %v1098_v58 = vld [vmem:[%s3587_s7 + $0x1b8] sm:$0xff] }
 0x21e   :  { %1295 = vmatprep.subr.mxu0 %v1156_v59  ;;  %v1225_v59 = vld [vmem:[%s3587_s7 + $0x5b0] sm:$0xff] }
 0x21f   :  { %1296 = vmatpush2.msra.mxu0 %v1155_v60  ;;  %v1097_v60 = vld [vmem:[%s3587_s7 + $0x1b0] sm:$0xff] }
 0x220   :  { %1297 = vmatprep.subr.mxu0 %v1152_v61  ;;  %v1222_v61 = vld [vmem:[%s3587_s7 + $0x598] sm:$0xff] }
 0x221   :  { %1298 = vmatpush2.msra.mxu0 %v1151_v62  ;;  %v1094_v62 = vld [vmem:[%s3587_s7 + $0x198] sm:$0xff] }
 0x222   :  { %1299 = vmatprep.subr.mxu0 %v1148_v0  ;;  %v1221_v0 = vld [vmem:[%s3587_s7 + $0x590] sm:$0xff] }
 0x223   :  { %1300 = vmatpush2.msra.mxu0 %v1147_v3  ;;  %v1093_v3 = vld [vmem:[%s3587_s7 + $0x190] sm:$0xff] }
 0x224   :  { %1301 = vmatprep.subr.mxu0 %v1144_v4  ;;  %v1218_v4 = vld [vmem:[%s3587_s7 + $0x578] sm:$0xff] }
 0x225   :  { %1302 = vmatpush2.msra.mxu0 %v1143_v6  ;;  %v1090_v6 = vld [vmem:[%s3587_s7 + $0x178] sm:$0xff] }
 0x226   :  { %1303 = vmatprep.subr.mxu0 %v1140_v7  ;;  %v1217_v7 = vld [vmem:[%s3587_s7 + $0x570] sm:$0xff] }
 0x227   :  { %1304 = vmatpush2.msra.mxu0 %v1139_v8  ;;  %v1089_v8 = vld [vmem:[%s3587_s7 + $0x170] sm:$0xff] }
 0x228   :  { %1305 = vmatprep.subr.mxu0 %v1136_v9  ;;  %v1214_v9 = vld [vmem:[%s3587_s7 + $0x558] sm:$0xff] }
 0x229   :  { %1306 = vmatpush2.msra.mxu0 %v1135_v10  ;;  %v1086_v10 = vld [vmem:[%s3587_s7 + $0x158] sm:$0xff] }
 0x22a   :  { %1307 = vmatprep.subr.mxu0 %v1132_v63  ;;  %v1213_v63 = vld [vmem:[%s3587_s7 + $0x550] sm:$0xff] }
 0x22b   :  { %1308 = vmatpush2.msra.mxu0 %v1131_v2  ;;  %v1085_v2 = vld [vmem:[%s3587_s7 + $0x150] sm:$0xff] }
 0x22c   :  { %1309 = vmatprep.subr.mxu0 %v1128_v1  ;;  %v1210_v1 = vld [vmem:[%s3587_s7 + $0x538] sm:$0xff] }
 0x22d   :  { %1310 = vmatpush2.msra.mxu0 %v1127_v5  ;;  %v1082_v5 = vld [vmem:[%s3587_s7 + $0x138] sm:$0xff] }
 0x22e   :  { %1311 = vmatprep.subr.mxu0 %v1124_v11  ;;  %v1209_v11 = vld [vmem:[%s3587_s7 + $0x530] sm:$0xff] }
 0x22f   :  { %1312 = vmatpush2.msra.mxu0 %v1123_v12  ;;  %v1081_v12 = vld [vmem:[%s3587_s7 + $0x130] sm:$0xff] }
 0x230   :  { %1313 = vmatprep.subr.mxu0 %v1120_v13  ;;  %v1206_v13 = vld [vmem:[%s3587_s7 + $0x518] sm:$0xff] }
 0x231   :  { %1314 = vmatpush2.msra.mxu0 %v1119_v14  ;;  %v1078_v14 = vld [vmem:[%s3587_s7 + $0x118] sm:$0xff] }
 0x232   :  { %1315 = vmatprep.subr.mxu0 %v1116_v16  ;;  %v1077_v16 = vld [vmem:[%s3587_s7 + $0x110] sm:$0xff] }
 0x233   :  { %1316 = vmatpush2.msra.mxu0 %v1115_v18  ;;  %v1074_v18 = vld [vmem:[%s3587_s7 + $0xf8] sm:$0xff] }
 0x234   :  { %1317 = vmatprep.subr.mxu0 %v1112_v20  ;;  %v1073_v20 = vld [vmem:[%s3587_s7 + $0xf0] sm:$0xff] }
 0x235   :  { %1318 = vmatpush2.msra.mxu0 %v1111_v22  ;;  %v1070_v22 = vld [vmem:[%s3587_s7 + $0xd8] sm:$0xff] }
 0x236   :  { %1319 = vmatprep.subr.mxu0 %v1108_v24  ;;  %v1069_v24 = vld [vmem:[%s3587_s7 + $0xd0] sm:$0xff] }
 0x237   :  { %1320 = vmatpush2.msra.mxu0 %v1107_v26  ;;  %v1066_v26 = vld [vmem:[%s3587_s7 + $0xb8] sm:$0xff] }
 0x238   :  { %1470 = vmatprep.subr.mxu0 %v1234_v29  ;;  %v1190_v29 = vld [vmem:[%s3587_s7 + $0x498] sm:$0xff] }
 0x2b8   :  { %v965_v34 = vpop.f32.mrf.mxu1  ;;  %v1671_v35 = vpop.f32.mrf.mxu0 }
 0x2b9   :  { %v966_v37 = vadd.f32 %v965_v34, %v887_v32  ;;  %v1061_v32 = vld [vmem:[%s3587_s7 + $0x90] sm:$0xff]  ;;  %v1058_v34 = vld [vmem:[%s3587_s7 + $0x78] sm:$0xff] }
 0x2ba   :  { %v967_v41 = vpop.f32.mrf.mxu1  ;;  %v1672_v43 = vpop.f32.mrf.mxu0 }
 0x2bb   :  { %v3260_v44 = vmax.f32 %v966_v37, 0.0  ;;  %v968_v45 = vadd.f32 %v967_v41, %v891_v33  ;;  %v1673_v46 = vadd.f32 %v1672_v43, %v1671_v35  ;;  %v1186_v33 = vld [vmem:[%s3587_s7 + $0x478] sm:$0xff]  ;;  %v1185_v35 = vld [vmem:[%s3587_s7 + $0x470] sm:$0xff] }
 0x2bc   :  { %v1057_v37 = vld [vmem:[%s3587_s7 + $0x70] sm:$0xff]  ;;  %v1054_v41 = vld [vmem:[%s3587_s7 + $0x58] sm:$0xff] }
 0x2bd   :  { %1550 = vst [vmem:[%s3591_s12] sm:$0xff] %v3260_v44  ;;  %v1041_v47 = vmax.f32 %v968_v45, 0.0  ;;  %v1037_v48 = vadd.f32 %v1673_v46, %v895_v38  ;;  %v1182_v38 = vld [vmem:[%s3587_s7 + $0x458] sm:$0xff]  ;;  %v1181_v43 = vld [vmem:[%s3587_s7 + $0x450] sm:$0xff] }
 0x2be   :  { %v1053_v45 = vld [vmem:[%s3587_s7 + $0x50] sm:$0xff]  ;;  %v1178_v46 = vld [vmem:[%s3587_s7 + $0x438] sm:$0xff] }
 0x2bf   :  { %1551 = vst [vmem:[%s3591_s12 + $0x8] sm:$0xff] %v1041_v47  ;;  %v3272_v50 = vmax.f32 %v1037_v48, 0.0  ;;  %1321 = vmatprep.mubr.f32.mxu0 %v1041_v47  ;;  %v1177_v48 = vld [vmem:[%s3587_s7 + $0x430] sm:$0xff] }
 0x2c0   :  { %1322 = vmatmul.mubr.f32.vlgmr.msra.gmra.mxu0 %v3260_v44 }
 0x2c1   :  { %1552 = vst [vmem:[%s3591_s12 + $0x10] sm:$0xff] %v3272_v50  ;;  %1471 = vmatpush1.msra.mxu0 %v1233_v49  ;;  %1393 = vmatmul.mubr.f32.vlgmr.msra.gmra.mxu1 %v3272_v50  ;;  %v1049_v49 = vld [vmem:[%s3587_s7 + $0x30] sm:$0xff] }
 0x2c2   :  { %1400 = vmatpush1.msra.mxu1 %v1105_v51  ;;  %1472 = vmatprep.subr.mxu0 %v1230_v52  ;;  %v1174_v51 = vld [vmem:[%s3587_s7 + $0x418] sm:$0xff] }
 0x2c3   :  { %1401 = vmatprep.subr.mxu1 %v1102_v53  ;;  %1463 = vmatprep.mubr.f32.mxu1 %v1041_v47  ;;  %v1050_v47 = vld [vmem:[%s3587_s7 + $0x38] sm:$0xff]  ;;  %v1173_v53 = vld [vmem:[%s3587_s7 + $0x410] sm:$0xff] }
 0x2c4   :  { %1473 = vmatpush1.msra.mxu0 %v1229_v54  ;;  %1402 = vmatpush1.msra.mxu1 %v1101_v56  ;;  %v1046_v52 = vld [vmem:[%s3587_s7 + $0x18] sm:$0xff]  ;;  %v1045_v54 = vld [vmem:[%s3587_s7 + $0x10] sm:$0xff] }
 0x2c5   :  { %1474 = vmatprep.subr.mxu0 %v1226_v57  ;;  %1403 = vmatprep.subr.mxu1 %v1098_v58  ;;  %v1170_v56 = vld [vmem:[%s3587_s7 + $0x3f8] sm:$0xff]  ;;  %v1169_v57 = vld [vmem:[%s3587_s7 + $0x3f0] sm:$0xff] }
 0x2c6   :  { %1475 = vmatpush1.msra.mxu0 %v1225_v59  ;;  %1404 = vmatpush1.msra.mxu1 %v1097_v60  ;;  %v1166_v58 = vld [vmem:[%s3587_s7 + $0x3d8] sm:$0xff]  ;;  %v1165_v59 = vld [vmem:[%s3587_s7 + $0x3d0] sm:$0xff] }
 0x2c7   :  { %1476 = vmatprep.subr.mxu0 %v1222_v61  ;;  %1405 = vmatprep.subr.mxu1 %v1094_v62  ;;  %v1161_v60 = vld [vmem:[%s3587_s7 + $0x3b0] sm:$0xff]  ;;  %v1154_v62 = vld [vmem:[%s3587_s7 + $0x378] sm:$0xff] }
 0x2c8   :  { %1477 = vmatpush1.msra.mxu0 %v1221_v0  ;;  %1406 = vmatpush1.msra.mxu1 %v1093_v3  ;;  %v1157_v61 = vld [vmem:[%s3587_s7 + $0x390] sm:$0xff]  ;;  %v1150_v3 = vld [vmem:[%s3587_s7 + $0x358] sm:$0xff] }
 0x2c9   :  { %1478 = vmatprep.subr.mxu0 %v1218_v4  ;;  %1407 = vmatprep.subr.mxu1 %v1090_v6  ;;  %v1153_v0 = vld [vmem:[%s3587_s7 + $0x370] sm:$0xff]  ;;  %v1146_v6 = vld [vmem:[%s3587_s7 + $0x338] sm:$0xff] }
 0x2ca   :  { %1479 = vmatpush1.msra.mxu0 %v1217_v7  ;;  %1408 = vmatpush1.msra.mxu1 %v1089_v8  ;;  %v1149_v4 = vld [vmem:[%s3587_s7 + $0x350] sm:$0xff]  ;;  %v1142_v8 = vld [vmem:[%s3587_s7 + $0x318] sm:$0xff] }
 0x2cb   :  { %1480 = vmatprep.subr.mxu0 %v1214_v9  ;;  %1409 = vmatprep.subr.mxu1 %v1086_v10  ;;  %v1145_v7 = vld [vmem:[%s3587_s7 + $0x330] sm:$0xff]  ;;  %v1138_v10 = vld [vmem:[%s3587_s7 + $0x2f8] sm:$0xff] }
 0x2cc   :  { %1481 = vmatpush1.msra.mxu0 %v1213_v63  ;;  %1410 = vmatpush1.msra.mxu1 %v1085_v2  ;;  %v1141_v9 = vld [vmem:[%s3587_s7 + $0x310] sm:$0xff]  ;;  %v1134_v2 = vld [vmem:[%s3587_s7 + $0x2d8] sm:$0xff] }
 0x2cd   :  { %1482 = vmatprep.subr.mxu0 %v1210_v1  ;;  %1411 = vmatprep.subr.mxu1 %v1082_v5  ;;  %v1137_v63 = vld [vmem:[%s3587_s7 + $0x2f0] sm:$0xff]  ;;  %v1130_v5 = vld [vmem:[%s3587_s7 + $0x2b8] sm:$0xff] }
 0x2ce   :  { %1483 = vmatpush1.msra.mxu0 %v1209_v11  ;;  %1412 = vmatpush1.msra.mxu1 %v1081_v12  ;;  %v1133_v1 = vld [vmem:[%s3587_s7 + $0x2d0] sm:$0xff]  ;;  %v1126_v12 = vld [vmem:[%s3587_s7 + $0x298] sm:$0xff] }
 0x2cf   :  { %1484 = vmatprep.subr.mxu0 %v1206_v13  ;;  %1413 = vmatprep.subr.mxu1 %v1078_v14  ;;  %v1129_v11 = vld [vmem:[%s3587_s7 + $0x2b0] sm:$0xff]  ;;  %v1122_v14 = vld [vmem:[%s3587_s7 + $0x278] sm:$0xff] }
 0x2d0   :  { %1485 = vmatpush1.msra.mxu0 %v1205_v15  ;;  %1414 = vmatpush1.msra.mxu1 %v1077_v16  ;;  %v1125_v13 = vld [vmem:[%s3587_s7 + $0x290] sm:$0xff]  ;;  %v1118_v16 = vld [vmem:[%s3587_s7 + $0x258] sm:$0xff] }
 0x2d1   :  { %1486 = vmatprep.subr.mxu0 %v1202_v17  ;;  %1415 = vmatprep.subr.mxu1 %v1074_v18  ;;  %v1121_v15 = vld [vmem:[%s3587_s7 + $0x270] sm:$0xff]  ;;  %v1114_v18 = vld [vmem:[%s3587_s7 + $0x238] sm:$0xff] }
 0x2d2   :  { %1487 = vmatpush1.msra.mxu0 %v1201_v19  ;;  %1416 = vmatpush1.msra.mxu1 %v1073_v20  ;;  %v1117_v17 = vld [vmem:[%s3587_s7 + $0x250] sm:$0xff]  ;;  %v1110_v20 = vld [vmem:[%s3587_s7 + $0x218] sm:$0xff] }
 0x2d3   :  { %1488 = vmatprep.subr.mxu0 %v1198_v21  ;;  %1417 = vmatprep.subr.mxu1 %v1070_v22  ;;  %v1113_v19 = vld [vmem:[%s3587_s7 + $0x230] sm:$0xff]  ;;  %v1235_v22 = vld [vmem:[%s3592_s8] sm:$0xf] }
 0x2d4   :  { %1489 = vmatpush1.msra.mxu0 %v1197_v23  ;;  %1418 = vmatpush1.msra.mxu1 %v1069_v24  ;;  %v1109_v21 = vld [vmem:[%s3587_s7 + $0x210] sm:$0xff]  ;;  %v1240_v23 = vrot.slane %v1235_v22, %v2640_v40  ;;  %v1244_v24 = vrot.slane %v1235_v22, %v2646_v42  ;;  %v1251_v40 = vsub.s32 3, %v2637_v39  ;;  %v1248_v42 = vrot.slane %v1235_v22, %v2657_v55 }
 0x2d5   :  { %1490 = vmatprep.subr.mxu0 %v1194_v25  ;;  %1419 = vmatprep.subr.mxu1 %v1066_v26 }
 0x2d6   :  { %1491 = vmatpush1.msra.mxu0 %v1193_v27  ;;  %1420 = vmatpush1.msra.mxu1 %v1065_v28 }
 0x2d7   :  { %1492 = vmatprep.subr.mxu0 %v1190_v29  ;;  %1421 = vmatprep.subr.mxu1 %v1062_v30 }
 0x2d8   :  { %1493 = vmatpush1.msra.mxu0 %v1189_v31  ;;  %1422 = vmatpush1.msra.mxu1 %v1061_v32  ;;  %v1252_v32 = vrot.slane %v1235_v22, %v1251_v40 }
 0x2d9   :  { %1494 = vmatprep.subr.mxu0 %v1186_v33  ;;  %1423 = vmatprep.subr.mxu1 %v1058_v34 }
 0x2da   :  { %1495 = vmatpush1.msra.mxu0 %v1185_v35  ;;  %1424 = vmatpush1.msra.mxu1 %v1057_v37 }
 0x2db   :  { %1496 = vmatprep.subr.mxu0 %v1182_v38  ;;  %1425 = vmatprep.subr.mxu1 %v1054_v41 }
 0x2dc   :  { %1497 = vmatpush1.msra.mxu0 %v1181_v43  ;;  %1426 = vmatpush1.msra.mxu1 %v1053_v45 }
 0x2dd   :  { %1498 = vmatprep.subr.mxu0 %v1178_v46  ;;  %1427 = vmatprep.subr.mxu1 %v1050_v47 }
 0x2de   :  { %1499 = vmatpush1.msra.mxu0 %v1177_v48  ;;  %1428 = vmatpush1.msra.mxu1 %v1049_v49 }
 0x2df   :  { %1500 = vmatprep.subr.mxu0 %v1174_v51  ;;  %1429 = vmatprep.subr.mxu1 %v1046_v52 }
 0x2e0   :  { %1501 = vmatpush1.msra.mxu0 %v1173_v53  ;;  %1534 = vmatprep.mubr.f32.mxu0 %v1675_v36  ;;  %v1162_v36 = vld [vmem:[%s3587_s7 + $0x3b8] sm:$0xff] }
 0x2e1   :  { %1430 = vmatpush1.msra.mxu1 %v1045_v54  ;;  %1535 = vmatmul.mubr.f32.vlgmr.msra.gmra.mxu0 %v3272_v50  ;;  %v1158_v50 = vld [vmem:[%s3587_s7 + $0x398] sm:$0xff] }
 0x2e2   :  { %1431 = vmatprep.subr.mxu1 %v1170_v56 }
 0x2e3   :  { %1432 = vmatpush2.msra.mxu1 %v1169_v57 }
 0x2e4   :  { %1433 = vmatprep.subr.mxu1 %v1166_v58 }
 0x2e5   :  { %1434 = vmatpush2.msra.mxu1 %v1165_v59 }
 0x2e6   :  { %1435 = vmatprep.subr.mxu1 %v1162_v36 }
 0x2e7   :  { %1436 = vmatpush2.msra.mxu1 %v1161_v60 }
 0x2e8   :  { %1437 = vmatprep.subr.mxu1 %v1158_v50 }
 0x2e9   :  { %1438 = vmatpush2.msra.mxu1 %v1157_v61 }
 0x2ea   :  { %1439 = vmatprep.subr.mxu1 %v1154_v62 }
 0x2eb   :  { %1440 = vmatpush2.msra.mxu1 %v1153_v0 }
 0x2ec   :  { %1441 = vmatprep.subr.mxu1 %v1150_v3 }
 0x2ed   :  { %1442 = vmatpush2.msra.mxu1 %v1149_v4 }
 0x2ee   :  { %1443 = vmatprep.subr.mxu1 %v1146_v6 }
 0x2ef   :  { %1444 = vmatpush2.msra.mxu1 %v1145_v7 }
 0x2f0   :  { %1445 = vmatprep.subr.mxu1 %v1142_v8 }
 0x2f1   :  { %1446 = vmatpush2.msra.mxu1 %v1141_v9 }
 0x2f2   :  { %1447 = vmatprep.subr.mxu1 %v1138_v10 }
 0x2f3   :  { %1448 = vmatpush2.msra.mxu1 %v1137_v63 }
 0x2f4   :  { %1449 = vmatprep.subr.mxu1 %v1134_v2 }
 0x2f5   :  { %1450 = vmatpush2.msra.mxu1 %v1133_v1 }
 0x2f6   :  { %1451 = vmatprep.subr.mxu1 %v1130_v5 }
 0x2f7   :  { %1452 = vmatpush2.msra.mxu1 %v1129_v11 }
 0x2f8   :  { %1453 = vmatprep.subr.mxu1 %v1126_v12 }
 0x2f9   :  { %1454 = vmatpush2.msra.mxu1 %v1125_v13 }
 0x2fa   :  { %1455 = vmatprep.subr.mxu1 %v1122_v14 }
 0x2fb   :  { %1456 = vmatpush2.msra.mxu1 %v1121_v15 }
 0x2fc   :  { %1457 = vmatprep.subr.mxu1 %v1118_v16 }
 0x2fd   :  { %1458 = vmatpush2.msra.mxu1 %v1117_v17 }
 0x2fe   :  { %1459 = vmatprep.subr.mxu1 %v1114_v18 }
 0x2ff   :  { %1460 = vmatpush2.msra.mxu1 %v1113_v19 }
 0x300   :  { %1461 = vmatprep.subr.mxu1 %v1110_v20 }
 0x301   :  { %1462 = vmatpush2.msra.mxu1 %v1109_v21 }
 0x302   :  { %1464 = vmatmul.mubr.f32.vlgmr.msra.gmra.mxu1 %v3260_v44 }
 0x380   :  { %v1323_v25 = vpop.f32.mrf.mxu0 }
 0x381   :  { %v1324_v26 = vadd.f32 %v1323_v25, %v1240_v23  ;;  %v1394_v27 = vpop.f32.mrf.mxu1 }
 0x382   :  { %v1325_v28 = vpop.f32.mrf.mxu0 }
 0x383   :  { %v1395_v29 = vadd.f32 %v1394_v27, %v1324_v26  ;;  %v1326_v30 = vadd.f32 %v1325_v28, %v1244_v24  ;;  %v1396_v31 = vpop.f32.mrf.mxu1 }
 0x385   :  { %1541 = vst [vmem:[%s3593_s9] sm:$0xff] %v1395_v29  ;;  %v1397_v44 = vadd.f32 %v1396_v31, %v1326_v30 }
 0x387   :  { %1542 = vst [vmem:[%s3593_s9 + $0x8] sm:$0xff] %v1397_v44 }
 0x3a1   :  { %v1536_v33 = vpop.f32.mrf.mxu0 }
 0x3a3   :  { %v1538_v43 = vpop.f32.mrf.mxu0 }
 0x3c2   :  { %v1465_v34 = vpop.f32.mrf.mxu1 }
 0x3c3   :  { %v1466_v35 = vadd.f32 %v1465_v34, %v1248_v42 }
 0x3c4   :  { %v1467_v37 = vpop.f32.mrf.mxu1 }
 0x3c5   :  { %v1537_v38 = vadd.f32 %v1536_v33, %v1466_v35  ;;  %v1468_v41 = vadd.f32 %v1467_v37, %v1252_v32 }
 0x3c7   :  { %1543 = vst [vmem:[%s3593_s9 + $0x10] sm:$0xff] %v1537_v38  ;;  %v1539_v45 = vadd.f32 %v1538_v43, %v1468_v41 }
 0x3c9   :  { %1544 = vst [vmem:[%s3593_s9 + $0x18] sm:$0xff] %v1539_v45 }

// kernel: clc_dyn_forward.27
= control target key start
LH: loop header
LB: loop body
LE: loop exit
PB: predicated region body
PF: predicated region fallthrough
CT: control target
= control target key end

     0   :  { %s111_s0 = inlined_call_operand.vmem [shape: f32[8,128], index: 0, kind: input, shape index: {}]   ;;  %s112_s1 = inlined_call_operand.vmem [shape: f32[8,128], index: 1, kind: input, shape index: {}]   ;;  %s113_s2 = inlined_call_operand.vmem [shape: f32[8,128], index: 2, kind: input, shape index: {}]   ;;  %s114_s3 = inlined_call_operand.vmem [shape: f32[8,128], index: 3, kind: output, shape index: {0}]   ;;  %s115_s4 = inlined_call_operand.hbm [shape: f32[8,128], index: 4, kind: output, shape index: {1}]  }
   0x1   :  { %v17_v0 = vld [vmem:[%s112_s1] sm:$0xff] }
   0x2   :  { %v18_v1 = vld [vmem:[%s111_s0] sm:$0xff] }
   0x3   :  { %v21_v2 = vld [vmem:[%s113_s2] sm:$0xff]  ;;  %v19_v3 = vmul.f32 0.01, %v18_v1 }
   0x4   :  { %v22_v4 = vmul.f32 0.9, %v21_v2 }
   0x5   :  { %10 = vsyncpa [#allocation3], 0  ;;  %s70_s21 = smov [#allocation2]   ;;  %v20_v5 = vadd.f32 %v19_v3, %v17_v0 }
   0x6   :  { %s37_s22 = sshll.u32 %s70_s21, 4  ;;  %s38_s22 = int_to_ptr.vmem [resolvable:$true] %s37_s22 }
   0x7   :  { %v23_v6 = vadd.f32 %v22_v4, %v20_v5  ;;  %s48_s23 = scalar_lea.vmem %s38_s22, 128  ;;  %p53_p1 = scmp.lt.s32.totalorder %s38_s22, %s38_s22 }
   0x8   :  { %p49_p0 = scmp.ne.s32.totalorder %s38_s22, %s48_s23  ;;  %p54_p2 = scmp.lt.s32.totalorder %s48_s23, %s48_s23 }
   0x9   :  { %24 = vst [vmem:[#allocation2] sm:$0xff] %v23_v6  ;;  %v26_v7 = vmul.f32 0.015, %v23_v6 }
   0xa   :  { %p55_p3 = por %p54_p2, %p53_p1 }
   0xc   :  { %p56_p4 = pnand %p55_p3, %p49_p0 }
   0xe   :  { %59 = shalt.err (!%p56_p4)
}
   0xf   :  { %40 = dma.vmem_to_hbm [thread:$0]  %s38_s22, 128, %s115_s4, [#allocation3]   ;;  %v27_v8 = vsub.f32 %v18_v1, %v26_v7 }
  0x11   :  { %28 = vst [vmem:[%s114_s3] sm:$0xff] %v27_v8 }
  0x12   :  { %68 = dma.done.wait [#allocation3], 128  }
  0x13   :  { %69 = vsyncadd [#allocation3], 4294967168 }
  0x14   :  { %46 = vsyncpa [#allocation3], 1 }

// kernel: clc_dyn_forward.28
= control target key start
LH: loop header
LB: loop body
LE: loop exit
PB: predicated region body
PF: predicated region fallthrough
CT: control target
= control target key end

     0   :  { %s103_s0 = inlined_call_operand.vmem [shape: f32[16,128], index: 0, kind: input, shape index: {}]   ;;  %s104_s1 = inlined_call_operand.vmem [shape: f32[16,128], index: 1, kind: input, shape index: {}]   ;;  %s105_s2 = inlined_call_operand.vmem [shape: f32[16,128], index: 2, kind: input, shape index: {}]   ;;  %s106_s4 = inlined_call_operand.vmem [shape: f32[16,128], index: 4, kind: output, shape index: {1}]   ;;  %s107_s3 = inlined_call_operand.vmem [shape: f32[16,128], index: 3, kind: output, shape index: {0}]  }
   0x1   :  { %v16_v0 = vld [vmem:[%s104_s1] sm:$0xff]  ;;  %v17_v5 = vld [vmem:[%s104_s1 + $0x8] sm:$0xff] }
   0x2   :  { %v18_v1 = vld [vmem:[%s103_s0] sm:$0xff]  ;;  %v19_v6 = vld [vmem:[%s103_s0 + $0x8] sm:$0xff] }
   0x3   :  { %v24_v2 = vld [vmem:[%s105_s2] sm:$0xff]  ;;  %v20_v3 = vmul.f32 0.01, %v18_v1  ;;  %v21_v7 = vmul.f32 0.01, %v19_v6  ;;  %v25_v8 = vld [vmem:[%s105_s2 + $0x8] sm:$0xff] }
   0x4   :  { %v26_v4 = vmul.f32 0.9, %v24_v2  ;;  %v27_v10 = vmul.f32 0.9, %v25_v8 }
   0x5   :  { %v22_v9 = vadd.f32 %v20_v3, %v16_v0  ;;  %v23_v11 = vadd.f32 %v21_v7, %v17_v5 }
   0x7   :  { %v28_v12 = vadd.f32 %v26_v4, %v22_v9  ;;  %v29_v13 = vadd.f32 %v27_v10, %v23_v11 }
   0x9   :  { %30 = vst [vmem:[%s106_s4] sm:$0xff] %v28_v12  ;;  %v34_v14 = vmul.f32 0.015, %v28_v12  ;;  %31 = vst [vmem:[%s106_s4 + $0x8] sm:$0xff] %v29_v13  ;;  %v35_v15 = vmul.f32 0.015, %v29_v13 }
   0xb   :  { %v36_v16 = vsub.f32 %v18_v1, %v34_v14  ;;  %v37_v17 = vsub.f32 %v19_v6, %v35_v15 }
   0xd   :  { %38 = vst [vmem:[%s107_s3] sm:$0xff] %v36_v16  ;;  %39 = vst [vmem:[%s107_s3 + $0x8] sm:$0xff] %v37_v17 }

// kernel: clc_dyn_forward.29
= control target key start
LH: loop header
LB: loop body
LE: loop exit
PB: predicated region body
PF: predicated region fallthrough
CT: control target
= control target key end

     0   :  { %s141_s0 = inlined_call_operand.vmem [shape: f32[16,128], index: 0, kind: input, shape index: {}]   ;;  %s142_s1 = inlined_call_operand.vmem [shape: f32[16,128], index: 1, kind: input, shape index: {}]   ;;  %s143_s2 = inlined_call_operand.vmem [shape: f32[16,128], index: 2, kind: input, shape index: {}]   ;;  %s144_s3 = inlined_call_operand.vmem [shape: f32[16,128], index: 3, kind: output, shape index: {0}]   ;;  %s145_s4 = inlined_call_operand.hbm [shape: f32[16,128], index: 4, kind: output, shape index: {1}]  }
   0x1   :  { %v17_v0 = vld [vmem:[%s142_s1] sm:$0xff]  ;;  %v18_v5 = vld [vmem:[%s142_s1 + $0x8] sm:$0xff] }
   0x2   :  { %v19_v1 = vld [vmem:[%s141_s0] sm:$0xff]  ;;  %v20_v6 = vld [vmem:[%s141_s0 + $0x8] sm:$0xff] }
   0x3   :  { %v25_v2 = vld [vmem:[%s143_s2] sm:$0xff]  ;;  %v21_v3 = vmul.f32 0.01, %v19_v1  ;;  %v22_v7 = vmul.f32 0.01, %v20_v6  ;;  %v26_v8 = vld [vmem:[%s143_s2 + $0x8] sm:$0xff] }
   0x4   :  { %v27_v4 = vmul.f32 0.9, %v25_v2 }
   0x5   :  { %10 = vsyncpa [#allocation3], 0  ;;  %v23_v9 = vadd.f32 %v21_v3, %v17_v0  ;;  %v28_v10 = vmul.f32 0.9, %v26_v8  ;;  %s86_s27 = smov [#allocation2]   ;;  %v24_v11 = vadd.f32 %v22_v7, %v18_v5 }
   0x6   :  { %s48_s28 = sshll.u32 %s86_s27, 4  ;;  %s49_s28 = int_to_ptr.vmem [resolvable:$true] %s48_s28 }
   0x7   :  { %v29_v12 = vadd.f32 %v27_v4, %v23_v9  ;;  %v30_v13 = vadd.f32 %v28_v10, %v24_v11  ;;  %s64_s0 = scalar_lea.vmem %s49_s28, 256  ;;  %p69_p1 = scmp.lt.s32.totalorder %s49_s28, %s49_s28 }
   0x8   :  { %p65_p0 = scmp.ne.s32.totalorder %s49_s28, %s64_s0  ;;  %p70_p2 = scmp.lt.s32.totalorder %s64_s0, %s64_s0 }
   0x9   :  { %31 = vst [vmem:[#allocation2] sm:$0xff] %v29_v12  ;;  %v35_v14 = vmul.f32 0.015, %v29_v12  ;;  %32 = vst [vmem:[#allocation2 + $0x8] sm:$0xff] %v30_v13  ;;  %v36_v15 = vmul.f32 0.015, %v30_v13 }
   0xa   :  { %p71_p3 = por %p70_p2, %p69_p1 }
   0xb   :  { %v37_v16 = vsub.f32 %v19_v1, %v35_v14 }
   0xc   :  { %p72_p4 = pnand %p71_p3, %p65_p0 }
   0xe   :  { %75 = shalt.err (!%p72_p4)
}
   0xf   :  { %s87_s1 = smov 128   ;;  %s88_s2 = smov 8   ;;  %v38_v17 = vsub.f32 %v20_v6, %v36_v15  ;;  %39 = vst [vmem:[%s144_s3] sm:$0xff] %v37_v16 }
  0x10   :  { %54 = dma.vmem_to_hbm [thread:$0]  %s49_s28, 256, %s145_s4, [#allocation3], %s87_s1, %s87_s1, %s88_s2  }
  0x11   :  { %40 = vst [vmem:[%s144_s3 + $0x8] sm:$0xff] %v38_v17 }
  0x12   :  { %84 = dma.done.wait [#allocation3], 256  }
  0x13   :  { %85 = vsyncadd [#allocation3], 4294967040 }
  0x14   :  { %60 = vsyncpa [#allocation3], 1 }

// kernel: clc_dyn_forward.37
= control target key start
LH: loop header
LB: loop body
LE: loop exit
PB: predicated region body
PF: predicated region fallthrough
CT: control target
= control target key end

     0   :  { %s548_s1 = inlined_call_operand.vmem [shape: f32[512,128], index: 1, kind: input, shape index: {}]   ;;  %s549_s0 = inlined_call_operand.vmem [shape: f32[8,512], index: 0, kind: input, shape index: {}]   ;;  %s550_s2 = inlined_call_operand.vmem [shape: f32[1,128], index: 2, kind: input, shape index: {}]   ;;  %s551_s3 = inlined_call_operand.vmem [shape: f32[8,128], index: 3, kind: output, shape index: {}]  }
   0x1   :  { %v55_v0 = vld [vmem:[%s548_s1 + $0xf8] sm:$0xff]  ;;  %v54_v4 = vld [vmem:[%s548_s1 + $0xf0] sm:$0xff]  ;;  %v53_v8 = vld [vmem:[%s548_s1 + $0xe8] sm:$0xff] }
   0x2   :  { %v87_v1 = vld [vmem:[%s548_s1 + $0x1f8] sm:$0xff]  ;;  %248 = vmatprep.subr.mxu0 %v55_v0  ;;  %v86_v5 = vld [vmem:[%s548_s1 + $0x1f0] sm:$0xff]  ;;  %v85_v9 = vld [vmem:[%s548_s1 + $0x1e8] sm:$0xff] }
   0x3   :  { %v39_v2 = vld [vmem:[%s548_s1 + $0x78] sm:$0xff]  ;;  %283 = vmatprep.subr.mxu1 %v87_v1  ;;  %v38_v6 = vld [vmem:[%s548_s1 + $0x70] sm:$0xff]  ;;  %v37_v10 = vld [vmem:[%s548_s1 + $0x68] sm:$0xff] }
   0x4   :  { %v71_v3 = vld [vmem:[%s548_s1 + $0x178] sm:$0xff]  ;;  %249 = vmatpush3.msra.mxu0 %v39_v2  ;;  %v70_v7 = vld [vmem:[%s548_s1 + $0x170] sm:$0xff]  ;;  %v69_v11 = vld [vmem:[%s548_s1 + $0x168] sm:$0xff] }
   0x5   :  { %284 = vmatpush3.msra.mxu1 %v71_v3  ;;  %250 = vmatprep.subr.mxu0 %v54_v4  ;;  %v52_v12 = vld [vmem:[%s548_s1 + $0xe0] sm:$0xff]  ;;  %v51_v16 = vld [vmem:[%s548_s1 + $0xd8] sm:$0xff]  ;;  %v50_v20 = vld [vmem:[%s548_s1 + $0xd0] sm:$0xff] }
   0x6   :  { %285 = vmatprep.subr.mxu1 %v86_v5  ;;  %251 = vmatpush3.msra.mxu0 %v38_v6  ;;  %v84_v13 = vld [vmem:[%s548_s1 + $0x1e0] sm:$0xff]  ;;  %v83_v17 = vld [vmem:[%s548_s1 + $0x1d8] sm:$0xff]  ;;  %v82_v21 = vld [vmem:[%s548_s1 + $0x1d0] sm:$0xff] }
   0x7   :  { %286 = vmatpush3.msra.mxu1 %v70_v7  ;;  %252 = vmatprep.subr.mxu0 %v53_v8  ;;  %v36_v14 = vld [vmem:[%s548_s1 + $0x60] sm:$0xff]  ;;  %v35_v18 = vld [vmem:[%s548_s1 + $0x58] sm:$0xff]  ;;  %v34_v22 = vld [vmem:[%s548_s1 + $0x50] sm:$0xff] }
   0x8   :  { %287 = vmatprep.subr.mxu1 %v85_v9  ;;  %v68_v15 = vld [vmem:[%s548_s1 + $0x160] sm:$0xff]  ;;  %253 = vmatpush3.msra.mxu0 %v37_v10  ;;  %v67_v19 = vld [vmem:[%s548_s1 + $0x158] sm:$0xff]  ;;  %v66_v23 = vld [vmem:[%s548_s1 + $0x150] sm:$0xff] }
   0x9   :  { %288 = vmatpush3.msra.mxu1 %v69_v11  ;;  %254 = vmatprep.subr.mxu0 %v52_v12  ;;  %v49_v24 = vld [vmem:[%s548_s1 + $0xc8] sm:$0xff]  ;;  %v48_v28 = vld [vmem:[%s548_s1 + $0xc0] sm:$0xff]  ;;  %v47_v32 = vld [vmem:[%s548_s1 + $0xb8] sm:$0xff] }
   0xa   :  { %289 = vmatprep.subr.mxu1 %v84_v13  ;;  %255 = vmatpush3.msra.mxu0 %v36_v14  ;;  %v81_v25 = vld [vmem:[%s548_s1 + $0x1c8] sm:$0xff]  ;;  %v80_v29 = vld [vmem:[%s548_s1 + $0x1c0] sm:$0xff]  ;;  %v79_v33 = vld [vmem:[%s548_s1 + $0x1b8] sm:$0xff] }
   0xb   :  { %290 = vmatpush3.msra.mxu1 %v68_v15  ;;  %256 = vmatprep.subr.mxu0 %v51_v16  ;;  %v33_v26 = vld [vmem:[%s548_s1 + $0x48] sm:$0xff]  ;;  %v32_v30 = vld [vmem:[%s548_s1 + $0x40] sm:$0xff]  ;;  %v31_v34 = vld [vmem:[%s548_s1 + $0x38] sm:$0xff] }
   0xc   :  { %291 = vmatprep.subr.mxu1 %v83_v17  ;;  %257 = vmatpush3.msra.mxu0 %v35_v18  ;;  %v65_v27 = vld [vmem:[%s548_s1 + $0x148] sm:$0xff]  ;;  %v64_v31 = vld [vmem:[%s548_s1 + $0x140] sm:$0xff]  ;;  %v63_v35 = vld [vmem:[%s548_s1 + $0x138] sm:$0xff] }
   0xd   :  { %292 = vmatpush3.msra.mxu1 %v67_v19  ;;  %258 = vmatprep.subr.mxu0 %v50_v20  ;;  %v46_v36 = vld [vmem:[%s548_s1 + $0xb0] sm:$0xff]  ;;  %v45_v40 = vld [vmem:[%s548_s1 + $0xa8] sm:$0xff]  ;;  %v44_v44 = vld [vmem:[%s548_s1 + $0xa0] sm:$0xff] }
   0xe   :  { %293 = vmatprep.subr.mxu1 %v82_v21  ;;  %259 = vmatpush3.msra.mxu0 %v34_v22  ;;  %v78_v37 = vld [vmem:[%s548_s1 + $0x1b0] sm:$0xff]  ;;  %v77_v41 = vld [vmem:[%s548_s1 + $0x1a8] sm:$0xff]  ;;  %v76_v45 = vld [vmem:[%s548_s1 + $0x1a0] sm:$0xff] }
   0xf   :  { %294 = vmatpush3.msra.mxu1 %v66_v23  ;;  %260 = vmatprep.subr.mxu0 %v49_v24  ;;  %v30_v38 = vld [vmem:[%s548_s1 + $0x30] sm:$0xff]  ;;  %v29_v42 = vld [vmem:[%s548_s1 + $0x28] sm:$0xff]  ;;  %v28_v46 = vld [vmem:[%s548_s1 + $0x20] sm:$0xff] }
  0x10   :  { %295 = vmatprep.subr.mxu1 %v81_v25  ;;  %261 = vmatpush3.msra.mxu0 %v33_v26  ;;  %v62_v39 = vld [vmem:[%s548_s1 + $0x130] sm:$0xff]  ;;  %v61_v43 = vld [vmem:[%s548_s1 + $0x128] sm:$0xff]  ;;  %v60_v47 = vld [vmem:[%s548_s1 + $0x120] sm:$0xff] }
  0x11   :  { %296 = vmatpush3.msra.mxu1 %v65_v27  ;;  %262 = vmatprep.subr.mxu0 %v48_v28  ;;  %v43_v48 = vld [vmem:[%s548_s1 + $0x98] sm:$0xff]  ;;  %v42_v52 = vld [vmem:[%s548_s1 + $0x90] sm:$0xff]  ;;  %v41_v56 = vld [vmem:[%s548_s1 + $0x88] sm:$0xff] }
  0x12   :  { %297 = vmatprep.subr.mxu1 %v80_v29  ;;  %263 = vmatpush3.msra.mxu0 %v32_v30  ;;  %v75_v49 = vld [vmem:[%s548_s1 + $0x198] sm:$0xff]  ;;  %v74_v53 = vld [vmem:[%s548_s1 + $0x190] sm:$0xff]  ;;  %v73_v57 = vld [vmem:[%s548_s1 + $0x188] sm:$0xff] }
  0x13   :  { %298 = vmatpush3.msra.mxu1 %v64_v31  ;;  %264 = vmatprep.subr.mxu0 %v47_v32  ;;  %v27_v50 = vld [vmem:[%s548_s1 + $0x18] sm:$0xff]  ;;  %v26_v54 = vld [vmem:[%s548_s1 + $0x10] sm:$0xff]  ;;  %v25_v58 = vld [vmem:[%s548_s1 + $0x8] sm:$0xff] }
  0x14   :  { %299 = vmatprep.subr.mxu1 %v79_v33  ;;  %265 = vmatpush3.msra.mxu0 %v31_v34  ;;  %v59_v51 = vld [vmem:[%s548_s1 + $0x118] sm:$0xff]  ;;  %v58_v55 = vld [vmem:[%s548_s1 + $0x110] sm:$0xff]  ;;  %v57_v59 = vld [vmem:[%s548_s1 + $0x108] sm:$0xff] }
  0x15   :  { %300 = vmatpush3.msra.mxu1 %v63_v35  ;;  %266 = vmatprep.subr.mxu0 %v46_v36  ;;  %v40_v60 = vld [vmem:[%s548_s1 + $0x80] sm:$0xff]  ;;  %v21_v63 = vld [vmem:[%s549_s0 + $0x8] sm:$0xff]  ;;  %v23_v1 = vld [vmem:[%s549_s0 + $0x18] sm:$0xff] }
  0x16   :  { %301 = vmatprep.subr.mxu1 %v78_v37  ;;  %267 = vmatpush3.msra.mxu0 %v30_v38  ;;  %v72_v61 = vld [vmem:[%s548_s1 + $0x180] sm:$0xff]  ;;  %v22_v3 = vld [vmem:[%s549_s0 + $0x10] sm:$0xff] }
  0x17   :  { %302 = vmatpush3.msra.mxu1 %v62_v39  ;;  %268 = vmatprep.subr.mxu0 %v45_v40  ;;  %v24_v62 = vld [vmem:[%s548_s1] sm:$0xff] }
  0x18   :  { %303 = vmatprep.subr.mxu1 %v77_v41  ;;  %269 = vmatpush3.msra.mxu0 %v29_v42  ;;  %v56_v0 = vld [vmem:[%s548_s1 + $0x100] sm:$0xff] }
  0x19   :  { %304 = vmatpush3.msra.mxu1 %v61_v43  ;;  %270 = vmatprep.subr.mxu0 %v44_v44  ;;  %v20_v2 = vld [vmem:[%s549_s0] sm:$0xff] }
  0x1a   :  { %305 = vmatprep.subr.mxu1 %v76_v45  ;;  %271 = vmatpush3.msra.mxu0 %v28_v46  ;;  %v247_v10 = vld [vmem:[%s550_s2] ss:$0 sm:$0xff] }
  0x1b   :  { %306 = vmatpush3.msra.mxu1 %v60_v47  ;;  %272 = vmatprep.subr.mxu0 %v43_v48 }
  0x1c   :  { %307 = vmatprep.subr.mxu1 %v75_v49  ;;  %273 = vmatpush3.msra.mxu0 %v27_v50 }
  0x1d   :  { %308 = vmatpush3.msra.mxu1 %v59_v51  ;;  %274 = vmatprep.subr.mxu0 %v42_v52 }
  0x1e   :  { %309 = vmatprep.subr.mxu1 %v74_v53  ;;  %275 = vmatpush3.msra.mxu0 %v26_v54 }
  0x1f   :  { %310 = vmatpush3.msra.mxu1 %v58_v55  ;;  %276 = vmatprep.subr.mxu0 %v41_v56 }
  0x20   :  { %311 = vmatprep.subr.mxu1 %v73_v57  ;;  %277 = vmatpush3.msra.mxu0 %v25_v58 }
  0x21   :  { %312 = vmatpush3.msra.mxu1 %v57_v59  ;;  %278 = vmatprep.subr.mxu0 %v40_v60 }
  0x22   :  { %313 = vmatprep.subr.mxu1 %v72_v61  ;;  %279 = vmatpush3.msra.mxu0 %v24_v62 }
  0x23   :  { %152 = vmatprep.mubr.f32.mxu0 %v21_v63  ;;  %314 = vmatpush3.msra.mxu1 %v56_v0 }
  0x24   :  { %222 = vmatprep.mubr.f32.mxu1 %v23_v1  ;;  %153 = vmatmul.mubr.f32.vlgmr.msra.gmra.mxu0 %v20_v2 }
  0x25   :  { %223 = vmatmul.mubr.f32.vlgmr.msra.gmra.mxu1 %v22_v3 }
  0xe4   :  { %v280_v4 = vpop.f32.mrf.mxu0 }
  0xe5   :  { %v315_v5 = vpop.f32.mrf.mxu1 }
  0xe6   :  { %v281_v6 = vpop.f32.mrf.mxu0 }
  0xe7   :  { %v316_v7 = vpop.f32.mrf.mxu1  ;;  %v282_v8 = vadd.f32 %v281_v6, %v280_v4 }
  0xe8   :  { %v317_v9 = vadd.f32 %v316_v7, %v315_v5 }
  0xea   :  { %v225_v11 = vadd.f32 %v317_v9, %v282_v8 }
  0xec   :  { %v241_v12 = vadd.f32 %v247_v10, %v225_v11 }
  0xee   :  { %242 = vst [vmem:[%s551_s3] sm:$0xff] %v241_v12 }

</bundles_post_ra>
